<compile_context>
chip_gen: v7x
topology: tpu7x:2x2x1
jax: 0.10.0
libtpu: 0.0.40
codegen_flags: <defaults>
</compile_context>

<pallas_src>
import functools

import jax
import jax.numpy as jnp
from jax import lax
from jax.experimental import pallas as pl
from jax.experimental.pallas import tpu as pltpu

_VMEM_LIMIT = 32 * 1024 * 1024  # 32 MiB scoped VMEM: fits 4 MiB tiles, OK on v5e/v6e/v7x


# ----------------------------------------------------------------------------
# Kernel 1: per-row mean over the lane (S) axis with an f32 accumulator.
# ----------------------------------------------------------------------------
def _row_mean_kernel(x_ref, o_ref, acc_ref, *, s_total, ts):
    s = pl.program_id(1)

    @pl.when(s == 0)
    def _():
        acc_ref[...] = jnp.zeros_like(acc_ref)

    x = x_ref[...].astype(jnp.float32)
    if s_total % ts != 0:  # trace-time check: only mask when a ragged tail exists
        col = lax.broadcasted_iota(jnp.int32, x.shape, 1) + s * ts
        x = jnp.where(col < s_total, x, 0.0)
    acc_ref[...] += jnp.sum(x, axis=-1, keepdims=True)

    @pl.when(s == pl.num_programs(1) - 1)
    def _():
        o_ref[...] = (acc_ref[...] * (1.0 / s_total)).astype(o_ref.dtype)


# ----------------------------------------------------------------------------
# Kernel 2: gates = sigmoid(avg @ W.T + b)  (tiny; whole arrays as one block).
# W stays in torch (out, in) layout; contraction on both dim-1 == avg @ W.T.
# ----------------------------------------------------------------------------
def _fc_sigmoid_kernel(avg_ref, w_ref, b_ref, g_ref):
    z = lax.dot_general(
        avg_ref[...], w_ref[...],
        dimension_numbers=(((1,), (1,)), ((), ())),
        preferred_element_type=jnp.float32,
    )
    z = z + b_ref[...]
    g_ref[...] = (1.0 / (1.0 + jnp.exp(-z))).astype(g_ref.dtype)


# ----------------------------------------------------------------------------
# Kernel 3: out[r, s] = gate[r] * x[r, s]   (lane-dense broadcast multiply)
# ----------------------------------------------------------------------------
def _scale_rows_kernel(x_ref, g_ref, o_ref):
    o_ref[...] = (x_ref[...].astype(jnp.float32) * g_ref[...]).astype(o_ref.dtype)


# ----------------------------------------------------------------------------
# Forward pass wrapper (matches torch SelfGating.forward semantics)
# ----------------------------------------------------------------------------
def self_gating_forward(x, fc_weight, fc_bias, *, tr_max=256, ts_max=4096):
    """x: (N, C, T, H, W). fc_weight: (C, C) torch layout (out, in). fc_bias: (C,)."""
    N, C, T, H, W = x.shape
    S = T * H * W
    R = N * C

    # Block sizes: full extent when small, otherwise (8,128)-aligned big tiles.
    tr = R if R <= tr_max else tr_max          # tr_max is a multiple of 8
    ts = S if S <= ts_max else ts_max          # ts_max is a multiple of 128
    grid = (pl.cdiv(R, tr), pl.cdiv(S, ts))

    x2d = x.reshape(R, S)                      # free view: no transpose, no HBM copy

    # --- 1) spatiotemporal mean per (n, c) ----------------------------------
    means = pl.pallas_call(
        functools.partial(_row_mean_kernel, s_total=S, ts=ts),
        out_shape=jax.ShapeDtypeStruct((R, 1), jnp.float32),
        grid_spec=pltpu.PrefetchScalarGridSpec(
            num_scalar_prefetch=0,
            grid=grid,
            in_specs=[pl.BlockSpec((tr, ts), lambda r, s: (r, s))],
            out_specs=pl.BlockSpec((tr, 1), lambda r, s: (r, 0)),
            scratch_shapes=[pltpu.VMEM((tr, 1), jnp.float32)],
        ),
        compiler_params=pltpu.CompilerParams(
            dimension_semantics=("parallel", "arbitrary"),
            vmem_limit_bytes=_VMEM_LIMIT),
    )(x2d)

    # --- 2) gates = sigmoid(Linear(avg)) ------------------------------------
    avg = means.reshape(N, C)                  # free view (row-major, c minor)
    n_pad = (-N) % 8                           # defensive sublane pad for the tiny matmul
    if n_pad:
        avg = jnp.pad(avg, ((0, n_pad), (0, 0)))
    w = jnp.asarray(fc_weight, jnp.float32)    # (out, in): contracted in-kernel, no transpose
    b_row = jnp.asarray(fc_bias, jnp.float32).reshape(1, C)
    gates = pl.pallas_call(
        _fc_sigmoid_kernel,
        out_shape=jax.ShapeDtypeStruct((N + n_pad, C), jnp.float32),
    )(avg, w, b_row)
    if n_pad:
        gates = gates[:N]

    # --- 3) out = gate[n, c] * x --------------------------------------------
    gates_col = gates.reshape(R, 1)            # same (n-major, c-minor) row order as x2d
    out2d = pl.pallas_call(
        _scale_rows_kernel,
        out_shape=jax.ShapeDtypeStruct((R, S), x.dtype),
        grid_spec=pltpu.PrefetchScalarGridSpec(
            num_scalar_prefetch=0,
            grid=grid,
            in_specs=[pl.BlockSpec((tr, ts), lambda r, s: (r, s)),
                      pl.BlockSpec((tr, 1), lambda r, s: (r, 0))],
            out_specs=pl.BlockSpec((tr, ts), lambda r, s: (r, s)),
        ),
        compiler_params=pltpu.CompilerParams(
            dimension_semantics=("parallel", "parallel"),
            vmem_limit_bytes=_VMEM_LIMIT),
    )(x2d, gates_col)

    return out2d.reshape(N, C, T, H, W)


# ----------------------------------------------------------------------------
if __name__ == "__main__":
    key = jax.random.PRNGKey(0)
    kx, kw, kb = jax.random.split(key, 3)

    # input_dim = C = 64; S = T*H*W = 8192 -> two 4096-wide lane tiles (exercises
    # the accumulating reduction path); R = N*C = 128 rows.
    N, C, T, H, W = 2, 64, 8, 16, 64
    x = jax.random.normal(kx, (N, C, T, H, W), jnp.float32)
    fc_w = 0.05 * jax.random.normal(kw, (C, C), jnp.float32)   # torch nn.Linear weight (out, in)
    fc_b = 0.10 * jax.random.normal(kb, (C,), jnp.float32)     # torch nn.Linear bias

    fwd = jax.jit(self_gating_forward)
    out = jax.block_until_ready(fwd(x, fc_w, fc_b))

    # Pure-JAX reference (same math as the PyTorch module).
    avg_ref = jnp.mean(x, axis=(2, 3, 4))
    gate_ref = jax.nn.sigmoid(avg_ref @ fc_w.T + fc_b)
    ref = gate_ref[:, :, None, None, None] * x

    assert out.shape == x.shape, out.shape
    assert bool(jnp.all(jnp.isfinite(out)))
    # Tolerance covers MXU default-precision (bf16-pass) differences in the tiny FC.
    assert bool(jnp.allclose(out, ref, rtol=5e-3, atol=5e-3)), \
        float(jnp.max(jnp.abs(out - ref)))

    print("KERNEL_OK")
</pallas_src>

<mosaic_0001>
module attributes {stable_mosaic.version = 11 : i64} {
  func.func @_row_mean_kernel(%arg0: i32, %arg1: i32, %arg2: memref<128x4096xf32, #tpu.memory_space<vmem>>, %arg3: memref<128x1xf32, #tpu.memory_space<vmem>>, %arg4: memref<128x1xf32, #tpu.memory_space<vmem>>) attributes {dimension_semantics = [#tpu.dimension_semantics<parallel>, #tpu.dimension_semantics<arbitrary>], iteration_bounds = array<i64: 1, 2>, scalar_prefetch = 0 : i64, scratch_operands = 1 : i64, tpu.core_type = #tpu.core_type<tc>, window_params = [{transform_indices = @transform_0, window_bounds = array<i64: 128, 4096>}, {transform_indices = @transform_1, window_bounds = array<i64: 128, 1>}]} {
    %c0_i32 = arith.constant 0 : i32
    %0 = arith.cmpi eq, %arg1, %c0_i32 : i32
    %1 = arith.extui %0 : i1 to i32
    %c0_i32_0 = arith.constant 0 : i32
    %2 = arith.cmpi ne, %1, %c0_i32_0 : i32
    scf.if %2 {
      %cst_7 = arith.constant 0.000000e+00 : f32
      %12 = vector.broadcast %cst_7 : f32 to vector<128x1xf32>
      %c0_8 = arith.constant 0 : index
      %c0_9 = arith.constant 0 : index
      %13 = vector.load %arg4[%c0_8, %c0_9] : memref<128x1xf32, #tpu.memory_space<vmem>>, vector<128x1xf32>
      tpu.vector_store %arg4[%c0_8, %c0_9], %12 {strides = array<i32>} : memref<128x1xf32, #tpu.memory_space<vmem>>, vector<128x1xf32>,
    } else {
    }
    %c0 = arith.constant 0 : index
    %c0_1 = arith.constant 0 : index
    %3 = vector.load %arg2[%c0, %c0_1] : memref<128x4096xf32, #tpu.memory_space<vmem>>, vector<128x4096xf32>
    %c0_2 = arith.constant 0 : index
    %c0_3 = arith.constant 0 : index
    %4 = vector.load %arg4[%c0_2, %c0_3] : memref<128x1xf32, #tpu.memory_space<vmem>>, vector<128x1xf32>
    %cst = arith.constant dense<0.000000e+00> : vector<128xf32>
    %5 = vector.multi_reduction <add>, %3, %cst [1] : vector<128x4096xf32> to vector<128xf32>
    %6 = vector.shape_cast %5 : vector<128xf32> to vector<128x1xf32>
    %7 = arith.addf %4, %6 : vector<128x1xf32>
    %c0_4 = arith.constant 0 : index
    %c0_5 = arith.constant 0 : index
    %8 = vector.load %arg4[%c0_4, %c0_5] : memref<128x1xf32, #tpu.memory_space<vmem>>, vector<128x1xf32>
    tpu.vector_store %arg4[%c0_4, %c0_5], %7 {strides = array<i32>} : memref<128x1xf32, #tpu.memory_space<vmem>>, vector<128x1xf32>,
    %c1_i32 = arith.constant 1 : i32
    %9 = arith.cmpi eq, %arg1, %c1_i32 : i32
    %10 = arith.extui %9 : i1 to i32
    %c0_i32_6 = arith.constant 0 : i32
    %11 = arith.cmpi ne, %10, %c0_i32_6 : i32
    scf.if %11 {
      %c0_7 = arith.constant 0 : index
      %c0_8 = arith.constant 0 : index
      %12 = vector.load %arg4[%c0_7, %c0_8] : memref<128x1xf32, #tpu.memory_space<vmem>>, vector<128x1xf32>
      %cst_9 = arith.constant 1.22070313E-4 : f32
      %13 = vector.broadcast %cst_9 : f32 to vector<128x1xf32>
      %14 = arith.mulf %12, %13 : vector<128x1xf32>
      %c0_10 = arith.constant 0 : index
      %c0_11 = arith.constant 0 : index
      %15 = vector.load %arg3[%c0_10, %c0_11] : memref<128x1xf32, #tpu.memory_space<vmem>>, vector<128x1xf32>
      tpu.vector_store %arg3[%c0_10, %c0_11], %14 {strides = array<i32>} : memref<128x1xf32, #tpu.memory_space<vmem>>, vector<128x1xf32>,
    } else {
    }
    return
  }
  func.func @transform_0(%arg0: i32, %arg1: i32) -> (i32, i32) {
    %c0_i32 = arith.constant 0 : i32
    return %arg0, %arg1 : i32, i32
  }
  func.func @transform_1(%arg0: i32, %arg1: i32) -> (i32, i32) {
    %c0_i32 = arith.constant 0 : i32
    %c0_i32_0 = arith.constant 0 : i32
    return %arg0, %c0_i32 : i32, i32
  }
}

module attributes {stable_mosaic.version = 11 : i64} {
  func.func @_fc_sigmoid_kernel(%arg0: memref<8x64xf32, #tpu.memory_space<vmem>>, %arg1: memref<64x64xf32, #tpu.memory_space<vmem>>, %arg2: memref<1x64xf32, #tpu.memory_space<vmem>>, %arg3: memref<8x64xf32, #tpu.memory_space<vmem>>) attributes {dimension_semantics = [], scalar_prefetch = 0 : i64, scratch_operands = 0 : i64, tpu.core_type = #tpu.core_type<tc>} {
    %c0 = arith.constant 0 : index
    %c0_0 = arith.constant 0 : index
    %0 = vector.load %arg0[%c0, %c0_0] : memref<8x64xf32, #tpu.memory_space<vmem>>, vector<8x64xf32>
    %c0_1 = arith.constant 0 : index
    %c0_2 = arith.constant 0 : index
    %1 = vector.load %arg1[%c0_1, %c0_2] : memref<64x64xf32, #tpu.memory_space<vmem>>, vector<64x64xf32>
    %cst = arith.constant dense<0.000000e+00> : vector<8x64xf32>
    %2 = tpu.matmul %0, %1, %cst {dimension_numbers = #tpu.dot_dimension_numbers<[1], [1], [0], [0], [0, 0, 1, 0], [], []>} : vector<8x64xf32>, vector<64x64xf32>, vector<8x64xf32> -> vector<8x64xf32>
    %c0_3 = arith.constant 0 : index
    %c0_4 = arith.constant 0 : index
    %3 = vector.load %arg2[%c0_3, %c0_4] : memref<1x64xf32, #tpu.memory_space<vmem>>, vector<1x64xf32>
    %4 = vector.broadcast %3 : vector<1x64xf32> to vector<8x64xf32>
    %5 = arith.addf %2, %4 : vector<8x64xf32>
    %cst_5 = arith.constant 0.000000e+00 : f32
    %6 = vector.broadcast %cst_5 : f32 to vector<8x64xf32>
    %7 = arith.subf %6, %5 : vector<8x64xf32>
    %8 = math.exp %7 : vector<8x64xf32>
    %cst_6 = arith.constant 1.000000e+00 : f32
    %9 = vector.broadcast %cst_6 : f32 to vector<8x64xf32>
    %10 = arith.addf %9, %8 : vector<8x64xf32>
    %cst_7 = arith.constant 1.000000e+00 : f32
    %11 = vector.broadcast %cst_7 : f32 to vector<8x64xf32>
    %12 = arith.divf %11, %10 : vector<8x64xf32>
    %c0_8 = arith.constant 0 : index
    %c0_9 = arith.constant 0 : index
    %13 = vector.load %arg3[%c0_8, %c0_9] : memref<8x64xf32, #tpu.memory_space<vmem>>, vector<8x64xf32>
    tpu.vector_store %arg3[%c0_8, %c0_9], %12 {strides = array<i32>} : memref<8x64xf32, #tpu.memory_space<vmem>>, vector<8x64xf32>,
    return
  }
}

module attributes {stable_mosaic.version = 11 : i64} {
  func.func @_scale_rows_kernel(%arg0: i32, %arg1: i32, %arg2: memref<128x4096xf32, #tpu.memory_space<vmem>>, %arg3: memref<128x1xf32, #tpu.memory_space<vmem>>, %arg4: memref<128x4096xf32, #tpu.memory_space<vmem>>) attributes {dimension_semantics = [#tpu.dimension_semantics<parallel>, #tpu.dimension_semantics<parallel>], iteration_bounds = array<i64: 1, 2>, scalar_prefetch = 0 : i64, scratch_operands = 0 : i64, tpu.core_type = #tpu.core_type<tc>, window_params = [{transform_indices = @transform_0, window_bounds = array<i64: 128, 4096>}, {transform_indices = @transform_1, window_bounds = array<i64: 128, 1>}, {transform_indices = @transform_2, window_bounds = array<i64: 128, 4096>}]} {
    %c0 = arith.constant 0 : index
    %c0_0 = arith.constant 0 : index
    %0 = vector.load %arg2[%c0, %c0_0] : memref<128x4096xf32, #tpu.memory_space<vmem>>, vector<128x4096xf32>
    %c0_1 = arith.constant 0 : index
    %c0_2 = arith.constant 0 : index
    %1 = vector.load %arg3[%c0_1, %c0_2] : memref<128x1xf32, #tpu.memory_space<vmem>>, vector<128x1xf32>
    %2 = vector.broadcast %1 : vector<128x1xf32> to vector<128x4096xf32>
    %3 = arith.mulf %0, %2 : vector<128x4096xf32>
    %c0_3 = arith.constant 0 : index
    %c0_4 = arith.constant 0 : index
    %4 = vector.load %arg4[%c0_3, %c0_4] : memref<128x4096xf32, #tpu.memory_space<vmem>>, vector<128x4096xf32>
    tpu.vector_store %arg4[%c0_3, %c0_4], %3 {strides = array<i32>} : memref<128x4096xf32, #tpu.memory_space<vmem>>, vector<128x4096xf32>,
    return
  }
  func.func @transform_0(%arg0: i32, %arg1: i32) -> (i32, i32) {
    %c0_i32 = arith.constant 0 : i32
    return %arg0, %arg1 : i32, i32
  }
  func.func @transform_1(%arg0: i32, %arg1: i32) -> (i32, i32) {
    %c0_i32 = arith.constant 0 : i32
    %c0_i32_0 = arith.constant 0 : i32
    return %arg0, %c0_i32 : i32, i32
  }
  func.func @transform_2(%arg0: i32, %arg1: i32) -> (i32, i32) {
    %c0_i32 = arith.constant 0 : i32
    return %arg0, %arg1 : i32, i32
  }
}

</mosaic_0001>

<bundles_post_ra>
// kernel: self_gating_forward.4
= control target key start
LH: loop header
LB: loop body
LE: loop exit
PB: predicated region body
PF: predicated region fallthrough
CT: control target
= control target key end

     0   :  { %vm30_vm0 = vcmask 523264   ;;  %v200_v0 = vmov 0.0|0.0   ;;  %vm201_vm2 = vmmov 0   ;;  %v202_v4 = vmov 0.0   ;;  %s272_s1 = inlined_call_operand.vmem [shape: f32[64,64], index: 1, kind: input, shape index: {}]   ;;  %s273_s0 = inlined_call_operand.vmem [shape: f32[8,64], index: 0, kind: input, shape index: {}]   ;;  %s274_s2 = inlined_call_operand.vmem [shape: f32[1,64], index: 2, kind: input, shape index: {}]   ;;  %s275_s3 = inlined_call_operand.vmem [shape: f32[8,64], index: 3, kind: output, shape index: {}]  }
   0x1   :  { %177 = vmatprep.subr.bf16.mxu0 %v200_v0  ;;  %v15_v1 = vld [vmem:[%s272_s1] sm:$0xff]  ;;  %v16_v2 = vld [vmem:[%s272_s1 + $0x8] sm:$0xff]  ;;  %vm231_vm1 = vmpackc.low %vm30_vm0, %vm30_vm0  ;;  %174 = vmatprep.mubr.msk.f32.mxu0 %vm201_vm2, %v202_v4 }
   0x2   :  { %v178_v5 = vpack.c.bf16 %v16_v2, %v15_v1  ;;  %v17_v6 = vld [vmem:[%s272_s1 + $0x10] sm:$0xff]  ;;  %v18_v7 = vld [vmem:[%s272_s1 + $0x18] sm:$0xff]  ;;  %v19_v9 = vld [vmem:[%s272_s1 + $0x20] sm:$0xff] }
   0x3   :  { %v182_v8 = vpack.c.bf16 %v18_v7, %v17_v6  ;;  %v20_v10 = vld [vmem:[%s272_s1 + $0x28] sm:$0xff]  ;;  %v21_v12 = vld [vmem:[%s272_s1 + $0x30] sm:$0xff]  ;;  %v22_v13 = vld [vmem:[%s272_s1 + $0x38] sm:$0xff] }
   0x4   :  { %180 = vmatpush3.bf16.xpose.msk.msra.mxu0 %vm231_vm1, %v178_v5  ;;  %v186_v11 = vpack.c.bf16 %v20_v10, %v19_v9  ;;  %v190_v14 = vpack.c.bf16 %v22_v13, %v21_v12  ;;  %v14_v15 = vld [vmem:[%s273_s0] sm:$0xff] }
   0x5   :  { %181 = vmatprep.subr.bf16.mxu0 %v200_v0  ;;  %v139_v16 = vld [vmem:[%s274_s2] ss:$0 sm:$0xff] }
   0xc   :  { %184 = vmatpush3.bf16.xpose.msk.msra.mxu0 %vm231_vm1, %v182_v8 }
   0xd   :  { %185 = vmatprep.subr.bf16.mxu0 %v200_v0 }
  0x14   :  { %188 = vmatpush3.bf16.xpose.msk.msra.mxu0 %vm231_vm1, %v186_v11 }
  0x15   :  { %189 = vmatprep.subr.bf16.mxu0 %v200_v0 }
  0x1c   :  { %192 = vmatpush3.bf16.xpose.msk.msra.mxu0 %vm231_vm1, %v190_v14 }
  0x23   :  { %175 = vmatmul.mubr.msk.f32.vlgmr.msra.gmra.mrb[0].mxu0 %vm30_vm0, %v14_v15 }
  0xf6   :  { %v124_v17 = vpop.f32.mrb[0].mxu0 }
  0xf7   :  { %v125_v18 = vadd.f32 %v139_v16, %v124_v17  ;;  %v176_v19 = vpop.f32.mrb[1].mxu0 }
  0xf9   :  { %v128_v20 = vsub.f32 0.0, %v125_v18 }
  0xfb   :  { %v129_v21 = vmul.f32 1.442695, %v128_v20 }
  0xfd   :  { %196 = vpow2.f32 %v129_v21 }
 0x107   :  { %v197_v22 = vpop.eup %196 }
 0x108   :  { %v131_v23 = vadd.f32 1.0, %v197_v22 }
 0x10a   :  { %198 = vrcp.f32 %v131_v23 }
 0x114   :  { %v199_v24 = vpop.eup %198 }
 0x115   :  { %134 = vst.msk [vmem:[%s275_s3] sm:$0xff] %vm30_vm0, %v199_v24 }

// kernel: self_gating_forward.3
= control target key start
LH: loop header
LB: loop body
LE: loop exit
PB: predicated region body
PF: predicated region fallthrough
CT: control target
= control target key end

     0   :  { %s2519_s6 = smov 0   ;;  %s2521_s7 = smov 0   ;;  %s4220_s0 = inlined_call_operand.vmem [shape: f32[128,8192], index: 0, kind: input, shape index: {}]   ;;  %s4221_s1 = inlined_call_operand.vmem [shape: f32[128,1], index: 1, kind: output, shape index: {}]  }
   0x1   :  { %s2523_s8 = smov 0   ;;  %s2525_s9 = smov 0  }
   0x2   :  { %s2527_s10 = smov 0  }
   0x3 LB: > { %s20_s11 = sadd.s32 1, %s2502_s9  ;;  %p39_p1 = scmp.ne.s32.totalorder %s2494_s7, %s2490_s6  ;;  %s2506_s10 = sphi %s2527_s10, %s11_s10   ;;  %s2502_s9 = sphi %s2525_s9, %s4225_s9   ;;  %s2498_s8 = sphi %s2523_s8, %s4224_s8   ;;  %s2494_s7 = sphi %s2521_s7, %s4223_s7   ;;  %s2490_s6 = sphi %s2519_s6, %s4222_s6  }
   0x4   : > { %p21_p0 = scmp.ge.s32.totalorder %s20_s11, 2  ;;  %p40_p2 = scmp.eq.s32.totalorder %s2506_s10, 0 }
   0x5   : > { %s32_s13 = sadd.s32 1, %s2494_s7  ;;  %p2414_p5 = scmp.ge.s32.totalorder %s2506_s10, 2 }
   0x6   : > { %s4227_s11 = smov (%p21_p0, %s20_s11), 0  ;;  %p41_p3 = por %p40_p2, %p39_p1 }
   0x7   : > { %s28_s12 = ssub.s32 %s2502_s9, %s4227_s11  ;;  %91 = sbr.rel (%p2414_p5) target bundleno = 274 (0x112), region = 16 }
   0x8   : > { %p30_p4 = scmp.eq.s32.totalorder %s28_s12, 0 }
   0xa   : > { %s2554_s14 = scalar_select %p30_p4, %s2494_s7, %s32_s13  }
   0xe   : > { %94 = sbr.rel (!%p41_p3) target bundleno = 274 (0x112), region = 20  ;;  %s96_s15 = sand.u32 (%p41_p3), 1, %s2494_s7  }
   0xf   : > { %s2426_s16 = sshll.u32 (%p41_p3), %s2502_s9, 8  ;;  %s2415_s17 = sshll.u32 (%p41_p3), %s96_s15, 12 }
  0x10   : > { %s2562_s20 = scalar_lea.vmem (%p41_p3), %s4220_s0, %s2426_s16  ;;  %s2567_s21 = scalar_lea.vmem (%p41_p3), [#allocation3], %s2415_s17 }
  0x11   : > { %v117_v0 = vld [vmem:[%s2562_s20] sm:$0xff] (%p41_p3)  ;;  %v119_v1 = vld [vmem:[%s2562_s20 + $0x8] sm:$0xff] (%p41_p3)  ;;  %v121_v2 = vld [vmem:[%s2562_s20 + $0x10] sm:$0xff] (%p41_p3) }
  0x12   : > { %118 = vst [vmem:[%s2567_s21] sm:$0xff] (%p41_p3), %v117_v0  ;;  %120 = vst [vmem:[%s2567_s21 + $0x8] sm:$0xff] (%p41_p3), %v119_v1  ;;  %v123_v3 = vld [vmem:[%s2562_s20 + $0x18] sm:$0xff] (%p41_p3)  ;;  %v125_v4 = vld [vmem:[%s2562_s20 + $0x20] sm:$0xff] (%p41_p3) }
  0x13   : > { %122 = vst [vmem:[%s2567_s21 + $0x10] sm:$0xff] (%p41_p3), %v121_v2  ;;  %v127_v5 = vld [vmem:[%s2562_s20 + $0x28] sm:$0xff] (%p41_p3)  ;;  %124 = vst [vmem:[%s2567_s21 + $0x18] sm:$0xff] (%p41_p3), %v123_v3  ;;  %v129_v6 = vld [vmem:[%s2562_s20 + $0x30] sm:$0xff] (%p41_p3) }
  0x14   : > { %126 = vst [vmem:[%s2567_s21 + $0x20] sm:$0xff] (%p41_p3), %v125_v4  ;;  %128 = vst [vmem:[%s2567_s21 + $0x28] sm:$0xff] (%p41_p3), %v127_v5  ;;  %v131_v7 = vld [vmem:[%s2562_s20 + $0x38] sm:$0xff] (%p41_p3)  ;;  %v133_v8 = vld [vmem:[%s2562_s20 + $0x40] sm:$0xff] (%p41_p3) }
  0x15   : > { %130 = vst [vmem:[%s2567_s21 + $0x30] sm:$0xff] %v129_v6  ;;  %132 = vst [vmem:[%s2567_s21 + $0x38] sm:$0xff] %v131_v7  ;;  %v135_v9 = vld [vmem:[%s2562_s20 + $0x48] sm:$0xff]  ;;  %v137_v10 = vld [vmem:[%s2562_s20 + $0x50] sm:$0xff] }
  0x16   : > { %134 = vst [vmem:[%s2567_s21 + $0x40] sm:$0xff] %v133_v8  ;;  %v139_v11 = vld [vmem:[%s2562_s20 + $0x58] sm:$0xff]  ;;  %136 = vst [vmem:[%s2567_s21 + $0x48] sm:$0xff] %v135_v9  ;;  %v141_v12 = vld [vmem:[%s2562_s20 + $0x60] sm:$0xff] }
  0x17   : > { %138 = vst [vmem:[%s2567_s21 + $0x50] sm:$0xff] %v137_v10  ;;  %140 = vst [vmem:[%s2567_s21 + $0x58] sm:$0xff] %v139_v11  ;;  %v143_v13 = vld [vmem:[%s2562_s20 + $0x68] sm:$0xff]  ;;  %v145_v14 = vld [vmem:[%s2562_s20 + $0x70] sm:$0xff] }
  0x18   : > { %142 = vst [vmem:[%s2567_s21 + $0x60] sm:$0xff] %v141_v12  ;;  %144 = vst [vmem:[%s2567_s21 + $0x68] sm:$0xff] %v143_v13  ;;  %v147_v15 = vld [vmem:[%s2562_s20 + $0x78] sm:$0xff]  ;;  %v149_v16 = vld [vmem:[%s2562_s20 + $0x80] sm:$0xff] }
  0x19   : > { %146 = vst [vmem:[%s2567_s21 + $0x70] sm:$0xff] %v145_v14  ;;  %v151_v17 = vld [vmem:[%s2562_s20 + $0x88] sm:$0xff]  ;;  %148 = vst [vmem:[%s2567_s21 + $0x78] sm:$0xff] %v147_v15  ;;  %v153_v18 = vld [vmem:[%s2562_s20 + $0x90] sm:$0xff] }
  0x1a   : > { %150 = vst [vmem:[%s2567_s21 + $0x80] sm:$0xff] %v149_v16  ;;  %152 = vst [vmem:[%s2567_s21 + $0x88] sm:$0xff] %v151_v17  ;;  %v155_v19 = vld [vmem:[%s2562_s20 + $0x98] sm:$0xff]  ;;  %v157_v20 = vld [vmem:[%s2562_s20 + $0xa0] sm:$0xff] }
  0x1b   : > { %154 = vst [vmem:[%s2567_s21 + $0x90] sm:$0xff] %v153_v18  ;;  %156 = vst [vmem:[%s2567_s21 + $0x98] sm:$0xff] %v155_v19  ;;  %v159_v21 = vld [vmem:[%s2562_s20 + $0xa8] sm:$0xff]  ;;  %v161_v22 = vld [vmem:[%s2562_s20 + $0xb0] sm:$0xff] }
  0x1c   : > { %158 = vst [vmem:[%s2567_s21 + $0xa0] sm:$0xff] %v157_v20  ;;  %v163_v23 = vld [vmem:[%s2562_s20 + $0xb8] sm:$0xff]  ;;  %160 = vst [vmem:[%s2567_s21 + $0xa8] sm:$0xff] %v159_v21  ;;  %v165_v24 = vld [vmem:[%s2562_s20 + $0xc0] sm:$0xff] }
  0x1d   : > { %162 = vst [vmem:[%s2567_s21 + $0xb0] sm:$0xff] %v161_v22  ;;  %164 = vst [vmem:[%s2567_s21 + $0xb8] sm:$0xff] %v163_v23  ;;  %v167_v25 = vld [vmem:[%s2562_s20 + $0xc8] sm:$0xff]  ;;  %v169_v26 = vld [vmem:[%s2562_s20 + $0xd0] sm:$0xff] }
  0x1e   : > { %166 = vst [vmem:[%s2567_s21 + $0xc0] sm:$0xff] %v165_v24  ;;  %168 = vst [vmem:[%s2567_s21 + $0xc8] sm:$0xff] %v167_v25  ;;  %v171_v27 = vld [vmem:[%s2562_s20 + $0xd8] sm:$0xff]  ;;  %v173_v28 = vld [vmem:[%s2562_s20 + $0xe0] sm:$0xff] }
  0x1f   : > { %170 = vst [vmem:[%s2567_s21 + $0xd0] sm:$0xff] %v169_v26  ;;  %v175_v29 = vld [vmem:[%s2562_s20 + $0xe8] sm:$0xff]  ;;  %172 = vst [vmem:[%s2567_s21 + $0xd8] sm:$0xff] %v171_v27  ;;  %v177_v30 = vld [vmem:[%s2562_s20 + $0xf0] sm:$0xff] }
  0x20   : > { %174 = vst [vmem:[%s2567_s21 + $0xe0] sm:$0xff] %v173_v28  ;;  %176 = vst [vmem:[%s2567_s21 + $0xe8] sm:$0xff] %v175_v29  ;;  %v179_v31 = vld [vmem:[%s2562_s20 + $0xf8] sm:$0xff]  ;;  %v181_v32 = vld [vmem:[%s2562_s20 + $0x200] sm:$0xff] }
  0x21   : > { %178 = vst [vmem:[%s2567_s21 + $0xf0] sm:$0xff] %v177_v30  ;;  %180 = vst [vmem:[%s2567_s21 + $0xf8] sm:$0xff] %v179_v31  ;;  %v183_v33 = vld [vmem:[%s2562_s20 + $0x208] sm:$0xff]  ;;  %v185_v34 = vld [vmem:[%s2562_s20 + $0x210] sm:$0xff] }
  0x22   : > { %182 = vst [vmem:[%s2567_s21 + $0x100] sm:$0xff] %v181_v32  ;;  %v187_v35 = vld [vmem:[%s2562_s20 + $0x218] sm:$0xff]  ;;  %184 = vst [vmem:[%s2567_s21 + $0x108] sm:$0xff] %v183_v33  ;;  %v189_v36 = vld [vmem:[%s2562_s20 + $0x220] sm:$0xff] }
  0x23   : > { %186 = vst [vmem:[%s2567_s21 + $0x110] sm:$0xff] %v185_v34  ;;  %188 = vst [vmem:[%s2567_s21 + $0x118] sm:$0xff] %v187_v35  ;;  %v191_v37 = vld [vmem:[%s2562_s20 + $0x228] sm:$0xff]  ;;  %v193_v38 = vld [vmem:[%s2562_s20 + $0x230] sm:$0xff] }
  0x24   : > { %190 = vst [vmem:[%s2567_s21 + $0x120] sm:$0xff] %v189_v36  ;;  %192 = vst [vmem:[%s2567_s21 + $0x128] sm:$0xff] %v191_v37  ;;  %v195_v39 = vld [vmem:[%s2562_s20 + $0x238] sm:$0xff]  ;;  %v197_v40 = vld [vmem:[%s2562_s20 + $0x240] sm:$0xff] }
  0x25   : > { %194 = vst [vmem:[%s2567_s21 + $0x130] sm:$0xff] %v193_v38  ;;  %v199_v41 = vld [vmem:[%s2562_s20 + $0x248] sm:$0xff]  ;;  %196 = vst [vmem:[%s2567_s21 + $0x138] sm:$0xff] %v195_v39  ;;  %v201_v42 = vld [vmem:[%s2562_s20 + $0x250] sm:$0xff] }
  0x26   : > { %198 = vst [vmem:[%s2567_s21 + $0x140] sm:$0xff] %v197_v40  ;;  %200 = vst [vmem:[%s2567_s21 + $0x148] sm:$0xff] %v199_v41  ;;  %v203_v43 = vld [vmem:[%s2562_s20 + $0x258] sm:$0xff]  ;;  %v205_v44 = vld [vmem:[%s2562_s20 + $0x260] sm:$0xff] }
  0x27   : > { %202 = vst [vmem:[%s2567_s21 + $0x150] sm:$0xff] %v201_v42  ;;  %204 = vst [vmem:[%s2567_s21 + $0x158] sm:$0xff] %v203_v43  ;;  %v207_v45 = vld [vmem:[%s2562_s20 + $0x268] sm:$0xff]  ;;  %v209_v46 = vld [vmem:[%s2562_s20 + $0x270] sm:$0xff] }
  0x28   : > { %206 = vst [vmem:[%s2567_s21 + $0x160] sm:$0xff] %v205_v44  ;;  %v211_v47 = vld [vmem:[%s2562_s20 + $0x278] sm:$0xff]  ;;  %208 = vst [vmem:[%s2567_s21 + $0x168] sm:$0xff] %v207_v45  ;;  %v213_v48 = vld [vmem:[%s2562_s20 + $0x280] sm:$0xff] }
  0x29   : > { %210 = vst [vmem:[%s2567_s21 + $0x170] sm:$0xff] %v209_v46  ;;  %212 = vst [vmem:[%s2567_s21 + $0x178] sm:$0xff] %v211_v47  ;;  %v215_v49 = vld [vmem:[%s2562_s20 + $0x288] sm:$0xff]  ;;  %v217_v50 = vld [vmem:[%s2562_s20 + $0x290] sm:$0xff] }
  0x2a   : > { %214 = vst [vmem:[%s2567_s21 + $0x180] sm:$0xff] %v213_v48  ;;  %216 = vst [vmem:[%s2567_s21 + $0x188] sm:$0xff] %v215_v49  ;;  %v219_v51 = vld [vmem:[%s2562_s20 + $0x298] sm:$0xff]  ;;  %v221_v52 = vld [vmem:[%s2562_s20 + $0x2a0] sm:$0xff] }
  0x2b   : > { %218 = vst [vmem:[%s2567_s21 + $0x190] sm:$0xff] %v217_v50  ;;  %v223_v53 = vld [vmem:[%s2562_s20 + $0x2a8] sm:$0xff]  ;;  %220 = vst [vmem:[%s2567_s21 + $0x198] sm:$0xff] %v219_v51  ;;  %v225_v54 = vld [vmem:[%s2562_s20 + $0x2b0] sm:$0xff] }
  0x2c   : > { %222 = vst [vmem:[%s2567_s21 + $0x1a0] sm:$0xff] %v221_v52  ;;  %224 = vst [vmem:[%s2567_s21 + $0x1a8] sm:$0xff] %v223_v53  ;;  %v227_v55 = vld [vmem:[%s2562_s20 + $0x2b8] sm:$0xff]  ;;  %v229_v56 = vld [vmem:[%s2562_s20 + $0x2c0] sm:$0xff] }
  0x2d   : > { %226 = vst [vmem:[%s2567_s21 + $0x1b0] sm:$0xff] %v225_v54  ;;  %228 = vst [vmem:[%s2567_s21 + $0x1b8] sm:$0xff] %v227_v55  ;;  %v231_v57 = vld [vmem:[%s2562_s20 + $0x2c8] sm:$0xff]  ;;  %v233_v58 = vld [vmem:[%s2562_s20 + $0x2d0] sm:$0xff] }
  0x2e   : > { %230 = vst [vmem:[%s2567_s21 + $0x1c0] sm:$0xff] %v229_v56  ;;  %v235_v59 = vld [vmem:[%s2562_s20 + $0x2d8] sm:$0xff]  ;;  %232 = vst [vmem:[%s2567_s21 + $0x1c8] sm:$0xff] %v231_v57  ;;  %v237_v60 = vld [vmem:[%s2562_s20 + $0x2e0] sm:$0xff] }
  0x2f   : > { %234 = vst [vmem:[%s2567_s21 + $0x1d0] sm:$0xff] %v233_v58  ;;  %236 = vst [vmem:[%s2567_s21 + $0x1d8] sm:$0xff] %v235_v59  ;;  %v239_v61 = vld [vmem:[%s2562_s20 + $0x2e8] sm:$0xff]  ;;  %v241_v62 = vld [vmem:[%s2562_s20 + $0x2f0] sm:$0xff] }
  0x30   : > { %238 = vst [vmem:[%s2567_s21 + $0x1e0] sm:$0xff] %v237_v60  ;;  %240 = vst [vmem:[%s2567_s21 + $0x1e8] sm:$0xff] %v239_v61  ;;  %v243_v63 = vld [vmem:[%s2562_s20 + $0x2f8] sm:$0xff]  ;;  %v245_v0 = vld [vmem:[%s2562_s20 + $0x400] sm:$0xff] }
  0x31   : > { %242 = vst [vmem:[%s2567_s21 + $0x1f0] sm:$0xff] %v241_v62  ;;  %v247_v1 = vld [vmem:[%s2562_s20 + $0x408] sm:$0xff]  ;;  %244 = vst [vmem:[%s2567_s21 + $0x1f8] sm:$0xff] %v243_v63  ;;  %v249_v2 = vld [vmem:[%s2562_s20 + $0x410] sm:$0xff] }
  0x32   : > { %246 = vst [vmem:[%s2567_s21 + $0x200] sm:$0xff] %v245_v0  ;;  %248 = vst [vmem:[%s2567_s21 + $0x208] sm:$0xff] %v247_v1  ;;  %v251_v3 = vld [vmem:[%s2562_s20 + $0x418] sm:$0xff]  ;;  %v253_v4 = vld [vmem:[%s2562_s20 + $0x420] sm:$0xff] }
  0x33   : > { %250 = vst [vmem:[%s2567_s21 + $0x210] sm:$0xff] %v249_v2  ;;  %252 = vst [vmem:[%s2567_s21 + $0x218] sm:$0xff] %v251_v3  ;;  %v255_v5 = vld [vmem:[%s2562_s20 + $0x428] sm:$0xff]  ;;  %v257_v6 = vld [vmem:[%s2562_s20 + $0x430] sm:$0xff] }
  0x34   : > { %254 = vst [vmem:[%s2567_s21 + $0x220] sm:$0xff] %v253_v4  ;;  %v259_v7 = vld [vmem:[%s2562_s20 + $0x438] sm:$0xff]  ;;  %256 = vst [vmem:[%s2567_s21 + $0x228] sm:$0xff] %v255_v5  ;;  %v261_v8 = vld [vmem:[%s2562_s20 + $0x440] sm:$0xff] }
  0x35   : > { %258 = vst [vmem:[%s2567_s21 + $0x230] sm:$0xff] %v257_v6  ;;  %260 = vst [vmem:[%s2567_s21 + $0x238] sm:$0xff] %v259_v7  ;;  %v263_v9 = vld [vmem:[%s2562_s20 + $0x448] sm:$0xff]  ;;  %v265_v10 = vld [vmem:[%s2562_s20 + $0x450] sm:$0xff] }
  0x36   : > { %262 = vst [vmem:[%s2567_s21 + $0x240] sm:$0xff] %v261_v8  ;;  %264 = vst [vmem:[%s2567_s21 + $0x248] sm:$0xff] %v263_v9  ;;  %v267_v11 = vld [vmem:[%s2562_s20 + $0x458] sm:$0xff]  ;;  %v269_v12 = vld [vmem:[%s2562_s20 + $0x460] sm:$0xff] }
  0x37   : > { %266 = vst [vmem:[%s2567_s21 + $0x250] sm:$0xff] %v265_v10  ;;  %v271_v13 = vld [vmem:[%s2562_s20 + $0x468] sm:$0xff]  ;;  %268 = vst [vmem:[%s2567_s21 + $0x258] sm:$0xff] %v267_v11  ;;  %v273_v14 = vld [vmem:[%s2562_s20 + $0x470] sm:$0xff] }
  0x38   : > { %270 = vst [vmem:[%s2567_s21 + $0x260] sm:$0xff] %v269_v12  ;;  %272 = vst [vmem:[%s2567_s21 + $0x268] sm:$0xff] %v271_v13  ;;  %v275_v15 = vld [vmem:[%s2562_s20 + $0x478] sm:$0xff]  ;;  %v277_v16 = vld [vmem:[%s2562_s20 + $0x480] sm:$0xff] }
  0x39   : > { %274 = vst [vmem:[%s2567_s21 + $0x270] sm:$0xff] %v273_v14  ;;  %276 = vst [vmem:[%s2567_s21 + $0x278] sm:$0xff] %v275_v15  ;;  %v279_v17 = vld [vmem:[%s2562_s20 + $0x488] sm:$0xff]  ;;  %v281_v18 = vld [vmem:[%s2562_s20 + $0x490] sm:$0xff] }
  0x3a   : > { %278 = vst [vmem:[%s2567_s21 + $0x280] sm:$0xff] %v277_v16  ;;  %v283_v19 = vld [vmem:[%s2562_s20 + $0x498] sm:$0xff]  ;;  %280 = vst [vmem:[%s2567_s21 + $0x288] sm:$0xff] %v279_v17  ;;  %v285_v20 = vld [vmem:[%s2562_s20 + $0x4a0] sm:$0xff] }
  0x3b   : > { %282 = vst [vmem:[%s2567_s21 + $0x290] sm:$0xff] %v281_v18  ;;  %284 = vst [vmem:[%s2567_s21 + $0x298] sm:$0xff] %v283_v19  ;;  %v287_v21 = vld [vmem:[%s2562_s20 + $0x4a8] sm:$0xff]  ;;  %v289_v22 = vld [vmem:[%s2562_s20 + $0x4b0] sm:$0xff] }
  0x3c   : > { %286 = vst [vmem:[%s2567_s21 + $0x2a0] sm:$0xff] %v285_v20  ;;  %288 = vst [vmem:[%s2567_s21 + $0x2a8] sm:$0xff] %v287_v21  ;;  %v291_v23 = vld [vmem:[%s2562_s20 + $0x4b8] sm:$0xff]  ;;  %v293_v24 = vld [vmem:[%s2562_s20 + $0x4c0] sm:$0xff] }
  0x3d   : > { %290 = vst [vmem:[%s2567_s21 + $0x2b0] sm:$0xff] %v289_v22  ;;  %v295_v25 = vld [vmem:[%s2562_s20 + $0x4c8] sm:$0xff]  ;;  %292 = vst [vmem:[%s2567_s21 + $0x2b8] sm:$0xff] %v291_v23  ;;  %v297_v26 = vld [vmem:[%s2562_s20 + $0x4d0] sm:$0xff] }
  0x3e   : > { %294 = vst [vmem:[%s2567_s21 + $0x2c0] sm:$0xff] %v293_v24  ;;  %296 = vst [vmem:[%s2567_s21 + $0x2c8] sm:$0xff] %v295_v25  ;;  %v299_v27 = vld [vmem:[%s2562_s20 + $0x4d8] sm:$0xff]  ;;  %v301_v28 = vld [vmem:[%s2562_s20 + $0x4e0] sm:$0xff] }
  0x3f   : > { %298 = vst [vmem:[%s2567_s21 + $0x2d0] sm:$0xff] %v297_v26  ;;  %300 = vst [vmem:[%s2567_s21 + $0x2d8] sm:$0xff] %v299_v27  ;;  %v303_v29 = vld [vmem:[%s2562_s20 + $0x4e8] sm:$0xff]  ;;  %v305_v30 = vld [vmem:[%s2562_s20 + $0x4f0] sm:$0xff] }
  0x40   : > { %302 = vst [vmem:[%s2567_s21 + $0x2e0] sm:$0xff] %v301_v28  ;;  %v307_v31 = vld [vmem:[%s2562_s20 + $0x4f8] sm:$0xff]  ;;  %304 = vst [vmem:[%s2567_s21 + $0x2e8] sm:$0xff] %v303_v29  ;;  %v309_v32 = vld [vmem:[%s2562_s20 + $0x600] sm:$0xff] }
  0x41   : > { %306 = vst [vmem:[%s2567_s21 + $0x2f0] sm:$0xff] %v305_v30  ;;  %308 = vst [vmem:[%s2567_s21 + $0x2f8] sm:$0xff] %v307_v31  ;;  %v311_v33 = vld [vmem:[%s2562_s20 + $0x608] sm:$0xff]  ;;  %v313_v34 = vld [vmem:[%s2562_s20 + $0x610] sm:$0xff] }
  0x42   : > { %310 = vst [vmem:[%s2567_s21 + $0x300] sm:$0xff] %v309_v32  ;;  %312 = vst [vmem:[%s2567_s21 + $0x308] sm:$0xff] %v311_v33  ;;  %v315_v35 = vld [vmem:[%s2562_s20 + $0x618] sm:$0xff]  ;;  %v317_v36 = vld [vmem:[%s2562_s20 + $0x620] sm:$0xff] }
  0x43   : > { %314 = vst [vmem:[%s2567_s21 + $0x310] sm:$0xff] %v313_v34  ;;  %v319_v37 = vld [vmem:[%s2562_s20 + $0x628] sm:$0xff]  ;;  %316 = vst [vmem:[%s2567_s21 + $0x318] sm:$0xff] %v315_v35  ;;  %v321_v38 = vld [vmem:[%s2562_s20 + $0x630] sm:$0xff] }
  0x44   : > { %318 = vst [vmem:[%s2567_s21 + $0x320] sm:$0xff] %v317_v36  ;;  %320 = vst [vmem:[%s2567_s21 + $0x328] sm:$0xff] %v319_v37  ;;  %v323_v39 = vld [vmem:[%s2562_s20 + $0x638] sm:$0xff]  ;;  %v325_v40 = vld [vmem:[%s2562_s20 + $0x640] sm:$0xff] }
  0x45   : > { %322 = vst [vmem:[%s2567_s21 + $0x330] sm:$0xff] %v321_v38  ;;  %324 = vst [vmem:[%s2567_s21 + $0x338] sm:$0xff] %v323_v39  ;;  %v327_v41 = vld [vmem:[%s2562_s20 + $0x648] sm:$0xff]  ;;  %v329_v42 = vld [vmem:[%s2562_s20 + $0x650] sm:$0xff] }
  0x46   : > { %326 = vst [vmem:[%s2567_s21 + $0x340] sm:$0xff] %v325_v40  ;;  %v331_v43 = vld [vmem:[%s2562_s20 + $0x658] sm:$0xff]  ;;  %328 = vst [vmem:[%s2567_s21 + $0x348] sm:$0xff] %v327_v41  ;;  %v333_v44 = vld [vmem:[%s2562_s20 + $0x660] sm:$0xff] }
  0x47   : > { %330 = vst [vmem:[%s2567_s21 + $0x350] sm:$0xff] %v329_v42  ;;  %332 = vst [vmem:[%s2567_s21 + $0x358] sm:$0xff] %v331_v43  ;;  %v335_v45 = vld [vmem:[%s2562_s20 + $0x668] sm:$0xff]  ;;  %v337_v46 = vld [vmem:[%s2562_s20 + $0x670] sm:$0xff] }
  0x48   : > { %334 = vst [vmem:[%s2567_s21 + $0x360] sm:$0xff] %v333_v44  ;;  %336 = vst [vmem:[%s2567_s21 + $0x368] sm:$0xff] %v335_v45  ;;  %v339_v47 = vld [vmem:[%s2562_s20 + $0x678] sm:$0xff]  ;;  %v341_v48 = vld [vmem:[%s2562_s20 + $0x680] sm:$0xff] }
  0x49   : > { %338 = vst [vmem:[%s2567_s21 + $0x370] sm:$0xff] %v337_v46  ;;  %v343_v49 = vld [vmem:[%s2562_s20 + $0x688] sm:$0xff]  ;;  %340 = vst [vmem:[%s2567_s21 + $0x378] sm:$0xff] %v339_v47  ;;  %v345_v50 = vld [vmem:[%s2562_s20 + $0x690] sm:$0xff] }
  0x4a   : > { %342 = vst [vmem:[%s2567_s21 + $0x380] sm:$0xff] %v341_v48  ;;  %344 = vst [vmem:[%s2567_s21 + $0x388] sm:$0xff] %v343_v49  ;;  %v347_v51 = vld [vmem:[%s2562_s20 + $0x698] sm:$0xff]  ;;  %v349_v52 = vld [vmem:[%s2562_s20 + $0x6a0] sm:$0xff] }
  0x4b   : > { %346 = vst [vmem:[%s2567_s21 + $0x390] sm:$0xff] %v345_v50  ;;  %348 = vst [vmem:[%s2567_s21 + $0x398] sm:$0xff] %v347_v51  ;;  %v351_v53 = vld [vmem:[%s2562_s20 + $0x6a8] sm:$0xff]  ;;  %v353_v54 = vld [vmem:[%s2562_s20 + $0x6b0] sm:$0xff] }
  0x4c   : > { %350 = vst [vmem:[%s2567_s21 + $0x3a0] sm:$0xff] %v349_v52  ;;  %v355_v55 = vld [vmem:[%s2562_s20 + $0x6b8] sm:$0xff]  ;;  %352 = vst [vmem:[%s2567_s21 + $0x3a8] sm:$0xff] %v351_v53  ;;  %v357_v56 = vld [vmem:[%s2562_s20 + $0x6c0] sm:$0xff] }
  0x4d   : > { %354 = vst [vmem:[%s2567_s21 + $0x3b0] sm:$0xff] %v353_v54  ;;  %356 = vst [vmem:[%s2567_s21 + $0x3b8] sm:$0xff] %v355_v55  ;;  %v359_v57 = vld [vmem:[%s2562_s20 + $0x6c8] sm:$0xff]  ;;  %v361_v58 = vld [vmem:[%s2562_s20 + $0x6d0] sm:$0xff] }
  0x4e   : > { %358 = vst [vmem:[%s2567_s21 + $0x3c0] sm:$0xff] %v357_v56  ;;  %360 = vst [vmem:[%s2567_s21 + $0x3c8] sm:$0xff] %v359_v57  ;;  %v363_v59 = vld [vmem:[%s2562_s20 + $0x6d8] sm:$0xff]  ;;  %v365_v60 = vld [vmem:[%s2562_s20 + $0x6e0] sm:$0xff] }
  0x4f   : > { %362 = vst [vmem:[%s2567_s21 + $0x3d0] sm:$0xff] %v361_v58  ;;  %v367_v61 = vld [vmem:[%s2562_s20 + $0x6e8] sm:$0xff]  ;;  %364 = vst [vmem:[%s2567_s21 + $0x3d8] sm:$0xff] %v363_v59  ;;  %v369_v62 = vld [vmem:[%s2562_s20 + $0x6f0] sm:$0xff] }
  0x50   : > { %366 = vst [vmem:[%s2567_s21 + $0x3e0] sm:$0xff] %v365_v60  ;;  %368 = vst [vmem:[%s2567_s21 + $0x3e8] sm:$0xff] %v367_v61  ;;  %v371_v63 = vld [vmem:[%s2562_s20 + $0x6f8] sm:$0xff]  ;;  %v373_v0 = vld [vmem:[%s2562_s20 + $0x800] sm:$0xff] }
  0x51   : > { %370 = vst [vmem:[%s2567_s21 + $0x3f0] sm:$0xff] %v369_v62  ;;  %372 = vst [vmem:[%s2567_s21 + $0x3f8] sm:$0xff] %v371_v63  ;;  %v375_v1 = vld [vmem:[%s2562_s20 + $0x808] sm:$0xff]  ;;  %v377_v2 = vld [vmem:[%s2562_s20 + $0x810] sm:$0xff] }
  0x52   : > { %374 = vst [vmem:[%s2567_s21 + $0x400] sm:$0xff] %v373_v0  ;;  %v379_v3 = vld [vmem:[%s2562_s20 + $0x818] sm:$0xff]  ;;  %376 = vst [vmem:[%s2567_s21 + $0x408] sm:$0xff] %v375_v1  ;;  %v381_v4 = vld [vmem:[%s2562_s20 + $0x820] sm:$0xff] }
  0x53   : > { %378 = vst [vmem:[%s2567_s21 + $0x410] sm:$0xff] %v377_v2  ;;  %380 = vst [vmem:[%s2567_s21 + $0x418] sm:$0xff] %v379_v3  ;;  %v383_v5 = vld [vmem:[%s2562_s20 + $0x828] sm:$0xff]  ;;  %v385_v6 = vld [vmem:[%s2562_s20 + $0x830] sm:$0xff] }
  0x54   : > { %382 = vst [vmem:[%s2567_s21 + $0x420] sm:$0xff] %v381_v4  ;;  %384 = vst [vmem:[%s2567_s21 + $0x428] sm:$0xff] %v383_v5  ;;  %v387_v7 = vld [vmem:[%s2562_s20 + $0x838] sm:$0xff]  ;;  %v389_v8 = vld [vmem:[%s2562_s20 + $0x840] sm:$0xff] }
  0x55   : > { %386 = vst [vmem:[%s2567_s21 + $0x430] sm:$0xff] %v385_v6  ;;  %v391_v9 = vld [vmem:[%s2562_s20 + $0x848] sm:$0xff]  ;;  %388 = vst [vmem:[%s2567_s21 + $0x438] sm:$0xff] %v387_v7  ;;  %v393_v10 = vld [vmem:[%s2562_s20 + $0x850] sm:$0xff] }
  0x56   : > { %390 = vst [vmem:[%s2567_s21 + $0x440] sm:$0xff] %v389_v8  ;;  %392 = vst [vmem:[%s2567_s21 + $0x448] sm:$0xff] %v391_v9  ;;  %v395_v11 = vld [vmem:[%s2562_s20 + $0x858] sm:$0xff]  ;;  %v397_v12 = vld [vmem:[%s2562_s20 + $0x860] sm:$0xff] }
  0x57   : > { %394 = vst [vmem:[%s2567_s21 + $0x450] sm:$0xff] %v393_v10  ;;  %396 = vst [vmem:[%s2567_s21 + $0x458] sm:$0xff] %v395_v11  ;;  %v399_v13 = vld [vmem:[%s2562_s20 + $0x868] sm:$0xff]  ;;  %v401_v14 = vld [vmem:[%s2562_s20 + $0x870] sm:$0xff] }
  0x58   : > { %398 = vst [vmem:[%s2567_s21 + $0x460] sm:$0xff] %v397_v12  ;;  %v403_v15 = vld [vmem:[%s2562_s20 + $0x878] sm:$0xff]  ;;  %400 = vst [vmem:[%s2567_s21 + $0x468] sm:$0xff] %v399_v13  ;;  %v405_v16 = vld [vmem:[%s2562_s20 + $0x880] sm:$0xff] }
  0x59   : > { %402 = vst [vmem:[%s2567_s21 + $0x470] sm:$0xff] %v401_v14  ;;  %404 = vst [vmem:[%s2567_s21 + $0x478] sm:$0xff] %v403_v15  ;;  %v407_v17 = vld [vmem:[%s2562_s20 + $0x888] sm:$0xff]  ;;  %v409_v18 = vld [vmem:[%s2562_s20 + $0x890] sm:$0xff] }
  0x5a   : > { %406 = vst [vmem:[%s2567_s21 + $0x480] sm:$0xff] %v405_v16  ;;  %408 = vst [vmem:[%s2567_s21 + $0x488] sm:$0xff] %v407_v17  ;;  %v411_v19 = vld [vmem:[%s2562_s20 + $0x898] sm:$0xff]  ;;  %v413_v20 = vld [vmem:[%s2562_s20 + $0x8a0] sm:$0xff] }
  0x5b   : > { %410 = vst [vmem:[%s2567_s21 + $0x490] sm:$0xff] %v409_v18  ;;  %v415_v21 = vld [vmem:[%s2562_s20 + $0x8a8] sm:$0xff]  ;;  %412 = vst [vmem:[%s2567_s21 + $0x498] sm:$0xff] %v411_v19  ;;  %v417_v22 = vld [vmem:[%s2562_s20 + $0x8b0] sm:$0xff] }
  0x5c   : > { %414 = vst [vmem:[%s2567_s21 + $0x4a0] sm:$0xff] %v413_v20  ;;  %416 = vst [vmem:[%s2567_s21 + $0x4a8] sm:$0xff] %v415_v21  ;;  %v419_v23 = vld [vmem:[%s2562_s20 + $0x8b8] sm:$0xff]  ;;  %v421_v24 = vld [vmem:[%s2562_s20 + $0x8c0] sm:$0xff] }
  0x5d   : > { %418 = vst [vmem:[%s2567_s21 + $0x4b0] sm:$0xff] %v417_v22  ;;  %420 = vst [vmem:[%s2567_s21 + $0x4b8] sm:$0xff] %v419_v23  ;;  %v423_v25 = vld [vmem:[%s2562_s20 + $0x8c8] sm:$0xff]  ;;  %v425_v26 = vld [vmem:[%s2562_s20 + $0x8d0] sm:$0xff] }
  0x5e   : > { %422 = vst [vmem:[%s2567_s21 + $0x4c0] sm:$0xff] %v421_v24  ;;  %v427_v27 = vld [vmem:[%s2562_s20 + $0x8d8] sm:$0xff]  ;;  %424 = vst [vmem:[%s2567_s21 + $0x4c8] sm:$0xff] %v423_v25  ;;  %v429_v28 = vld [vmem:[%s2562_s20 + $0x8e0] sm:$0xff] }
  0x5f   : > { %426 = vst [vmem:[%s2567_s21 + $0x4d0] sm:$0xff] %v425_v26  ;;  %428 = vst [vmem:[%s2567_s21 + $0x4d8] sm:$0xff] %v427_v27  ;;  %v431_v29 = vld [vmem:[%s2562_s20 + $0x8e8] sm:$0xff]  ;;  %v433_v30 = vld [vmem:[%s2562_s20 + $0x8f0] sm:$0xff] }
  0x60   : > { %430 = vst [vmem:[%s2567_s21 + $0x4e0] sm:$0xff] %v429_v28  ;;  %432 = vst [vmem:[%s2567_s21 + $0x4e8] sm:$0xff] %v431_v29  ;;  %v435_v31 = vld [vmem:[%s2562_s20 + $0x8f8] sm:$0xff]  ;;  %v437_v32 = vld [vmem:[%s2562_s20 + $0xa00] sm:$0xff] }
  0x61   : > { %434 = vst [vmem:[%s2567_s21 + $0x4f0] sm:$0xff] %v433_v30  ;;  %v439_v33 = vld [vmem:[%s2562_s20 + $0xa08] sm:$0xff]  ;;  %436 = vst [vmem:[%s2567_s21 + $0x4f8] sm:$0xff] %v435_v31  ;;  %v441_v34 = vld [vmem:[%s2562_s20 + $0xa10] sm:$0xff] }
  0x62   : > { %438 = vst [vmem:[%s2567_s21 + $0x500] sm:$0xff] %v437_v32  ;;  %440 = vst [vmem:[%s2567_s21 + $0x508] sm:$0xff] %v439_v33  ;;  %v443_v35 = vld [vmem:[%s2562_s20 + $0xa18] sm:$0xff]  ;;  %v445_v36 = vld [vmem:[%s2562_s20 + $0xa20] sm:$0xff] }
  0x63   : > { %442 = vst [vmem:[%s2567_s21 + $0x510] sm:$0xff] %v441_v34  ;;  %444 = vst [vmem:[%s2567_s21 + $0x518] sm:$0xff] %v443_v35  ;;  %v447_v37 = vld [vmem:[%s2562_s20 + $0xa28] sm:$0xff]  ;;  %v449_v38 = vld [vmem:[%s2562_s20 + $0xa30] sm:$0xff] }
  0x64   : > { %446 = vst [vmem:[%s2567_s21 + $0x520] sm:$0xff] %v445_v36  ;;  %v451_v39 = vld [vmem:[%s2562_s20 + $0xa38] sm:$0xff]  ;;  %448 = vst [vmem:[%s2567_s21 + $0x528] sm:$0xff] %v447_v37  ;;  %v453_v40 = vld [vmem:[%s2562_s20 + $0xa40] sm:$0xff] }
  0x65   : > { %450 = vst [vmem:[%s2567_s21 + $0x530] sm:$0xff] %v449_v38  ;;  %452 = vst [vmem:[%s2567_s21 + $0x538] sm:$0xff] %v451_v39  ;;  %v455_v41 = vld [vmem:[%s2562_s20 + $0xa48] sm:$0xff]  ;;  %v457_v42 = vld [vmem:[%s2562_s20 + $0xa50] sm:$0xff] }
  0x66   : > { %454 = vst [vmem:[%s2567_s21 + $0x540] sm:$0xff] %v453_v40  ;;  %456 = vst [vmem:[%s2567_s21 + $0x548] sm:$0xff] %v455_v41  ;;  %v459_v43 = vld [vmem:[%s2562_s20 + $0xa58] sm:$0xff]  ;;  %v461_v44 = vld [vmem:[%s2562_s20 + $0xa60] sm:$0xff] }
  0x67   : > { %458 = vst [vmem:[%s2567_s21 + $0x550] sm:$0xff] %v457_v42  ;;  %v463_v45 = vld [vmem:[%s2562_s20 + $0xa68] sm:$0xff]  ;;  %460 = vst [vmem:[%s2567_s21 + $0x558] sm:$0xff] %v459_v43  ;;  %v465_v46 = vld [vmem:[%s2562_s20 + $0xa70] sm:$0xff] }
  0x68   : > { %462 = vst [vmem:[%s2567_s21 + $0x560] sm:$0xff] %v461_v44  ;;  %464 = vst [vmem:[%s2567_s21 + $0x568] sm:$0xff] %v463_v45  ;;  %v467_v47 = vld [vmem:[%s2562_s20 + $0xa78] sm:$0xff]  ;;  %v469_v48 = vld [vmem:[%s2562_s20 + $0xa80] sm:$0xff] }
  0x69   : > { %466 = vst [vmem:[%s2567_s21 + $0x570] sm:$0xff] %v465_v46  ;;  %468 = vst [vmem:[%s2567_s21 + $0x578] sm:$0xff] %v467_v47  ;;  %v471_v49 = vld [vmem:[%s2562_s20 + $0xa88] sm:$0xff]  ;;  %v473_v50 = vld [vmem:[%s2562_s20 + $0xa90] sm:$0xff] }
  0x6a   : > { %470 = vst [vmem:[%s2567_s21 + $0x580] sm:$0xff] %v469_v48  ;;  %v475_v51 = vld [vmem:[%s2562_s20 + $0xa98] sm:$0xff]  ;;  %472 = vst [vmem:[%s2567_s21 + $0x588] sm:$0xff] %v471_v49  ;;  %v477_v52 = vld [vmem:[%s2562_s20 + $0xaa0] sm:$0xff] }
  0x6b   : > { %474 = vst [vmem:[%s2567_s21 + $0x590] sm:$0xff] %v473_v50  ;;  %476 = vst [vmem:[%s2567_s21 + $0x598] sm:$0xff] %v475_v51  ;;  %v479_v53 = vld [vmem:[%s2562_s20 + $0xaa8] sm:$0xff]  ;;  %v481_v54 = vld [vmem:[%s2562_s20 + $0xab0] sm:$0xff] }
  0x6c   : > { %478 = vst [vmem:[%s2567_s21 + $0x5a0] sm:$0xff] %v477_v52  ;;  %480 = vst [vmem:[%s2567_s21 + $0x5a8] sm:$0xff] %v479_v53  ;;  %v483_v55 = vld [vmem:[%s2562_s20 + $0xab8] sm:$0xff]  ;;  %v485_v56 = vld [vmem:[%s2562_s20 + $0xac0] sm:$0xff] }
  0x6d   : > { %482 = vst [vmem:[%s2567_s21 + $0x5b0] sm:$0xff] %v481_v54  ;;  %v487_v57 = vld [vmem:[%s2562_s20 + $0xac8] sm:$0xff]  ;;  %484 = vst [vmem:[%s2567_s21 + $0x5b8] sm:$0xff] %v483_v55  ;;  %v489_v58 = vld [vmem:[%s2562_s20 + $0xad0] sm:$0xff] }
  0x6e   : > { %486 = vst [vmem:[%s2567_s21 + $0x5c0] sm:$0xff] %v485_v56  ;;  %488 = vst [vmem:[%s2567_s21 + $0x5c8] sm:$0xff] %v487_v57  ;;  %v491_v59 = vld [vmem:[%s2562_s20 + $0xad8] sm:$0xff]  ;;  %v493_v60 = vld [vmem:[%s2562_s20 + $0xae0] sm:$0xff] }
  0x6f   : > { %490 = vst [vmem:[%s2567_s21 + $0x5d0] sm:$0xff] %v489_v58  ;;  %492 = vst [vmem:[%s2567_s21 + $0x5d8] sm:$0xff] %v491_v59  ;;  %v495_v61 = vld [vmem:[%s2562_s20 + $0xae8] sm:$0xff]  ;;  %v497_v62 = vld [vmem:[%s2562_s20 + $0xaf0] sm:$0xff] }
  0x70   : > { %494 = vst [vmem:[%s2567_s21 + $0x5e0] sm:$0xff] %v493_v60  ;;  %v499_v63 = vld [vmem:[%s2562_s20 + $0xaf8] sm:$0xff]  ;;  %496 = vst [vmem:[%s2567_s21 + $0x5e8] sm:$0xff] %v495_v61  ;;  %v501_v0 = vld [vmem:[%s2562_s20 + $0xc00] sm:$0xff] }
  0x71   : > { %498 = vst [vmem:[%s2567_s21 + $0x5f0] sm:$0xff] %v497_v62  ;;  %500 = vst [vmem:[%s2567_s21 + $0x5f8] sm:$0xff] %v499_v63  ;;  %v503_v1 = vld [vmem:[%s2562_s20 + $0xc08] sm:$0xff]  ;;  %v505_v2 = vld [vmem:[%s2562_s20 + $0xc10] sm:$0xff] }
  0x72   : > { %502 = vst [vmem:[%s2567_s21 + $0x600] sm:$0xff] %v501_v0  ;;  %504 = vst [vmem:[%s2567_s21 + $0x608] sm:$0xff] %v503_v1  ;;  %v507_v3 = vld [vmem:[%s2562_s20 + $0xc18] sm:$0xff]  ;;  %v509_v4 = vld [vmem:[%s2562_s20 + $0xc20] sm:$0xff] }
  0x73   : > { %506 = vst [vmem:[%s2567_s21 + $0x610] sm:$0xff] %v505_v2  ;;  %v511_v5 = vld [vmem:[%s2562_s20 + $0xc28] sm:$0xff]  ;;  %508 = vst [vmem:[%s2567_s21 + $0x618] sm:$0xff] %v507_v3  ;;  %v513_v6 = vld [vmem:[%s2562_s20 + $0xc30] sm:$0xff] }
  0x74   : > { %510 = vst [vmem:[%s2567_s21 + $0x620] sm:$0xff] %v509_v4  ;;  %512 = vst [vmem:[%s2567_s21 + $0x628] sm:$0xff] %v511_v5  ;;  %v515_v7 = vld [vmem:[%s2562_s20 + $0xc38] sm:$0xff]  ;;  %v517_v8 = vld [vmem:[%s2562_s20 + $0xc40] sm:$0xff] }
  0x75   : > { %514 = vst [vmem:[%s2567_s21 + $0x630] sm:$0xff] %v513_v6  ;;  %516 = vst [vmem:[%s2567_s21 + $0x638] sm:$0xff] %v515_v7  ;;  %v519_v9 = vld [vmem:[%s2562_s20 + $0xc48] sm:$0xff]  ;;  %v521_v10 = vld [vmem:[%s2562_s20 + $0xc50] sm:$0xff] }
  0x76   : > { %518 = vst [vmem:[%s2567_s21 + $0x640] sm:$0xff] %v517_v8  ;;  %v523_v11 = vld [vmem:[%s2562_s20 + $0xc58] sm:$0xff]  ;;  %520 = vst [vmem:[%s2567_s21 + $0x648] sm:$0xff] %v519_v9  ;;  %v525_v12 = vld [vmem:[%s2562_s20 + $0xc60] sm:$0xff] }
  0x77   : > { %522 = vst [vmem:[%s2567_s21 + $0x650] sm:$0xff] %v521_v10  ;;  %524 = vst [vmem:[%s2567_s21 + $0x658] sm:$0xff] %v523_v11  ;;  %v527_v13 = vld [vmem:[%s2562_s20 + $0xc68] sm:$0xff]  ;;  %v529_v14 = vld [vmem:[%s2562_s20 + $0xc70] sm:$0xff] }
  0x78   : > { %526 = vst [vmem:[%s2567_s21 + $0x660] sm:$0xff] %v525_v12  ;;  %528 = vst [vmem:[%s2567_s21 + $0x668] sm:$0xff] %v527_v13  ;;  %v531_v15 = vld [vmem:[%s2562_s20 + $0xc78] sm:$0xff]  ;;  %v533_v16 = vld [vmem:[%s2562_s20 + $0xc80] sm:$0xff] }
  0x79   : > { %530 = vst [vmem:[%s2567_s21 + $0x670] sm:$0xff] %v529_v14  ;;  %v535_v17 = vld [vmem:[%s2562_s20 + $0xc88] sm:$0xff]  ;;  %532 = vst [vmem:[%s2567_s21 + $0x678] sm:$0xff] %v531_v15  ;;  %v537_v18 = vld [vmem:[%s2562_s20 + $0xc90] sm:$0xff] }
  0x7a   : > { %534 = vst [vmem:[%s2567_s21 + $0x680] sm:$0xff] %v533_v16  ;;  %536 = vst [vmem:[%s2567_s21 + $0x688] sm:$0xff] %v535_v17  ;;  %v539_v19 = vld [vmem:[%s2562_s20 + $0xc98] sm:$0xff]  ;;  %v541_v20 = vld [vmem:[%s2562_s20 + $0xca0] sm:$0xff] }
  0x7b   : > { %538 = vst [vmem:[%s2567_s21 + $0x690] sm:$0xff] %v537_v18  ;;  %540 = vst [vmem:[%s2567_s21 + $0x698] sm:$0xff] %v539_v19  ;;  %v543_v21 = vld [vmem:[%s2562_s20 + $0xca8] sm:$0xff]  ;;  %v545_v22 = vld [vmem:[%s2562_s20 + $0xcb0] sm:$0xff] }
  0x7c   : > { %542 = vst [vmem:[%s2567_s21 + $0x6a0] sm:$0xff] %v541_v20  ;;  %v547_v23 = vld [vmem:[%s2562_s20 + $0xcb8] sm:$0xff]  ;;  %544 = vst [vmem:[%s2567_s21 + $0x6a8] sm:$0xff] %v543_v21  ;;  %v549_v24 = vld [vmem:[%s2562_s20 + $0xcc0] sm:$0xff] }
  0x7d   : > { %546 = vst [vmem:[%s2567_s21 + $0x6b0] sm:$0xff] %v545_v22  ;;  %548 = vst [vmem:[%s2567_s21 + $0x6b8] sm:$0xff] %v547_v23  ;;  %v551_v25 = vld [vmem:[%s2562_s20 + $0xcc8] sm:$0xff]  ;;  %v553_v26 = vld [vmem:[%s2562_s20 + $0xcd0] sm:$0xff] }
  0x7e   : > { %550 = vst [vmem:[%s2567_s21 + $0x6c0] sm:$0xff] %v549_v24  ;;  %552 = vst [vmem:[%s2567_s21 + $0x6c8] sm:$0xff] %v551_v25  ;;  %v555_v27 = vld [vmem:[%s2562_s20 + $0xcd8] sm:$0xff]  ;;  %v557_v28 = vld [vmem:[%s2562_s20 + $0xce0] sm:$0xff] }
  0x7f   : > { %554 = vst [vmem:[%s2567_s21 + $0x6d0] sm:$0xff] %v553_v26  ;;  %v559_v29 = vld [vmem:[%s2562_s20 + $0xce8] sm:$0xff]  ;;  %556 = vst [vmem:[%s2567_s21 + $0x6d8] sm:$0xff] %v555_v27  ;;  %v561_v30 = vld [vmem:[%s2562_s20 + $0xcf0] sm:$0xff] }
  0x80   : > { %558 = vst [vmem:[%s2567_s21 + $0x6e0] sm:$0xff] %v557_v28  ;;  %560 = vst [vmem:[%s2567_s21 + $0x6e8] sm:$0xff] %v559_v29  ;;  %v563_v31 = vld [vmem:[%s2562_s20 + $0xcf8] sm:$0xff]  ;;  %v565_v32 = vld [vmem:[%s2562_s20 + $0xe00] sm:$0xff] }
  0x81   : > { %562 = vst [vmem:[%s2567_s21 + $0x6f0] sm:$0xff] %v561_v30  ;;  %564 = vst [vmem:[%s2567_s21 + $0x6f8] sm:$0xff] %v563_v31  ;;  %v567_v33 = vld [vmem:[%s2562_s20 + $0xe08] sm:$0xff]  ;;  %v569_v34 = vld [vmem:[%s2562_s20 + $0xe10] sm:$0xff] }
  0x82   : > { %566 = vst [vmem:[%s2567_s21 + $0x700] sm:$0xff] %v565_v32  ;;  %v571_v35 = vld [vmem:[%s2562_s20 + $0xe18] sm:$0xff]  ;;  %568 = vst [vmem:[%s2567_s21 + $0x708] sm:$0xff] %v567_v33  ;;  %v573_v36 = vld [vmem:[%s2562_s20 + $0xe20] sm:$0xff] }
  0x83   : > { %570 = vst [vmem:[%s2567_s21 + $0x710] sm:$0xff] %v569_v34  ;;  %572 = vst [vmem:[%s2567_s21 + $0x718] sm:$0xff] %v571_v35  ;;  %v575_v37 = vld [vmem:[%s2562_s20 + $0xe28] sm:$0xff]  ;;  %v577_v38 = vld [vmem:[%s2562_s20 + $0xe30] sm:$0xff] }
  0x84   : > { %574 = vst [vmem:[%s2567_s21 + $0x720] sm:$0xff] %v573_v36  ;;  %576 = vst [vmem:[%s2567_s21 + $0x728] sm:$0xff] %v575_v37  ;;  %v579_v39 = vld [vmem:[%s2562_s20 + $0xe38] sm:$0xff]  ;;  %v581_v40 = vld [vmem:[%s2562_s20 + $0xe40] sm:$0xff] }
  0x85   : > { %578 = vst [vmem:[%s2567_s21 + $0x730] sm:$0xff] %v577_v38  ;;  %v583_v41 = vld [vmem:[%s2562_s20 + $0xe48] sm:$0xff]  ;;  %580 = vst [vmem:[%s2567_s21 + $0x738] sm:$0xff] %v579_v39  ;;  %v585_v42 = vld [vmem:[%s2562_s20 + $0xe50] sm:$0xff] }
  0x86   : > { %582 = vst [vmem:[%s2567_s21 + $0x740] sm:$0xff] %v581_v40  ;;  %584 = vst [vmem:[%s2567_s21 + $0x748] sm:$0xff] %v583_v41  ;;  %v587_v43 = vld [vmem:[%s2562_s20 + $0xe58] sm:$0xff]  ;;  %v589_v44 = vld [vmem:[%s2562_s20 + $0xe60] sm:$0xff] }
  0x87   : > { %586 = vst [vmem:[%s2567_s21 + $0x750] sm:$0xff] %v585_v42  ;;  %588 = vst [vmem:[%s2567_s21 + $0x758] sm:$0xff] %v587_v43  ;;  %v591_v45 = vld [vmem:[%s2562_s20 + $0xe68] sm:$0xff]  ;;  %v593_v46 = vld [vmem:[%s2562_s20 + $0xe70] sm:$0xff] }
  0x88   : > { %590 = vst [vmem:[%s2567_s21 + $0x760] sm:$0xff] %v589_v44  ;;  %v595_v47 = vld [vmem:[%s2562_s20 + $0xe78] sm:$0xff]  ;;  %592 = vst [vmem:[%s2567_s21 + $0x768] sm:$0xff] %v591_v45  ;;  %v597_v48 = vld [vmem:[%s2562_s20 + $0xe80] sm:$0xff] }
  0x89   : > { %594 = vst [vmem:[%s2567_s21 + $0x770] sm:$0xff] %v593_v46  ;;  %596 = vst [vmem:[%s2567_s21 + $0x778] sm:$0xff] %v595_v47  ;;  %v599_v49 = vld [vmem:[%s2562_s20 + $0xe88] sm:$0xff]  ;;  %v601_v50 = vld [vmem:[%s2562_s20 + $0xe90] sm:$0xff] }
  0x8a   : > { %598 = vst [vmem:[%s2567_s21 + $0x780] sm:$0xff] %v597_v48  ;;  %600 = vst [vmem:[%s2567_s21 + $0x788] sm:$0xff] %v599_v49  ;;  %v603_v51 = vld [vmem:[%s2562_s20 + $0xe98] sm:$0xff]  ;;  %v605_v52 = vld [vmem:[%s2562_s20 + $0xea0] sm:$0xff] }
  0x8b   : > { %602 = vst [vmem:[%s2567_s21 + $0x790] sm:$0xff] %v601_v50  ;;  %v607_v53 = vld [vmem:[%s2562_s20 + $0xea8] sm:$0xff]  ;;  %604 = vst [vmem:[%s2567_s21 + $0x798] sm:$0xff] %v603_v51  ;;  %v609_v54 = vld [vmem:[%s2562_s20 + $0xeb0] sm:$0xff] }
  0x8c   : > { %606 = vst [vmem:[%s2567_s21 + $0x7a0] sm:$0xff] %v605_v52  ;;  %608 = vst [vmem:[%s2567_s21 + $0x7a8] sm:$0xff] %v607_v53  ;;  %v611_v55 = vld [vmem:[%s2562_s20 + $0xeb8] sm:$0xff]  ;;  %v613_v56 = vld [vmem:[%s2562_s20 + $0xec0] sm:$0xff] }
  0x8d   : > { %610 = vst [vmem:[%s2567_s21 + $0x7b0] sm:$0xff] %v609_v54  ;;  %612 = vst [vmem:[%s2567_s21 + $0x7b8] sm:$0xff] %v611_v55  ;;  %v615_v57 = vld [vmem:[%s2562_s20 + $0xec8] sm:$0xff]  ;;  %v617_v58 = vld [vmem:[%s2562_s20 + $0xed0] sm:$0xff] }
  0x8e   : > { %614 = vst [vmem:[%s2567_s21 + $0x7c0] sm:$0xff] %v613_v56  ;;  %v619_v59 = vld [vmem:[%s2562_s20 + $0xed8] sm:$0xff]  ;;  %616 = vst [vmem:[%s2567_s21 + $0x7c8] sm:$0xff] %v615_v57  ;;  %v621_v60 = vld [vmem:[%s2562_s20 + $0xee0] sm:$0xff] }
  0x8f   : > { %618 = vst [vmem:[%s2567_s21 + $0x7d0] sm:$0xff] %v617_v58  ;;  %620 = vst [vmem:[%s2567_s21 + $0x7d8] sm:$0xff] %v619_v59  ;;  %v623_v61 = vld [vmem:[%s2562_s20 + $0xee8] sm:$0xff]  ;;  %v625_v62 = vld [vmem:[%s2562_s20 + $0xef0] sm:$0xff] }
  0x90   : > { %622 = vst [vmem:[%s2567_s21 + $0x7e0] sm:$0xff] %v621_v60  ;;  %624 = vst [vmem:[%s2567_s21 + $0x7e8] sm:$0xff] %v623_v61  ;;  %v627_v63 = vld [vmem:[%s2562_s20 + $0xef8] sm:$0xff]  ;;  %v629_v0 = vld [vmem:[%s2562_s20 + $0x1000] sm:$0xff] }
  0x91   : > { %626 = vst [vmem:[%s2567_s21 + $0x7f0] sm:$0xff] %v625_v62  ;;  %v631_v1 = vld [vmem:[%s2562_s20 + $0x1008] sm:$0xff]  ;;  %628 = vst [vmem:[%s2567_s21 + $0x7f8] sm:$0xff] %v627_v63  ;;  %v633_v2 = vld [vmem:[%s2562_s20 + $0x1010] sm:$0xff] }
  0x92   : > { %630 = vst [vmem:[%s2567_s21 + $0x800] sm:$0xff] %v629_v0  ;;  %632 = vst [vmem:[%s2567_s21 + $0x808] sm:$0xff] %v631_v1  ;;  %v635_v3 = vld [vmem:[%s2562_s20 + $0x1018] sm:$0xff]  ;;  %v637_v4 = vld [vmem:[%s2562_s20 + $0x1020] sm:$0xff] }
  0x93   : > { %634 = vst [vmem:[%s2567_s21 + $0x810] sm:$0xff] %v633_v2  ;;  %636 = vst [vmem:[%s2567_s21 + $0x818] sm:$0xff] %v635_v3  ;;  %v639_v5 = vld [vmem:[%s2562_s20 + $0x1028] sm:$0xff]  ;;  %v641_v6 = vld [vmem:[%s2562_s20 + $0x1030] sm:$0xff] }
  0x94   : > { %638 = vst [vmem:[%s2567_s21 + $0x820] sm:$0xff] %v637_v4  ;;  %v643_v7 = vld [vmem:[%s2562_s20 + $0x1038] sm:$0xff]  ;;  %640 = vst [vmem:[%s2567_s21 + $0x828] sm:$0xff] %v639_v5  ;;  %v645_v8 = vld [vmem:[%s2562_s20 + $0x1040] sm:$0xff] }
  0x95   : > { %642 = vst [vmem:[%s2567_s21 + $0x830] sm:$0xff] %v641_v6  ;;  %644 = vst [vmem:[%s2567_s21 + $0x838] sm:$0xff] %v643_v7  ;;  %v647_v9 = vld [vmem:[%s2562_s20 + $0x1048] sm:$0xff]  ;;  %v649_v10 = vld [vmem:[%s2562_s20 + $0x1050] sm:$0xff] }
  0x96   : > { %646 = vst [vmem:[%s2567_s21 + $0x840] sm:$0xff] %v645_v8  ;;  %648 = vst [vmem:[%s2567_s21 + $0x848] sm:$0xff] %v647_v9  ;;  %v651_v11 = vld [vmem:[%s2562_s20 + $0x1058] sm:$0xff]  ;;  %v653_v12 = vld [vmem:[%s2562_s20 + $0x1060] sm:$0xff] }
  0x97   : > { %650 = vst [vmem:[%s2567_s21 + $0x850] sm:$0xff] %v649_v10  ;;  %v655_v13 = vld [vmem:[%s2562_s20 + $0x1068] sm:$0xff]  ;;  %652 = vst [vmem:[%s2567_s21 + $0x858] sm:$0xff] %v651_v11  ;;  %v657_v14 = vld [vmem:[%s2562_s20 + $0x1070] sm:$0xff] }
  0x98   : > { %654 = vst [vmem:[%s2567_s21 + $0x860] sm:$0xff] %v653_v12  ;;  %656 = vst [vmem:[%s2567_s21 + $0x868] sm:$0xff] %v655_v13  ;;  %v659_v15 = vld [vmem:[%s2562_s20 + $0x1078] sm:$0xff]  ;;  %v661_v16 = vld [vmem:[%s2562_s20 + $0x1080] sm:$0xff] }
  0x99   : > { %658 = vst [vmem:[%s2567_s21 + $0x870] sm:$0xff] %v657_v14  ;;  %660 = vst [vmem:[%s2567_s21 + $0x878] sm:$0xff] %v659_v15  ;;  %v663_v17 = vld [vmem:[%s2562_s20 + $0x1088] sm:$0xff]  ;;  %v665_v18 = vld [vmem:[%s2562_s20 + $0x1090] sm:$0xff] }
  0x9a   : > { %662 = vst [vmem:[%s2567_s21 + $0x880] sm:$0xff] %v661_v16  ;;  %v667_v19 = vld [vmem:[%s2562_s20 + $0x1098] sm:$0xff]  ;;  %664 = vst [vmem:[%s2567_s21 + $0x888] sm:$0xff] %v663_v17  ;;  %v669_v20 = vld [vmem:[%s2562_s20 + $0x10a0] sm:$0xff] }
  0x9b   : > { %666 = vst [vmem:[%s2567_s21 + $0x890] sm:$0xff] %v665_v18  ;;  %668 = vst [vmem:[%s2567_s21 + $0x898] sm:$0xff] %v667_v19  ;;  %v671_v21 = vld [vmem:[%s2562_s20 + $0x10a8] sm:$0xff]  ;;  %v673_v22 = vld [vmem:[%s2562_s20 + $0x10b0] sm:$0xff] }
  0x9c   : > { %670 = vst [vmem:[%s2567_s21 + $0x8a0] sm:$0xff] %v669_v20  ;;  %672 = vst [vmem:[%s2567_s21 + $0x8a8] sm:$0xff] %v671_v21  ;;  %v675_v23 = vld [vmem:[%s2562_s20 + $0x10b8] sm:$0xff]  ;;  %v677_v24 = vld [vmem:[%s2562_s20 + $0x10c0] sm:$0xff] }
  0x9d   : > { %674 = vst [vmem:[%s2567_s21 + $0x8b0] sm:$0xff] %v673_v22  ;;  %v679_v25 = vld [vmem:[%s2562_s20 + $0x10c8] sm:$0xff]  ;;  %676 = vst [vmem:[%s2567_s21 + $0x8b8] sm:$0xff] %v675_v23  ;;  %v681_v26 = vld [vmem:[%s2562_s20 + $0x10d0] sm:$0xff] }
  0x9e   : > { %678 = vst [vmem:[%s2567_s21 + $0x8c0] sm:$0xff] %v677_v24  ;;  %680 = vst [vmem:[%s2567_s21 + $0x8c8] sm:$0xff] %v679_v25  ;;  %v683_v27 = vld [vmem:[%s2562_s20 + $0x10d8] sm:$0xff]  ;;  %v685_v28 = vld [vmem:[%s2562_s20 + $0x10e0] sm:$0xff] }
  0x9f   : > { %682 = vst [vmem:[%s2567_s21 + $0x8d0] sm:$0xff] %v681_v26  ;;  %684 = vst [vmem:[%s2567_s21 + $0x8d8] sm:$0xff] %v683_v27  ;;  %v687_v29 = vld [vmem:[%s2562_s20 + $0x10e8] sm:$0xff]  ;;  %v689_v30 = vld [vmem:[%s2562_s20 + $0x10f0] sm:$0xff] }
  0xa0   : > { %686 = vst [vmem:[%s2567_s21 + $0x8e0] sm:$0xff] %v685_v28  ;;  %v691_v31 = vld [vmem:[%s2562_s20 + $0x10f8] sm:$0xff]  ;;  %688 = vst [vmem:[%s2567_s21 + $0x8e8] sm:$0xff] %v687_v29  ;;  %v693_v32 = vld [vmem:[%s2562_s20 + $0x1200] sm:$0xff] }
  0xa1   : > { %690 = vst [vmem:[%s2567_s21 + $0x8f0] sm:$0xff] %v689_v30  ;;  %692 = vst [vmem:[%s2567_s21 + $0x8f8] sm:$0xff] %v691_v31  ;;  %v695_v33 = vld [vmem:[%s2562_s20 + $0x1208] sm:$0xff]  ;;  %v697_v34 = vld [vmem:[%s2562_s20 + $0x1210] sm:$0xff] }
  0xa2   : > { %694 = vst [vmem:[%s2567_s21 + $0x900] sm:$0xff] %v693_v32  ;;  %696 = vst [vmem:[%s2567_s21 + $0x908] sm:$0xff] %v695_v33  ;;  %v699_v35 = vld [vmem:[%s2562_s20 + $0x1218] sm:$0xff]  ;;  %v701_v36 = vld [vmem:[%s2562_s20 + $0x1220] sm:$0xff] }
  0xa3   : > { %698 = vst [vmem:[%s2567_s21 + $0x910] sm:$0xff] %v697_v34  ;;  %v703_v37 = vld [vmem:[%s2562_s20 + $0x1228] sm:$0xff]  ;;  %700 = vst [vmem:[%s2567_s21 + $0x918] sm:$0xff] %v699_v35  ;;  %v705_v38 = vld [vmem:[%s2562_s20 + $0x1230] sm:$0xff] }
  0xa4   : > { %702 = vst [vmem:[%s2567_s21 + $0x920] sm:$0xff] %v701_v36  ;;  %704 = vst [vmem:[%s2567_s21 + $0x928] sm:$0xff] %v703_v37  ;;  %v707_v39 = vld [vmem:[%s2562_s20 + $0x1238] sm:$0xff]  ;;  %v709_v40 = vld [vmem:[%s2562_s20 + $0x1240] sm:$0xff] }
  0xa5   : > { %706 = vst [vmem:[%s2567_s21 + $0x930] sm:$0xff] %v705_v38  ;;  %708 = vst [vmem:[%s2567_s21 + $0x938] sm:$0xff] %v707_v39  ;;  %v711_v41 = vld [vmem:[%s2562_s20 + $0x1248] sm:$0xff]  ;;  %v713_v42 = vld [vmem:[%s2562_s20 + $0x1250] sm:$0xff] }
  0xa6   : > { %710 = vst [vmem:[%s2567_s21 + $0x940] sm:$0xff] %v709_v40  ;;  %v715_v43 = vld [vmem:[%s2562_s20 + $0x1258] sm:$0xff]  ;;  %712 = vst [vmem:[%s2567_s21 + $0x948] sm:$0xff] %v711_v41  ;;  %v717_v44 = vld [vmem:[%s2562_s20 + $0x1260] sm:$0xff] }
  0xa7   : > { %714 = vst [vmem:[%s2567_s21 + $0x950] sm:$0xff] %v713_v42  ;;  %716 = vst [vmem:[%s2567_s21 + $0x958] sm:$0xff] %v715_v43  ;;  %v719_v45 = vld [vmem:[%s2562_s20 + $0x1268] sm:$0xff]  ;;  %v721_v46 = vld [vmem:[%s2562_s20 + $0x1270] sm:$0xff] }
  0xa8   : > { %718 = vst [vmem:[%s2567_s21 + $0x960] sm:$0xff] %v717_v44  ;;  %720 = vst [vmem:[%s2567_s21 + $0x968] sm:$0xff] %v719_v45  ;;  %v723_v47 = vld [vmem:[%s2562_s20 + $0x1278] sm:$0xff]  ;;  %v725_v48 = vld [vmem:[%s2562_s20 + $0x1280] sm:$0xff] }
  0xa9   : > { %722 = vst [vmem:[%s2567_s21 + $0x970] sm:$0xff] %v721_v46  ;;  %v727_v49 = vld [vmem:[%s2562_s20 + $0x1288] sm:$0xff]  ;;  %724 = vst [vmem:[%s2567_s21 + $0x978] sm:$0xff] %v723_v47  ;;  %v729_v50 = vld [vmem:[%s2562_s20 + $0x1290] sm:$0xff] }
  0xaa   : > { %726 = vst [vmem:[%s2567_s21 + $0x980] sm:$0xff] %v725_v48  ;;  %728 = vst [vmem:[%s2567_s21 + $0x988] sm:$0xff] %v727_v49  ;;  %v731_v51 = vld [vmem:[%s2562_s20 + $0x1298] sm:$0xff]  ;;  %v733_v52 = vld [vmem:[%s2562_s20 + $0x12a0] sm:$0xff] }
  0xab   : > { %730 = vst [vmem:[%s2567_s21 + $0x990] sm:$0xff] %v729_v50  ;;  %732 = vst [vmem:[%s2567_s21 + $0x998] sm:$0xff] %v731_v51  ;;  %v735_v53 = vld [vmem:[%s2562_s20 + $0x12a8] sm:$0xff]  ;;  %v737_v54 = vld [vmem:[%s2562_s20 + $0x12b0] sm:$0xff] }
  0xac   : > { %734 = vst [vmem:[%s2567_s21 + $0x9a0] sm:$0xff] %v733_v52  ;;  %v739_v55 = vld [vmem:[%s2562_s20 + $0x12b8] sm:$0xff]  ;;  %736 = vst [vmem:[%s2567_s21 + $0x9a8] sm:$0xff] %v735_v53  ;;  %v741_v56 = vld [vmem:[%s2562_s20 + $0x12c0] sm:$0xff] }
  0xad   : > { %738 = vst [vmem:[%s2567_s21 + $0x9b0] sm:$0xff] %v737_v54  ;;  %740 = vst [vmem:[%s2567_s21 + $0x9b8] sm:$0xff] %v739_v55  ;;  %v743_v57 = vld [vmem:[%s2562_s20 + $0x12c8] sm:$0xff]  ;;  %v745_v58 = vld [vmem:[%s2562_s20 + $0x12d0] sm:$0xff] }
  0xae   : > { %742 = vst [vmem:[%s2567_s21 + $0x9c0] sm:$0xff] %v741_v56  ;;  %744 = vst [vmem:[%s2567_s21 + $0x9c8] sm:$0xff] %v743_v57  ;;  %v747_v59 = vld [vmem:[%s2562_s20 + $0x12d8] sm:$0xff]  ;;  %v749_v60 = vld [vmem:[%s2562_s20 + $0x12e0] sm:$0xff] }
  0xaf   : > { %746 = vst [vmem:[%s2567_s21 + $0x9d0] sm:$0xff] %v745_v58  ;;  %v751_v61 = vld [vmem:[%s2562_s20 + $0x12e8] sm:$0xff]  ;;  %748 = vst [vmem:[%s2567_s21 + $0x9d8] sm:$0xff] %v747_v59  ;;  %v753_v62 = vld [vmem:[%s2562_s20 + $0x12f0] sm:$0xff] }
  0xb0   : > { %750 = vst [vmem:[%s2567_s21 + $0x9e0] sm:$0xff] %v749_v60  ;;  %752 = vst [vmem:[%s2567_s21 + $0x9e8] sm:$0xff] %v751_v61  ;;  %v755_v63 = vld [vmem:[%s2562_s20 + $0x12f8] sm:$0xff]  ;;  %v757_v0 = vld [vmem:[%s2562_s20 + $0x1400] sm:$0xff] }
  0xb1   : > { %754 = vst [vmem:[%s2567_s21 + $0x9f0] sm:$0xff] %v753_v62  ;;  %756 = vst [vmem:[%s2567_s21 + $0x9f8] sm:$0xff] %v755_v63  ;;  %v759_v1 = vld [vmem:[%s2562_s20 + $0x1408] sm:$0xff]  ;;  %v761_v2 = vld [vmem:[%s2562_s20 + $0x1410] sm:$0xff] }
  0xb2   : > { %758 = vst [vmem:[%s2567_s21 + $0xa00] sm:$0xff] %v757_v0  ;;  %v763_v3 = vld [vmem:[%s2562_s20 + $0x1418] sm:$0xff]  ;;  %760 = vst [vmem:[%s2567_s21 + $0xa08] sm:$0xff] %v759_v1  ;;  %v765_v4 = vld [vmem:[%s2562_s20 + $0x1420] sm:$0xff] }
  0xb3   : > { %762 = vst [vmem:[%s2567_s21 + $0xa10] sm:$0xff] %v761_v2  ;;  %764 = vst [vmem:[%s2567_s21 + $0xa18] sm:$0xff] %v763_v3  ;;  %v767_v5 = vld [vmem:[%s2562_s20 + $0x1428] sm:$0xff]  ;;  %v769_v6 = vld [vmem:[%s2562_s20 + $0x1430] sm:$0xff] }
  0xb4   : > { %766 = vst [vmem:[%s2567_s21 + $0xa20] sm:$0xff] %v765_v4  ;;  %768 = vst [vmem:[%s2567_s21 + $0xa28] sm:$0xff] %v767_v5  ;;  %v771_v7 = vld [vmem:[%s2562_s20 + $0x1438] sm:$0xff]  ;;  %v773_v8 = vld [vmem:[%s2562_s20 + $0x1440] sm:$0xff] }
  0xb5   : > { %770 = vst [vmem:[%s2567_s21 + $0xa30] sm:$0xff] %v769_v6  ;;  %v775_v9 = vld [vmem:[%s2562_s20 + $0x1448] sm:$0xff]  ;;  %772 = vst [vmem:[%s2567_s21 + $0xa38] sm:$0xff] %v771_v7  ;;  %v777_v10 = vld [vmem:[%s2562_s20 + $0x1450] sm:$0xff] }
  0xb6   : > { %774 = vst [vmem:[%s2567_s21 + $0xa40] sm:$0xff] %v773_v8  ;;  %776 = vst [vmem:[%s2567_s21 + $0xa48] sm:$0xff] %v775_v9  ;;  %v779_v11 = vld [vmem:[%s2562_s20 + $0x1458] sm:$0xff]  ;;  %v781_v12 = vld [vmem:[%s2562_s20 + $0x1460] sm:$0xff] }
  0xb7   : > { %778 = vst [vmem:[%s2567_s21 + $0xa50] sm:$0xff] %v777_v10  ;;  %780 = vst [vmem:[%s2567_s21 + $0xa58] sm:$0xff] %v779_v11  ;;  %v783_v13 = vld [vmem:[%s2562_s20 + $0x1468] sm:$0xff]  ;;  %v785_v14 = vld [vmem:[%s2562_s20 + $0x1470] sm:$0xff] }
  0xb8   : > { %782 = vst [vmem:[%s2567_s21 + $0xa60] sm:$0xff] %v781_v12  ;;  %v787_v15 = vld [vmem:[%s2562_s20 + $0x1478] sm:$0xff]  ;;  %784 = vst [vmem:[%s2567_s21 + $0xa68] sm:$0xff] %v783_v13  ;;  %v789_v16 = vld [vmem:[%s2562_s20 + $0x1480] sm:$0xff] }
  0xb9   : > { %786 = vst [vmem:[%s2567_s21 + $0xa70] sm:$0xff] %v785_v14  ;;  %788 = vst [vmem:[%s2567_s21 + $0xa78] sm:$0xff] %v787_v15  ;;  %v791_v17 = vld [vmem:[%s2562_s20 + $0x1488] sm:$0xff]  ;;  %v793_v18 = vld [vmem:[%s2562_s20 + $0x1490] sm:$0xff] }
  0xba   : > { %790 = vst [vmem:[%s2567_s21 + $0xa80] sm:$0xff] %v789_v16  ;;  %792 = vst [vmem:[%s2567_s21 + $0xa88] sm:$0xff] %v791_v17  ;;  %v795_v19 = vld [vmem:[%s2562_s20 + $0x1498] sm:$0xff]  ;;  %v797_v20 = vld [vmem:[%s2562_s20 + $0x14a0] sm:$0xff] }
  0xbb   : > { %794 = vst [vmem:[%s2567_s21 + $0xa90] sm:$0xff] %v793_v18  ;;  %v799_v21 = vld [vmem:[%s2562_s20 + $0x14a8] sm:$0xff]  ;;  %796 = vst [vmem:[%s2567_s21 + $0xa98] sm:$0xff] %v795_v19  ;;  %v801_v22 = vld [vmem:[%s2562_s20 + $0x14b0] sm:$0xff] }
  0xbc   : > { %798 = vst [vmem:[%s2567_s21 + $0xaa0] sm:$0xff] %v797_v20  ;;  %800 = vst [vmem:[%s2567_s21 + $0xaa8] sm:$0xff] %v799_v21  ;;  %v803_v23 = vld [vmem:[%s2562_s20 + $0x14b8] sm:$0xff]  ;;  %v805_v24 = vld [vmem:[%s2562_s20 + $0x14c0] sm:$0xff] }
  0xbd   : > { %802 = vst [vmem:[%s2567_s21 + $0xab0] sm:$0xff] %v801_v22  ;;  %804 = vst [vmem:[%s2567_s21 + $0xab8] sm:$0xff] %v803_v23  ;;  %v807_v25 = vld [vmem:[%s2562_s20 + $0x14c8] sm:$0xff]  ;;  %v809_v26 = vld [vmem:[%s2562_s20 + $0x14d0] sm:$0xff] }
  0xbe   : > { %806 = vst [vmem:[%s2567_s21 + $0xac0] sm:$0xff] %v805_v24  ;;  %v811_v27 = vld [vmem:[%s2562_s20 + $0x14d8] sm:$0xff]  ;;  %808 = vst [vmem:[%s2567_s21 + $0xac8] sm:$0xff] %v807_v25  ;;  %v813_v28 = vld [vmem:[%s2562_s20 + $0x14e0] sm:$0xff] }
  0xbf   : > { %810 = vst [vmem:[%s2567_s21 + $0xad0] sm:$0xff] %v809_v26  ;;  %812 = vst [vmem:[%s2567_s21 + $0xad8] sm:$0xff] %v811_v27  ;;  %v815_v29 = vld [vmem:[%s2562_s20 + $0x14e8] sm:$0xff]  ;;  %v817_v30 = vld [vmem:[%s2562_s20 + $0x14f0] sm:$0xff] }
  0xc0   : > { %814 = vst [vmem:[%s2567_s21 + $0xae0] sm:$0xff] %v813_v28  ;;  %816 = vst [vmem:[%s2567_s21 + $0xae8] sm:$0xff] %v815_v29  ;;  %v819_v31 = vld [vmem:[%s2562_s20 + $0x14f8] sm:$0xff]  ;;  %v821_v32 = vld [vmem:[%s2562_s20 + $0x1600] sm:$0xff] }
  0xc1   : > { %818 = vst [vmem:[%s2567_s21 + $0xaf0] sm:$0xff] %v817_v30  ;;  %v823_v33 = vld [vmem:[%s2562_s20 + $0x1608] sm:$0xff]  ;;  %820 = vst [vmem:[%s2567_s21 + $0xaf8] sm:$0xff] %v819_v31  ;;  %v825_v34 = vld [vmem:[%s2562_s20 + $0x1610] sm:$0xff] }
  0xc2   : > { %822 = vst [vmem:[%s2567_s21 + $0xb00] sm:$0xff] %v821_v32  ;;  %824 = vst [vmem:[%s2567_s21 + $0xb08] sm:$0xff] %v823_v33  ;;  %v827_v35 = vld [vmem:[%s2562_s20 + $0x1618] sm:$0xff]  ;;  %v829_v36 = vld [vmem:[%s2562_s20 + $0x1620] sm:$0xff] }
  0xc3   : > { %826 = vst [vmem:[%s2567_s21 + $0xb10] sm:$0xff] %v825_v34  ;;  %828 = vst [vmem:[%s2567_s21 + $0xb18] sm:$0xff] %v827_v35  ;;  %v831_v37 = vld [vmem:[%s2562_s20 + $0x1628] sm:$0xff]  ;;  %v833_v38 = vld [vmem:[%s2562_s20 + $0x1630] sm:$0xff] }
  0xc4   : > { %830 = vst [vmem:[%s2567_s21 + $0xb20] sm:$0xff] %v829_v36  ;;  %v835_v39 = vld [vmem:[%s2562_s20 + $0x1638] sm:$0xff]  ;;  %832 = vst [vmem:[%s2567_s21 + $0xb28] sm:$0xff] %v831_v37  ;;  %v837_v40 = vld [vmem:[%s2562_s20 + $0x1640] sm:$0xff] }
  0xc5   : > { %834 = vst [vmem:[%s2567_s21 + $0xb30] sm:$0xff] %v833_v38  ;;  %836 = vst [vmem:[%s2567_s21 + $0xb38] sm:$0xff] %v835_v39  ;;  %v839_v41 = vld [vmem:[%s2562_s20 + $0x1648] sm:$0xff]  ;;  %v841_v42 = vld [vmem:[%s2562_s20 + $0x1650] sm:$0xff] }
  0xc6   : > { %838 = vst [vmem:[%s2567_s21 + $0xb40] sm:$0xff] %v837_v40  ;;  %840 = vst [vmem:[%s2567_s21 + $0xb48] sm:$0xff] %v839_v41  ;;  %v843_v43 = vld [vmem:[%s2562_s20 + $0x1658] sm:$0xff]  ;;  %v845_v44 = vld [vmem:[%s2562_s20 + $0x1660] sm:$0xff] }
  0xc7   : > { %842 = vst [vmem:[%s2567_s21 + $0xb50] sm:$0xff] %v841_v42  ;;  %v847_v45 = vld [vmem:[%s2562_s20 + $0x1668] sm:$0xff]  ;;  %844 = vst [vmem:[%s2567_s21 + $0xb58] sm:$0xff] %v843_v43  ;;  %v849_v46 = vld [vmem:[%s2562_s20 + $0x1670] sm:$0xff] }
  0xc8   : > { %846 = vst [vmem:[%s2567_s21 + $0xb60] sm:$0xff] %v845_v44  ;;  %848 = vst [vmem:[%s2567_s21 + $0xb68] sm:$0xff] %v847_v45  ;;  %v851_v47 = vld [vmem:[%s2562_s20 + $0x1678] sm:$0xff]  ;;  %v853_v48 = vld [vmem:[%s2562_s20 + $0x1680] sm:$0xff] }
  0xc9   : > { %850 = vst [vmem:[%s2567_s21 + $0xb70] sm:$0xff] %v849_v46  ;;  %852 = vst [vmem:[%s2567_s21 + $0xb78] sm:$0xff] %v851_v47  ;;  %v855_v49 = vld [vmem:[%s2562_s20 + $0x1688] sm:$0xff]  ;;  %v857_v50 = vld [vmem:[%s2562_s20 + $0x1690] sm:$0xff] }
  0xca   : > { %854 = vst [vmem:[%s2567_s21 + $0xb80] sm:$0xff] %v853_v48  ;;  %v859_v51 = vld [vmem:[%s2562_s20 + $0x1698] sm:$0xff]  ;;  %856 = vst [vmem:[%s2567_s21 + $0xb88] sm:$0xff] %v855_v49  ;;  %v861_v52 = vld [vmem:[%s2562_s20 + $0x16a0] sm:$0xff] }
  0xcb   : > { %858 = vst [vmem:[%s2567_s21 + $0xb90] sm:$0xff] %v857_v50  ;;  %860 = vst [vmem:[%s2567_s21 + $0xb98] sm:$0xff] %v859_v51  ;;  %v863_v53 = vld [vmem:[%s2562_s20 + $0x16a8] sm:$0xff]  ;;  %v865_v54 = vld [vmem:[%s2562_s20 + $0x16b0] sm:$0xff] }
  0xcc   : > { %862 = vst [vmem:[%s2567_s21 + $0xba0] sm:$0xff] %v861_v52  ;;  %864 = vst [vmem:[%s2567_s21 + $0xba8] sm:$0xff] %v863_v53  ;;  %v867_v55 = vld [vmem:[%s2562_s20 + $0x16b8] sm:$0xff]  ;;  %v869_v56 = vld [vmem:[%s2562_s20 + $0x16c0] sm:$0xff] }
  0xcd   : > { %866 = vst [vmem:[%s2567_s21 + $0xbb0] sm:$0xff] %v865_v54  ;;  %v871_v57 = vld [vmem:[%s2562_s20 + $0x16c8] sm:$0xff]  ;;  %868 = vst [vmem:[%s2567_s21 + $0xbb8] sm:$0xff] %v867_v55  ;;  %v873_v58 = vld [vmem:[%s2562_s20 + $0x16d0] sm:$0xff] }
  0xce   : > { %870 = vst [vmem:[%s2567_s21 + $0xbc0] sm:$0xff] %v869_v56  ;;  %872 = vst [vmem:[%s2567_s21 + $0xbc8] sm:$0xff] %v871_v57  ;;  %v875_v59 = vld [vmem:[%s2562_s20 + $0x16d8] sm:$0xff]  ;;  %v877_v60 = vld [vmem:[%s2562_s20 + $0x16e0] sm:$0xff] }
  0xcf   : > { %874 = vst [vmem:[%s2567_s21 + $0xbd0] sm:$0xff] %v873_v58  ;;  %876 = vst [vmem:[%s2567_s21 + $0xbd8] sm:$0xff] %v875_v59  ;;  %v879_v61 = vld [vmem:[%s2562_s20 + $0x16e8] sm:$0xff]  ;;  %v881_v62 = vld [vmem:[%s2562_s20 + $0x16f0] sm:$0xff] }
  0xd0   : > { %878 = vst [vmem:[%s2567_s21 + $0xbe0] sm:$0xff] %v877_v60  ;;  %v883_v63 = vld [vmem:[%s2562_s20 + $0x16f8] sm:$0xff]  ;;  %880 = vst [vmem:[%s2567_s21 + $0xbe8] sm:$0xff] %v879_v61  ;;  %v885_v0 = vld [vmem:[%s2562_s20 + $0x1800] sm:$0xff] }
  0xd1   : > { %882 = vst [vmem:[%s2567_s21 + $0xbf0] sm:$0xff] %v881_v62  ;;  %884 = vst [vmem:[%s2567_s21 + $0xbf8] sm:$0xff] %v883_v63  ;;  %v887_v1 = vld [vmem:[%s2562_s20 + $0x1808] sm:$0xff]  ;;  %v889_v2 = vld [vmem:[%s2562_s20 + $0x1810] sm:$0xff] }
  0xd2   : > { %886 = vst [vmem:[%s2567_s21 + $0xc00] sm:$0xff] %v885_v0  ;;  %888 = vst [vmem:[%s2567_s21 + $0xc08] sm:$0xff] %v887_v1  ;;  %v891_v3 = vld [vmem:[%s2562_s20 + $0x1818] sm:$0xff]  ;;  %v893_v4 = vld [vmem:[%s2562_s20 + $0x1820] sm:$0xff] }
  0xd3   : > { %890 = vst [vmem:[%s2567_s21 + $0xc10] sm:$0xff] %v889_v2  ;;  %v895_v5 = vld [vmem:[%s2562_s20 + $0x1828] sm:$0xff]  ;;  %892 = vst [vmem:[%s2567_s21 + $0xc18] sm:$0xff] %v891_v3  ;;  %v897_v6 = vld [vmem:[%s2562_s20 + $0x1830] sm:$0xff] }
  0xd4   : > { %894 = vst [vmem:[%s2567_s21 + $0xc20] sm:$0xff] %v893_v4  ;;  %896 = vst [vmem:[%s2567_s21 + $0xc28] sm:$0xff] %v895_v5  ;;  %v899_v7 = vld [vmem:[%s2562_s20 + $0x1838] sm:$0xff]  ;;  %v901_v8 = vld [vmem:[%s2562_s20 + $0x1840] sm:$0xff] }
  0xd5   : > { %898 = vst [vmem:[%s2567_s21 + $0xc30] sm:$0xff] %v897_v6  ;;  %900 = vst [vmem:[%s2567_s21 + $0xc38] sm:$0xff] %v899_v7  ;;  %v903_v9 = vld [vmem:[%s2562_s20 + $0x1848] sm:$0xff]  ;;  %v905_v10 = vld [vmem:[%s2562_s20 + $0x1850] sm:$0xff] }
  0xd6   : > { %902 = vst [vmem:[%s2567_s21 + $0xc40] sm:$0xff] %v901_v8  ;;  %v907_v11 = vld [vmem:[%s2562_s20 + $0x1858] sm:$0xff]  ;;  %904 = vst [vmem:[%s2567_s21 + $0xc48] sm:$0xff] %v903_v9  ;;  %v909_v12 = vld [vmem:[%s2562_s20 + $0x1860] sm:$0xff] }
  0xd7   : > { %906 = vst [vmem:[%s2567_s21 + $0xc50] sm:$0xff] %v905_v10  ;;  %908 = vst [vmem:[%s2567_s21 + $0xc58] sm:$0xff] %v907_v11  ;;  %v911_v13 = vld [vmem:[%s2562_s20 + $0x1868] sm:$0xff]  ;;  %v913_v14 = vld [vmem:[%s2562_s20 + $0x1870] sm:$0xff] }
  0xd8   : > { %910 = vst [vmem:[%s2567_s21 + $0xc60] sm:$0xff] %v909_v12  ;;  %912 = vst [vmem:[%s2567_s21 + $0xc68] sm:$0xff] %v911_v13  ;;  %v915_v15 = vld [vmem:[%s2562_s20 + $0x1878] sm:$0xff]  ;;  %v917_v16 = vld [vmem:[%s2562_s20 + $0x1880] sm:$0xff] }
  0xd9   : > { %914 = vst [vmem:[%s2567_s21 + $0xc70] sm:$0xff] %v913_v14  ;;  %v919_v17 = vld [vmem:[%s2562_s20 + $0x1888] sm:$0xff]  ;;  %916 = vst [vmem:[%s2567_s21 + $0xc78] sm:$0xff] %v915_v15  ;;  %v921_v18 = vld [vmem:[%s2562_s20 + $0x1890] sm:$0xff] }
  0xda   : > { %918 = vst [vmem:[%s2567_s21 + $0xc80] sm:$0xff] %v917_v16  ;;  %920 = vst [vmem:[%s2567_s21 + $0xc88] sm:$0xff] %v919_v17  ;;  %v923_v19 = vld [vmem:[%s2562_s20 + $0x1898] sm:$0xff]  ;;  %v925_v20 = vld [vmem:[%s2562_s20 + $0x18a0] sm:$0xff] }
  0xdb   : > { %922 = vst [vmem:[%s2567_s21 + $0xc90] sm:$0xff] %v921_v18  ;;  %924 = vst [vmem:[%s2567_s21 + $0xc98] sm:$0xff] %v923_v19  ;;  %v927_v21 = vld [vmem:[%s2562_s20 + $0x18a8] sm:$0xff]  ;;  %v929_v22 = vld [vmem:[%s2562_s20 + $0x18b0] sm:$0xff] }
  0xdc   : > { %926 = vst [vmem:[%s2567_s21 + $0xca0] sm:$0xff] %v925_v20  ;;  %v931_v23 = vld [vmem:[%s2562_s20 + $0x18b8] sm:$0xff]  ;;  %928 = vst [vmem:[%s2567_s21 + $0xca8] sm:$0xff] %v927_v21  ;;  %v933_v24 = vld [vmem:[%s2562_s20 + $0x18c0] sm:$0xff] }
  0xdd   : > { %930 = vst [vmem:[%s2567_s21 + $0xcb0] sm:$0xff] %v929_v22  ;;  %932 = vst [vmem:[%s2567_s21 + $0xcb8] sm:$0xff] %v931_v23  ;;  %v935_v25 = vld [vmem:[%s2562_s20 + $0x18c8] sm:$0xff]  ;;  %v937_v26 = vld [vmem:[%s2562_s20 + $0x18d0] sm:$0xff] }
  0xde   : > { %934 = vst [vmem:[%s2567_s21 + $0xcc0] sm:$0xff] %v933_v24  ;;  %936 = vst [vmem:[%s2567_s21 + $0xcc8] sm:$0xff] %v935_v25  ;;  %v939_v27 = vld [vmem:[%s2562_s20 + $0x18d8] sm:$0xff]  ;;  %v941_v28 = vld [vmem:[%s2562_s20 + $0x18e0] sm:$0xff] }
  0xdf   : > { %938 = vst [vmem:[%s2567_s21 + $0xcd0] sm:$0xff] %v937_v26  ;;  %v943_v29 = vld [vmem:[%s2562_s20 + $0x18e8] sm:$0xff]  ;;  %940 = vst [vmem:[%s2567_s21 + $0xcd8] sm:$0xff] %v939_v27  ;;  %v945_v30 = vld [vmem:[%s2562_s20 + $0x18f0] sm:$0xff] }
  0xe0   : > { %942 = vst [vmem:[%s2567_s21 + $0xce0] sm:$0xff] %v941_v28  ;;  %944 = vst [vmem:[%s2567_s21 + $0xce8] sm:$0xff] %v943_v29  ;;  %v947_v31 = vld [vmem:[%s2562_s20 + $0x18f8] sm:$0xff]  ;;  %v949_v32 = vld [vmem:[%s2562_s20 + $0x1a00] sm:$0xff] }
  0xe1   : > { %946 = vst [vmem:[%s2567_s21 + $0xcf0] sm:$0xff] %v945_v30  ;;  %948 = vst [vmem:[%s2567_s21 + $0xcf8] sm:$0xff] %v947_v31  ;;  %v951_v33 = vld [vmem:[%s2562_s20 + $0x1a08] sm:$0xff]  ;;  %v953_v34 = vld [vmem:[%s2562_s20 + $0x1a10] sm:$0xff] }
  0xe2   : > { %950 = vst [vmem:[%s2567_s21 + $0xd00] sm:$0xff] %v949_v32  ;;  %v955_v35 = vld [vmem:[%s2562_s20 + $0x1a18] sm:$0xff]  ;;  %952 = vst [vmem:[%s2567_s21 + $0xd08] sm:$0xff] %v951_v33  ;;  %v957_v36 = vld [vmem:[%s2562_s20 + $0x1a20] sm:$0xff] }
  0xe3   : > { %954 = vst [vmem:[%s2567_s21 + $0xd10] sm:$0xff] %v953_v34  ;;  %956 = vst [vmem:[%s2567_s21 + $0xd18] sm:$0xff] %v955_v35  ;;  %v959_v37 = vld [vmem:[%s2562_s20 + $0x1a28] sm:$0xff]  ;;  %v961_v38 = vld [vmem:[%s2562_s20 + $0x1a30] sm:$0xff] }
  0xe4   : > { %958 = vst [vmem:[%s2567_s21 + $0xd20] sm:$0xff] %v957_v36  ;;  %960 = vst [vmem:[%s2567_s21 + $0xd28] sm:$0xff] %v959_v37  ;;  %v963_v39 = vld [vmem:[%s2562_s20 + $0x1a38] sm:$0xff]  ;;  %v965_v40 = vld [vmem:[%s2562_s20 + $0x1a40] sm:$0xff] }
  0xe5   : > { %962 = vst [vmem:[%s2567_s21 + $0xd30] sm:$0xff] %v961_v38  ;;  %v967_v41 = vld [vmem:[%s2562_s20 + $0x1a48] sm:$0xff]  ;;  %964 = vst [vmem:[%s2567_s21 + $0xd38] sm:$0xff] %v963_v39  ;;  %v969_v42 = vld [vmem:[%s2562_s20 + $0x1a50] sm:$0xff] }
  0xe6   : > { %966 = vst [vmem:[%s2567_s21 + $0xd40] sm:$0xff] %v965_v40  ;;  %968 = vst [vmem:[%s2567_s21 + $0xd48] sm:$0xff] %v967_v41  ;;  %v971_v43 = vld [vmem:[%s2562_s20 + $0x1a58] sm:$0xff]  ;;  %v973_v44 = vld [vmem:[%s2562_s20 + $0x1a60] sm:$0xff] }
  0xe7   : > { %970 = vst [vmem:[%s2567_s21 + $0xd50] sm:$0xff] %v969_v42  ;;  %972 = vst [vmem:[%s2567_s21 + $0xd58] sm:$0xff] %v971_v43  ;;  %v975_v45 = vld [vmem:[%s2562_s20 + $0x1a68] sm:$0xff]  ;;  %v977_v46 = vld [vmem:[%s2562_s20 + $0x1a70] sm:$0xff] }
  0xe8   : > { %974 = vst [vmem:[%s2567_s21 + $0xd60] sm:$0xff] %v973_v44  ;;  %v979_v47 = vld [vmem:[%s2562_s20 + $0x1a78] sm:$0xff]  ;;  %976 = vst [vmem:[%s2567_s21 + $0xd68] sm:$0xff] %v975_v45  ;;  %v981_v48 = vld [vmem:[%s2562_s20 + $0x1a80] sm:$0xff] }
  0xe9   : > { %978 = vst [vmem:[%s2567_s21 + $0xd70] sm:$0xff] %v977_v46  ;;  %980 = vst [vmem:[%s2567_s21 + $0xd78] sm:$0xff] %v979_v47  ;;  %v983_v49 = vld [vmem:[%s2562_s20 + $0x1a88] sm:$0xff]  ;;  %v985_v50 = vld [vmem:[%s2562_s20 + $0x1a90] sm:$0xff] }
  0xea   : > { %982 = vst [vmem:[%s2567_s21 + $0xd80] sm:$0xff] %v981_v48  ;;  %984 = vst [vmem:[%s2567_s21 + $0xd88] sm:$0xff] %v983_v49  ;;  %v987_v51 = vld [vmem:[%s2562_s20 + $0x1a98] sm:$0xff]  ;;  %v989_v52 = vld [vmem:[%s2562_s20 + $0x1aa0] sm:$0xff] }
  0xeb   : > { %986 = vst [vmem:[%s2567_s21 + $0xd90] sm:$0xff] %v985_v50  ;;  %v991_v53 = vld [vmem:[%s2562_s20 + $0x1aa8] sm:$0xff]  ;;  %988 = vst [vmem:[%s2567_s21 + $0xd98] sm:$0xff] %v987_v51  ;;  %v993_v54 = vld [vmem:[%s2562_s20 + $0x1ab0] sm:$0xff] }
  0xec   : > { %990 = vst [vmem:[%s2567_s21 + $0xda0] sm:$0xff] %v989_v52  ;;  %992 = vst [vmem:[%s2567_s21 + $0xda8] sm:$0xff] %v991_v53  ;;  %v995_v55 = vld [vmem:[%s2562_s20 + $0x1ab8] sm:$0xff]  ;;  %v997_v56 = vld [vmem:[%s2562_s20 + $0x1ac0] sm:$0xff] }
  0xed   : > { %994 = vst [vmem:[%s2567_s21 + $0xdb0] sm:$0xff] %v993_v54  ;;  %996 = vst [vmem:[%s2567_s21 + $0xdb8] sm:$0xff] %v995_v55  ;;  %v999_v57 = vld [vmem:[%s2562_s20 + $0x1ac8] sm:$0xff]  ;;  %v1001_v58 = vld [vmem:[%s2562_s20 + $0x1ad0] sm:$0xff] }
  0xee   : > { %998 = vst [vmem:[%s2567_s21 + $0xdc0] sm:$0xff] %v997_v56  ;;  %v1003_v59 = vld [vmem:[%s2562_s20 + $0x1ad8] sm:$0xff]  ;;  %1000 = vst [vmem:[%s2567_s21 + $0xdc8] sm:$0xff] %v999_v57  ;;  %v1005_v60 = vld [vmem:[%s2562_s20 + $0x1ae0] sm:$0xff] }
  0xef   : > { %1002 = vst [vmem:[%s2567_s21 + $0xdd0] sm:$0xff] %v1001_v58  ;;  %1004 = vst [vmem:[%s2567_s21 + $0xdd8] sm:$0xff] %v1003_v59  ;;  %v1007_v61 = vld [vmem:[%s2562_s20 + $0x1ae8] sm:$0xff]  ;;  %v1009_v62 = vld [vmem:[%s2562_s20 + $0x1af0] sm:$0xff] }
  0xf0   : > { %1006 = vst [vmem:[%s2567_s21 + $0xde0] sm:$0xff] %v1005_v60  ;;  %1008 = vst [vmem:[%s2567_s21 + $0xde8] sm:$0xff] %v1007_v61  ;;  %v1011_v63 = vld [vmem:[%s2562_s20 + $0x1af8] sm:$0xff]  ;;  %v1013_v0 = vld [vmem:[%s2562_s20 + $0x1c00] sm:$0xff] }
  0xf1   : > { %1010 = vst [vmem:[%s2567_s21 + $0xdf0] sm:$0xff] %v1009_v62  ;;  %v1015_v1 = vld [vmem:[%s2562_s20 + $0x1c08] sm:$0xff]  ;;  %1012 = vst [vmem:[%s2567_s21 + $0xdf8] sm:$0xff] %v1011_v63  ;;  %v1017_v2 = vld [vmem:[%s2562_s20 + $0x1c10] sm:$0xff] }
  0xf2   : > { %1014 = vst [vmem:[%s2567_s21 + $0xe00] sm:$0xff] %v1013_v0  ;;  %1016 = vst [vmem:[%s2567_s21 + $0xe08] sm:$0xff] %v1015_v1  ;;  %v1019_v3 = vld [vmem:[%s2562_s20 + $0x1c18] sm:$0xff]  ;;  %v1021_v4 = vld [vmem:[%s2562_s20 + $0x1c20] sm:$0xff] }
  0xf3   : > { %1018 = vst [vmem:[%s2567_s21 + $0xe10] sm:$0xff] %v1017_v2  ;;  %1020 = vst [vmem:[%s2567_s21 + $0xe18] sm:$0xff] %v1019_v3  ;;  %v1023_v5 = vld [vmem:[%s2562_s20 + $0x1c28] sm:$0xff]  ;;  %v1025_v6 = vld [vmem:[%s2562_s20 + $0x1c30] sm:$0xff] }
  0xf4   : > { %1022 = vst [vmem:[%s2567_s21 + $0xe20] sm:$0xff] %v1021_v4  ;;  %v1027_v7 = vld [vmem:[%s2562_s20 + $0x1c38] sm:$0xff]  ;;  %1024 = vst [vmem:[%s2567_s21 + $0xe28] sm:$0xff] %v1023_v5  ;;  %v1029_v8 = vld [vmem:[%s2562_s20 + $0x1c40] sm:$0xff] }
  0xf5   : > { %1026 = vst [vmem:[%s2567_s21 + $0xe30] sm:$0xff] %v1025_v6  ;;  %1028 = vst [vmem:[%s2567_s21 + $0xe38] sm:$0xff] %v1027_v7  ;;  %v1031_v9 = vld [vmem:[%s2562_s20 + $0x1c48] sm:$0xff]  ;;  %v1033_v10 = vld [vmem:[%s2562_s20 + $0x1c50] sm:$0xff] }
  0xf6   : > { %1030 = vst [vmem:[%s2567_s21 + $0xe40] sm:$0xff] %v1029_v8  ;;  %1032 = vst [vmem:[%s2567_s21 + $0xe48] sm:$0xff] %v1031_v9  ;;  %v1035_v11 = vld [vmem:[%s2562_s20 + $0x1c58] sm:$0xff]  ;;  %v1037_v12 = vld [vmem:[%s2562_s20 + $0x1c60] sm:$0xff] }
  0xf7   : > { %1034 = vst [vmem:[%s2567_s21 + $0xe50] sm:$0xff] %v1033_v10  ;;  %v1039_v13 = vld [vmem:[%s2562_s20 + $0x1c68] sm:$0xff]  ;;  %1036 = vst [vmem:[%s2567_s21 + $0xe58] sm:$0xff] %v1035_v11  ;;  %v1041_v14 = vld [vmem:[%s2562_s20 + $0x1c70] sm:$0xff] }
  0xf8   : > { %1038 = vst [vmem:[%s2567_s21 + $0xe60] sm:$0xff] %v1037_v12  ;;  %1040 = vst [vmem:[%s2567_s21 + $0xe68] sm:$0xff] %v1039_v13  ;;  %v1043_v15 = vld [vmem:[%s2562_s20 + $0x1c78] sm:$0xff]  ;;  %v1045_v16 = vld [vmem:[%s2562_s20 + $0x1c80] sm:$0xff] }
  0xf9   : > { %1042 = vst [vmem:[%s2567_s21 + $0xe70] sm:$0xff] %v1041_v14  ;;  %1044 = vst [vmem:[%s2567_s21 + $0xe78] sm:$0xff] %v1043_v15  ;;  %v1047_v17 = vld [vmem:[%s2562_s20 + $0x1c88] sm:$0xff]  ;;  %v1049_v18 = vld [vmem:[%s2562_s20 + $0x1c90] sm:$0xff] }
  0xfa   : > { %1046 = vst [vmem:[%s2567_s21 + $0xe80] sm:$0xff] %v1045_v16  ;;  %v1051_v19 = vld [vmem:[%s2562_s20 + $0x1c98] sm:$0xff]  ;;  %1048 = vst [vmem:[%s2567_s21 + $0xe88] sm:$0xff] %v1047_v17  ;;  %v1053_v20 = vld [vmem:[%s2562_s20 + $0x1ca0] sm:$0xff] }
  0xfb   : > { %1050 = vst [vmem:[%s2567_s21 + $0xe90] sm:$0xff] %v1049_v18  ;;  %1052 = vst [vmem:[%s2567_s21 + $0xe98] sm:$0xff] %v1051_v19  ;;  %v1055_v21 = vld [vmem:[%s2562_s20 + $0x1ca8] sm:$0xff]  ;;  %v1057_v22 = vld [vmem:[%s2562_s20 + $0x1cb0] sm:$0xff] }
  0xfc   : > { %1054 = vst [vmem:[%s2567_s21 + $0xea0] sm:$0xff] %v1053_v20  ;;  %1056 = vst [vmem:[%s2567_s21 + $0xea8] sm:$0xff] %v1055_v21  ;;  %v1059_v23 = vld [vmem:[%s2562_s20 + $0x1cb8] sm:$0xff]  ;;  %v1061_v24 = vld [vmem:[%s2562_s20 + $0x1cc0] sm:$0xff] }
  0xfd   : > { %1058 = vst [vmem:[%s2567_s21 + $0xeb0] sm:$0xff] %v1057_v22  ;;  %v1063_v25 = vld [vmem:[%s2562_s20 + $0x1cc8] sm:$0xff]  ;;  %1060 = vst [vmem:[%s2567_s21 + $0xeb8] sm:$0xff] %v1059_v23  ;;  %v1065_v26 = vld [vmem:[%s2562_s20 + $0x1cd0] sm:$0xff] }
  0xfe   : > { %1062 = vst [vmem:[%s2567_s21 + $0xec0] sm:$0xff] %v1061_v24  ;;  %1064 = vst [vmem:[%s2567_s21 + $0xec8] sm:$0xff] %v1063_v25  ;;  %v1067_v27 = vld [vmem:[%s2562_s20 + $0x1cd8] sm:$0xff]  ;;  %v1069_v28 = vld [vmem:[%s2562_s20 + $0x1ce0] sm:$0xff] }
  0xff   : > { %1066 = vst [vmem:[%s2567_s21 + $0xed0] sm:$0xff] %v1065_v26  ;;  %1068 = vst [vmem:[%s2567_s21 + $0xed8] sm:$0xff] %v1067_v27  ;;  %v1071_v29 = vld [vmem:[%s2562_s20 + $0x1ce8] sm:$0xff]  ;;  %v1073_v30 = vld [vmem:[%s2562_s20 + $0x1cf0] sm:$0xff] }
 0x100   : > { %1070 = vst [vmem:[%s2567_s21 + $0xee0] sm:$0xff] %v1069_v28  ;;  %v1075_v31 = vld [vmem:[%s2562_s20 + $0x1cf8] sm:$0xff]  ;;  %1072 = vst [vmem:[%s2567_s21 + $0xee8] sm:$0xff] %v1071_v29  ;;  %v1077_v32 = vld [vmem:[%s2562_s20 + $0x1e00] sm:$0xff] }
 0x101   : > { %1074 = vst [vmem:[%s2567_s21 + $0xef0] sm:$0xff] %v1073_v30  ;;  %1076 = vst [vmem:[%s2567_s21 + $0xef8] sm:$0xff] %v1075_v31  ;;  %v1079_v33 = vld [vmem:[%s2562_s20 + $0x1e08] sm:$0xff]  ;;  %v1081_v34 = vld [vmem:[%s2562_s20 + $0x1e10] sm:$0xff] }
 0x102   : > { %1078 = vst [vmem:[%s2567_s21 + $0xf00] sm:$0xff] %v1077_v32  ;;  %1080 = vst [vmem:[%s2567_s21 + $0xf08] sm:$0xff] %v1079_v33  ;;  %v1083_v35 = vld [vmem:[%s2562_s20 + $0x1e18] sm:$0xff]  ;;  %v1085_v36 = vld [vmem:[%s2562_s20 + $0x1e20] sm:$0xff] }
 0x103   : > { %1082 = vst [vmem:[%s2567_s21 + $0xf10] sm:$0xff] %v1081_v34  ;;  %v1087_v37 = vld [vmem:[%s2562_s20 + $0x1e28] sm:$0xff]  ;;  %1084 = vst [vmem:[%s2567_s21 + $0xf18] sm:$0xff] %v1083_v35  ;;  %v1089_v38 = vld [vmem:[%s2562_s20 + $0x1e30] sm:$0xff] }
 0x104   : > { %1086 = vst [vmem:[%s2567_s21 + $0xf20] sm:$0xff] %v1085_v36  ;;  %1088 = vst [vmem:[%s2567_s21 + $0xf28] sm:$0xff] %v1087_v37  ;;  %v1091_v39 = vld [vmem:[%s2562_s20 + $0x1e38] sm:$0xff]  ;;  %v1093_v40 = vld [vmem:[%s2562_s20 + $0x1e40] sm:$0xff] }
 0x105   : > { %1090 = vst [vmem:[%s2567_s21 + $0xf30] sm:$0xff] %v1089_v38  ;;  %1092 = vst [vmem:[%s2567_s21 + $0xf38] sm:$0xff] %v1091_v39  ;;  %v1095_v41 = vld [vmem:[%s2562_s20 + $0x1e48] sm:$0xff]  ;;  %v1097_v42 = vld [vmem:[%s2562_s20 + $0x1e50] sm:$0xff] }
 0x106   : > { %1094 = vst [vmem:[%s2567_s21 + $0xf40] sm:$0xff] %v1093_v40  ;;  %v1099_v43 = vld [vmem:[%s2562_s20 + $0x1e58] sm:$0xff]  ;;  %1096 = vst [vmem:[%s2567_s21 + $0xf48] sm:$0xff] %v1095_v41  ;;  %v1101_v44 = vld [vmem:[%s2562_s20 + $0x1e60] sm:$0xff] }
 0x107   : > { %1098 = vst [vmem:[%s2567_s21 + $0xf50] sm:$0xff] %v1097_v42  ;;  %1100 = vst [vmem:[%s2567_s21 + $0xf58] sm:$0xff] %v1099_v43  ;;  %v1103_v45 = vld [vmem:[%s2562_s20 + $0x1e68] sm:$0xff]  ;;  %v1105_v46 = vld [vmem:[%s2562_s20 + $0x1e70] sm:$0xff] }
 0x108   : > { %1102 = vst [vmem:[%s2567_s21 + $0xf60] sm:$0xff] %v1101_v44  ;;  %1104 = vst [vmem:[%s2567_s21 + $0xf68] sm:$0xff] %v1103_v45  ;;  %v1107_v47 = vld [vmem:[%s2562_s20 + $0x1e78] sm:$0xff]  ;;  %v1109_v48 = vld [vmem:[%s2562_s20 + $0x1e80] sm:$0xff] }
 0x109   : > { %1106 = vst [vmem:[%s2567_s21 + $0xf70] sm:$0xff] %v1105_v46  ;;  %v1111_v49 = vld [vmem:[%s2562_s20 + $0x1e88] sm:$0xff]  ;;  %1108 = vst [vmem:[%s2567_s21 + $0xf78] sm:$0xff] %v1107_v47  ;;  %v1113_v50 = vld [vmem:[%s2562_s20 + $0x1e90] sm:$0xff] }
 0x10a   : > { %1110 = vst [vmem:[%s2567_s21 + $0xf80] sm:$0xff] %v1109_v48  ;;  %1112 = vst [vmem:[%s2567_s21 + $0xf88] sm:$0xff] %v1111_v49  ;;  %v1115_v51 = vld [vmem:[%s2562_s20 + $0x1e98] sm:$0xff]  ;;  %v1117_v52 = vld [vmem:[%s2562_s20 + $0x1ea0] sm:$0xff] }
 0x10b   : > { %1114 = vst [vmem:[%s2567_s21 + $0xf90] sm:$0xff] %v1113_v50  ;;  %1116 = vst [vmem:[%s2567_s21 + $0xf98] sm:$0xff] %v1115_v51  ;;  %v1119_v53 = vld [vmem:[%s2562_s20 + $0x1ea8] sm:$0xff]  ;;  %v1121_v54 = vld [vmem:[%s2562_s20 + $0x1eb0] sm:$0xff] }
 0x10c   : > { %1118 = vst [vmem:[%s2567_s21 + $0xfa0] sm:$0xff] %v1117_v52  ;;  %v1123_v55 = vld [vmem:[%s2562_s20 + $0x1eb8] sm:$0xff]  ;;  %1120 = vst [vmem:[%s2567_s21 + $0xfa8] sm:$0xff] %v1119_v53  ;;  %v1125_v56 = vld [vmem:[%s2562_s20 + $0x1ec0] sm:$0xff] }
 0x10d   : > { %1122 = vst [vmem:[%s2567_s21 + $0xfb0] sm:$0xff] %v1121_v54  ;;  %1124 = vst [vmem:[%s2567_s21 + $0xfb8] sm:$0xff] %v1123_v55  ;;  %v1127_v57 = vld [vmem:[%s2562_s20 + $0x1ec8] sm:$0xff]  ;;  %v1129_v58 = vld [vmem:[%s2562_s20 + $0x1ed0] sm:$0xff] }
 0x10e   : > { %1126 = vst [vmem:[%s2567_s21 + $0xfc0] sm:$0xff] %v1125_v56  ;;  %1128 = vst [vmem:[%s2567_s21 + $0xfc8] sm:$0xff] %v1127_v57  ;;  %v1131_v59 = vld [vmem:[%s2562_s20 + $0x1ed8] sm:$0xff]  ;;  %v1133_v60 = vld [vmem:[%s2562_s20 + $0x1ee0] sm:$0xff] }
 0x10f   : > { %1130 = vst [vmem:[%s2567_s21 + $0xfd0] sm:$0xff] %v1129_v58  ;;  %v1135_v61 = vld [vmem:[%s2562_s20 + $0x1ee8] sm:$0xff]  ;;  %1132 = vst [vmem:[%s2567_s21 + $0xfd8] sm:$0xff] %v1131_v59  ;;  %v1137_v62 = vld [vmem:[%s2562_s20 + $0x1ef0] sm:$0xff] }
 0x110   : > { %1134 = vst [vmem:[%s2567_s21 + $0xfe0] sm:$0xff] %v1133_v60  ;;  %1136 = vst [vmem:[%s2567_s21 + $0xfe8] sm:$0xff] %v1135_v61  ;;  %v1139_v63 = vld [vmem:[%s2562_s20 + $0x1ef8] sm:$0xff] }
 0x111   : > { %1138 = vst [vmem:[%s2567_s21 + $0xff0] sm:$0xff] %v1137_v62  ;;  %1140 = vst [vmem:[%s2567_s21 + $0xff8] sm:$0xff] %v1139_v63 }
 0x112 PF: > { %p2418_p6 = scmp.ge.s32.totalorder %s2506_s10, 1  ;;  %p1145_p7 = scmp.lt.s32.totalorder %s2506_s10, 3 }
 0x114   : > { %p1146_p8 = pnand %p2418_p6, %p1145_p7 }
 0x115   : > { %s1152_s22 = sand.u32 (!%p1146_p8), 1, %s2490_s6   ;;  %p2420_p9 = scmp.ne.s32.totalorder (!%p1146_p8), %s2498_s8, 0 }
 0x116   : > { %1149 = sbr.rel (%p1146_p8) target bundleno = 657 (0x291), region = 43  ;;  %s2419_s23 = sshll.u32 (!%p1146_p8), %s1152_s22, 12 }
 0x117   : > { %s3593_s24 = scalar_lea.vmem (!%p1146_p8), [#allocation3], %s2419_s23 }
 0x11d   : > { %1182 = sbr.rel (%p2420_p9) target bundleno = 294 (0x126), region = 51  ;;  %vm1183_vm0 = vcmask (!%p2420_p9), 7168   ;;  %v2508_v0 = vmov (!%p2420_p9), 0.0  }
 0x11e   : > { %1184 = vst.msk [vmem:[#allocation2] sm:$0xff] (!%p2420_p9), %vm1183_vm0, %v2508_v0  ;;  %1185 = vst.msk [vmem:[#allocation2 + $0x8] sm:$0xff] (!%p2420_p9), %vm1183_vm0, %v2508_v0 }
 0x11f   : > { %1186 = vst.msk [vmem:[#allocation2 + $0x10] sm:$0xff] (!%p2420_p9), %vm1183_vm0, %v2508_v0  ;;  %1187 = vst.msk [vmem:[#allocation2 + $0x18] sm:$0xff] (!%p2420_p9), %vm1183_vm0, %v2508_v0 }
 0x120   : > { %1188 = vst.msk [vmem:[#allocation2 + $0x20] sm:$0xff] (!%p2420_p9), %vm1183_vm0, %v2508_v0  ;;  %1189 = vst.msk [vmem:[#allocation2 + $0x28] sm:$0xff] (!%p2420_p9), %vm1183_vm0, %v2508_v0 }
 0x121   : > { %1190 = vst.msk [vmem:[#allocation2 + $0x30] sm:$0xff] (!%p2420_p9), %vm1183_vm0, %v2508_v0  ;;  %1191 = vst.msk [vmem:[#allocation2 + $0x38] sm:$0xff] (!%p2420_p9), %vm1183_vm0, %v2508_v0 }
 0x122   : > { %1192 = vst.msk [vmem:[#allocation2 + $0x40] sm:$0xff] (!%p2420_p9), %vm1183_vm0, %v2508_v0  ;;  %1193 = vst.msk [vmem:[#allocation2 + $0x48] sm:$0xff] (!%p2420_p9), %vm1183_vm0, %v2508_v0 }
 0x123   : > { %1194 = vst.msk [vmem:[#allocation2 + $0x50] sm:$0xff] (!%p2420_p9), %vm1183_vm0, %v2508_v0  ;;  %1195 = vst.msk [vmem:[#allocation2 + $0x58] sm:$0xff] (!%p2420_p9), %vm1183_vm0, %v2508_v0 }
 0x124   : > { %1196 = vst.msk [vmem:[#allocation2 + $0x60] sm:$0xff] %vm1183_vm0, %v2508_v0  ;;  %1197 = vst.msk [vmem:[#allocation2 + $0x68] sm:$0xff] %vm1183_vm0, %v2508_v0 }
 0x125   : > { %1198 = vst.msk [vmem:[#allocation2 + $0x70] sm:$0xff] %vm1183_vm0, %v2508_v0  ;;  %1199 = vst.msk [vmem:[#allocation2 + $0x78] sm:$0xff] %vm1183_vm0, %v2508_v0 }
 0x126 PF: > { %v1264_v1 = vld [vmem:[%s3593_s24 + $0x200] sm:$0xff]  ;;  %v1265_v2 = vld [vmem:[%s3593_s24 + $0x208] sm:$0xff]  ;;  %v1266_v3 = vld [vmem:[%s3593_s24 + $0x210] sm:$0xff]  ;;  %vm2272_vm1 = vcmask 7168   ;;  %p2421_p10 = scmp.ne.s32.totalorder %s2498_s8, 1 }
 0x127   : > { %v1794_v4 = vadd.f32 %v1265_v2, %v1264_v1  ;;  %v1267_v5 = vld [vmem:[%s3593_s24 + $0x218] sm:$0xff]  ;;  %v1268_v7 = vld [vmem:[%s3593_s24 + $0x220] sm:$0xff]  ;;  %v1269_v9 = vld [vmem:[%s3593_s24 + $0x228] sm:$0xff] }
 0x128   : > { %v1270_v11 = vld [vmem:[%s3593_s24 + $0x230] sm:$0xff]  ;;  %v1271_v13 = vld [vmem:[%s3593_s24 + $0x238] sm:$0xff]  ;;  %v1200_v14 = vld [vmem:[%s3593_s24] sm:$0xff] }
 0x129   : > { %v1795_v6 = vadd.f32 %v1794_v4, %v1266_v3  ;;  %v1201_v16 = vld [vmem:[%s3593_s24 + $0x8] sm:$0xff]  ;;  %v1202_v17 = vld [vmem:[%s3593_s24 + $0x10] sm:$0xff]  ;;  %v1272_v18 = vld [vmem:[%s3593_s24 + $0x240] sm:$0xff] }
 0x12a   : > { %v1728_v19 = vadd.f32 %v1201_v16, %v1200_v14  ;;  %v1203_v21 = vld [vmem:[%s3593_s24 + $0x18] sm:$0xff]  ;;  %v1273_v22 = vld [vmem:[%s3593_s24 + $0x248] sm:$0xff]  ;;  %v1204_v25 = vld [vmem:[%s3593_s24 + $0x20] sm:$0xff] }
 0x12b   : > { %v1796_v8 = vadd.f32 %v1795_v6, %v1267_v5  ;;  %v1274_v26 = vld [vmem:[%s3593_s24 + $0x250] sm:$0xff]  ;;  %v1205_v29 = vld [vmem:[%s3593_s24 + $0x28] sm:$0xff]  ;;  %v1275_v30 = vld [vmem:[%s3593_s24 + $0x258] sm:$0xff] }
 0x12c   : > { %v1729_v23 = vadd.f32 %v1728_v19, %v1202_v17  ;;  %v1206_v33 = vld [vmem:[%s3593_s24 + $0x30] sm:$0xff]  ;;  %v1276_v34 = vld [vmem:[%s3593_s24 + $0x260] sm:$0xff]  ;;  %v1207_v37 = vld [vmem:[%s3593_s24 + $0x38] sm:$0xff] }
 0x12d   : > { %v1797_v10 = vadd.f32 %v1796_v8, %v1268_v7  ;;  %v1296_v38 = vld [vmem:[%s3593_s24 + $0x300] sm:$0xff]  ;;  %v1297_v39 = vld [vmem:[%s3593_s24 + $0x308] sm:$0xff]  ;;  %v1298_v42 = vld [vmem:[%s3593_s24 + $0x310] sm:$0xff] }
 0x12e   : > { %v1730_v27 = vadd.f32 %v1729_v23, %v1203_v21  ;;  %v1277_v40 = vld [vmem:[%s3593_s24 + $0x268] sm:$0xff]  ;;  %v1827_v43 = vadd.f32 %v1297_v39, %v1296_v38  ;;  %v1208_v45 = vld [vmem:[%s3593_s24 + $0x40] sm:$0xff]  ;;  %v1299_v46 = vld [vmem:[%s3593_s24 + $0x318] sm:$0xff] }
 0x12f   : > { %v1798_v12 = vadd.f32 %v1797_v10, %v1269_v9  ;;  %v1278_v47 = vld [vmem:[%s3593_s24 + $0x270] sm:$0xff]  ;;  %v1209_v51 = vld [vmem:[%s3593_s24 + $0x48] sm:$0xff]  ;;  %v1300_v52 = vld [vmem:[%s3593_s24 + $0x320] sm:$0xff] }
 0x130   : > { %v1731_v31 = vadd.f32 %v1730_v27, %v1204_v25  ;;  %v1828_v49 = vadd.f32 %v1827_v43, %v1298_v42  ;;  %v1279_v53 = vld [vmem:[%s3593_s24 + $0x278] sm:$0xff]  ;;  %v1210_v57 = vld [vmem:[%s3593_s24 + $0x50] sm:$0xff]  ;;  %v1301_v58 = vld [vmem:[%s3593_s24 + $0x328] sm:$0xff] }
 0x131   : > { %v1799_v15 = vadd.f32 %v1798_v12, %v1270_v11  ;;  %v1280_v59 = vld [vmem:[%s3593_s24 + $0x280] sm:$0xff]  ;;  %v1211_v63 = vld [vmem:[%s3593_s24 + $0x58] sm:$0xff]  ;;  %v1302_v0 = vld [vmem:[%s3593_s24 + $0x330] sm:$0xff] }
 0x132   : > { %v1732_v35 = vadd.f32 %v1731_v31, %v1205_v29  ;;  %v1829_v55 = vadd.f32 %v1828_v49, %v1299_v46  ;;  %v1281_v1 = vld [vmem:[%s3593_s24 + $0x288] sm:$0xff]  ;;  %v1282_v4 = vld [vmem:[%s3593_s24 + $0x290] sm:$0xff]  ;;  %v1212_v6 = vld [vmem:[%s3593_s24 + $0x60] sm:$0xff] }
 0x133   : > { %v1800_v20 = vadd.f32 %v1799_v15, %v1271_v13  ;;  %v1303_v7 = vld [vmem:[%s3593_s24 + $0x338] sm:$0xff]  ;;  %v1232_v10 = vld [vmem:[%s3593_s24 + $0x100] sm:$0xff]  ;;  %v1233_v11 = vld [vmem:[%s3593_s24 + $0x108] sm:$0xff] }
 0x134   : > { %v1733_v41 = vadd.f32 %v1732_v35, %v1206_v33  ;;  %v1830_v61 = vadd.f32 %v1829_v55, %v1300_v52  ;;  %v1234_v12 = vld [vmem:[%s3593_s24 + $0x110] sm:$0xff]  ;;  %v1213_v14 = vld [vmem:[%s3593_s24 + $0x68] sm:$0xff]  ;;  %v1304_v15 = vld [vmem:[%s3593_s24 + $0x340] sm:$0xff]  ;;  %v1761_v16 = vadd.f32 %v1233_v11, %v1232_v10 }
 0x135   : > { %v1801_v24 = vadd.f32 %v1800_v20, %v1272_v18  ;;  %v1283_v17 = vld [vmem:[%s3593_s24 + $0x298] sm:$0xff]  ;;  %v1305_v23 = vld [vmem:[%s3593_s24 + $0x348] sm:$0xff]  ;;  %v1284_v25 = vld [vmem:[%s3593_s24 + $0x2a0] sm:$0xff] }
 0x136   : > { %v1734_v48 = vadd.f32 %v1733_v41, %v1207_v37  ;;  %v1831_v3 = vadd.f32 %v1830_v61, %v1301_v58  ;;  %v1235_v20 = vld [vmem:[%s3593_s24 + $0x118] sm:$0xff]  ;;  %v1306_v31 = vld [vmem:[%s3593_s24 + $0x350] sm:$0xff]  ;;  %v1285_v33 = vld [vmem:[%s3593_s24 + $0x2a8] sm:$0xff] }
 0x137   : > { %v1802_v28 = vadd.f32 %v1801_v24, %v1273_v22  ;;  %v1214_v22 = vld [vmem:[%s3593_s24 + $0x70] sm:$0xff]  ;;  %v1762_v24 = vadd.f32 %v1761_v16, %v1234_v12  ;;  %v1216_v38 = vld [vmem:[%s3593_s24 + $0x80] sm:$0xff]  ;;  %v1307_v39 = vld [vmem:[%s3593_s24 + $0x358] sm:$0xff] }
 0x138   : > { %v1735_v54 = vadd.f32 %v1734_v48, %v1208_v45  ;;  %v1832_v9 = vadd.f32 %v1831_v3, %v1302_v0  ;;  %v1286_v41 = vld [vmem:[%s3593_s24 + $0x2b0] sm:$0xff]  ;;  %v1287_v45 = vld [vmem:[%s3593_s24 + $0x2b8] sm:$0xff]  ;;  %v1308_v48 = vld [vmem:[%s3593_s24 + $0x360] sm:$0xff] }
 0x139   : > { %v1803_v32 = vadd.f32 %v1802_v28, %v1274_v26  ;;  %v1236_v28 = vld [vmem:[%s3593_s24 + $0x120] sm:$0xff]  ;;  %v1361_v58 = vld [vmem:[%s3593_s24 + $0x508] sm:$0xff]  ;;  %v1310_v3 = vld [vmem:[%s3593_s24 + $0x370] sm:$0xff] }
 0x13a   : > { %v1736_v60 = vadd.f32 %v1735_v54, %v1209_v51  ;;  %v1833_v19 = vadd.f32 %v1832_v9, %v1303_v7  ;;  %v1360_v54 = vld [vmem:[%s3593_s24 + $0x500] sm:$0xff]  ;;  %v1241_v9 = vld [vmem:[%s3593_s24 + $0x148] sm:$0xff]  ;;  %v1290_v16 = vld [vmem:[%s3593_s24 + $0x2d0] sm:$0xff] }
 0x13b   : > { %v1804_v36 = vadd.f32 %v1803_v32, %v1275_v30  ;;  %v1215_v30 = vld [vmem:[%s3593_s24 + $0x78] sm:$0xff]  ;;  %v1763_v32 = vadd.f32 %v1762_v24, %v1235_v20  ;;  %v1893_v0 = vadd.f32 %v1361_v58, %v1360_v54  ;;  %v1220_v12 = vld [vmem:[%s3593_s24 + $0xa0] sm:$0xff]  ;;  %v1330_v54 = vld [vmem:[%s3593_s24 + $0x410] sm:$0xff] }
 0x13c   : > { %v1737_v2 = vadd.f32 %v1736_v60, %v1210_v57  ;;  %v1834_v27 = vadd.f32 %v1833_v19, %v1304_v15  ;;  %v1288_v60 = vld [vmem:[%s3593_s24 + $0x2c0] sm:$0xff]  ;;  %v1242_v19 = vld [vmem:[%s3593_s24 + $0x150] sm:$0xff] }
 0x13d   : > { %v1805_v44 = vadd.f32 %v1804_v36, %v1276_v34  ;;  %v1237_v36 = vld [vmem:[%s3593_s24 + $0x128] sm:$0xff]  ;;  %v1364_v15 = vld [vmem:[%s3593_s24 + $0x520] sm:$0xff] }
 0x13e   : > { %v1738_v8 = vadd.f32 %v1737_v2, %v1211_v63  ;;  %v1835_v35 = vadd.f32 %v1834_v27, %v1305_v23  ;;  %v1240_v63 = vld [vmem:[%s3593_s24 + $0x140] sm:$0xff]  ;;  %v1219_v2 = vld [vmem:[%s3593_s24 + $0x98] sm:$0xff] }
 0x13f   : > { %v1806_v50 = vadd.f32 %v1805_v44, %v1277_v40  ;;  %v1764_v40 = vadd.f32 %v1763_v32, %v1236_v28  ;;  %v1238_v44 = vld [vmem:[%s3593_s24 + $0x130] sm:$0xff]  ;;  %v1312_v23 = vld [vmem:[%s3593_s24 + $0x380] sm:$0xff] }
 0x140   : > { %v1739_v18 = vadd.f32 %v1738_v8, %v1212_v6  ;;  %v1836_v43 = vadd.f32 %v1835_v35, %v1306_v31  ;;  %v1289_v6 = vld [vmem:[%s3593_s24 + $0x2c8] sm:$0xff]  ;;  %v1292_v27 = vld [vmem:[%s3593_s24 + $0x2e0] sm:$0xff] }
 0x141   : > { %v1807_v56 = vadd.f32 %v1806_v50, %v1278_v47  ;;  %v1217_v47 = vld [vmem:[%s3593_s24 + $0x88] sm:$0xff]  ;;  %v1765_v49 = vadd.f32 %v1764_v40, %v1237_v36  ;;  %v1218_v50 = vld [vmem:[%s3593_s24 + $0x90] sm:$0xff] }
 0x142   : > { %v1740_v26 = vadd.f32 %v1739_v18, %v1213_v14  ;;  %v1837_v52 = vadd.f32 %v1836_v43, %v1307_v39  ;;  %v1366_v36 = vld [vmem:[%s3593_s24 + $0x530] sm:$0xff] }
 0x143   : > { %v1808_v62 = vadd.f32 %v1807_v56, %v1279_v53  ;;  %v1239_v53 = vld [vmem:[%s3593_s24 + $0x138] sm:$0xff]  ;;  %v1309_v56 = vld [vmem:[%s3593_s24 + $0x368] sm:$0xff]  ;;  %v1766_v57 = vadd.f32 %v1765_v49, %v1238_v44  ;;  %v1314_v40 = vld [vmem:[%s3593_s24 + $0x390] sm:$0xff] }
 0x144   : > { %v1741_v34 = vadd.f32 %v1740_v26, %v1214_v22  ;;  %v1221_v22 = vld [vmem:[%s3593_s24 + $0xa8] sm:$0xff]  ;;  %v1291_v26 = vld [vmem:[%s3593_s24 + $0x2d8] sm:$0xff]  ;;  %v1224_v49 = vld [vmem:[%s3593_s24 + $0xc0] sm:$0xff] }
 0x145   : > { %v1809_v5 = vadd.f32 %v1808_v62, %v1280_v59  ;;  %v1362_v59 = vld [vmem:[%s3593_s24 + $0x510] sm:$0xff]  ;;  %v1838_v62 = vadd.f32 %v1837_v52, %v1308_v48  ;;  %v1329_v48 = vld [vmem:[%s3593_s24 + $0x408] sm:$0xff] }
 0x146   : > { %v1742_v42 = vadd.f32 %v1741_v34, %v1215_v30  ;;  %v1894_v10 = vadd.f32 %v1893_v0, %v1362_v59  ;;  %v1243_v30 = vld [vmem:[%s3593_s24 + $0x158] sm:$0xff]  ;;  %v1313_v34 = vld [vmem:[%s3593_s24 + $0x388] sm:$0xff]  ;;  %v1368_v59 = vld [vmem:[%s3593_s24 + $0x540] sm:$0xff] }
 0x147   : > { %v1810_v13 = vadd.f32 %v1809_v5, %v1281_v1  ;;  %v1363_v5 = vld [vmem:[%s3593_s24 + $0x518] sm:$0xff]  ;;  %v1839_v8 = vadd.f32 %v1838_v62, %v1309_v56  ;;  %v1245_v52 = vld [vmem:[%s3593_s24 + $0x168] sm:$0xff] }
 0x148   : > { %v1743_v51 = vadd.f32 %v1742_v42, %v1216_v38  ;;  %v1895_v20 = vadd.f32 %v1894_v10, %v1363_v5  ;;  %v1223_v38 = vld [vmem:[%s3593_s24 + $0xb8] sm:$0xff]  ;;  %v1244_v42 = vld [vmem:[%s3593_s24 + $0x160] sm:$0xff]  ;;  %v1225_v62 = vld [vmem:[%s3593_s24 + $0xc8] sm:$0xff] }
 0x149   : > { %v1811_v21 = vadd.f32 %v1810_v13, %v1282_v4  ;;  %v1767_v4 = vadd.f32 %v1766_v57, %v1239_v53  ;;  %v1311_v13 = vld [vmem:[%s3593_s24 + $0x378] sm:$0xff]  ;;  %v1840_v18 = vadd.f32 %v1839_v8, %v1310_v3  ;;  %v1316_v5 = vld [vmem:[%s3593_s24 + $0x3a0] sm:$0xff]  ;;  %v1226_v10 = vld [vmem:[%s3593_s24 + $0xd0] sm:$0xff] }
 0x14a   : > { %v1744_v61 = vadd.f32 %v1743_v51, %v1217_v47  ;;  %v1896_v31 = vadd.f32 %v1895_v20, %v1364_v15  ;;  %v1328_v47 = vld [vmem:[%s3593_s24 + $0x400] sm:$0xff]  ;;  %v1315_v57 = vld [vmem:[%s3593_s24 + $0x398] sm:$0xff]  ;;  %v1333_v20 = vld [vmem:[%s3593_s24 + $0x428] sm:$0xff] }
 0x14b   : > { %v1812_v29 = vadd.f32 %v1811_v21, %v1283_v17  ;;  %v1768_v14 = vadd.f32 %v1767_v4, %v1240_v63  ;;  %v1332_v8 = vld [vmem:[%s3593_s24 + $0x420] sm:$0xff] }
 0x14c   : > { %v1745_v7 = vadd.f32 %v1744_v61, %v1218_v50  ;;  %v1294_v61 = vld [vmem:[%s3593_s24 + $0x2f0] sm:$0xff] }
 0x14d   : > { %v1813_v37 = vadd.f32 %v1812_v29, %v1284_v25  ;;  %v1769_v24 = vadd.f32 %v1768_v14, %v1241_v9  ;;  %v1365_v25 = vld [vmem:[%s3593_s24 + $0x528] sm:$0xff]  ;;  %v1841_v29 = vadd.f32 %v1840_v18, %v1311_v13  ;;  %v1295_v9 = vld [vmem:[%s3593_s24 + $0x2f8] sm:$0xff] }
 0x14e   : > { %v1746_v17 = vadd.f32 %v1745_v7, %v1219_v2  ;;  %v1897_v43 = vadd.f32 %v1896_v31, %v1365_v25  ;;  %v1369_v7 = vld [vmem:[%s3593_s24 + $0x548] sm:$0xff]  ;;  %v1247_v13 = vld [vmem:[%s3593_s24 + $0x178] sm:$0xff]  ;;  %v1334_v31 = vld [vmem:[%s3593_s24 + $0x430] sm:$0xff] }
 0x14f   : > { %v1814_v46 = vadd.f32 %v1813_v37, %v1285_v33  ;;  %v1222_v33 = vld [vmem:[%s3593_s24 + $0xb0] sm:$0xff]  ;;  %v1770_v35 = vadd.f32 %v1769_v24, %v1242_v19  ;;  %v1293_v37 = vld [vmem:[%s3593_s24 + $0x2e8] sm:$0xff]  ;;  %v1248_v24 = vld [vmem:[%s3593_s24 + $0x180] sm:$0xff] }
 0x150   : > { %v1747_v28 = vadd.f32 %v1746_v17, %v1220_v12  ;;  %v1898_v53 = vadd.f32 %v1897_v43, %v1366_v36  ;;  %v1317_v17 = vld [vmem:[%s3593_s24 + $0x3a8] sm:$0xff]  ;;  %v1370_v19 = vld [vmem:[%s3593_s24 + $0x550] sm:$0xff]  ;;  %v1335_v43 = vld [vmem:[%s3593_s24 + $0x438] sm:$0xff] }
 0x151   : > { %v1815_v55 = vadd.f32 %v1814_v46, %v1286_v41  ;;  %v1842_v41 = vadd.f32 %v1841_v29, %v1312_v23  ;;  %v1367_v46 = vld [vmem:[%s3593_s24 + $0x538] sm:$0xff]  ;;  %v1249_v36 = vld [vmem:[%s3593_s24 + $0x188] sm:$0xff] }
 0x152   : > { %v1748_v39 = vadd.f32 %v1747_v28, %v1221_v22  ;;  %v1899_v2 = vadd.f32 %v1898_v53, %v1367_v46  ;;  %v1318_v28 = vld [vmem:[%s3593_s24 + $0x3b0] sm:$0xff]  ;;  %v1373_v53 = vld [vmem:[%s3593_s24 + $0x568] sm:$0xff] }
 0x153   : > { %v1816_v1 = vadd.f32 %v1815_v55, %v1287_v45  ;;  %v1771_v45 = vadd.f32 %v1770_v35, %v1243_v30  ;;  %v1843_v51 = vadd.f32 %v1842_v41, %v1313_v34  ;;  %v1860_v55 = vadd.f32 %v1329_v48, %v1328_v47  ;;  %v1371_v30 = vld [vmem:[%s3593_s24 + $0x558] sm:$0xff]  ;;  %v1424_v48 = vld [vmem:[%s3593_s24 + $0x700] sm:$0xff] }
 0x154   : > { %v1749_v50 = vadd.f32 %v1748_v39, %v1222_v33  ;;  %v1900_v14 = vadd.f32 %v1899_v2, %v1368_v59  ;;  %v1319_v34 = vld [vmem:[%s3593_s24 + $0x3b8] sm:$0xff]  ;;  %v1229_v39 = vld [vmem:[%s3593_s24 + $0xe8] sm:$0xff] }
 0x155   : > { %v1817_v11 = vadd.f32 %v1816_v1, %v1288_v60  ;;  %v1772_v58 = vadd.f32 %v1771_v45, %v1244_v42  ;;  %v1331_v60 = vld [vmem:[%s3593_s24 + $0x418] sm:$0xff]  ;;  %v1844_v0 = vadd.f32 %v1843_v51, %v1314_v40  ;;  %v1246_v1 = vld [vmem:[%s3593_s24 + $0x170] sm:$0xff]  ;;  %v1861_v3 = vadd.f32 %v1860_v55, %v1330_v54  ;;  %v1372_v42 = vld [vmem:[%s3593_s24 + $0x560] sm:$0xff] }
 0x156   : > { %v1750_v63 = vadd.f32 %v1749_v50, %v1223_v38  ;;  %v1901_v25 = vadd.f32 %v1900_v14, %v1369_v7  ;;  %v1250_v40 = vld [vmem:[%s3593_s24 + $0x190] sm:$0xff]  ;;  %v1320_v51 = vld [vmem:[%s3593_s24 + $0x3c0] sm:$0xff]  ;;  %v1251_v59 = vld [vmem:[%s3593_s24 + $0x198] sm:$0xff] }
 0x157   : > { %v1818_v21 = vadd.f32 %v1817_v11, %v1289_v6  ;;  %v1773_v6 = vadd.f32 %v1772_v58, %v1245_v52  ;;  %v1845_v12 = vadd.f32 %v1844_v0, %v1315_v57  ;;  %v1862_v15 = vadd.f32 %v1861_v3, %v1331_v60  ;;  %v1426_v50 = vld [vmem:[%s3593_s24 + $0x710] sm:$0xff]  ;;  %v1336_v54 = vld [vmem:[%s3593_s24 + $0x440] sm:$0xff]  ;;  %v1337_v2 = vld [vmem:[%s3593_s24 + $0x448] sm:$0xff] }
 0x158   : > { %v1751_v11 = vadd.f32 %v1750_v63, %v1224_v49  ;;  %v1425_v49 = vld [vmem:[%s3593_s24 + $0x708] sm:$0xff]  ;;  %v1252_v7 = vld [vmem:[%s3593_s24 + $0x1a0] sm:$0xff]  ;;  %v1338_v14 = vld [vmem:[%s3593_s24 + $0x450] sm:$0xff] }
 0x159   : > { %v1819_v32 = vadd.f32 %v1818_v21, %v1290_v16  ;;  %v1774_v18 = vadd.f32 %v1773_v6, %v1246_v1  ;;  %v1227_v21 = vld [vmem:[%s3593_s24 + $0xd8] sm:$0xff]  ;;  %v1846_v23 = vadd.f32 %v1845_v12, %v1316_v5  ;;  %v1959_v55 = vadd.f32 %v1425_v49, %v1424_v48  ;;  %v1321_v63 = vld [vmem:[%s3593_s24 + $0x3c8] sm:$0xff]  ;;  %v1374_v1 = vld [vmem:[%s3593_s24 + $0x570] sm:$0xff] }
 0x15a   : > { %v1752_v22 = vadd.f32 %v1751_v11, %v1225_v62  ;;  %v1427_v62 = vld [vmem:[%s3593_s24 + $0x718] sm:$0xff]  ;;  %v1322_v11 = vld [vmem:[%s3593_s24 + $0x3d0] sm:$0xff]  ;;  %v1393_v49 = vld [vmem:[%s3593_s24 + $0x608] sm:$0xff] }
 0x15b   : > { %v1820_v44 = vadd.f32 %v1819_v32, %v1291_v26  ;;  %v1863_v26 = vadd.f32 %v1862_v15, %v1332_v8  ;;  %v1775_v29 = vadd.f32 %v1774_v18, %v1247_v13  ;;  %v1228_v32 = vld [vmem:[%s3593_s24 + $0xe0] sm:$0xff]  ;;  %v1847_v35 = vadd.f32 %v1846_v23, %v1317_v17  ;;  %v1375_v13 = vld [vmem:[%s3593_s24 + $0x578] sm:$0xff]  ;;  %v1253_v18 = vld [vmem:[%s3593_s24 + $0x1a8] sm:$0xff] }
 0x15c   : > { %v1753_v33 = vadd.f32 %v1752_v22, %v1226_v10  ;;  %v1960_v3 = vadd.f32 %v1959_v55, %v1426_v50  ;;  %v1428_v10 = vld [vmem:[%s3593_s24 + $0x720] sm:$0xff]  ;;  %v1323_v22 = vld [vmem:[%s3593_s24 + $0x3d8] sm:$0xff]  ;;  %v1394_v50 = vld [vmem:[%s3593_s24 + $0x610] sm:$0xff] }
 0x15d   : > { %v1821_v56 = vadd.f32 %v1820_v44, %v1292_v27  ;;  %v1864_v38 = vadd.f32 %v1863_v26, %v1333_v20  ;;  %v1776_v41 = vadd.f32 %v1775_v29, %v1248_v24  ;;  %v1848_v45 = vadd.f32 %v1847_v35, %v1318_v28  ;;  %v1376_v24 = vld [vmem:[%s3593_s24 + $0x580] sm:$0xff]  ;;  %v1255_v35 = vld [vmem:[%s3593_s24 + $0x1b8] sm:$0xff] }
 0x15e   : > { %v1754_v44 = vadd.f32 %v1753_v33, %v1227_v21  ;;  %v1961_v15 = vadd.f32 %v1960_v3, %v1427_v62  ;;  %v1429_v21 = vld [vmem:[%s3593_s24 + $0x728] sm:$0xff]  ;;  %v1324_v28 = vld [vmem:[%s3593_s24 + $0x3e0] sm:$0xff]  ;;  %v1430_v33 = vld [vmem:[%s3593_s24 + $0x730] sm:$0xff] }
 0x15f   : > { %v1822_v4 = vadd.f32 %v1821_v56, %v1293_v37  ;;  %v1902_v37 = vadd.f32 %v1901_v25, %v1370_v19  ;;  %v1865_v47 = vadd.f32 %v1864_v38, %v1334_v31  ;;  %v1777_v52 = vadd.f32 %v1776_v41, %v1249_v36  ;;  %v1230_v56 = vld [vmem:[%s3593_s24 + $0xf0] sm:$0xff]  ;;  %v1339_v25 = vld [vmem:[%s3593_s24 + $0x458] sm:$0xff]  ;;  %v1340_v38 = vld [vmem:[%s3593_s24 + $0x460] sm:$0xff] }
 0x160   : > { %v1755_v57 = vadd.f32 %v1754_v44, %v1228_v32  ;;  %v1849_v58 = vadd.f32 %v1848_v45, %v1319_v34  ;;  %v1962_v26 = vadd.f32 %v1961_v15, %v1428_v10  ;;  %v1325_v34 = vld [vmem:[%s3593_s24 + $0x3e8] sm:$0xff]  ;;  %v1378_v41 = vld [vmem:[%s3593_s24 + $0x590] sm:$0xff]  ;;  %v1431_v44 = vld [vmem:[%s3593_s24 + $0x738] sm:$0xff] }
 0x161   : > { %v1823_v16 = vadd.f32 %v1822_v4, %v1294_v61  ;;  %v1903_v46 = vadd.f32 %v1902_v37, %v1371_v30  ;;  %v1866_v61 = vadd.f32 %v1865_v47, %v1335_v43  ;;  %v1778_v0 = vadd.f32 %v1777_v52, %v1250_v40  ;;  %v1231_v4 = vld [vmem:[%s3593_s24 + $0xf8] sm:$0xff]  ;;  %v1254_v30 = vld [vmem:[%s3593_s24 + $0x1b0] sm:$0xff]  ;;  %v1377_v37 = vld [vmem:[%s3593_s24 + $0x588] sm:$0xff] }
 0x162   : > { %v1756_v5 = vadd.f32 %v1755_v57, %v1229_v39  ;;  %v1850_v6 = vadd.f32 %v1849_v58, %v1320_v51  ;;  %v1963_v39 = vadd.f32 %v1962_v26, %v1429_v21  ;;  %v1392_v45 = vld [vmem:[%s3593_s24 + $0x600] sm:$0xff]  ;;  %v1341_v47 = vld [vmem:[%s3593_s24 + $0x468] sm:$0xff]  ;;  %v1326_v51 = vld [vmem:[%s3593_s24 + $0x3f0] sm:$0xff] }
 0x163   : > { %v1824_v27 = vadd.f32 %v1823_v16, %v1295_v9  ;;  %v1904_v60 = vadd.f32 %v1903_v46, %v1372_v42  ;;  %v1867_v9 = vadd.f32 %v1866_v61, %v1336_v54  ;;  %v1779_v12 = vadd.f32 %v1778_v0, %v1251_v59  ;;  %v1379_v59 = vld [vmem:[%s3593_s24 + $0x598] sm:$0xff]  ;;  %v1396_v10 = vld [vmem:[%s3593_s24 + $0x620] sm:$0xff]  ;;  %v1434_v15 = vld [vmem:[%s3593_s24 + $0x750] sm:$0xff] }
 0x164   : > { %v1757_v16 = vadd.f32 %v1756_v5, %v1230_v56  ;;  %v1851_v17 = vadd.f32 %v1850_v6, %v1321_v63  ;;  %v1964_v48 = vadd.f32 %v1963_v39, %v1430_v33  ;;  %v1432_v56 = vld [vmem:[%s3593_s24 + $0x740] sm:$0xff]  ;;  %v1926_v57 = vadd.f32 %v1393_v49, %v1392_v45  ;;  %v1395_v62 = vld [vmem:[%s3593_s24 + $0x618] sm:$0xff]  ;;  %v1397_v21 = vld [vmem:[%s3593_s24 + $0x628] sm:$0xff] }
 0x165   : > { %1825 = vadd.xlane.f32.xlu1 %v1824_v27  ;;  %v1905_v8 = vadd.f32 %v1904_v60, %v1373_v53  ;;  %v1868_v20 = vadd.f32 %v1867_v9, %v1337_v2  ;;  %v1780_v23 = vadd.f32 %v1779_v12, %v1252_v7  ;;  %v1256_v53 = vld [vmem:[%s3593_s24 + $0x1c0] sm:$0xff]  ;;  %v1342_v60 = vld [vmem:[%s3593_s24 + $0x470] sm:$0xff]  ;;  %v1327_v63 = vld [vmem:[%s3593_s24 + $0x3f8] sm:$0xff] }
 0x166   : > { %v1758_v27 = vadd.f32 %v1757_v16, %v1231_v4  ;;  %v1852_v29 = vadd.f32 %v1851_v17, %v1322_v11  ;;  %v1965_v61 = vadd.f32 %v1964_v48, %v1431_v44  ;;  %v1433_v4 = vld [vmem:[%s3593_s24 + $0x748] sm:$0xff]  ;;  %v1927_v5 = vadd.f32 %v1926_v57, %v1394_v50  ;;  %v1380_v7 = vld [vmem:[%s3593_s24 + $0x5a0] sm:$0xff]  ;;  %v1258_v12 = vld [vmem:[%s3593_s24 + $0x1d0] sm:$0xff] }
 0x167   : > { %v1906_v19 = vadd.f32 %v1905_v8, %v1374_v1  ;;  %v1869_v32 = vadd.f32 %v1868_v20, %v1338_v14  ;;  %v1781_v36 = vadd.f32 %v1780_v23, %v1253_v18  ;;  %v1257_v1 = vld [vmem:[%s3593_s24 + $0x1c8] sm:$0xff]  ;;  %v1343_v8 = vld [vmem:[%s3593_s24 + $0x478] sm:$0xff]  ;;  %v1398_v33 = vld [vmem:[%s3593_s24 + $0x630] sm:$0xff] }
 0x168   : > { %1759 = vadd.xlane.f32.xlu0 %v1758_v27  ;;  %v1853_v40 = vadd.f32 %v1852_v29, %v1323_v22  ;;  %v1966_v9 = vadd.f32 %v1965_v61, %v1432_v56  ;;  %v1928_v16 = vadd.f32 %v1927_v5, %v1395_v62  ;;  %v1381_v18 = vld [vmem:[%s3593_s24 + $0x5a8] sm:$0xff]  ;;  %v1259_v23 = vld [vmem:[%s3593_s24 + $0x1d8] sm:$0xff]  ;;  %v1436_v39 = vld [vmem:[%s3593_s24 + $0x760] sm:$0xff] }
 0x169   : > { %v1907_v31 = vadd.f32 %v1906_v19, %v1375_v13  ;;  %v1870_v43 = vadd.f32 %v1869_v32, %v1339_v25  ;;  %v1782_v46 = vadd.f32 %v1781_v36, %v1254_v30  ;;  %v1344_v19 = vld [vmem:[%s3593_s24 + $0x480] sm:$0xff]  ;;  %v1435_v27 = vld [vmem:[%s3593_s24 + $0x758] sm:$0xff]  ;;  %v1382_v30 = vld [vmem:[%s3593_s24 + $0x5b0] sm:$0xff] }
 0x16a   : > { %v1854_v52 = vadd.f32 %v1853_v40, %v1324_v28  ;;  %v1967_v20 = vadd.f32 %v1966_v9, %v1433_v4  ;;  %v1929_v28 = vadd.f32 %v1928_v16, %v1396_v10  ;;  %v1488_v44 = vld [vmem:[%s3593_s24 + $0x900] sm:$0xff]  ;;  %v1489_v45 = vld [vmem:[%s3593_s24 + $0x908] sm:$0xff]  ;;  %v1491_v57 = vld [vmem:[%s3593_s24 + $0x918] sm:$0xff] }
 0x16b   : > { %v1908_v42 = vadd.f32 %v1907_v31, %v1376_v24  ;;  %v1871_v55 = vadd.f32 %v1870_v43, %v1340_v38  ;;  %v1783_v58 = vadd.f32 %v1782_v46, %v1255_v35  ;;  %v1260_v24 = vld [vmem:[%s3593_s24 + $0x1e0] sm:$0xff]  ;;  %v1345_v31 = vld [vmem:[%s3593_s24 + $0x488] sm:$0xff]  ;;  %v1383_v35 = vld [vmem:[%s3593_s24 + $0x5b8] sm:$0xff] }
 0x16c   : > { %v1855_v0 = vadd.f32 %v1854_v52, %v1325_v34  ;;  %v1968_v32 = vadd.f32 %v1967_v20, %v1434_v15  ;;  %v1261_v34 = vld [vmem:[%s3593_s24 + $0x1e8] sm:$0xff]  ;;  %v1930_v40 = vadd.f32 %v1929_v28, %v1397_v21  ;;  %v1399_v43 = vld [vmem:[%s3593_s24 + $0x638] sm:$0xff]  ;;  %v1384_v46 = vld [vmem:[%s3593_s24 + $0x5c0] sm:$0xff]  ;;  %v2025_v52 = vadd.f32 %v1489_v45, %v1488_v44 }
 0x16d   : > { %v1909_v54 = vadd.f32 %v1908_v42, %v1377_v37  ;;  %v1872_v3 = vadd.f32 %v1871_v55, %v1341_v47  ;;  %v1784_v6 = vadd.f32 %v1783_v58, %v1256_v53  ;;  %v1346_v37 = vld [vmem:[%s3593_s24 + $0x490] sm:$0xff]  ;;  %v1437_v49 = vld [vmem:[%s3593_s24 + $0x768] sm:$0xff]  ;;  %v1400_v56 = vld [vmem:[%s3593_s24 + $0x640] sm:$0xff] }
 0x16e   : > { %v1856_v11 = vadd.f32 %v1855_v0, %v1326_v51  ;;  %v1969_v42 = vadd.f32 %v1968_v32, %v1435_v27  ;;  %v1931_v50 = vadd.f32 %v1930_v40, %v1398_v33  ;;  %v1490_v51 = vld [vmem:[%s3593_s24 + $0x910] sm:$0xff]  ;;  %v1401_v4 = vld [vmem:[%s3593_s24 + $0x648] sm:$0xff]  ;;  %v1492_v5 = vld [vmem:[%s3593_s24 + $0x920] sm:$0xff] }
 0x16f   : > { %v1910_v2 = vadd.f32 %v1909_v54, %v1378_v41  ;;  %v1873_v14 = vadd.f32 %v1872_v3, %v1342_v60  ;;  %v1785_v17 = vadd.f32 %v1784_v6, %v1257_v1  ;;  %v1347_v54 = vld [vmem:[%s3593_s24 + $0x498] sm:$0xff]  ;;  %v1262_v58 = vld [vmem:[%s3593_s24 + $0x1f0] sm:$0xff]  ;;  %v2026_v0 = vadd.f32 %v2025_v52, %v1490_v51  ;;  %v1440_v21 = vld [vmem:[%s3593_s24 + $0x780] sm:$0xff] }
 0x170   : > { %v1857_v22 = vadd.f32 %v1856_v11, %v1327_v63  ;;  %v1970_v55 = vadd.f32 %v1969_v42, %v1436_v39  ;;  %v1438_v62 = vld [vmem:[%s3593_s24 + $0x770] sm:$0xff]  ;;  %v1932_v63 = vadd.f32 %v1931_v50, %v1399_v43  ;;  %v1263_v6 = vld [vmem:[%s3593_s24 + $0x1f8] sm:$0xff]  ;;  %v1441_v33 = vld [vmem:[%s3593_s24 + $0x788] sm:$0xff] }
 0x171   : > { %v1911_v13 = vadd.f32 %v1910_v2, %v1379_v59  ;;  %v1874_v26 = vadd.f32 %v1873_v14, %v1343_v8  ;;  %v1786_v29 = vadd.f32 %v1785_v17, %v1258_v12  ;;  %v1385_v59 = vld [vmem:[%s3593_s24 + $0x5c8] sm:$0xff]  ;;  %v1348_v2 = vld [vmem:[%s3593_s24 + $0x4a0] sm:$0xff]  ;;  %v1439_v10 = vld [vmem:[%s3593_s24 + $0x778] sm:$0xff]  ;;  %v2027_v12 = vadd.f32 %v2026_v0, %v1491_v57 }
 0x172   : > { %1858 = vadd.xlane.f32.xlu1 %v1857_v22  ;;  %v1971_v3 = vadd.f32 %v1970_v55, %v1437_v49  ;;  %v1933_v11 = vadd.f32 %v1932_v63, %v1400_v56  ;;  %v1349_v14 = vld [vmem:[%s3593_s24 + $0x4a8] sm:$0xff]  ;;  %v1402_v16 = vld [vmem:[%s3593_s24 + $0x650] sm:$0xff]  ;;  %v1403_v27 = vld [vmem:[%s3593_s24 + $0x658] sm:$0xff] }
 0x173   : > { %v1912_v25 = vadd.f32 %v1911_v13, %v1380_v7  ;;  %v1875_v38 = vadd.f32 %v1874_v26, %v1344_v19  ;;  %v1787_v41 = vadd.f32 %v1786_v29, %v1259_v23  ;;  %v1386_v7 = vld [vmem:[%s3593_s24 + $0x5d0] sm:$0xff]  ;;  %v1493_v17 = vld [vmem:[%s3593_s24 + $0x928] sm:$0xff]  ;;  %v2028_v23 = vadd.f32 %v2027_v12, %v1492_v5  ;;  %v1388_v29 = vld [vmem:[%s3593_s24 + $0x5e0] sm:$0xff] }
 0x174   : > { %v1972_v15 = vadd.f32 %v1971_v3, %v1438_v62  ;;  %v1934_v22 = vadd.f32 %v1933_v11, %v1401_v4  ;;  %v1494_v28 = vld [vmem:[%s3593_s24 + $0x930] sm:$0xff]  ;;  %v1404_v39 = vld [vmem:[%s3593_s24 + $0x660] sm:$0xff]  ;;  %v1495_v40 = vld [vmem:[%s3593_s24 + $0x938] sm:$0xff] }
 0x175   : > { %v1913_v36 = vadd.f32 %v1912_v25, %v1381_v18  ;;  %v1876_v48 = vadd.f32 %v1875_v38, %v1345_v31  ;;  %v1788_v53 = vadd.f32 %v1787_v41, %v1260_v24  ;;  %v1387_v18 = vld [vmem:[%s3593_s24 + $0x5d8] sm:$0xff]  ;;  %v1350_v25 = vld [vmem:[%s3593_s24 + $0x4b0] sm:$0xff]  ;;  %v1456_v45 = vld [vmem:[%s3593_s24 + $0x800] sm:$0xff] }
 0x176   : > { %v1973_v26 = vadd.f32 %v1972_v15, %v1439_v10  ;;  %v1351_v31 = vld [vmem:[%s3593_s24 + $0x4b8] sm:$0xff]  ;;  %v1405_v50 = vld [vmem:[%s3593_s24 + $0x668] sm:$0xff]  ;;  %v1496_v51 = vld [vmem:[%s3593_s24 + $0x940] sm:$0xff] }
 0x177   : > { %v1914_v47 = vadd.f32 %v1913_v36, %v1382_v30  ;;  %v1877_v61 = vadd.f32 %v1876_v48, %v1346_v37  ;;  %v1789_v1 = vadd.f32 %v1788_v53, %v1261_v34  ;;  %v1935_v34 = vadd.f32 %v1934_v22, %v1402_v16  ;;  %v1389_v36 = vld [vmem:[%s3593_s24 + $0x5e8] sm:$0xff]  ;;  %v1442_v37 = vld [vmem:[%s3593_s24 + $0x790] sm:$0xff]  ;;  %v1352_v48 = vld [vmem:[%s3593_s24 + $0x4c0] sm:$0xff] }
 0x178   : > { %v1974_v38 = vadd.f32 %v1973_v26, %v1440_v21  ;;  %v1390_v53 = vld [vmem:[%s3593_s24 + $0x5f0] sm:$0xff]  ;;  %v1443_v56 = vld [vmem:[%s3593_s24 + $0x798] sm:$0xff]  ;;  %v1497_v63 = vld [vmem:[%s3593_s24 + $0x948] sm:$0xff] }
 0x179   : > { %v1915_v60 = vadd.f32 %v1914_v47, %v1383_v35  ;;  %v1878_v9 = vadd.f32 %v1877_v61, %v1347_v54  ;;  %v1790_v13 = vadd.f32 %v1789_v1, %v1262_v58  ;;  %v2029_v35 = vadd.f32 %v2028_v23, %v1493_v17  ;;  %v1458_v47 = vld [vmem:[%s3593_s24 + $0x810] sm:$0xff]  ;;  %v1391_v1 = vld [vmem:[%s3593_s24 + $0x5f8] sm:$0xff]  ;;  %v1444_v4 = vld [vmem:[%s3593_s24 + $0x7a0] sm:$0xff] }
 0x17a   : > { %v1936_v43 = vadd.f32 %v1935_v34, %v1403_v27  ;;  %v1975_v49 = vadd.f32 %v1974_v38, %v1441_v33  ;;  %v1406_v62 = vld [vmem:[%s3593_s24 + $0x670] sm:$0xff]  ;;  %v1407_v10 = vld [vmem:[%s3593_s24 + $0x678] sm:$0xff]  ;;  %v1445_v15 = vld [vmem:[%s3593_s24 + $0x7a8] sm:$0xff] }
 0x17b   : > { %v1916_v8 = vadd.f32 %v1915_v60, %v1384_v46  ;;  %v1879_v20 = vadd.f32 %v1878_v9, %v1348_v2  ;;  %v1791_v24 = vadd.f32 %v1790_v13, %v1263_v6  ;;  %v2030_v44 = vadd.f32 %v2029_v35, %v1494_v28  ;;  %v1457_v46 = vld [vmem:[%s3593_s24 + $0x808] sm:$0xff]  ;;  %v1498_v11 = vld [vmem:[%s3593_s24 + $0x950] sm:$0xff]  ;;  %v1408_v21 = vld [vmem:[%s3593_s24 + $0x680] sm:$0xff] }
 0x17c   : > { %v1992_v52 = vadd.f32 %v1457_v46, %v1456_v45  ;;  %v1937_v57 = vadd.f32 %v1936_v43, %v1404_v39  ;;  %v1353_v60 = vld [vmem:[%s3593_s24 + $0x4c8] sm:$0xff]  ;;  %v1976_v61 = vadd.f32 %v1975_v49, %v1442_v37  ;;  %v1499_v22 = vld [vmem:[%s3593_s24 + $0x958] sm:$0xff]  ;;  %v1446_v27 = vld [vmem:[%s3593_s24 + $0x7b0] sm:$0xff] }
 0x17d   : > { %v1917_v19 = vadd.f32 %v1916_v8, %v1385_v59  ;;  %v1880_v32 = vadd.f32 %v1879_v20, %v1349_v14  ;;  %1792 = vadd.xlane.f32.xlu0 %v1791_v24  ;;  %v2031_v58 = vadd.f32 %v2030_v44, %v1495_v40  ;;  %v1459_v59 = vld [vmem:[%s3593_s24 + $0x818] sm:$0xff]  ;;  %v1354_v8 = vld [vmem:[%s3593_s24 + $0x4d0] sm:$0xff]  ;;  %v1409_v34 = vld [vmem:[%s3593_s24 + $0x688] sm:$0xff] }
 0x17e   : > { %v1993_v0 = vadd.f32 %v1992_v52, %v1458_v47  ;;  %v1938_v5 = vadd.f32 %v1937_v57, %v1405_v50  ;;  %v1977_v9 = vadd.f32 %v1976_v61, %v1443_v56  ;;  %v1500_v35 = vld [vmem:[%s3593_s24 + $0x960] sm:$0xff]  ;;  %v1410_v38 = vld [vmem:[%s3593_s24 + $0x690] sm:$0xff]  ;;  %v1501_v44 = vld [vmem:[%s3593_s24 + $0x968] sm:$0xff] }
 0x17f   : > { %v1918_v30 = vadd.f32 %v1917_v19, %v1386_v7  ;;  %v1881_v42 = vadd.f32 %v1880_v32, %v1350_v25  ;;  %v2032_v6 = vadd.f32 %v2031_v58, %v1496_v51  ;;  %v1460_v7 = vld [vmem:[%s3593_s24 + $0x820] sm:$0xff]  ;;  %v1355_v19 = vld [vmem:[%s3593_s24 + $0x4d8] sm:$0xff]  ;;  %v1553_v46 = vld [vmem:[%s3593_s24 + $0xb08] sm:$0xff] }
 0x180   : > { %v1994_v12 = vadd.f32 %v1993_v0, %v1459_v59  ;;  %v1939_v16 = vadd.f32 %v1938_v5, %v1406_v62  ;;  %v1978_v20 = vadd.f32 %v1977_v9, %v1444_v4  ;;  %v1356_v25 = vld [vmem:[%s3593_s24 + $0x4e0] sm:$0xff]  ;;  %v1447_v32 = vld [vmem:[%s3593_s24 + $0x7b8] sm:$0xff]  ;;  %v1554_v47 = vld [vmem:[%s3593_s24 + $0xb10] sm:$0xff] }
 0x181   : > { %v1919_v41 = vadd.f32 %v1918_v30, %v1387_v18  ;;  %v1882_v55 = vadd.f32 %v1881_v42, %v1351_v31  ;;  %v2033_v17 = vadd.f32 %v2032_v6, %v1497_v63  ;;  %v1461_v18 = vld [vmem:[%s3593_s24 + $0x828] sm:$0xff]  ;;  %v1462_v30 = vld [vmem:[%s3593_s24 + $0x830] sm:$0xff]  ;;  %v1552_v42 = vld [vmem:[%s3593_s24 + $0xb00] sm:$0xff] }
 0x182   : > { %v1995_v23 = vadd.f32 %v1994_v12, %v1460_v7  ;;  %v1940_v28 = vadd.f32 %v1939_v16, %v1407_v10  ;;  %v1357_v31 = vld [vmem:[%s3593_s24 + $0x4e8] sm:$0xff]  ;;  %v1979_v33 = vadd.f32 %v1978_v20, %v1445_v15  ;;  %v1448_v50 = vld [vmem:[%s3593_s24 + $0x7c0] sm:$0xff]  ;;  %v1411_v56 = vld [vmem:[%s3593_s24 + $0x698] sm:$0xff] }
 0x183   : > { %v1920_v54 = vadd.f32 %v1919_v41, %v1388_v29  ;;  %v1883_v3 = vadd.f32 %v1882_v55, %v1352_v48  ;;  %v2034_v29 = vadd.f32 %v2033_v17, %v1498_v11  ;;  %v1463_v41 = vld [vmem:[%s3593_s24 + $0x838] sm:$0xff]  ;;  %v1358_v48 = vld [vmem:[%s3593_s24 + $0x4f0] sm:$0xff]  ;;  %v1449_v62 = vld [vmem:[%s3593_s24 + $0x7c8] sm:$0xff] }
 0x184   : > { %v1941_v39 = vadd.f32 %v1940_v28, %v1408_v21  ;;  %v1980_v43 = vadd.f32 %v1979_v33, %v1446_v27  ;;  %v1502_v57 = vld [vmem:[%s3593_s24 + $0x970] sm:$0xff]  ;;  %v1555_v59 = vld [vmem:[%s3593_s24 + $0xb18] sm:$0xff]  ;;  %v1412_v4 = vld [vmem:[%s3593_s24 + $0x6a0] sm:$0xff] }
 0x185   : > { %v1921_v2 = vadd.f32 %v1920_v54, %v1389_v36  ;;  %v1884_v14 = vadd.f32 %v1883_v3, %v1353_v60  ;;  %v1996_v36 = vadd.f32 %v1995_v23, %v1461_v18  ;;  %v2035_v40 = vadd.f32 %v2034_v29, %v1499_v22  ;;  %v1359_v60 = vld [vmem:[%s3593_s24 + $0x4f8] sm:$0xff]  ;;  %v1556_v7 = vld [vmem:[%s3593_s24 + $0xb20] sm:$0xff]  ;;  %v1450_v9 = vld [vmem:[%s3593_s24 + $0x7d0] sm:$0xff] }
 0x186   : > { %v1942_v51 = vadd.f32 %v1941_v39, %v1409_v34  ;;  %v2091_v54 = vadd.f32 %v1553_v46, %v1552_v42  ;;  %v1981_v55 = vadd.f32 %v1980_v43, %v1447_v32  ;;  %v1503_v5 = vld [vmem:[%s3593_s24 + $0x978] sm:$0xff]  ;;  %v1466_v12 = vld [vmem:[%s3593_s24 + $0x850] sm:$0xff]  ;;  %v1413_v15 = vld [vmem:[%s3593_s24 + $0x6a8] sm:$0xff] }
 0x187   : > { %v1922_v13 = vadd.f32 %v1921_v2, %v1390_v53  ;;  %v1885_v26 = vadd.f32 %v1884_v14, %v1354_v8  ;;  %v1997_v45 = vadd.f32 %v1996_v36, %v1462_v30  ;;  %v2036_v52 = vadd.f32 %v2035_v40, %v1500_v35  ;;  %v1464_v53 = vld [vmem:[%s3593_s24 + $0x840] sm:$0xff]  ;;  %v1557_v18 = vld [vmem:[%s3593_s24 + $0xb28] sm:$0xff]  ;;  %v1451_v20 = vld [vmem:[%s3593_s24 + $0x7d8] sm:$0xff] }
 0x188   : > { %v1943_v63 = vadd.f32 %v1942_v51, %v1410_v38  ;;  %v2092_v2 = vadd.f32 %v2091_v54, %v1554_v47  ;;  %v1982_v3 = vadd.f32 %v1981_v55, %v1448_v50  ;;  %v1504_v16 = vld [vmem:[%s3593_s24 + $0x980] sm:$0xff]  ;;  %v1414_v27 = vld [vmem:[%s3593_s24 + $0x6b0] sm:$0xff]  ;;  %v1505_v28 = vld [vmem:[%s3593_s24 + $0x988] sm:$0xff] }
 0x189   : > { %v1923_v24 = vadd.f32 %v1922_v13, %v1391_v1  ;;  %v1886_v37 = vadd.f32 %v1885_v26, %v1355_v19  ;;  %v1998_v58 = vadd.f32 %v1997_v45, %v1463_v41  ;;  %v2037_v0 = vadd.f32 %v2036_v52, %v1501_v44  ;;  %v1465_v1 = vld [vmem:[%s3593_s24 + $0x848] sm:$0xff]  ;;  %v1452_v21 = vld [vmem:[%s3593_s24 + $0x7e0] sm:$0xff]  ;;  %v1558_v30 = vld [vmem:[%s3593_s24 + $0xb30] sm:$0xff] }
 0x18a   : > { %v1944_v10 = vadd.f32 %v1943_v63, %v1411_v56  ;;  %v2093_v13 = vadd.f32 %v2092_v2, %v1555_v59  ;;  %v1983_v14 = vadd.f32 %v1982_v3, %v1449_v62  ;;  %v1415_v32 = vld [vmem:[%s3593_s24 + $0x6b8] sm:$0xff]  ;;  %v1506_v34 = vld [vmem:[%s3593_s24 + $0x990] sm:$0xff]  ;;  %v1468_v36 = vld [vmem:[%s3593_s24 + $0x860] sm:$0xff] }
 0x18b   : > { %1924 = vadd.xlane.f32.xlu1 %v1923_v24  ;;  %v1887_v49 = vadd.f32 %v1886_v37, %v1356_v25  ;;  %v1999_v6 = vadd.f32 %v1998_v58, %v1464_v53  ;;  %v2038_v11 = vadd.f32 %v2037_v0, %v1502_v57  ;;  %v1467_v24 = vld [vmem:[%s3593_s24 + $0x858] sm:$0xff]  ;;  %v1520_v41 = vld [vmem:[%s3593_s24 + $0xa00] sm:$0xff]  ;;  %v1521_v42 = vld [vmem:[%s3593_s24 + $0xa08] sm:$0xff] }
 0x18c   : > { %v1945_v22 = vadd.f32 %v1944_v10, %v1412_v4  ;;  %v2094_v25 = vadd.f32 %v2093_v13, %v1556_v7  ;;  %v1984_v26 = vadd.f32 %v1983_v14, %v1450_v9  ;;  %v1559_v40 = vld [vmem:[%s3593_s24 + $0xb38] sm:$0xff]  ;;  %v1416_v43 = vld [vmem:[%s3593_s24 + $0x6c0] sm:$0xff]  ;;  %v1469_v46 = vld [vmem:[%s3593_s24 + $0x868] sm:$0xff] }
 0x18d   : > { %v1888_v61 = vadd.f32 %v1887_v49, %v1357_v31  ;;  %v2000_v17 = vadd.f32 %v1999_v6, %v1465_v1  ;;  %v2039_v23 = vadd.f32 %v2038_v11, %v1503_v5  ;;  %v1453_v31 = vld [vmem:[%s3593_s24 + $0x7e8] sm:$0xff]  ;;  %v2058_v49 = vadd.f32 %v1521_v42, %v1520_v41  ;;  %v1507_v51 = vld [vmem:[%s3593_s24 + $0x998] sm:$0xff]  ;;  %v1560_v53 = vld [vmem:[%s3593_s24 + $0xb40] sm:$0xff] }
 0x18e   : > { %v1946_v33 = vadd.f32 %v1945_v22, %v1413_v15  ;;  %v2095_v37 = vadd.f32 %v2094_v25, %v1557_v18  ;;  %v1985_v38 = vadd.f32 %v1984_v26, %v1451_v20  ;;  %v1523_v54 = vld [vmem:[%s3593_s24 + $0xa18] sm:$0xff]  ;;  %v1454_v55 = vld [vmem:[%s3593_s24 + $0x7f0] sm:$0xff]  ;;  %v1417_v56 = vld [vmem:[%s3593_s24 + $0x6c8] sm:$0xff] }
 0x18f   : > { %v1889_v8 = vadd.f32 %v1888_v61, %v1358_v48  ;;  %v2001_v29 = vadd.f32 %v2000_v17, %v1466_v12  ;;  %v2040_v35 = vadd.f32 %v2039_v23, %v1504_v16  ;;  %v1522_v48 = vld [vmem:[%s3593_s24 + $0xa10] sm:$0xff]  ;;  %v1508_v63 = vld [vmem:[%s3593_s24 + $0x9a0] sm:$0xff]  ;;  %v1561_v1 = vld [vmem:[%s3593_s24 + $0xb48] sm:$0xff] }
 0x190   : > { %v1947_v44 = vadd.f32 %v1946_v33, %v1414_v27  ;;  %v2096_v47 = vadd.f32 %v2095_v37, %v1558_v30  ;;  %v1986_v50 = vadd.f32 %v1985_v38, %v1452_v21  ;;  %v1470_v59 = vld [vmem:[%s3593_s24 + $0x870] sm:$0xff]  ;;  %v2059_v61 = vadd.f32 %v2058_v49, %v1522_v48  ;;  %v1524_v2 = vld [vmem:[%s3593_s24 + $0xa20] sm:$0xff]  ;;  %v1455_v3 = vld [vmem:[%s3593_s24 + $0x7f8] sm:$0xff] }
 0x191   : > { %v1890_v19 = vadd.f32 %v1889_v8, %v1359_v60  ;;  %v2002_v39 = vadd.f32 %v2001_v29, %v1467_v24  ;;  %v2041_v45 = vadd.f32 %v2040_v35, %v1505_v28  ;;  %v1418_v4 = vld [vmem:[%s3593_s24 + $0x6d0] sm:$0xff]  ;;  %v1471_v7 = vld [vmem:[%s3593_s24 + $0x878] sm:$0xff]  ;;  %v1509_v11 = vld [vmem:[%s3593_s24 + $0x9a8] sm:$0xff] }
 0x192   : > { %v1948_v57 = vadd.f32 %v1947_v44, %v1415_v32  ;;  %v2097_v60 = vadd.f32 %v2096_v47, %v1559_v40  ;;  %v1987_v62 = vadd.f32 %v1986_v50, %v1453_v31  ;;  %v2060_v9 = vadd.f32 %v2059_v61, %v1523_v54  ;;  %v1562_v13 = vld [vmem:[%s3593_s24 + $0xb50] sm:$0xff]  ;;  %v1525_v14 = vld [vmem:[%s3593_s24 + $0xa28] sm:$0xff]  ;;  %v1419_v15 = vld [vmem:[%s3593_s24 + $0x6d8] sm:$0xff] }
 0x193   : > { %1891 = vadd.xlane.f32.xlu0 %v1890_v19  ;;  %v2003_v52 = vadd.f32 %v2002_v39, %v1468_v36  ;;  %v2042_v58 = vadd.f32 %v2041_v45, %v1506_v34  ;;  %v1472_v18 = vld [vmem:[%s3593_s24 + $0x880] sm:$0xff]  ;;  %v1510_v22 = vld [vmem:[%s3593_s24 + $0x9b0] sm:$0xff]  ;;  %v1563_v24 = vld [vmem:[%s3593_s24 + $0xb58] sm:$0xff] }
 0x194   : > { %v1949_v5 = vadd.f32 %v1948_v57, %v1416_v43  ;;  %v2098_v8 = vadd.f32 %v2097_v60, %v1560_v53  ;;  %v1988_v10 = vadd.f32 %v1987_v62, %v1454_v55  ;;  %v2061_v20 = vadd.f32 %v2060_v9, %v1524_v2  ;;  %v1526_v25 = vld [vmem:[%s3593_s24 + $0xa30] sm:$0xff]  ;;  %v1420_v26 = vld [vmem:[%s3593_s24 + $0x6e0] sm:$0xff]  ;;  %v1511_v28 = vld [vmem:[%s3593_s24 + $0x9b8] sm:$0xff] }
 0x195   : > { %v2004_v0 = vadd.f32 %v2003_v52, %v1469_v46  ;;  %v2043_v6 = vadd.f32 %v2042_v58, %v1507_v51  ;;  %v1473_v30 = vld [vmem:[%s3593_s24 + $0x888] sm:$0xff]  ;;  %v1474_v34 = vld [vmem:[%s3593_s24 + $0x890] sm:$0xff]  ;;  %v1564_v36 = vld [vmem:[%s3593_s24 + $0xb60] sm:$0xff] }
 0x196   : > { %v1950_v16 = vadd.f32 %v1949_v5, %v1417_v56  ;;  %v2099_v19 = vadd.f32 %v2098_v8, %v1561_v1  ;;  %v1989_v21 = vadd.f32 %v1988_v10, %v1455_v3  ;;  %v2062_v32 = vadd.f32 %v2061_v20, %v1525_v14  ;;  %v1421_v33 = vld [vmem:[%s3593_s24 + $0x6e8] sm:$0xff]  ;;  %v1527_v37 = vld [vmem:[%s3593_s24 + $0xa38] sm:$0xff]  ;;  %v1616_v42 = vld [vmem:[%s3593_s24 + $0xd00] sm:$0xff] }
 0x197   : > { %v2005_v12 = vadd.f32 %v2004_v0, %v1470_v59  ;;  %v2044_v17 = vadd.f32 %v2043_v6, %v1508_v63  ;;  %v1617_v43 = vld [vmem:[%s3593_s24 + $0xd08] sm:$0xff]  ;;  %v1618_v44 = vld [vmem:[%s3593_s24 + $0xd10] sm:$0xff]  ;;  %v1512_v45 = vld [vmem:[%s3593_s24 + $0x9c0] sm:$0xff] }
 0x198   : > { %v1951_v27 = vadd.f32 %v1950_v16, %v1418_v4  ;;  %v2100_v31 = vadd.f32 %v2099_v19, %v1562_v13  ;;  %1990 = vadd.xlane.f32.xlu1 %v1989_v21  ;;  %v2063_v41 = vadd.f32 %v2062_v32, %v1526_v25  ;;  %v1565_v47 = vld [vmem:[%s3593_s24 + $0xb68] sm:$0xff]  ;;  %v1528_v48 = vld [vmem:[%s3593_s24 + $0xa40] sm:$0xff]  ;;  %v2157_v49 = vadd.f32 %v1617_v43, %v1616_v42  ;;  %v1422_v50 = vld [vmem:[%s3593_s24 + $0x6f0] sm:$0xff] }
 0x199   : > { %v2006_v23 = vadd.f32 %v2005_v12, %v1471_v7  ;;  %v2045_v29 = vadd.f32 %v2044_v17, %v1509_v11  ;;  %v1475_v53 = vld [vmem:[%s3593_s24 + $0x898] sm:$0xff]  ;;  %v1513_v57 = vld [vmem:[%s3593_s24 + $0x9c8] sm:$0xff]  ;;  %v1566_v59 = vld [vmem:[%s3593_s24 + $0xb70] sm:$0xff] }
 0x19a   : > { %v1952_v38 = vadd.f32 %v1951_v27, %v1419_v15  ;;  %v2101_v40 = vadd.f32 %v2100_v31, %v1563_v24  ;;  %v2064_v55 = vadd.f32 %v2063_v41, %v1527_v37  ;;  %v1619_v56 = vld [vmem:[%s3593_s24 + $0xd18] sm:$0xff]  ;;  %v1529_v60 = vld [vmem:[%s3593_s24 + $0xa48] sm:$0xff]  ;;  %v2158_v61 = vadd.f32 %v2157_v49, %v1618_v44  ;;  %v1476_v1 = vld [vmem:[%s3593_s24 + $0x8a0] sm:$0xff] }
 0x19b   : > { %v2007_v35 = vadd.f32 %v2006_v23, %v1472_v18  ;;  %v2046_v39 = vadd.f32 %v2045_v29, %v1510_v22  ;;  %v1423_v62 = vld [vmem:[%s3593_s24 + $0x6f8] sm:$0xff]  ;;  %v1620_v4 = vld [vmem:[%s3593_s24 + $0xd20] sm:$0xff]  ;;  %v1514_v5 = vld [vmem:[%s3593_s24 + $0x9d0] sm:$0xff] }
 0x19c   : > { %v1953_v51 = vadd.f32 %v1952_v38, %v1420_v26  ;;  %v2102_v54 = vadd.f32 %v2101_v40, %v1564_v36  ;;  %v2065_v3 = vadd.f32 %v2064_v55, %v1528_v48  ;;  %v1567_v7 = vld [vmem:[%s3593_s24 + $0xb78] sm:$0xff]  ;;  %v1530_v8 = vld [vmem:[%s3593_s24 + $0xa50] sm:$0xff]  ;;  %v2159_v9 = vadd.f32 %v2158_v61, %v1619_v56  ;;  %v1477_v12 = vld [vmem:[%s3593_s24 + $0x8a8] sm:$0xff] }
 0x19d   : > { %v2008_v46 = vadd.f32 %v2007_v35, %v1473_v30  ;;  %v2047_v52 = vadd.f32 %v2046_v39, %v1511_v28  ;;  %v1621_v15 = vld [vmem:[%s3593_s24 + $0xd28] sm:$0xff]  ;;  %v1515_v16 = vld [vmem:[%s3593_s24 + $0x9d8] sm:$0xff]  ;;  %v1568_v18 = vld [vmem:[%s3593_s24 + $0xb80] sm:$0xff] }
 0x19e   : > { %v1954_v63 = vadd.f32 %v1953_v51, %v1421_v33  ;;  %v2103_v2 = vadd.f32 %v2102_v54, %v1565_v47  ;;  %v2066_v14 = vadd.f32 %v2065_v3, %v1529_v60  ;;  %v1531_v19 = vld [vmem:[%s3593_s24 + $0xa58] sm:$0xff]  ;;  %v2160_v20 = vadd.f32 %v2159_v9, %v1620_v4  ;;  %v1516_v22 = vld [vmem:[%s3593_s24 + $0x9e0] sm:$0xff]  ;;  %v1478_v24 = vld [vmem:[%s3593_s24 + $0x8b0] sm:$0xff] }
 0x19f   : > { %v2009_v58 = vadd.f32 %v2008_v46, %v1474_v34  ;;  %v2048_v0 = vadd.f32 %v2047_v52, %v1512_v45  ;;  %v1622_v27 = vld [vmem:[%s3593_s24 + $0xd30] sm:$0xff]  ;;  %v1517_v28 = vld [vmem:[%s3593_s24 + $0x9e8] sm:$0xff]  ;;  %v1479_v29 = vld [vmem:[%s3593_s24 + $0x8b8] sm:$0xff] }
 0x1a0   : > { %v1955_v10 = vadd.f32 %v1954_v63, %v1422_v50  ;;  %v2104_v13 = vadd.f32 %v2103_v2, %v1566_v59  ;;  %v2067_v26 = vadd.f32 %v2066_v14, %v1530_v8  ;;  %v1569_v31 = vld [vmem:[%s3593_s24 + $0xb88] sm:$0xff]  ;;  %v1532_v32 = vld [vmem:[%s3593_s24 + $0xa60] sm:$0xff]  ;;  %v2161_v33 = vadd.f32 %v2160_v20, %v1621_v15  ;;  %v1570_v35 = vld [vmem:[%s3593_s24 + $0xb90] sm:$0xff] }
 0x1a1   : > { %v2010_v6 = vadd.f32 %v2009_v58, %v1475_v53  ;;  %v2049_v11 = vadd.f32 %v2048_v0, %v1513_v57  ;;  %v1623_v38 = vld [vmem:[%s3593_s24 + $0xd38] sm:$0xff]  ;;  %v1584_v39 = vld [vmem:[%s3593_s24 + $0xc00] sm:$0xff]  ;;  %v1533_v41 = vld [vmem:[%s3593_s24 + $0xa68] sm:$0xff] }
 0x1a2   : > { %v1956_v21 = vadd.f32 %v1955_v10, %v1423_v62  ;;  %v2105_v25 = vadd.f32 %v2104_v13, %v1567_v7  ;;  %v2068_v37 = vadd.f32 %v2067_v26, %v1531_v19  ;;  %v2162_v42 = vadd.f32 %v2161_v33, %v1622_v27  ;;  %v1585_v43 = vld [vmem:[%s3593_s24 + $0xc08] sm:$0xff]  ;;  %v1586_v44 = vld [vmem:[%s3593_s24 + $0xc10] sm:$0xff]  ;;  %v1480_v47 = vld [vmem:[%s3593_s24 + $0x8c0] sm:$0xff] }
 0x1a3   : > { %v2011_v17 = vadd.f32 %v2010_v6, %v1476_v1  ;;  %v2050_v23 = vadd.f32 %v2049_v11, %v1514_v5  ;;  %v1518_v45 = vld [vmem:[%s3593_s24 + $0x9f0] sm:$0xff]  ;;  %v1624_v50 = vld [vmem:[%s3593_s24 + $0xd40] sm:$0xff]  ;;  %v2124_v51 = vadd.f32 %v1585_v43, %v1584_v39  ;;  %v1571_v53 = vld [vmem:[%s3593_s24 + $0xb98] sm:$0xff] }
 0x1a4   : > { %1957 = vadd.xlane.f32.xlu0 %v1956_v21  ;;  %v2106_v36 = vadd.f32 %v2105_v25, %v1568_v18  ;;  %v2069_v49 = vadd.f32 %v2068_v37, %v1532_v32  ;;  %v1534_v54 = vld [vmem:[%s3593_s24 + $0xa70] sm:$0xff]  ;;  %v2163_v55 = vadd.f32 %v2162_v42, %v1623_v38  ;;  %v1587_v56 = vld [vmem:[%s3593_s24 + $0xc18] sm:$0xff]  ;;  %v1481_v59 = vld [vmem:[%s3593_s24 + $0x8c8] sm:$0xff] }
 0x1a5   : > { %v2012_v30 = vadd.f32 %v2011_v17, %v1477_v12  ;;  %v2051_v34 = vadd.f32 %v2050_v23, %v1515_v16  ;;  %v1519_v57 = vld [vmem:[%s3593_s24 + $0x9f8] sm:$0xff]  ;;  %v1625_v62 = vld [vmem:[%s3593_s24 + $0xd48] sm:$0xff]  ;;  %v2125_v63 = vadd.f32 %v2124_v51, %v1586_v44  ;;  %v1572_v1 = vld [vmem:[%s3593_s24 + $0xba0] sm:$0xff] }
 0x1a6   : > { %v2107_v48 = vadd.f32 %v2106_v36, %v1569_v31  ;;  %v2070_v61 = vadd.f32 %v2069_v49, %v1533_v41  ;;  %v1535_v2 = vld [vmem:[%s3593_s24 + $0xa78] sm:$0xff]  ;;  %v2164_v3 = vadd.f32 %v2163_v55, %v1624_v50  ;;  %v1588_v4 = vld [vmem:[%s3593_s24 + $0xc20] sm:$0xff]  ;;  %v1482_v6 = vld [vmem:[%s3593_s24 + $0x8d0] sm:$0xff] }
 0x1a7   : > { %v2013_v40 = vadd.f32 %v2012_v30, %v1478_v24  ;;  %v2052_v46 = vadd.f32 %v2051_v34, %v1516_v22  ;;  %v1626_v9 = vld [vmem:[%s3593_s24 + $0xd50] sm:$0xff]  ;;  %v2126_v10 = vadd.f32 %v2125_v63, %v1587_v56  ;;  %v1573_v12 = vld [vmem:[%s3593_s24 + $0xba8] sm:$0xff]  ;;  %v1536_v13 = vld [vmem:[%s3593_s24 + $0xa80] sm:$0xff] }
 0x1a8   : > { %v2108_v60 = vadd.f32 %v2107_v48, %v1570_v35  ;;  %v2071_v8 = vadd.f32 %v2070_v61, %v1534_v54  ;;  %v2165_v14 = vadd.f32 %v2164_v3, %v1625_v62  ;;  %v1589_v15 = vld [vmem:[%s3593_s24 + $0xc28] sm:$0xff]  ;;  %v1483_v17 = vld [vmem:[%s3593_s24 + $0x8d8] sm:$0xff]  ;;  %v1484_v18 = vld [vmem:[%s3593_s24 + $0x8e0] sm:$0xff] }
 0x1a9   : > { %v2014_v52 = vadd.f32 %v2013_v40, %v1479_v29  ;;  %v2053_v58 = vadd.f32 %v2052_v46, %v1517_v28  ;;  %v1627_v21 = vld [vmem:[%s3593_s24 + $0xd58] sm:$0xff]  ;;  %v2127_v22 = vadd.f32 %v2126_v10, %v1588_v4  ;;  %v1574_v24 = vld [vmem:[%s3593_s24 + $0xbb0] sm:$0xff]  ;;  %v1537_v25 = vld [vmem:[%s3593_s24 + $0xa88] sm:$0xff] }
 0x1aa   : > { %v2109_v7 = vadd.f32 %v2108_v60, %v1571_v53  ;;  %v2072_v20 = vadd.f32 %v2071_v8, %v1535_v2  ;;  %v2166_v26 = vadd.f32 %v2165_v14, %v1626_v9  ;;  %v1590_v27 = vld [vmem:[%s3593_s24 + $0xc30] sm:$0xff]  ;;  %v1485_v28 = vld [vmem:[%s3593_s24 + $0x8e8] sm:$0xff]  ;;  %v1575_v29 = vld [vmem:[%s3593_s24 + $0xbb8] sm:$0xff] }
 0x1ab   : > { %v2015_v0 = vadd.f32 %v2014_v52, %v1480_v47  ;;  %v2054_v5 = vadd.f32 %v2053_v58, %v1518_v45  ;;  %v1538_v31 = vld [vmem:[%s3593_s24 + $0xa90] sm:$0xff]  ;;  %v1628_v33 = vld [vmem:[%s3593_s24 + $0xd60] sm:$0xff]  ;;  %v2128_v34 = vadd.f32 %v2127_v22, %v1589_v15  ;;  %v1591_v37 = vld [vmem:[%s3593_s24 + $0xc38] sm:$0xff] }
 0x1ac   : > { %v2110_v19 = vadd.f32 %v2109_v7, %v1572_v1  ;;  %v2073_v32 = vadd.f32 %v2072_v20, %v1536_v13  ;;  %v2167_v36 = vadd.f32 %v2166_v26, %v1627_v21  ;;  %v1680_v38 = vld [vmem:[%s3593_s24 + $0xf00] sm:$0xff]  ;;  %v1681_v39 = vld [vmem:[%s3593_s24 + $0xf08] sm:$0xff]  ;;  %v1682_v45 = vld [vmem:[%s3593_s24 + $0xf10] sm:$0xff] }
 0x1ad   : > { %v2016_v11 = vadd.f32 %v2015_v0, %v1481_v59  ;;  %v2055_v16 = vadd.f32 %v2054_v5, %v1519_v57  ;;  %v1576_v40 = vld [vmem:[%s3593_s24 + $0xbc0] sm:$0xff]  ;;  %v1629_v43 = vld [vmem:[%s3593_s24 + $0xd68] sm:$0xff]  ;;  %v2129_v44 = vadd.f32 %v2128_v34, %v1590_v27  ;;  %v2223_v46 = vadd.f32 %v1681_v39, %v1680_v38  ;;  %v1539_v48 = vld [vmem:[%s3593_s24 + $0xa98] sm:$0xff] }
 0x1ae   : > { %v2111_v30 = vadd.f32 %v2110_v19, %v1573_v12  ;;  %v2074_v42 = vadd.f32 %v2073_v32, %v1537_v25  ;;  %v2168_v49 = vadd.f32 %v2167_v36, %v1628_v33  ;;  %v1592_v50 = vld [vmem:[%s3593_s24 + $0xc40] sm:$0xff]  ;;  %v1683_v51 = vld [vmem:[%s3593_s24 + $0xf18] sm:$0xff]  ;;  %v1486_v52 = vld [vmem:[%s3593_s24 + $0x8f0] sm:$0xff] }
 0x1af   : > { %v2017_v23 = vadd.f32 %v2016_v11, %v1482_v6  ;;  %2056 = vadd.xlane.f32.xlu1 %v2055_v16  ;;  %v1577_v53 = vld [vmem:[%s3593_s24 + $0xbc8] sm:$0xff]  ;;  %v1630_v56 = vld [vmem:[%s3593_s24 + $0xd70] sm:$0xff]  ;;  %v2130_v57 = vadd.f32 %v2129_v44, %v1591_v37  ;;  %v2224_v58 = vadd.f32 %v2223_v46, %v1682_v45  ;;  %v1540_v60 = vld [vmem:[%s3593_s24 + $0xaa0] sm:$0xff] }
 0x1b0   : > { %v2112_v41 = vadd.f32 %v2111_v30, %v1574_v24  ;;  %v2075_v55 = vadd.f32 %v2074_v42, %v1538_v31  ;;  %v2169_v61 = vadd.f32 %v2168_v49, %v1629_v43  ;;  %v1593_v62 = vld [vmem:[%s3593_s24 + $0xc48] sm:$0xff]  ;;  %v1684_v63 = vld [vmem:[%s3593_s24 + $0xf20] sm:$0xff]  ;;  %v1487_v0 = vld [vmem:[%s3593_s24 + $0x8f8] sm:$0xff] }
 0x1b1   : > { %v2018_v35 = vadd.f32 %v2017_v23, %v1483_v17  ;;  %v1578_v1 = vld [vmem:[%s3593_s24 + $0xbd0] sm:$0xff]  ;;  %v1631_v4 = vld [vmem:[%s3593_s24 + $0xd78] sm:$0xff]  ;;  %v2131_v5 = vadd.f32 %v2130_v57, %v1592_v50  ;;  %v2225_v6 = vadd.f32 %v2224_v58, %v1683_v51  ;;  %v1541_v8 = vld [vmem:[%s3593_s24 + $0xaa8] sm:$0xff] }
 0x1b2   : > { %v2113_v54 = vadd.f32 %v2112_v41, %v1575_v29  ;;  %v2076_v3 = vadd.f32 %v2075_v55, %v1539_v48  ;;  %v2170_v9 = vadd.f32 %v2169_v61, %v1630_v56  ;;  %v1594_v10 = vld [vmem:[%s3593_s24 + $0xc50] sm:$0xff]  ;;  %v1685_v11 = vld [vmem:[%s3593_s24 + $0xf28] sm:$0xff]  ;;  %v1579_v12 = vld [vmem:[%s3593_s24 + $0xbd8] sm:$0xff] }
 0x1b3   : > { %v2019_v47 = vadd.f32 %v2018_v35, %v1484_v18  ;;  %v1632_v15 = vld [vmem:[%s3593_s24 + $0xd80] sm:$0xff]  ;;  %v2132_v16 = vadd.f32 %v2131_v5, %v1593_v62  ;;  %v2226_v17 = vadd.f32 %v2225_v6, %v1684_v63  ;;  %v1542_v19 = vld [vmem:[%s3593_s24 + $0xab0] sm:$0xff]  ;;  %v1595_v21 = vld [vmem:[%s3593_s24 + $0xc58] sm:$0xff] }
 0x1b4   : > { %v2114_v2 = vadd.f32 %v2113_v54, %v1576_v40  ;;  %v2077_v14 = vadd.f32 %v2076_v3, %v1540_v60  ;;  %v2171_v20 = vadd.f32 %v2170_v9, %v1631_v4  ;;  %v1686_v22 = vld [vmem:[%s3593_s24 + $0xf30] sm:$0xff]  ;;  %v1580_v23 = vld [vmem:[%s3593_s24 + $0xbe0] sm:$0xff]  ;;  %v1543_v25 = vld [vmem:[%s3593_s24 + $0xab8] sm:$0xff] }
 0x1b5   : > { %v2020_v59 = vadd.f32 %v2019_v47, %v1485_v28  ;;  %v1633_v27 = vld [vmem:[%s3593_s24 + $0xd88] sm:$0xff]  ;;  %v2133_v28 = vadd.f32 %v2132_v16, %v1594_v10  ;;  %v2227_v29 = vadd.f32 %v2226_v17, %v1685_v11  ;;  %v1634_v31 = vld [vmem:[%s3593_s24 + $0xd90] sm:$0xff]  ;;  %v1596_v33 = vld [vmem:[%s3593_s24 + $0xc60] sm:$0xff] }
 0x1b6   : > { %v2115_v13 = vadd.f32 %v2114_v2, %v1577_v53  ;;  %v2078_v26 = vadd.f32 %v2077_v14, %v1541_v8  ;;  %v1581_v30 = vld [vmem:[%s3593_s24 + $0xbe8] sm:$0xff]  ;;  %v2172_v32 = vadd.f32 %v2171_v20, %v1632_v15  ;;  %v1687_v34 = vld [vmem:[%s3593_s24 + $0xf38] sm:$0xff]  ;;  %v1648_v39 = vld [vmem:[%s3593_s24 + $0xe00] sm:$0xff] }
 0x1b7   : > { %v2021_v7 = vadd.f32 %v2020_v59, %v1486_v52  ;;  %v2134_v37 = vadd.f32 %v2133_v28, %v1595_v21  ;;  %v2228_v38 = vadd.f32 %v2227_v29, %v1686_v22  ;;  %v1649_v40 = vld [vmem:[%s3593_s24 + $0xe08] sm:$0xff]  ;;  %v1650_v41 = vld [vmem:[%s3593_s24 + $0xe10] sm:$0xff]  ;;  %v1544_v42 = vld [vmem:[%s3593_s24 + $0xac0] sm:$0xff] }
 0x1b8   : > { %v2116_v24 = vadd.f32 %v2115_v13, %v1578_v1  ;;  %v2079_v36 = vadd.f32 %v2078_v26, %v1542_v19  ;;  %v2173_v43 = vadd.f32 %v2172_v32, %v1633_v27  ;;  %v1597_v44 = vld [vmem:[%s3593_s24 + $0xc68] sm:$0xff]  ;;  %v1688_v45 = vld [vmem:[%s3593_s24 + $0xf40] sm:$0xff]  ;;  %v2190_v46 = vadd.f32 %v1649_v40, %v1648_v39  ;;  %v1582_v47 = vld [vmem:[%s3593_s24 + $0xbf0] sm:$0xff] }
 0x1b9   : > { %v2022_v18 = vadd.f32 %v2021_v7, %v1487_v0  ;;  %v1635_v50 = vld [vmem:[%s3593_s24 + $0xd98] sm:$0xff]  ;;  %v2135_v51 = vadd.f32 %v2134_v37, %v1596_v33  ;;  %v2229_v52 = vadd.f32 %v2228_v38, %v1687_v34  ;;  %v1545_v54 = vld [vmem:[%s3593_s24 + $0xac8] sm:$0xff]  ;;  %v1598_v56 = vld [vmem:[%s3593_s24 + $0xc70] sm:$0xff] }
 0x1ba   : > { %v2117_v35 = vadd.f32 %v2116_v24, %v1579_v12  ;;  %v2080_v49 = vadd.f32 %v2079_v36, %v1543_v25  ;;  %v1651_v53 = vld [vmem:[%s3593_s24 + $0xe18] sm:$0xff]  ;;  %v2174_v55 = vadd.f32 %v2173_v43, %v1634_v31  ;;  %v1689_v57 = vld [vmem:[%s3593_s24 + $0xf48] sm:$0xff]  ;;  %v2191_v58 = vadd.f32 %v2190_v46, %v1650_v41  ;;  %v1636_v62 = vld [vmem:[%s3593_s24 + $0xda0] sm:$0xff] }
 0x1bb   : > { %2023 = vadd.xlane.f32.xlu0 %v2022_v18  ;;  %v1583_v59 = vld [vmem:[%s3593_s24 + $0xbf8] sm:$0xff]  ;;  %v2136_v63 = vadd.f32 %v2135_v51, %v1597_v44  ;;  %v2230_v0 = vadd.f32 %v2229_v52, %v1688_v45  ;;  %v1652_v1 = vld [vmem:[%s3593_s24 + $0xe20] sm:$0xff]  ;;  %v1546_v2 = vld [vmem:[%s3593_s24 + $0xad0] sm:$0xff] }
 0x1bc   : > { %v2118_v48 = vadd.f32 %v2117_v35, %v1580_v23  ;;  %v2081_v61 = vadd.f32 %v2080_v49, %v1544_v42  ;;  %v2175_v3 = vadd.f32 %v2174_v55, %v1635_v50  ;;  %v1599_v4 = vld [vmem:[%s3593_s24 + $0xc78] sm:$0xff]  ;;  %v1690_v5 = vld [vmem:[%s3593_s24 + $0xf50] sm:$0xff]  ;;  %v2192_v6 = vadd.f32 %v2191_v58, %v1651_v53  ;;  %v1637_v9 = vld [vmem:[%s3593_s24 + $0xda8] sm:$0xff] }
 0x1bd   : > { %v2137_v10 = vadd.f32 %v2136_v63, %v1598_v56  ;;  %v2231_v11 = vadd.f32 %v2230_v0, %v1689_v57  ;;  %v1653_v12 = vld [vmem:[%s3593_s24 + $0xe28] sm:$0xff]  ;;  %v1547_v13 = vld [vmem:[%s3593_s24 + $0xad8] sm:$0xff]  ;;  %v1600_v15 = vld [vmem:[%s3593_s24 + $0xc80] sm:$0xff] }
 0x1be   : > { %v2119_v60 = vadd.f32 %v2118_v48, %v1581_v30  ;;  %v2082_v8 = vadd.f32 %v2081_v61, %v1545_v54  ;;  %v2176_v14 = vadd.f32 %v2175_v3, %v1636_v62  ;;  %v1691_v16 = vld [vmem:[%s3593_s24 + $0xf58] sm:$0xff]  ;;  %v2193_v17 = vadd.f32 %v2192_v6, %v1652_v1  ;;  %v1638_v20 = vld [vmem:[%s3593_s24 + $0xdb0] sm:$0xff]  ;;  %v1548_v24 = vld [vmem:[%s3593_s24 + $0xae0] sm:$0xff] }
 0x1bf   : > { %v2138_v21 = vadd.f32 %v2137_v10, %v1599_v4  ;;  %v2232_v22 = vadd.f32 %v2231_v11, %v1690_v5  ;;  %v1654_v23 = vld [vmem:[%s3593_s24 + $0xe30] sm:$0xff]  ;;  %v1601_v26 = vld [vmem:[%s3593_s24 + $0xc88] sm:$0xff]  ;;  %v1692_v27 = vld [vmem:[%s3593_s24 + $0xf60] sm:$0xff] }
 0x1c0   : > { %v2120_v7 = vadd.f32 %v2119_v60, %v1582_v47  ;;  %v2083_v19 = vadd.f32 %v2082_v8, %v1546_v2  ;;  %v2177_v25 = vadd.f32 %v2176_v14, %v1637_v9  ;;  %v2194_v28 = vadd.f32 %v2193_v17, %v1653_v12  ;;  %v1639_v30 = vld [vmem:[%s3593_s24 + $0xdb8] sm:$0xff]  ;;  %v1549_v34 = vld [vmem:[%s3593_s24 + $0xae8] sm:$0xff]  ;;  %v1602_v36 = vld [vmem:[%s3593_s24 + $0xc90] sm:$0xff] }
 0x1c1   : > { %v2139_v31 = vadd.f32 %v2138_v21, %v1600_v15  ;;  %v2233_v32 = vadd.f32 %v2232_v22, %v1691_v16  ;;  %v1655_v33 = vld [vmem:[%s3593_s24 + $0xe38] sm:$0xff]  ;;  %v1693_v37 = vld [vmem:[%s3593_s24 + $0xf68] sm:$0xff]  ;;  %v1640_v40 = vld [vmem:[%s3593_s24 + $0xdc0] sm:$0xff] }
 0x1c2   : > { %v2121_v18 = vadd.f32 %v2120_v7, %v1583_v59  ;;  %v2084_v29 = vadd.f32 %v2083_v19, %v1547_v13  ;;  %v2178_v35 = vadd.f32 %v2177_v25, %v1638_v20  ;;  %v2195_v38 = vadd.f32 %v2194_v28, %v1654_v23  ;;  %v1656_v43 = vld [vmem:[%s3593_s24 + $0xe40] sm:$0xff]  ;;  %v1550_v44 = vld [vmem:[%s3593_s24 + $0xaf0] sm:$0xff]  ;;  %v1603_v46 = vld [vmem:[%s3593_s24 + $0xc98] sm:$0xff] }
 0x1c3   : > { %v2140_v41 = vadd.f32 %v2139_v31, %v1601_v26  ;;  %v2234_v42 = vadd.f32 %v2233_v32, %v1692_v27  ;;  %v1694_v47 = vld [vmem:[%s3593_s24 + $0xf70] sm:$0xff]  ;;  %v1641_v50 = vld [vmem:[%s3593_s24 + $0xdc8] sm:$0xff]  ;;  %v1551_v54 = vld [vmem:[%s3593_s24 + $0xaf8] sm:$0xff] }
 0x1c4   : > { %2122 = vadd.xlane.f32.xlu1 %v2121_v18  ;;  %v2085_v39 = vadd.f32 %v2084_v29, %v1548_v24  ;;  %v2179_v45 = vadd.f32 %v2178_v35, %v1639_v30  ;;  %v2196_v48 = vadd.f32 %v2195_v38, %v1655_v33  ;;  %v1657_v53 = vld [vmem:[%s3593_s24 + $0xe48] sm:$0xff]  ;;  %v1604_v56 = vld [vmem:[%s3593_s24 + $0xca0] sm:$0xff]  ;;  %v1695_v57 = vld [vmem:[%s3593_s24 + $0xf78] sm:$0xff] }
 0x1c5   : > { %v2141_v51 = vadd.f32 %v2140_v41, %v1602_v36  ;;  %v2235_v52 = vadd.f32 %v2234_v42, %v1693_v37  ;;  %v1642_v60 = vld [vmem:[%s3593_s24 + $0xdd0] sm:$0xff]  ;;  %v1605_v1 = vld [vmem:[%s3593_s24 + $0xca8] sm:$0xff]  ;;  %v1696_v2 = vld [vmem:[%s3593_s24 + $0xf80] sm:$0xff] }
 0x1c6   : > { %v2086_v49 = vadd.f32 %v2085_v39, %v1549_v34  ;;  %v2180_v55 = vadd.f32 %v2179_v45, %v1640_v40  ;;  %v2197_v58 = vadd.f32 %v2196_v48, %v1656_v43  ;;  %v1658_v63 = vld [vmem:[%s3593_s24 + $0xe50] sm:$0xff]  ;;  %v1643_v5 = vld [vmem:[%s3593_s24 + $0xdd8] sm:$0xff]  ;;  %v1697_v11 = vld [vmem:[%s3593_s24 + $0xf88] sm:$0xff] }
 0x1c7   : > { %v2142_v61 = vadd.f32 %v2141_v51, %v1603_v46  ;;  %v2236_v62 = vadd.f32 %v2235_v52, %v1694_v47  ;;  %v1659_v8 = vld [vmem:[%s3593_s24 + $0xe58] sm:$0xff]  ;;  %v1606_v10 = vld [vmem:[%s3593_s24 + $0xcb0] sm:$0xff]  ;;  %v1644_v13 = vld [vmem:[%s3593_s24 + $0xde0] sm:$0xff] }
 0x1c8   : > { %v2087_v59 = vadd.f32 %v2086_v49, %v1550_v44  ;;  %v2181_v0 = vadd.f32 %v2180_v55, %v1641_v50  ;;  %v2198_v3 = vadd.f32 %v2197_v58, %v1657_v53  ;;  %v1660_v16 = vld [vmem:[%s3593_s24 + $0xe60] sm:$0xff]  ;;  %v1607_v18 = vld [vmem:[%s3593_s24 + $0xcb8] sm:$0xff]  ;;  %v1698_v19 = vld [vmem:[%s3593_s24 + $0xf90] sm:$0xff] }
 0x1c9   : > { %v2143_v6 = vadd.f32 %v2142_v61, %v1604_v56  ;;  %v2237_v7 = vadd.f32 %v2236_v62, %v1695_v57  ;;  %v1645_v21 = vld [vmem:[%s3593_s24 + $0xde8] sm:$0xff]  ;;  %v1608_v26 = vld [vmem:[%s3593_s24 + $0xcc0] sm:$0xff]  ;;  %v1699_v27 = vld [vmem:[%s3593_s24 + $0xf98] sm:$0xff] }
 0x1ca   : > { %v2088_v4 = vadd.f32 %v2087_v59, %v1551_v54  ;;  %v2182_v9 = vadd.f32 %v2181_v0, %v1642_v60  ;;  %v2199_v12 = vadd.f32 %v2198_v3, %v1658_v63  ;;  %v1661_v24 = vld [vmem:[%s3593_s24 + $0xe68] sm:$0xff]  ;;  %v1646_v29 = vld [vmem:[%s3593_s24 + $0xdf0] sm:$0xff]  ;;  %v1700_v35 = vld [vmem:[%s3593_s24 + $0xfa0] sm:$0xff] }
 0x1cb   : > { %v2144_v14 = vadd.f32 %v2143_v6, %v1605_v1  ;;  %v2238_v15 = vadd.f32 %v2237_v7, %v1696_v2  ;;  %v1662_v32 = vld [vmem:[%s3593_s24 + $0xe70] sm:$0xff]  ;;  %v1609_v34 = vld [vmem:[%s3593_s24 + $0xcc8] sm:$0xff]  ;;  %v1647_v37 = vld [vmem:[%s3593_s24 + $0xdf8] sm:$0xff] }
 0x1cc   : > { %2089 = vadd.xlane.f32.xlu0 %v2088_v4  ;;  %v2183_v17 = vadd.f32 %v2182_v9, %v1643_v5  ;;  %v2200_v20 = vadd.f32 %v2199_v12, %v1659_v8  ;;  %v1663_v40 = vld [vmem:[%s3593_s24 + $0xe78] sm:$0xff]  ;;  %v1610_v42 = vld [vmem:[%s3593_s24 + $0xcd0] sm:$0xff]  ;;  %v1701_v43 = vld [vmem:[%s3593_s24 + $0xfa8] sm:$0xff] }
 0x1cd   : > { %v2145_v22 = vadd.f32 %v2144_v14, %v1606_v10  ;;  %v2239_v23 = vadd.f32 %v2238_v15, %v1697_v11  ;;  %v1664_v47 = vld [vmem:[%s3593_s24 + $0xe80] sm:$0xff]  ;;  %v1611_v49 = vld [vmem:[%s3593_s24 + $0xcd8] sm:$0xff]  ;;  %v1702_v50 = vld [vmem:[%s3593_s24 + $0xfb0] sm:$0xff] }
 0x1ce   : > { %v2184_v25 = vadd.f32 %v2183_v17, %v1644_v13  ;;  %v2201_v28 = vadd.f32 %v2200_v20, %v1660_v16  ;;  %v1665_v54 = vld [vmem:[%s3593_s24 + $0xe88] sm:$0xff]  ;;  %v1612_v55 = vld [vmem:[%s3593_s24 + $0xce0] sm:$0xff]  ;;  %v1703_v56 = vld [vmem:[%s3593_s24 + $0xfb8] sm:$0xff] }
 0x1cf   : > { %v2146_v30 = vadd.f32 %v2145_v22, %v1607_v18  ;;  %v2240_v31 = vadd.f32 %v2239_v23, %v1698_v19  ;;  %v1666_v60 = vld [vmem:[%s3593_s24 + $0xe90] sm:$0xff]  ;;  %v1613_v61 = vld [vmem:[%s3593_s24 + $0xce8] sm:$0xff]  ;;  %v1704_v62 = vld [vmem:[%s3593_s24 + $0xfc0] sm:$0xff] }
 0x1d0   : > { %v2185_v33 = vadd.f32 %v2184_v25, %v1645_v21  ;;  %v2202_v36 = vadd.f32 %v2201_v28, %v1661_v24  ;;  %v1667_v2 = vld [vmem:[%s3593_s24 + $0xe98] sm:$0xff]  ;;  %v1614_v3 = vld [vmem:[%s3593_s24 + $0xcf0] sm:$0xff]  ;;  %v1705_v4 = vld [vmem:[%s3593_s24 + $0xfc8] sm:$0xff] }
 0x1d1   : > { %v2147_v38 = vadd.f32 %v2146_v30, %v1608_v26  ;;  %v2241_v39 = vadd.f32 %v2240_v31, %v1699_v27  ;;  %v1668_v8 = vld [vmem:[%s3593_s24 + $0xea0] sm:$0xff]  ;;  %v1615_v9 = vld [vmem:[%s3593_s24 + $0xcf8] sm:$0xff]  ;;  %v1706_v10 = vld [vmem:[%s3593_s24 + $0xfd0] sm:$0xff] }
 0x1d2   : > { %v2186_v41 = vadd.f32 %v2185_v33, %v1646_v29  ;;  %v2203_v44 = vadd.f32 %v2202_v36, %v1662_v32  ;;  %v1669_v14 = vld [vmem:[%s3593_s24 + $0xea8] sm:$0xff]  ;;  %v1707_v15 = vld [vmem:[%s3593_s24 + $0xfd8] sm:$0xff]  ;;  %v1670_v19 = vld [vmem:[%s3593_s24 + $0xeb0] sm:$0xff] }
 0x1d3   : > { %v2148_v45 = vadd.f32 %v2147_v38, %v1609_v34  ;;  %v2242_v46 = vadd.f32 %v2241_v39, %v1700_v35  ;;  %v1708_v20 = vld [vmem:[%s3593_s24 + $0xfe0] sm:$0xff]  ;;  %v1671_v23 = vld [vmem:[%s3593_s24 + $0xeb8] sm:$0xff]  ;;  %v1714_v24 = vld [vmem:[#allocation2 + $0x10] sm:$0xff] }
 0x1d4   : > { %v2187_v48 = vadd.f32 %v2186_v41, %v1647_v37  ;;  %v2204_v51 = vadd.f32 %v2203_v44, %v1663_v40  ;;  %v1709_v25 = vld [vmem:[%s3593_s24 + $0xfe8] sm:$0xff]  ;;  %v1672_v28 = vld [vmem:[%s3593_s24 + $0xec0] sm:$0xff]  ;;  %v1710_v30 = vld [vmem:[%s3593_s24 + $0xff0] sm:$0xff] }
 0x1d5   : > { %v2149_v52 = vadd.f32 %v2148_v45, %v1610_v42  ;;  %v2243_v53 = vadd.f32 %v2242_v46, %v1701_v43  ;;  %v1673_v34 = vld [vmem:[%s3593_s24 + $0xec8] sm:$0xff]  ;;  %v1711_v35 = vld [vmem:[%s3593_s24 + $0xff8] sm:$0xff]  ;;  %v1674_v38 = vld [vmem:[%s3593_s24 + $0xed0] sm:$0xff] }
 0x1d6   : > { %2188 = vadd.xlane.f32.xlu1 %v2187_v48  ;;  %v2205_v57 = vadd.f32 %v2204_v51, %v1664_v47  ;;  %v1675_v41 = vld [vmem:[%s3593_s24 + $0xed8] sm:$0xff]  ;;  %v1676_v43 = vld [vmem:[%s3593_s24 + $0xee0] sm:$0xff]  ;;  %v1677_v46 = vld [vmem:[%s3593_s24 + $0xee8] sm:$0xff] }
 0x1d7   : > { %v2150_v58 = vadd.f32 %v2149_v52, %v1611_v49  ;;  %v2244_v59 = vadd.f32 %v2243_v53, %v1702_v50  ;;  %v1712_v45 = vld [vmem:[#allocation2] sm:$0xff]  ;;  %v1678_v49 = vld [vmem:[%s3593_s24 + $0xef0] sm:$0xff]  ;;  %v1679_v52 = vld [vmem:[%s3593_s24 + $0xef8] sm:$0xff] }
 0x1d8   : > { %v2206_v63 = vadd.f32 %v2205_v57, %v1665_v54 }
 0x1d9   : > { %v2151_v0 = vadd.f32 %v2150_v58, %v1612_v55  ;;  %v2245_v1 = vadd.f32 %v2244_v59, %v1703_v56  ;;  %v1715_v55 = vld [vmem:[#allocation2 + $0x18] sm:$0xff]  ;;  %v1713_v58 = vld [vmem:[#allocation2 + $0x8] sm:$0xff] }
 0x1da   : > { %v2207_v5 = vadd.f32 %v2206_v63, %v1666_v60 }
 0x1db   : > { %v2152_v6 = vadd.f32 %v2151_v0, %v1613_v61  ;;  %v2246_v7 = vadd.f32 %v2245_v1, %v1704_v62  ;;  %v1717_v61 = vld [vmem:[#allocation2 + $0x28] sm:$0xff]  ;;  %v1716_v0 = vld [vmem:[#allocation2 + $0x20] sm:$0xff] }
 0x1dc   : > { %v2208_v11 = vadd.f32 %v2207_v5, %v1667_v2 }
 0x1dd   : > { %v2153_v12 = vadd.f32 %v2152_v6, %v1614_v3  ;;  %v2247_v13 = vadd.f32 %v2246_v7, %v1705_v4  ;;  %v1719_v3 = vld [vmem:[#allocation2 + $0x38] sm:$0xff]  ;;  %v1718_v6 = vld [vmem:[#allocation2 + $0x30] sm:$0xff] }
 0x1de   : > { %v2209_v16 = vadd.f32 %v2208_v11, %v1668_v8 }
 0x1df   : > { %v2154_v17 = vadd.f32 %v2153_v12, %v1615_v9  ;;  %v2248_v18 = vadd.f32 %v2247_v13, %v1706_v10  ;;  %v1721_v9 = vld [vmem:[#allocation2 + $0x48] sm:$0xff]  ;;  %v1720_v12 = vld [vmem:[#allocation2 + $0x40] sm:$0xff] }
 0x1e0   : > { %v2210_v21 = vadd.f32 %v2209_v16, %v1669_v14 }
 0x1e1   : > { %2155 = vadd.xlane.f32.xlu0 %v2154_v17  ;;  %v2249_v22 = vadd.f32 %v2248_v18, %v1707_v15  ;;  %v1723_v15 = vld [vmem:[#allocation2 + $0x58] sm:$0xff]  ;;  %v1722_v18 = vld [vmem:[#allocation2 + $0x50] sm:$0xff] }
 0x1e2   : > { %v2211_v26 = vadd.f32 %v2210_v21, %v1670_v19  ;;  %v1725_v21 = vld [vmem:[#allocation2 + $0x68] sm:$0xff] }
 0x1e3   : > { %v2250_v27 = vadd.f32 %v2249_v22, %v1708_v20 }
 0x1e4   : > { %v2212_v31 = vadd.f32 %v2211_v26, %v1671_v23 }
 0x1e5   : > { %v2251_v33 = vadd.f32 %v2250_v27, %v1709_v25  ;;  %v1727_v27 = vld [vmem:[#allocation2 + $0x78] sm:$0xff] }
 0x1e6   : > { %v2213_v36 = vadd.f32 %v2212_v31, %v1672_v28 }
 0x1e7   : > { %v2252_v37 = vadd.f32 %v2251_v33, %v1710_v30  ;;  %v1726_v30 = vld [vmem:[#allocation2 + $0x70] sm:$0xff] }
 0x1e8   : > { %v2214_v39 = vadd.f32 %v2213_v36, %v1673_v34 }
 0x1e9   : > { %v2253_v40 = vadd.f32 %v2252_v37, %v1711_v35 }
 0x1ea   : > { %v2215_v42 = vadd.f32 %v2214_v39, %v1674_v38 }
 0x1eb   : > { %2254 = vadd.xlane.f32.xlu1 %v2253_v40 }
 0x1ec   : > { %v2216_v44 = vadd.f32 %v2215_v42, %v1675_v41 }
 0x1ee   : > { %v2217_v47 = vadd.f32 %v2216_v44, %v1676_v43 }
 0x1f0   : > { %v2218_v51 = vadd.f32 %v2217_v47, %v1677_v46 }
 0x1f2   : > { %v1826_v29 = vpop.xlane.xlu1 %1825  ;;  %v2219_v53 = vadd.f32 %v2218_v51, %v1678_v49 }
 0x1f3   : > { %v2258_v32 = vadd.f32 %v1826_v29, %v1714_v24  ;;  %v1724_v24 = vld [vmem:[#allocation2 + $0x60] sm:$0xff] }
 0x1f4   : > { %v2220_v54 = vadd.f32 %v2219_v53, %v1679_v52 }
 0x1f5   : > { %2275 = vst.msk [vmem:[#allocation2 + $0x10] sm:$0xff] %vm2272_vm1, %v2258_v32  ;;  %v1760_v48 = vpop.xlane.xlu0 %1759 }
 0x1f6   : > { %v2256_v50 = vadd.f32 %v1760_v48, %v1712_v45  ;;  %2221 = vadd.xlane.f32.xlu0 %v2220_v54 }
 0x1f8   : > { %2273 = vst.msk [vmem:[#allocation2] sm:$0xff] %vm2272_vm1, %v2256_v50 }
 0x1fc   : > { %v2295_v35 = vld [vmem:[#allocation2 + $0x10] sm:$0xff] (!%p2421_p10) }
 0x1fd   : > { %v2311_v38 = vmul.f32 (!%p2421_p10), 0.00012207031, %v2295_v35 }
 0x1ff   : > { %v1859_v56 = vpop.xlane.xlu1 %1858  ;;  %v2293_v33 = vld [vmem:[#allocation2] sm:$0xff] (!%p2421_p10)  ;;  %2327 = vst.msk [vmem:[%s4221_s1 + $0x10] sm:$0xff] (!%p2421_p10), %vm2272_vm1, %v2311_v38 }
 0x200   : > { %v2259_v57 = vadd.f32 %v1859_v56, %v1715_v55  ;;  %v2309_v36 = vmul.f32 (!%p2421_p10), 0.00012207031, %v2293_v33 }
 0x202   : > { %2276 = vst.msk [vmem:[#allocation2 + $0x18] sm:$0xff] %vm2272_vm1, %v2259_v57  ;;  %2325 = vst.msk [vmem:[%s4221_s1] sm:$0xff] (!%p2421_p10), %vm2272_vm1, %v2309_v36 }
 0x209   : > { %v2296_v39 = vld [vmem:[#allocation2 + $0x18] sm:$0xff] (!%p2421_p10) }
 0x20a   : > { %v1793_v59 = vpop.xlane.xlu0 %1792  ;;  %v2312_v42 = vmul.f32 (!%p2421_p10), 0.00012207031, %v2296_v39 }
 0x20b   : > { %v2257_v60 = vadd.f32 %v1793_v59, %v1713_v58 }
 0x20c   : > { %2328 = vst.msk [vmem:[%s4221_s1 + $0x18] sm:$0xff] (!%p2421_p10), %vm2272_vm1, %v2312_v42 }
 0x20d   : > { %2274 = vst.msk [vmem:[#allocation2 + $0x8] sm:$0xff] %vm2272_vm1, %v2257_v60 }
 0x214   : > { %v2294_v34 = vld [vmem:[#allocation2 + $0x8] sm:$0xff] (!%p2421_p10) }
 0x215   : > { %v2310_v37 = vmul.f32 (!%p2421_p10), 0.00012207031, %v2294_v34 }
 0x217   : > { %2326 = vst.msk [vmem:[%s4221_s1 + $0x8] sm:$0xff] (!%p2421_p10), %vm2272_vm1, %v2310_v37 }
 0x218   : > { %v1925_v62 = vpop.xlane.xlu1 %1924 }
 0x219   : > { %v2261_v63 = vadd.f32 %v1925_v62, %v1717_v61 }
 0x21b   : > { %2278 = vst.msk [vmem:[#allocation2 + $0x28] sm:$0xff] %vm2272_vm1, %v2261_v63 }
 0x220   : > { %v1892_v1 = vpop.xlane.xlu0 %1891 }
 0x221   : > { %v2260_v2 = vadd.f32 %v1892_v1, %v1716_v0 }
 0x222   : > { %v2298_v41 = vld [vmem:[#allocation2 + $0x28] sm:$0xff] (!%p2421_p10) }
 0x223   : > { %2277 = vst.msk [vmem:[#allocation2 + $0x20] sm:$0xff] %vm2272_vm1, %v2260_v2  ;;  %v2314_v44 = vmul.f32 (!%p2421_p10), 0.00012207031, %v2298_v41 }
 0x225   : > { %v1991_v4 = vpop.xlane.xlu1 %1990  ;;  %2330 = vst.msk [vmem:[%s4221_s1 + $0x28] sm:$0xff] (!%p2421_p10), %vm2272_vm1, %v2314_v44 }
 0x226   : > { %v2263_v5 = vadd.f32 %v1991_v4, %v1719_v3 }
 0x228   : > { %2280 = vst.msk [vmem:[#allocation2 + $0x38] sm:$0xff] %vm2272_vm1, %v2263_v5 }
 0x22a   : > { %v2297_v40 = vld [vmem:[#allocation2 + $0x20] sm:$0xff] (!%p2421_p10) }
 0x22b   : > { %v2313_v43 = vmul.f32 (!%p2421_p10), 0.00012207031, %v2297_v40 }
 0x22d   : > { %2329 = vst.msk [vmem:[%s4221_s1 + $0x20] sm:$0xff] (!%p2421_p10), %vm2272_vm1, %v2313_v43 }
 0x22f   : > { %v2300_v46 = vld [vmem:[#allocation2 + $0x38] sm:$0xff] (!%p2421_p10) }
 0x230   : > { %v2316_v49 = vmul.f32 (!%p2421_p10), 0.00012207031, %v2300_v46 }
 0x231   : > { %v1958_v7 = vpop.xlane.xlu0 %1957 }
 0x232   : > { %v2262_v8 = vadd.f32 %v1958_v7, %v1718_v6  ;;  %2332 = vst.msk [vmem:[%s4221_s1 + $0x38] sm:$0xff] (!%p2421_p10), %vm2272_vm1, %v2316_v49 }
 0x234   : > { %2279 = vst.msk [vmem:[#allocation2 + $0x30] sm:$0xff] %vm2272_vm1, %v2262_v8 }
 0x23b   : > { %v2299_v45 = vld [vmem:[#allocation2 + $0x30] sm:$0xff] (!%p2421_p10) }
 0x23c   : > { %v2057_v10 = vpop.xlane.xlu1 %2056  ;;  %v2315_v48 = vmul.f32 (!%p2421_p10), 0.00012207031, %v2299_v45 }
 0x23d   : > { %v2265_v11 = vadd.f32 %v2057_v10, %v1721_v9 }
 0x23e   : > { %2331 = vst.msk [vmem:[%s4221_s1 + $0x30] sm:$0xff] (!%p2421_p10), %vm2272_vm1, %v2315_v48 }
 0x23f   : > { %2282 = vst.msk [vmem:[#allocation2 + $0x48] sm:$0xff] %vm2272_vm1, %v2265_v11 }
 0x246   : > { %v2302_v51 = vld [vmem:[#allocation2 + $0x48] sm:$0xff] (!%p2421_p10) }
 0x247   : > { %v2318_v54 = vmul.f32 (!%p2421_p10), 0.00012207031, %v2302_v51 }
 0x248   : > { %v2024_v13 = vpop.xlane.xlu0 %2023 }
 0x249   : > { %v2264_v14 = vadd.f32 %v2024_v13, %v1720_v12  ;;  %2334 = vst.msk [vmem:[%s4221_s1 + $0x48] sm:$0xff] (!%p2421_p10), %vm2272_vm1, %v2318_v54 }
 0x24b   : > { %2281 = vst.msk [vmem:[#allocation2 + $0x40] sm:$0xff] %vm2272_vm1, %v2264_v14 }
 0x251   : > { %v2123_v16 = vpop.xlane.xlu1 %2122 }
 0x252   : > { %v2267_v17 = vadd.f32 %v2123_v16, %v1723_v15  ;;  %v2301_v47 = vld [vmem:[#allocation2 + $0x40] sm:$0xff] (!%p2421_p10) }
 0x253   : > { %v2317_v50 = vmul.f32 (!%p2421_p10), 0.00012207031, %v2301_v47 }
 0x254   : > { %2284 = vst.msk [vmem:[#allocation2 + $0x58] sm:$0xff] %vm2272_vm1, %v2267_v17 }
 0x255   : > { %2333 = vst.msk [vmem:[%s4221_s1 + $0x40] sm:$0xff] (!%p2421_p10), %vm2272_vm1, %v2317_v50 }
 0x259   : > { %v2090_v19 = vpop.xlane.xlu0 %2089 }
 0x25a   : > { %v2266_v20 = vadd.f32 %v2090_v19, %v1722_v18 }
 0x25b   : > { %v2304_v53 = vld [vmem:[#allocation2 + $0x58] sm:$0xff] (!%p2421_p10) }
 0x25c   : > { %2283 = vst.msk [vmem:[#allocation2 + $0x50] sm:$0xff] %vm2272_vm1, %v2266_v20  ;;  %v2320_v56 = vmul.f32 (!%p2421_p10), 0.00012207031, %v2304_v53 }
 0x25e   : > { %2336 = vst.msk [vmem:[%s4221_s1 + $0x58] sm:$0xff] (!%p2421_p10), %vm2272_vm1, %v2320_v56 }
 0x263   : > { %v2189_v22 = vpop.xlane.xlu1 %2188  ;;  %v2303_v52 = vld [vmem:[#allocation2 + $0x50] sm:$0xff] (!%p2421_p10) }
 0x264   : > { %v2269_v23 = vadd.f32 %v2189_v22, %v1725_v21  ;;  %v2319_v55 = vmul.f32 (!%p2421_p10), 0.00012207031, %v2303_v52 }
 0x266   : > { %2286 = vst.msk [vmem:[#allocation2 + $0x68] sm:$0xff] %vm2272_vm1, %v2269_v23  ;;  %2335 = vst.msk [vmem:[%s4221_s1 + $0x50] sm:$0xff] (!%p2421_p10), %vm2272_vm1, %v2319_v55 }
 0x26d   : > { %v2306_v58 = vld [vmem:[#allocation2 + $0x68] sm:$0xff] (!%p2421_p10) }
 0x26e   : > { %v2156_v25 = vpop.xlane.xlu0 %2155  ;;  %v2322_v61 = vmul.f32 (!%p2421_p10), 0.00012207031, %v2306_v58 }
 0x26f   : > { %v2268_v26 = vadd.f32 %v2156_v25, %v1724_v24 }
 0x270   : > { %2338 = vst.msk [vmem:[%s4221_s1 + $0x68] sm:$0xff] (!%p2421_p10), %vm2272_vm1, %v2322_v61 }
 0x271   : > { %2285 = vst.msk [vmem:[#allocation2 + $0x60] sm:$0xff] %vm2272_vm1, %v2268_v26 }
 0x278   : > { %v2255_v28 = vpop.xlane.xlu1 %2254  ;;  %v2305_v57 = vld [vmem:[#allocation2 + $0x60] sm:$0xff] (!%p2421_p10) }
 0x279   : > { %v2271_v29 = vadd.f32 %v2255_v28, %v1727_v27  ;;  %v2321_v60 = vmul.f32 (!%p2421_p10), 0.00012207031, %v2305_v57 }
 0x27b   : > { %2288 = vst.msk [vmem:[#allocation2 + $0x78] sm:$0xff] %vm2272_vm1, %v2271_v29  ;;  %2337 = vst.msk [vmem:[%s4221_s1 + $0x60] sm:$0xff] (!%p2421_p10), %vm2272_vm1, %v2321_v60 }
 0x280   : > { %2292 = sbr.rel (%p2421_p10) target bundleno = 657 (0x291), region = 55 }
 0x282   : > { %v2308_v63 = vld [vmem:[#allocation2 + $0x78] sm:$0xff] (!%p2421_p10) }
 0x283   : > { %v2222_v31 = vpop.xlane.xlu0 %2221  ;;  %v2324_v0 = vmul.f32 (!%p2421_p10), 0.00012207031, %v2308_v63 }
 0x284   : > { %v2270_v32 = vadd.f32 %v2222_v31, %v1726_v30 }
 0x285   : > { %2340 = vst.msk [vmem:[%s4221_s1 + $0x78] sm:$0xff] (!%p2421_p10), %vm2272_vm1, %v2324_v0 }
 0x286   : > { %2287 = vst.msk [vmem:[#allocation2 + $0x70] sm:$0xff] %vm2272_vm1, %v2270_v32 }
 0x28d   : > { %v2307_v59 = vld [vmem:[#allocation2 + $0x70] sm:$0xff] }
 0x28e   : > { %v2323_v62 = vmul.f32 0.00012207031, %v2307_v59 }
 0x290   : > { %2339 = vst.msk [vmem:[%s4221_s1 + $0x70] sm:$0xff] %vm2272_vm1, %v2323_v62 }
 0x291 PF: > { %s11_s10 = sadd.s32 1, %s2506_s10   ;;  %s4222_s6 = smov %s2494_s7 }
 0x292   : > { %p8_p11 = scmp.ge.s32.totalorder %s11_s10, 4   ;;  %s4223_s7 = smov %s2554_s14 }
 0x293   : > { %s4224_s8 = smov %s2502_s9  ;;  %s4225_s9 = smov %s4227_s11 }
 0x294   :  { %10 = sbr.rel (!%p8_p11) target bundleno = 3 (0x3), region = 90 }

// kernel: self_gating_forward.5
= control target key start
LH: loop header
LB: loop body
LE: loop exit
PB: predicated region body
PF: predicated region fallthrough
CT: control target
= control target key end

     0   :  { %s4112_s9 = smov 0   ;;  %s4114_s10 = smov 0   ;;  %s7862_s0 = inlined_call_operand.vmem [shape: f32[128,8192], index: 0, kind: input, shape index: {}]   ;;  %s7863_s1 = inlined_call_operand.vmem [shape: f32[128,1], index: 1, kind: input, shape index: {}]   ;;  %s7864_s2 = inlined_call_operand.vmem [shape: f32[128,8192], index: 2, kind: output, shape index: {}]  }
   0x1   :  { %s4116_s11 = smov 0   ;;  %s4118_s12 = smov 0  }
   0x2   :  { %s4120_s13 = smov 0  }
   0x3 LB: > { %s21_s14 = sadd.s32 1, %s4090_s12  ;;  %s3995_s15 = sadd.s32 4294967295, %s4094_s13   ;;  %s4094_s13 = sphi %s4120_s13, %s12_s13   ;;  %s4090_s12 = sphi %s4118_s12, %s7869_s12   ;;  %s4086_s11 = sphi %s4116_s11, %s7868_s11   ;;  %s4082_s10 = sphi %s4114_s10, %s7867_s10   ;;  %s4078_s9 = sphi %s4112_s9, %s7866_s9  }
   0x4   : > { %p22_p0 = scmp.ge.s32.totalorder %s21_s14, 2  ;;  %p40_p1 = scmp.ne.s32.totalorder %s4082_s10, %s4078_s9 }
   0x5   : > { %p41_p2 = scmp.eq.s32.totalorder %s4094_s13, 0  ;;  %p98_p4 = scmp.eq.s32.totalorder %s3995_s15, 1 }
   0x6   : > { %s7871_s14 = smov (%p22_p0, %s21_s14), 0  ;;  %s33_s17 = sadd.s32 1, %s4082_s10 }
   0x7   : > { %p42_p3 = por %p41_p2, %p40_p1  ;;  %s29_s16 = ssub.s32 %s4090_s12, %s7871_s14 }
   0x8   : > { %p31_p5 = scmp.eq.s32.totalorder %s29_s16, 0  ;;  %p4147_p6 = por %p98_p4, %p40_p1 }
   0x9   : > { %p3999_p7 = scmp.ge.s32.totalorder %s4094_s13, 2 }
   0xa   : > { %s4152_s19 = scalar_select %p31_p5, %s4082_s10, %s33_s17  }
   0xb   : > { %129 = sbr.rel (%p3999_p7) target bundleno = 278 (0x116), region = 20 }
  0x12   : > { %132 = sbr.rel (!%p42_p3) target bundleno = 278 (0x116), region = 24  ;;  %s134_s20 = sand.u32 (%p42_p3), 1, %s4082_s10  }
  0x13   : > { %s4011_s21 = sshll.u32 (%p42_p3), %s4090_s12, 8  ;;  %s4000_s22 = sshll.u32 (%p42_p3), %s134_s20, 12 }
  0x14   : > { %s4160_s25 = scalar_lea.vmem (%p42_p3), %s7862_s0, %s4011_s21  ;;  %s4165_s26 = scalar_lea.vmem (%p42_p3), [#allocation2], %s4000_s22 }
  0x15   : > { %v155_v0 = vld [vmem:[%s4160_s25] sm:$0xff] (%p42_p3)  ;;  %v157_v1 = vld [vmem:[%s4160_s25 + $0x8] sm:$0xff] (%p42_p3)  ;;  %v159_v2 = vld [vmem:[%s4160_s25 + $0x10] sm:$0xff] (%p42_p3) }
  0x16   : > { %156 = vst [vmem:[%s4165_s26] sm:$0xff] (%p42_p3), %v155_v0  ;;  %158 = vst [vmem:[%s4165_s26 + $0x8] sm:$0xff] (%p42_p3), %v157_v1  ;;  %v161_v3 = vld [vmem:[%s4160_s25 + $0x18] sm:$0xff] (%p42_p3)  ;;  %v163_v4 = vld [vmem:[%s4160_s25 + $0x20] sm:$0xff] (%p42_p3) }
  0x17   : > { %160 = vst [vmem:[%s4165_s26 + $0x10] sm:$0xff] (%p42_p3), %v159_v2  ;;  %v165_v5 = vld [vmem:[%s4160_s25 + $0x28] sm:$0xff] (%p42_p3)  ;;  %162 = vst [vmem:[%s4165_s26 + $0x18] sm:$0xff] (%p42_p3), %v161_v3  ;;  %v167_v6 = vld [vmem:[%s4160_s25 + $0x30] sm:$0xff] (%p42_p3) }
  0x18   : > { %164 = vst [vmem:[%s4165_s26 + $0x20] sm:$0xff] (%p42_p3), %v163_v4  ;;  %166 = vst [vmem:[%s4165_s26 + $0x28] sm:$0xff] (%p42_p3), %v165_v5  ;;  %v169_v7 = vld [vmem:[%s4160_s25 + $0x38] sm:$0xff] (%p42_p3)  ;;  %v171_v8 = vld [vmem:[%s4160_s25 + $0x40] sm:$0xff] (%p42_p3) }
  0x19   : > { %168 = vst [vmem:[%s4165_s26 + $0x30] sm:$0xff] %v167_v6  ;;  %170 = vst [vmem:[%s4165_s26 + $0x38] sm:$0xff] %v169_v7  ;;  %v173_v9 = vld [vmem:[%s4160_s25 + $0x48] sm:$0xff]  ;;  %v175_v10 = vld [vmem:[%s4160_s25 + $0x50] sm:$0xff] }
  0x1a   : > { %172 = vst [vmem:[%s4165_s26 + $0x40] sm:$0xff] %v171_v8  ;;  %v177_v11 = vld [vmem:[%s4160_s25 + $0x58] sm:$0xff]  ;;  %174 = vst [vmem:[%s4165_s26 + $0x48] sm:$0xff] %v173_v9  ;;  %v179_v12 = vld [vmem:[%s4160_s25 + $0x60] sm:$0xff] }
  0x1b   : > { %176 = vst [vmem:[%s4165_s26 + $0x50] sm:$0xff] %v175_v10  ;;  %178 = vst [vmem:[%s4165_s26 + $0x58] sm:$0xff] %v177_v11  ;;  %v181_v13 = vld [vmem:[%s4160_s25 + $0x68] sm:$0xff]  ;;  %v183_v14 = vld [vmem:[%s4160_s25 + $0x70] sm:$0xff] }
  0x1c   : > { %180 = vst [vmem:[%s4165_s26 + $0x60] sm:$0xff] %v179_v12  ;;  %182 = vst [vmem:[%s4165_s26 + $0x68] sm:$0xff] %v181_v13  ;;  %v185_v15 = vld [vmem:[%s4160_s25 + $0x78] sm:$0xff]  ;;  %v187_v16 = vld [vmem:[%s4160_s25 + $0x80] sm:$0xff] }
  0x1d   : > { %184 = vst [vmem:[%s4165_s26 + $0x70] sm:$0xff] %v183_v14  ;;  %v189_v17 = vld [vmem:[%s4160_s25 + $0x88] sm:$0xff]  ;;  %186 = vst [vmem:[%s4165_s26 + $0x78] sm:$0xff] %v185_v15  ;;  %v191_v18 = vld [vmem:[%s4160_s25 + $0x90] sm:$0xff] }
  0x1e   : > { %188 = vst [vmem:[%s4165_s26 + $0x80] sm:$0xff] %v187_v16  ;;  %190 = vst [vmem:[%s4165_s26 + $0x88] sm:$0xff] %v189_v17  ;;  %v193_v19 = vld [vmem:[%s4160_s25 + $0x98] sm:$0xff]  ;;  %v195_v20 = vld [vmem:[%s4160_s25 + $0xa0] sm:$0xff] }
  0x1f   : > { %192 = vst [vmem:[%s4165_s26 + $0x90] sm:$0xff] %v191_v18  ;;  %194 = vst [vmem:[%s4165_s26 + $0x98] sm:$0xff] %v193_v19  ;;  %v197_v21 = vld [vmem:[%s4160_s25 + $0xa8] sm:$0xff]  ;;  %v199_v22 = vld [vmem:[%s4160_s25 + $0xb0] sm:$0xff] }
  0x20   : > { %196 = vst [vmem:[%s4165_s26 + $0xa0] sm:$0xff] %v195_v20  ;;  %v201_v23 = vld [vmem:[%s4160_s25 + $0xb8] sm:$0xff]  ;;  %198 = vst [vmem:[%s4165_s26 + $0xa8] sm:$0xff] %v197_v21  ;;  %v203_v24 = vld [vmem:[%s4160_s25 + $0xc0] sm:$0xff] }
  0x21   : > { %200 = vst [vmem:[%s4165_s26 + $0xb0] sm:$0xff] %v199_v22  ;;  %202 = vst [vmem:[%s4165_s26 + $0xb8] sm:$0xff] %v201_v23  ;;  %v205_v25 = vld [vmem:[%s4160_s25 + $0xc8] sm:$0xff]  ;;  %v207_v26 = vld [vmem:[%s4160_s25 + $0xd0] sm:$0xff] }
  0x22   : > { %204 = vst [vmem:[%s4165_s26 + $0xc0] sm:$0xff] %v203_v24  ;;  %206 = vst [vmem:[%s4165_s26 + $0xc8] sm:$0xff] %v205_v25  ;;  %v209_v27 = vld [vmem:[%s4160_s25 + $0xd8] sm:$0xff]  ;;  %v211_v28 = vld [vmem:[%s4160_s25 + $0xe0] sm:$0xff] }
  0x23   : > { %208 = vst [vmem:[%s4165_s26 + $0xd0] sm:$0xff] %v207_v26  ;;  %v213_v29 = vld [vmem:[%s4160_s25 + $0xe8] sm:$0xff]  ;;  %210 = vst [vmem:[%s4165_s26 + $0xd8] sm:$0xff] %v209_v27  ;;  %v215_v30 = vld [vmem:[%s4160_s25 + $0xf0] sm:$0xff] }
  0x24   : > { %212 = vst [vmem:[%s4165_s26 + $0xe0] sm:$0xff] %v211_v28  ;;  %214 = vst [vmem:[%s4165_s26 + $0xe8] sm:$0xff] %v213_v29  ;;  %v217_v31 = vld [vmem:[%s4160_s25 + $0xf8] sm:$0xff]  ;;  %v219_v32 = vld [vmem:[%s4160_s25 + $0x200] sm:$0xff] }
  0x25   : > { %216 = vst [vmem:[%s4165_s26 + $0xf0] sm:$0xff] %v215_v30  ;;  %218 = vst [vmem:[%s4165_s26 + $0xf8] sm:$0xff] %v217_v31  ;;  %v221_v33 = vld [vmem:[%s4160_s25 + $0x208] sm:$0xff]  ;;  %v223_v34 = vld [vmem:[%s4160_s25 + $0x210] sm:$0xff] }
  0x26   : > { %220 = vst [vmem:[%s4165_s26 + $0x100] sm:$0xff] %v219_v32  ;;  %v225_v35 = vld [vmem:[%s4160_s25 + $0x218] sm:$0xff]  ;;  %222 = vst [vmem:[%s4165_s26 + $0x108] sm:$0xff] %v221_v33  ;;  %v227_v36 = vld [vmem:[%s4160_s25 + $0x220] sm:$0xff] }
  0x27   : > { %224 = vst [vmem:[%s4165_s26 + $0x110] sm:$0xff] %v223_v34  ;;  %226 = vst [vmem:[%s4165_s26 + $0x118] sm:$0xff] %v225_v35  ;;  %v229_v37 = vld [vmem:[%s4160_s25 + $0x228] sm:$0xff]  ;;  %v231_v38 = vld [vmem:[%s4160_s25 + $0x230] sm:$0xff] }
  0x28   : > { %228 = vst [vmem:[%s4165_s26 + $0x120] sm:$0xff] %v227_v36  ;;  %230 = vst [vmem:[%s4165_s26 + $0x128] sm:$0xff] %v229_v37  ;;  %v233_v39 = vld [vmem:[%s4160_s25 + $0x238] sm:$0xff]  ;;  %v235_v40 = vld [vmem:[%s4160_s25 + $0x240] sm:$0xff] }
  0x29   : > { %232 = vst [vmem:[%s4165_s26 + $0x130] sm:$0xff] %v231_v38  ;;  %v237_v41 = vld [vmem:[%s4160_s25 + $0x248] sm:$0xff]  ;;  %234 = vst [vmem:[%s4165_s26 + $0x138] sm:$0xff] %v233_v39  ;;  %v239_v42 = vld [vmem:[%s4160_s25 + $0x250] sm:$0xff] }
  0x2a   : > { %236 = vst [vmem:[%s4165_s26 + $0x140] sm:$0xff] %v235_v40  ;;  %238 = vst [vmem:[%s4165_s26 + $0x148] sm:$0xff] %v237_v41  ;;  %v241_v43 = vld [vmem:[%s4160_s25 + $0x258] sm:$0xff]  ;;  %v243_v44 = vld [vmem:[%s4160_s25 + $0x260] sm:$0xff] }
  0x2b   : > { %240 = vst [vmem:[%s4165_s26 + $0x150] sm:$0xff] %v239_v42  ;;  %242 = vst [vmem:[%s4165_s26 + $0x158] sm:$0xff] %v241_v43  ;;  %v245_v45 = vld [vmem:[%s4160_s25 + $0x268] sm:$0xff]  ;;  %v247_v46 = vld [vmem:[%s4160_s25 + $0x270] sm:$0xff] }
  0x2c   : > { %244 = vst [vmem:[%s4165_s26 + $0x160] sm:$0xff] %v243_v44  ;;  %v249_v47 = vld [vmem:[%s4160_s25 + $0x278] sm:$0xff]  ;;  %246 = vst [vmem:[%s4165_s26 + $0x168] sm:$0xff] %v245_v45  ;;  %v251_v48 = vld [vmem:[%s4160_s25 + $0x280] sm:$0xff] }
  0x2d   : > { %248 = vst [vmem:[%s4165_s26 + $0x170] sm:$0xff] %v247_v46  ;;  %250 = vst [vmem:[%s4165_s26 + $0x178] sm:$0xff] %v249_v47  ;;  %v253_v49 = vld [vmem:[%s4160_s25 + $0x288] sm:$0xff]  ;;  %v255_v50 = vld [vmem:[%s4160_s25 + $0x290] sm:$0xff] }
  0x2e   : > { %252 = vst [vmem:[%s4165_s26 + $0x180] sm:$0xff] %v251_v48  ;;  %254 = vst [vmem:[%s4165_s26 + $0x188] sm:$0xff] %v253_v49  ;;  %v257_v51 = vld [vmem:[%s4160_s25 + $0x298] sm:$0xff]  ;;  %v259_v52 = vld [vmem:[%s4160_s25 + $0x2a0] sm:$0xff] }
  0x2f   : > { %256 = vst [vmem:[%s4165_s26 + $0x190] sm:$0xff] %v255_v50  ;;  %v261_v53 = vld [vmem:[%s4160_s25 + $0x2a8] sm:$0xff]  ;;  %258 = vst [vmem:[%s4165_s26 + $0x198] sm:$0xff] %v257_v51  ;;  %v263_v54 = vld [vmem:[%s4160_s25 + $0x2b0] sm:$0xff] }
  0x30   : > { %260 = vst [vmem:[%s4165_s26 + $0x1a0] sm:$0xff] %v259_v52  ;;  %262 = vst [vmem:[%s4165_s26 + $0x1a8] sm:$0xff] %v261_v53  ;;  %v265_v55 = vld [vmem:[%s4160_s25 + $0x2b8] sm:$0xff]  ;;  %v267_v56 = vld [vmem:[%s4160_s25 + $0x2c0] sm:$0xff] }
  0x31   : > { %264 = vst [vmem:[%s4165_s26 + $0x1b0] sm:$0xff] %v263_v54  ;;  %266 = vst [vmem:[%s4165_s26 + $0x1b8] sm:$0xff] %v265_v55  ;;  %v269_v57 = vld [vmem:[%s4160_s25 + $0x2c8] sm:$0xff]  ;;  %v271_v58 = vld [vmem:[%s4160_s25 + $0x2d0] sm:$0xff] }
  0x32   : > { %268 = vst [vmem:[%s4165_s26 + $0x1c0] sm:$0xff] %v267_v56  ;;  %v273_v59 = vld [vmem:[%s4160_s25 + $0x2d8] sm:$0xff]  ;;  %270 = vst [vmem:[%s4165_s26 + $0x1c8] sm:$0xff] %v269_v57  ;;  %v275_v60 = vld [vmem:[%s4160_s25 + $0x2e0] sm:$0xff] }
  0x33   : > { %272 = vst [vmem:[%s4165_s26 + $0x1d0] sm:$0xff] %v271_v58  ;;  %274 = vst [vmem:[%s4165_s26 + $0x1d8] sm:$0xff] %v273_v59  ;;  %v277_v61 = vld [vmem:[%s4160_s25 + $0x2e8] sm:$0xff]  ;;  %v279_v62 = vld [vmem:[%s4160_s25 + $0x2f0] sm:$0xff] }
  0x34   : > { %276 = vst [vmem:[%s4165_s26 + $0x1e0] sm:$0xff] %v275_v60  ;;  %278 = vst [vmem:[%s4165_s26 + $0x1e8] sm:$0xff] %v277_v61  ;;  %v281_v63 = vld [vmem:[%s4160_s25 + $0x2f8] sm:$0xff]  ;;  %v283_v0 = vld [vmem:[%s4160_s25 + $0x400] sm:$0xff] }
  0x35   : > { %280 = vst [vmem:[%s4165_s26 + $0x1f0] sm:$0xff] %v279_v62  ;;  %v285_v1 = vld [vmem:[%s4160_s25 + $0x408] sm:$0xff]  ;;  %282 = vst [vmem:[%s4165_s26 + $0x1f8] sm:$0xff] %v281_v63  ;;  %v287_v2 = vld [vmem:[%s4160_s25 + $0x410] sm:$0xff] }
  0x36   : > { %284 = vst [vmem:[%s4165_s26 + $0x200] sm:$0xff] %v283_v0  ;;  %286 = vst [vmem:[%s4165_s26 + $0x208] sm:$0xff] %v285_v1  ;;  %v289_v3 = vld [vmem:[%s4160_s25 + $0x418] sm:$0xff]  ;;  %v291_v4 = vld [vmem:[%s4160_s25 + $0x420] sm:$0xff] }
  0x37   : > { %288 = vst [vmem:[%s4165_s26 + $0x210] sm:$0xff] %v287_v2  ;;  %290 = vst [vmem:[%s4165_s26 + $0x218] sm:$0xff] %v289_v3  ;;  %v293_v5 = vld [vmem:[%s4160_s25 + $0x428] sm:$0xff]  ;;  %v295_v6 = vld [vmem:[%s4160_s25 + $0x430] sm:$0xff] }
  0x38   : > { %292 = vst [vmem:[%s4165_s26 + $0x220] sm:$0xff] %v291_v4  ;;  %v297_v7 = vld [vmem:[%s4160_s25 + $0x438] sm:$0xff]  ;;  %294 = vst [vmem:[%s4165_s26 + $0x228] sm:$0xff] %v293_v5  ;;  %v299_v8 = vld [vmem:[%s4160_s25 + $0x440] sm:$0xff] }
  0x39   : > { %296 = vst [vmem:[%s4165_s26 + $0x230] sm:$0xff] %v295_v6  ;;  %298 = vst [vmem:[%s4165_s26 + $0x238] sm:$0xff] %v297_v7  ;;  %v301_v9 = vld [vmem:[%s4160_s25 + $0x448] sm:$0xff]  ;;  %v303_v10 = vld [vmem:[%s4160_s25 + $0x450] sm:$0xff] }
  0x3a   : > { %300 = vst [vmem:[%s4165_s26 + $0x240] sm:$0xff] %v299_v8  ;;  %302 = vst [vmem:[%s4165_s26 + $0x248] sm:$0xff] %v301_v9  ;;  %v305_v11 = vld [vmem:[%s4160_s25 + $0x458] sm:$0xff]  ;;  %v307_v12 = vld [vmem:[%s4160_s25 + $0x460] sm:$0xff] }
  0x3b   : > { %304 = vst [vmem:[%s4165_s26 + $0x250] sm:$0xff] %v303_v10  ;;  %v309_v13 = vld [vmem:[%s4160_s25 + $0x468] sm:$0xff]  ;;  %306 = vst [vmem:[%s4165_s26 + $0x258] sm:$0xff] %v305_v11  ;;  %v311_v14 = vld [vmem:[%s4160_s25 + $0x470] sm:$0xff] }
  0x3c   : > { %308 = vst [vmem:[%s4165_s26 + $0x260] sm:$0xff] %v307_v12  ;;  %310 = vst [vmem:[%s4165_s26 + $0x268] sm:$0xff] %v309_v13  ;;  %v313_v15 = vld [vmem:[%s4160_s25 + $0x478] sm:$0xff]  ;;  %v315_v16 = vld [vmem:[%s4160_s25 + $0x480] sm:$0xff] }
  0x3d   : > { %312 = vst [vmem:[%s4165_s26 + $0x270] sm:$0xff] %v311_v14  ;;  %314 = vst [vmem:[%s4165_s26 + $0x278] sm:$0xff] %v313_v15  ;;  %v317_v17 = vld [vmem:[%s4160_s25 + $0x488] sm:$0xff]  ;;  %v319_v18 = vld [vmem:[%s4160_s25 + $0x490] sm:$0xff] }
  0x3e   : > { %316 = vst [vmem:[%s4165_s26 + $0x280] sm:$0xff] %v315_v16  ;;  %v321_v19 = vld [vmem:[%s4160_s25 + $0x498] sm:$0xff]  ;;  %318 = vst [vmem:[%s4165_s26 + $0x288] sm:$0xff] %v317_v17  ;;  %v323_v20 = vld [vmem:[%s4160_s25 + $0x4a0] sm:$0xff] }
  0x3f   : > { %320 = vst [vmem:[%s4165_s26 + $0x290] sm:$0xff] %v319_v18  ;;  %322 = vst [vmem:[%s4165_s26 + $0x298] sm:$0xff] %v321_v19  ;;  %v325_v21 = vld [vmem:[%s4160_s25 + $0x4a8] sm:$0xff]  ;;  %v327_v22 = vld [vmem:[%s4160_s25 + $0x4b0] sm:$0xff] }
  0x40   : > { %324 = vst [vmem:[%s4165_s26 + $0x2a0] sm:$0xff] %v323_v20  ;;  %326 = vst [vmem:[%s4165_s26 + $0x2a8] sm:$0xff] %v325_v21  ;;  %v329_v23 = vld [vmem:[%s4160_s25 + $0x4b8] sm:$0xff]  ;;  %v331_v24 = vld [vmem:[%s4160_s25 + $0x4c0] sm:$0xff] }
  0x41   : > { %328 = vst [vmem:[%s4165_s26 + $0x2b0] sm:$0xff] %v327_v22  ;;  %v333_v25 = vld [vmem:[%s4160_s25 + $0x4c8] sm:$0xff]  ;;  %330 = vst [vmem:[%s4165_s26 + $0x2b8] sm:$0xff] %v329_v23  ;;  %v335_v26 = vld [vmem:[%s4160_s25 + $0x4d0] sm:$0xff] }
  0x42   : > { %332 = vst [vmem:[%s4165_s26 + $0x2c0] sm:$0xff] %v331_v24  ;;  %334 = vst [vmem:[%s4165_s26 + $0x2c8] sm:$0xff] %v333_v25  ;;  %v337_v27 = vld [vmem:[%s4160_s25 + $0x4d8] sm:$0xff]  ;;  %v339_v28 = vld [vmem:[%s4160_s25 + $0x4e0] sm:$0xff] }
  0x43   : > { %336 = vst [vmem:[%s4165_s26 + $0x2d0] sm:$0xff] %v335_v26  ;;  %338 = vst [vmem:[%s4165_s26 + $0x2d8] sm:$0xff] %v337_v27  ;;  %v341_v29 = vld [vmem:[%s4160_s25 + $0x4e8] sm:$0xff]  ;;  %v343_v30 = vld [vmem:[%s4160_s25 + $0x4f0] sm:$0xff] }
  0x44   : > { %340 = vst [vmem:[%s4165_s26 + $0x2e0] sm:$0xff] %v339_v28  ;;  %v345_v31 = vld [vmem:[%s4160_s25 + $0x4f8] sm:$0xff]  ;;  %342 = vst [vmem:[%s4165_s26 + $0x2e8] sm:$0xff] %v341_v29  ;;  %v347_v32 = vld [vmem:[%s4160_s25 + $0x600] sm:$0xff] }
  0x45   : > { %344 = vst [vmem:[%s4165_s26 + $0x2f0] sm:$0xff] %v343_v30  ;;  %346 = vst [vmem:[%s4165_s26 + $0x2f8] sm:$0xff] %v345_v31  ;;  %v349_v33 = vld [vmem:[%s4160_s25 + $0x608] sm:$0xff]  ;;  %v351_v34 = vld [vmem:[%s4160_s25 + $0x610] sm:$0xff] }
  0x46   : > { %348 = vst [vmem:[%s4165_s26 + $0x300] sm:$0xff] %v347_v32  ;;  %350 = vst [vmem:[%s4165_s26 + $0x308] sm:$0xff] %v349_v33  ;;  %v353_v35 = vld [vmem:[%s4160_s25 + $0x618] sm:$0xff]  ;;  %v355_v36 = vld [vmem:[%s4160_s25 + $0x620] sm:$0xff] }
  0x47   : > { %352 = vst [vmem:[%s4165_s26 + $0x310] sm:$0xff] %v351_v34  ;;  %v357_v37 = vld [vmem:[%s4160_s25 + $0x628] sm:$0xff]  ;;  %354 = vst [vmem:[%s4165_s26 + $0x318] sm:$0xff] %v353_v35  ;;  %v359_v38 = vld [vmem:[%s4160_s25 + $0x630] sm:$0xff] }
  0x48   : > { %356 = vst [vmem:[%s4165_s26 + $0x320] sm:$0xff] %v355_v36  ;;  %358 = vst [vmem:[%s4165_s26 + $0x328] sm:$0xff] %v357_v37  ;;  %v361_v39 = vld [vmem:[%s4160_s25 + $0x638] sm:$0xff]  ;;  %v363_v40 = vld [vmem:[%s4160_s25 + $0x640] sm:$0xff] }
  0x49   : > { %360 = vst [vmem:[%s4165_s26 + $0x330] sm:$0xff] %v359_v38  ;;  %362 = vst [vmem:[%s4165_s26 + $0x338] sm:$0xff] %v361_v39  ;;  %v365_v41 = vld [vmem:[%s4160_s25 + $0x648] sm:$0xff]  ;;  %v367_v42 = vld [vmem:[%s4160_s25 + $0x650] sm:$0xff] }
  0x4a   : > { %364 = vst [vmem:[%s4165_s26 + $0x340] sm:$0xff] %v363_v40  ;;  %v369_v43 = vld [vmem:[%s4160_s25 + $0x658] sm:$0xff]  ;;  %366 = vst [vmem:[%s4165_s26 + $0x348] sm:$0xff] %v365_v41  ;;  %v371_v44 = vld [vmem:[%s4160_s25 + $0x660] sm:$0xff] }
  0x4b   : > { %368 = vst [vmem:[%s4165_s26 + $0x350] sm:$0xff] %v367_v42  ;;  %370 = vst [vmem:[%s4165_s26 + $0x358] sm:$0xff] %v369_v43  ;;  %v373_v45 = vld [vmem:[%s4160_s25 + $0x668] sm:$0xff]  ;;  %v375_v46 = vld [vmem:[%s4160_s25 + $0x670] sm:$0xff] }
  0x4c   : > { %372 = vst [vmem:[%s4165_s26 + $0x360] sm:$0xff] %v371_v44  ;;  %374 = vst [vmem:[%s4165_s26 + $0x368] sm:$0xff] %v373_v45  ;;  %v377_v47 = vld [vmem:[%s4160_s25 + $0x678] sm:$0xff]  ;;  %v379_v48 = vld [vmem:[%s4160_s25 + $0x680] sm:$0xff] }
  0x4d   : > { %376 = vst [vmem:[%s4165_s26 + $0x370] sm:$0xff] %v375_v46  ;;  %v381_v49 = vld [vmem:[%s4160_s25 + $0x688] sm:$0xff]  ;;  %378 = vst [vmem:[%s4165_s26 + $0x378] sm:$0xff] %v377_v47  ;;  %v383_v50 = vld [vmem:[%s4160_s25 + $0x690] sm:$0xff] }
  0x4e   : > { %380 = vst [vmem:[%s4165_s26 + $0x380] sm:$0xff] %v379_v48  ;;  %382 = vst [vmem:[%s4165_s26 + $0x388] sm:$0xff] %v381_v49  ;;  %v385_v51 = vld [vmem:[%s4160_s25 + $0x698] sm:$0xff]  ;;  %v387_v52 = vld [vmem:[%s4160_s25 + $0x6a0] sm:$0xff] }
  0x4f   : > { %384 = vst [vmem:[%s4165_s26 + $0x390] sm:$0xff] %v383_v50  ;;  %386 = vst [vmem:[%s4165_s26 + $0x398] sm:$0xff] %v385_v51  ;;  %v389_v53 = vld [vmem:[%s4160_s25 + $0x6a8] sm:$0xff]  ;;  %v391_v54 = vld [vmem:[%s4160_s25 + $0x6b0] sm:$0xff] }
  0x50   : > { %388 = vst [vmem:[%s4165_s26 + $0x3a0] sm:$0xff] %v387_v52  ;;  %v393_v55 = vld [vmem:[%s4160_s25 + $0x6b8] sm:$0xff]  ;;  %390 = vst [vmem:[%s4165_s26 + $0x3a8] sm:$0xff] %v389_v53  ;;  %v395_v56 = vld [vmem:[%s4160_s25 + $0x6c0] sm:$0xff] }
  0x51   : > { %392 = vst [vmem:[%s4165_s26 + $0x3b0] sm:$0xff] %v391_v54  ;;  %394 = vst [vmem:[%s4165_s26 + $0x3b8] sm:$0xff] %v393_v55  ;;  %v397_v57 = vld [vmem:[%s4160_s25 + $0x6c8] sm:$0xff]  ;;  %v399_v58 = vld [vmem:[%s4160_s25 + $0x6d0] sm:$0xff] }
  0x52   : > { %396 = vst [vmem:[%s4165_s26 + $0x3c0] sm:$0xff] %v395_v56  ;;  %398 = vst [vmem:[%s4165_s26 + $0x3c8] sm:$0xff] %v397_v57  ;;  %v401_v59 = vld [vmem:[%s4160_s25 + $0x6d8] sm:$0xff]  ;;  %v403_v60 = vld [vmem:[%s4160_s25 + $0x6e0] sm:$0xff] }
  0x53   : > { %400 = vst [vmem:[%s4165_s26 + $0x3d0] sm:$0xff] %v399_v58  ;;  %v405_v61 = vld [vmem:[%s4160_s25 + $0x6e8] sm:$0xff]  ;;  %402 = vst [vmem:[%s4165_s26 + $0x3d8] sm:$0xff] %v401_v59  ;;  %v407_v62 = vld [vmem:[%s4160_s25 + $0x6f0] sm:$0xff] }
  0x54   : > { %404 = vst [vmem:[%s4165_s26 + $0x3e0] sm:$0xff] %v403_v60  ;;  %406 = vst [vmem:[%s4165_s26 + $0x3e8] sm:$0xff] %v405_v61  ;;  %v409_v63 = vld [vmem:[%s4160_s25 + $0x6f8] sm:$0xff]  ;;  %v411_v0 = vld [vmem:[%s4160_s25 + $0x800] sm:$0xff] }
  0x55   : > { %408 = vst [vmem:[%s4165_s26 + $0x3f0] sm:$0xff] %v407_v62  ;;  %410 = vst [vmem:[%s4165_s26 + $0x3f8] sm:$0xff] %v409_v63  ;;  %v413_v1 = vld [vmem:[%s4160_s25 + $0x808] sm:$0xff]  ;;  %v415_v2 = vld [vmem:[%s4160_s25 + $0x810] sm:$0xff] }
  0x56   : > { %412 = vst [vmem:[%s4165_s26 + $0x400] sm:$0xff] %v411_v0  ;;  %v417_v3 = vld [vmem:[%s4160_s25 + $0x818] sm:$0xff]  ;;  %414 = vst [vmem:[%s4165_s26 + $0x408] sm:$0xff] %v413_v1  ;;  %v419_v4 = vld [vmem:[%s4160_s25 + $0x820] sm:$0xff] }
  0x57   : > { %416 = vst [vmem:[%s4165_s26 + $0x410] sm:$0xff] %v415_v2  ;;  %418 = vst [vmem:[%s4165_s26 + $0x418] sm:$0xff] %v417_v3  ;;  %v421_v5 = vld [vmem:[%s4160_s25 + $0x828] sm:$0xff]  ;;  %v423_v6 = vld [vmem:[%s4160_s25 + $0x830] sm:$0xff] }
  0x58   : > { %420 = vst [vmem:[%s4165_s26 + $0x420] sm:$0xff] %v419_v4  ;;  %422 = vst [vmem:[%s4165_s26 + $0x428] sm:$0xff] %v421_v5  ;;  %v425_v7 = vld [vmem:[%s4160_s25 + $0x838] sm:$0xff]  ;;  %v427_v8 = vld [vmem:[%s4160_s25 + $0x840] sm:$0xff] }
  0x59   : > { %424 = vst [vmem:[%s4165_s26 + $0x430] sm:$0xff] %v423_v6  ;;  %v429_v9 = vld [vmem:[%s4160_s25 + $0x848] sm:$0xff]  ;;  %426 = vst [vmem:[%s4165_s26 + $0x438] sm:$0xff] %v425_v7  ;;  %v431_v10 = vld [vmem:[%s4160_s25 + $0x850] sm:$0xff] }
  0x5a   : > { %428 = vst [vmem:[%s4165_s26 + $0x440] sm:$0xff] %v427_v8  ;;  %430 = vst [vmem:[%s4165_s26 + $0x448] sm:$0xff] %v429_v9  ;;  %v433_v11 = vld [vmem:[%s4160_s25 + $0x858] sm:$0xff]  ;;  %v435_v12 = vld [vmem:[%s4160_s25 + $0x860] sm:$0xff] }
  0x5b   : > { %432 = vst [vmem:[%s4165_s26 + $0x450] sm:$0xff] %v431_v10  ;;  %434 = vst [vmem:[%s4165_s26 + $0x458] sm:$0xff] %v433_v11  ;;  %v437_v13 = vld [vmem:[%s4160_s25 + $0x868] sm:$0xff]  ;;  %v439_v14 = vld [vmem:[%s4160_s25 + $0x870] sm:$0xff] }
  0x5c   : > { %436 = vst [vmem:[%s4165_s26 + $0x460] sm:$0xff] %v435_v12  ;;  %v441_v15 = vld [vmem:[%s4160_s25 + $0x878] sm:$0xff]  ;;  %438 = vst [vmem:[%s4165_s26 + $0x468] sm:$0xff] %v437_v13  ;;  %v443_v16 = vld [vmem:[%s4160_s25 + $0x880] sm:$0xff] }
  0x5d   : > { %440 = vst [vmem:[%s4165_s26 + $0x470] sm:$0xff] %v439_v14  ;;  %442 = vst [vmem:[%s4165_s26 + $0x478] sm:$0xff] %v441_v15  ;;  %v445_v17 = vld [vmem:[%s4160_s25 + $0x888] sm:$0xff]  ;;  %v447_v18 = vld [vmem:[%s4160_s25 + $0x890] sm:$0xff] }
  0x5e   : > { %444 = vst [vmem:[%s4165_s26 + $0x480] sm:$0xff] %v443_v16  ;;  %446 = vst [vmem:[%s4165_s26 + $0x488] sm:$0xff] %v445_v17  ;;  %v449_v19 = vld [vmem:[%s4160_s25 + $0x898] sm:$0xff]  ;;  %v451_v20 = vld [vmem:[%s4160_s25 + $0x8a0] sm:$0xff] }
  0x5f   : > { %448 = vst [vmem:[%s4165_s26 + $0x490] sm:$0xff] %v447_v18  ;;  %v453_v21 = vld [vmem:[%s4160_s25 + $0x8a8] sm:$0xff]  ;;  %450 = vst [vmem:[%s4165_s26 + $0x498] sm:$0xff] %v449_v19  ;;  %v455_v22 = vld [vmem:[%s4160_s25 + $0x8b0] sm:$0xff] }
  0x60   : > { %452 = vst [vmem:[%s4165_s26 + $0x4a0] sm:$0xff] %v451_v20  ;;  %454 = vst [vmem:[%s4165_s26 + $0x4a8] sm:$0xff] %v453_v21  ;;  %v457_v23 = vld [vmem:[%s4160_s25 + $0x8b8] sm:$0xff]  ;;  %v459_v24 = vld [vmem:[%s4160_s25 + $0x8c0] sm:$0xff] }
  0x61   : > { %456 = vst [vmem:[%s4165_s26 + $0x4b0] sm:$0xff] %v455_v22  ;;  %458 = vst [vmem:[%s4165_s26 + $0x4b8] sm:$0xff] %v457_v23  ;;  %v461_v25 = vld [vmem:[%s4160_s25 + $0x8c8] sm:$0xff]  ;;  %v463_v26 = vld [vmem:[%s4160_s25 + $0x8d0] sm:$0xff] }
  0x62   : > { %460 = vst [vmem:[%s4165_s26 + $0x4c0] sm:$0xff] %v459_v24  ;;  %v465_v27 = vld [vmem:[%s4160_s25 + $0x8d8] sm:$0xff]  ;;  %462 = vst [vmem:[%s4165_s26 + $0x4c8] sm:$0xff] %v461_v25  ;;  %v467_v28 = vld [vmem:[%s4160_s25 + $0x8e0] sm:$0xff] }
  0x63   : > { %464 = vst [vmem:[%s4165_s26 + $0x4d0] sm:$0xff] %v463_v26  ;;  %466 = vst [vmem:[%s4165_s26 + $0x4d8] sm:$0xff] %v465_v27  ;;  %v469_v29 = vld [vmem:[%s4160_s25 + $0x8e8] sm:$0xff]  ;;  %v471_v30 = vld [vmem:[%s4160_s25 + $0x8f0] sm:$0xff] }
  0x64   : > { %468 = vst [vmem:[%s4165_s26 + $0x4e0] sm:$0xff] %v467_v28  ;;  %470 = vst [vmem:[%s4165_s26 + $0x4e8] sm:$0xff] %v469_v29  ;;  %v473_v31 = vld [vmem:[%s4160_s25 + $0x8f8] sm:$0xff]  ;;  %v475_v32 = vld [vmem:[%s4160_s25 + $0xa00] sm:$0xff] }
  0x65   : > { %472 = vst [vmem:[%s4165_s26 + $0x4f0] sm:$0xff] %v471_v30  ;;  %v477_v33 = vld [vmem:[%s4160_s25 + $0xa08] sm:$0xff]  ;;  %474 = vst [vmem:[%s4165_s26 + $0x4f8] sm:$0xff] %v473_v31  ;;  %v479_v34 = vld [vmem:[%s4160_s25 + $0xa10] sm:$0xff] }
  0x66   : > { %476 = vst [vmem:[%s4165_s26 + $0x500] sm:$0xff] %v475_v32  ;;  %478 = vst [vmem:[%s4165_s26 + $0x508] sm:$0xff] %v477_v33  ;;  %v481_v35 = vld [vmem:[%s4160_s25 + $0xa18] sm:$0xff]  ;;  %v483_v36 = vld [vmem:[%s4160_s25 + $0xa20] sm:$0xff] }
  0x67   : > { %480 = vst [vmem:[%s4165_s26 + $0x510] sm:$0xff] %v479_v34  ;;  %482 = vst [vmem:[%s4165_s26 + $0x518] sm:$0xff] %v481_v35  ;;  %v485_v37 = vld [vmem:[%s4160_s25 + $0xa28] sm:$0xff]  ;;  %v487_v38 = vld [vmem:[%s4160_s25 + $0xa30] sm:$0xff] }
  0x68   : > { %484 = vst [vmem:[%s4165_s26 + $0x520] sm:$0xff] %v483_v36  ;;  %v489_v39 = vld [vmem:[%s4160_s25 + $0xa38] sm:$0xff]  ;;  %486 = vst [vmem:[%s4165_s26 + $0x528] sm:$0xff] %v485_v37  ;;  %v491_v40 = vld [vmem:[%s4160_s25 + $0xa40] sm:$0xff] }
  0x69   : > { %488 = vst [vmem:[%s4165_s26 + $0x530] sm:$0xff] %v487_v38  ;;  %490 = vst [vmem:[%s4165_s26 + $0x538] sm:$0xff] %v489_v39  ;;  %v493_v41 = vld [vmem:[%s4160_s25 + $0xa48] sm:$0xff]  ;;  %v495_v42 = vld [vmem:[%s4160_s25 + $0xa50] sm:$0xff] }
  0x6a   : > { %492 = vst [vmem:[%s4165_s26 + $0x540] sm:$0xff] %v491_v40  ;;  %494 = vst [vmem:[%s4165_s26 + $0x548] sm:$0xff] %v493_v41  ;;  %v497_v43 = vld [vmem:[%s4160_s25 + $0xa58] sm:$0xff]  ;;  %v499_v44 = vld [vmem:[%s4160_s25 + $0xa60] sm:$0xff] }
  0x6b   : > { %496 = vst [vmem:[%s4165_s26 + $0x550] sm:$0xff] %v495_v42  ;;  %v501_v45 = vld [vmem:[%s4160_s25 + $0xa68] sm:$0xff]  ;;  %498 = vst [vmem:[%s4165_s26 + $0x558] sm:$0xff] %v497_v43  ;;  %v503_v46 = vld [vmem:[%s4160_s25 + $0xa70] sm:$0xff] }
  0x6c   : > { %500 = vst [vmem:[%s4165_s26 + $0x560] sm:$0xff] %v499_v44  ;;  %502 = vst [vmem:[%s4165_s26 + $0x568] sm:$0xff] %v501_v45  ;;  %v505_v47 = vld [vmem:[%s4160_s25 + $0xa78] sm:$0xff]  ;;  %v507_v48 = vld [vmem:[%s4160_s25 + $0xa80] sm:$0xff] }
  0x6d   : > { %504 = vst [vmem:[%s4165_s26 + $0x570] sm:$0xff] %v503_v46  ;;  %506 = vst [vmem:[%s4165_s26 + $0x578] sm:$0xff] %v505_v47  ;;  %v509_v49 = vld [vmem:[%s4160_s25 + $0xa88] sm:$0xff]  ;;  %v511_v50 = vld [vmem:[%s4160_s25 + $0xa90] sm:$0xff] }
  0x6e   : > { %508 = vst [vmem:[%s4165_s26 + $0x580] sm:$0xff] %v507_v48  ;;  %v513_v51 = vld [vmem:[%s4160_s25 + $0xa98] sm:$0xff]  ;;  %510 = vst [vmem:[%s4165_s26 + $0x588] sm:$0xff] %v509_v49  ;;  %v515_v52 = vld [vmem:[%s4160_s25 + $0xaa0] sm:$0xff] }
  0x6f   : > { %512 = vst [vmem:[%s4165_s26 + $0x590] sm:$0xff] %v511_v50  ;;  %514 = vst [vmem:[%s4165_s26 + $0x598] sm:$0xff] %v513_v51  ;;  %v517_v53 = vld [vmem:[%s4160_s25 + $0xaa8] sm:$0xff]  ;;  %v519_v54 = vld [vmem:[%s4160_s25 + $0xab0] sm:$0xff] }
  0x70   : > { %516 = vst [vmem:[%s4165_s26 + $0x5a0] sm:$0xff] %v515_v52  ;;  %518 = vst [vmem:[%s4165_s26 + $0x5a8] sm:$0xff] %v517_v53  ;;  %v521_v55 = vld [vmem:[%s4160_s25 + $0xab8] sm:$0xff]  ;;  %v523_v56 = vld [vmem:[%s4160_s25 + $0xac0] sm:$0xff] }
  0x71   : > { %520 = vst [vmem:[%s4165_s26 + $0x5b0] sm:$0xff] %v519_v54  ;;  %v525_v57 = vld [vmem:[%s4160_s25 + $0xac8] sm:$0xff]  ;;  %522 = vst [vmem:[%s4165_s26 + $0x5b8] sm:$0xff] %v521_v55  ;;  %v527_v58 = vld [vmem:[%s4160_s25 + $0xad0] sm:$0xff] }
  0x72   : > { %524 = vst [vmem:[%s4165_s26 + $0x5c0] sm:$0xff] %v523_v56  ;;  %526 = vst [vmem:[%s4165_s26 + $0x5c8] sm:$0xff] %v525_v57  ;;  %v529_v59 = vld [vmem:[%s4160_s25 + $0xad8] sm:$0xff]  ;;  %v531_v60 = vld [vmem:[%s4160_s25 + $0xae0] sm:$0xff] }
  0x73   : > { %528 = vst [vmem:[%s4165_s26 + $0x5d0] sm:$0xff] %v527_v58  ;;  %530 = vst [vmem:[%s4165_s26 + $0x5d8] sm:$0xff] %v529_v59  ;;  %v533_v61 = vld [vmem:[%s4160_s25 + $0xae8] sm:$0xff]  ;;  %v535_v62 = vld [vmem:[%s4160_s25 + $0xaf0] sm:$0xff] }
  0x74   : > { %532 = vst [vmem:[%s4165_s26 + $0x5e0] sm:$0xff] %v531_v60  ;;  %v537_v63 = vld [vmem:[%s4160_s25 + $0xaf8] sm:$0xff]  ;;  %534 = vst [vmem:[%s4165_s26 + $0x5e8] sm:$0xff] %v533_v61  ;;  %v539_v0 = vld [vmem:[%s4160_s25 + $0xc00] sm:$0xff] }
  0x75   : > { %536 = vst [vmem:[%s4165_s26 + $0x5f0] sm:$0xff] %v535_v62  ;;  %538 = vst [vmem:[%s4165_s26 + $0x5f8] sm:$0xff] %v537_v63  ;;  %v541_v1 = vld [vmem:[%s4160_s25 + $0xc08] sm:$0xff]  ;;  %v543_v2 = vld [vmem:[%s4160_s25 + $0xc10] sm:$0xff] }
  0x76   : > { %540 = vst [vmem:[%s4165_s26 + $0x600] sm:$0xff] %v539_v0  ;;  %542 = vst [vmem:[%s4165_s26 + $0x608] sm:$0xff] %v541_v1  ;;  %v545_v3 = vld [vmem:[%s4160_s25 + $0xc18] sm:$0xff]  ;;  %v547_v4 = vld [vmem:[%s4160_s25 + $0xc20] sm:$0xff] }
  0x77   : > { %544 = vst [vmem:[%s4165_s26 + $0x610] sm:$0xff] %v543_v2  ;;  %v549_v5 = vld [vmem:[%s4160_s25 + $0xc28] sm:$0xff]  ;;  %546 = vst [vmem:[%s4165_s26 + $0x618] sm:$0xff] %v545_v3  ;;  %v551_v6 = vld [vmem:[%s4160_s25 + $0xc30] sm:$0xff] }
  0x78   : > { %548 = vst [vmem:[%s4165_s26 + $0x620] sm:$0xff] %v547_v4  ;;  %550 = vst [vmem:[%s4165_s26 + $0x628] sm:$0xff] %v549_v5  ;;  %v553_v7 = vld [vmem:[%s4160_s25 + $0xc38] sm:$0xff]  ;;  %v555_v8 = vld [vmem:[%s4160_s25 + $0xc40] sm:$0xff] }
  0x79   : > { %552 = vst [vmem:[%s4165_s26 + $0x630] sm:$0xff] %v551_v6  ;;  %554 = vst [vmem:[%s4165_s26 + $0x638] sm:$0xff] %v553_v7  ;;  %v557_v9 = vld [vmem:[%s4160_s25 + $0xc48] sm:$0xff]  ;;  %v559_v10 = vld [vmem:[%s4160_s25 + $0xc50] sm:$0xff] }
  0x7a   : > { %556 = vst [vmem:[%s4165_s26 + $0x640] sm:$0xff] %v555_v8  ;;  %v561_v11 = vld [vmem:[%s4160_s25 + $0xc58] sm:$0xff]  ;;  %558 = vst [vmem:[%s4165_s26 + $0x648] sm:$0xff] %v557_v9  ;;  %v563_v12 = vld [vmem:[%s4160_s25 + $0xc60] sm:$0xff] }
  0x7b   : > { %560 = vst [vmem:[%s4165_s26 + $0x650] sm:$0xff] %v559_v10  ;;  %562 = vst [vmem:[%s4165_s26 + $0x658] sm:$0xff] %v561_v11  ;;  %v565_v13 = vld [vmem:[%s4160_s25 + $0xc68] sm:$0xff]  ;;  %v567_v14 = vld [vmem:[%s4160_s25 + $0xc70] sm:$0xff] }
  0x7c   : > { %564 = vst [vmem:[%s4165_s26 + $0x660] sm:$0xff] %v563_v12  ;;  %566 = vst [vmem:[%s4165_s26 + $0x668] sm:$0xff] %v565_v13  ;;  %v569_v15 = vld [vmem:[%s4160_s25 + $0xc78] sm:$0xff]  ;;  %v571_v16 = vld [vmem:[%s4160_s25 + $0xc80] sm:$0xff] }
  0x7d   : > { %568 = vst [vmem:[%s4165_s26 + $0x670] sm:$0xff] %v567_v14  ;;  %v573_v17 = vld [vmem:[%s4160_s25 + $0xc88] sm:$0xff]  ;;  %570 = vst [vmem:[%s4165_s26 + $0x678] sm:$0xff] %v569_v15  ;;  %v575_v18 = vld [vmem:[%s4160_s25 + $0xc90] sm:$0xff] }
  0x7e   : > { %572 = vst [vmem:[%s4165_s26 + $0x680] sm:$0xff] %v571_v16  ;;  %574 = vst [vmem:[%s4165_s26 + $0x688] sm:$0xff] %v573_v17  ;;  %v577_v19 = vld [vmem:[%s4160_s25 + $0xc98] sm:$0xff]  ;;  %v579_v20 = vld [vmem:[%s4160_s25 + $0xca0] sm:$0xff] }
  0x7f   : > { %576 = vst [vmem:[%s4165_s26 + $0x690] sm:$0xff] %v575_v18  ;;  %578 = vst [vmem:[%s4165_s26 + $0x698] sm:$0xff] %v577_v19  ;;  %v581_v21 = vld [vmem:[%s4160_s25 + $0xca8] sm:$0xff]  ;;  %v583_v22 = vld [vmem:[%s4160_s25 + $0xcb0] sm:$0xff] }
  0x80   : > { %580 = vst [vmem:[%s4165_s26 + $0x6a0] sm:$0xff] %v579_v20  ;;  %v585_v23 = vld [vmem:[%s4160_s25 + $0xcb8] sm:$0xff]  ;;  %582 = vst [vmem:[%s4165_s26 + $0x6a8] sm:$0xff] %v581_v21  ;;  %v587_v24 = vld [vmem:[%s4160_s25 + $0xcc0] sm:$0xff] }
  0x81   : > { %584 = vst [vmem:[%s4165_s26 + $0x6b0] sm:$0xff] %v583_v22  ;;  %586 = vst [vmem:[%s4165_s26 + $0x6b8] sm:$0xff] %v585_v23  ;;  %v589_v25 = vld [vmem:[%s4160_s25 + $0xcc8] sm:$0xff]  ;;  %v591_v26 = vld [vmem:[%s4160_s25 + $0xcd0] sm:$0xff] }
  0x82   : > { %588 = vst [vmem:[%s4165_s26 + $0x6c0] sm:$0xff] %v587_v24  ;;  %590 = vst [vmem:[%s4165_s26 + $0x6c8] sm:$0xff] %v589_v25  ;;  %v593_v27 = vld [vmem:[%s4160_s25 + $0xcd8] sm:$0xff]  ;;  %v595_v28 = vld [vmem:[%s4160_s25 + $0xce0] sm:$0xff] }
  0x83   : > { %592 = vst [vmem:[%s4165_s26 + $0x6d0] sm:$0xff] %v591_v26  ;;  %v597_v29 = vld [vmem:[%s4160_s25 + $0xce8] sm:$0xff]  ;;  %594 = vst [vmem:[%s4165_s26 + $0x6d8] sm:$0xff] %v593_v27  ;;  %v599_v30 = vld [vmem:[%s4160_s25 + $0xcf0] sm:$0xff] }
  0x84   : > { %596 = vst [vmem:[%s4165_s26 + $0x6e0] sm:$0xff] %v595_v28  ;;  %598 = vst [vmem:[%s4165_s26 + $0x6e8] sm:$0xff] %v597_v29  ;;  %v601_v31 = vld [vmem:[%s4160_s25 + $0xcf8] sm:$0xff]  ;;  %v603_v32 = vld [vmem:[%s4160_s25 + $0xe00] sm:$0xff] }
  0x85   : > { %600 = vst [vmem:[%s4165_s26 + $0x6f0] sm:$0xff] %v599_v30  ;;  %602 = vst [vmem:[%s4165_s26 + $0x6f8] sm:$0xff] %v601_v31  ;;  %v605_v33 = vld [vmem:[%s4160_s25 + $0xe08] sm:$0xff]  ;;  %v607_v34 = vld [vmem:[%s4160_s25 + $0xe10] sm:$0xff] }
  0x86   : > { %604 = vst [vmem:[%s4165_s26 + $0x700] sm:$0xff] %v603_v32  ;;  %v609_v35 = vld [vmem:[%s4160_s25 + $0xe18] sm:$0xff]  ;;  %606 = vst [vmem:[%s4165_s26 + $0x708] sm:$0xff] %v605_v33  ;;  %v611_v36 = vld [vmem:[%s4160_s25 + $0xe20] sm:$0xff] }
  0x87   : > { %608 = vst [vmem:[%s4165_s26 + $0x710] sm:$0xff] %v607_v34  ;;  %610 = vst [vmem:[%s4165_s26 + $0x718] sm:$0xff] %v609_v35  ;;  %v613_v37 = vld [vmem:[%s4160_s25 + $0xe28] sm:$0xff]  ;;  %v615_v38 = vld [vmem:[%s4160_s25 + $0xe30] sm:$0xff] }
  0x88   : > { %612 = vst [vmem:[%s4165_s26 + $0x720] sm:$0xff] %v611_v36  ;;  %614 = vst [vmem:[%s4165_s26 + $0x728] sm:$0xff] %v613_v37  ;;  %v617_v39 = vld [vmem:[%s4160_s25 + $0xe38] sm:$0xff]  ;;  %v619_v40 = vld [vmem:[%s4160_s25 + $0xe40] sm:$0xff] }
  0x89   : > { %616 = vst [vmem:[%s4165_s26 + $0x730] sm:$0xff] %v615_v38  ;;  %v621_v41 = vld [vmem:[%s4160_s25 + $0xe48] sm:$0xff]  ;;  %618 = vst [vmem:[%s4165_s26 + $0x738] sm:$0xff] %v617_v39  ;;  %v623_v42 = vld [vmem:[%s4160_s25 + $0xe50] sm:$0xff] }
  0x8a   : > { %620 = vst [vmem:[%s4165_s26 + $0x740] sm:$0xff] %v619_v40  ;;  %622 = vst [vmem:[%s4165_s26 + $0x748] sm:$0xff] %v621_v41  ;;  %v625_v43 = vld [vmem:[%s4160_s25 + $0xe58] sm:$0xff]  ;;  %v627_v44 = vld [vmem:[%s4160_s25 + $0xe60] sm:$0xff] }
  0x8b   : > { %624 = vst [vmem:[%s4165_s26 + $0x750] sm:$0xff] %v623_v42  ;;  %626 = vst [vmem:[%s4165_s26 + $0x758] sm:$0xff] %v625_v43  ;;  %v629_v45 = vld [vmem:[%s4160_s25 + $0xe68] sm:$0xff]  ;;  %v631_v46 = vld [vmem:[%s4160_s25 + $0xe70] sm:$0xff] }
  0x8c   : > { %628 = vst [vmem:[%s4165_s26 + $0x760] sm:$0xff] %v627_v44  ;;  %v633_v47 = vld [vmem:[%s4160_s25 + $0xe78] sm:$0xff]  ;;  %630 = vst [vmem:[%s4165_s26 + $0x768] sm:$0xff] %v629_v45  ;;  %v635_v48 = vld [vmem:[%s4160_s25 + $0xe80] sm:$0xff] }
  0x8d   : > { %632 = vst [vmem:[%s4165_s26 + $0x770] sm:$0xff] %v631_v46  ;;  %634 = vst [vmem:[%s4165_s26 + $0x778] sm:$0xff] %v633_v47  ;;  %v637_v49 = vld [vmem:[%s4160_s25 + $0xe88] sm:$0xff]  ;;  %v639_v50 = vld [vmem:[%s4160_s25 + $0xe90] sm:$0xff] }
  0x8e   : > { %636 = vst [vmem:[%s4165_s26 + $0x780] sm:$0xff] %v635_v48  ;;  %638 = vst [vmem:[%s4165_s26 + $0x788] sm:$0xff] %v637_v49  ;;  %v641_v51 = vld [vmem:[%s4160_s25 + $0xe98] sm:$0xff]  ;;  %v643_v52 = vld [vmem:[%s4160_s25 + $0xea0] sm:$0xff] }
  0x8f   : > { %640 = vst [vmem:[%s4165_s26 + $0x790] sm:$0xff] %v639_v50  ;;  %v645_v53 = vld [vmem:[%s4160_s25 + $0xea8] sm:$0xff]  ;;  %642 = vst [vmem:[%s4165_s26 + $0x798] sm:$0xff] %v641_v51  ;;  %v647_v54 = vld [vmem:[%s4160_s25 + $0xeb0] sm:$0xff] }
  0x90   : > { %644 = vst [vmem:[%s4165_s26 + $0x7a0] sm:$0xff] %v643_v52  ;;  %646 = vst [vmem:[%s4165_s26 + $0x7a8] sm:$0xff] %v645_v53  ;;  %v649_v55 = vld [vmem:[%s4160_s25 + $0xeb8] sm:$0xff]  ;;  %v651_v56 = vld [vmem:[%s4160_s25 + $0xec0] sm:$0xff] }
  0x91   : > { %648 = vst [vmem:[%s4165_s26 + $0x7b0] sm:$0xff] %v647_v54  ;;  %650 = vst [vmem:[%s4165_s26 + $0x7b8] sm:$0xff] %v649_v55  ;;  %v653_v57 = vld [vmem:[%s4160_s25 + $0xec8] sm:$0xff]  ;;  %v655_v58 = vld [vmem:[%s4160_s25 + $0xed0] sm:$0xff] }
  0x92   : > { %652 = vst [vmem:[%s4165_s26 + $0x7c0] sm:$0xff] %v651_v56  ;;  %v657_v59 = vld [vmem:[%s4160_s25 + $0xed8] sm:$0xff]  ;;  %654 = vst [vmem:[%s4165_s26 + $0x7c8] sm:$0xff] %v653_v57  ;;  %v659_v60 = vld [vmem:[%s4160_s25 + $0xee0] sm:$0xff] }
  0x93   : > { %656 = vst [vmem:[%s4165_s26 + $0x7d0] sm:$0xff] %v655_v58  ;;  %658 = vst [vmem:[%s4165_s26 + $0x7d8] sm:$0xff] %v657_v59  ;;  %v661_v61 = vld [vmem:[%s4160_s25 + $0xee8] sm:$0xff]  ;;  %v663_v62 = vld [vmem:[%s4160_s25 + $0xef0] sm:$0xff] }
  0x94   : > { %660 = vst [vmem:[%s4165_s26 + $0x7e0] sm:$0xff] %v659_v60  ;;  %662 = vst [vmem:[%s4165_s26 + $0x7e8] sm:$0xff] %v661_v61  ;;  %v665_v63 = vld [vmem:[%s4160_s25 + $0xef8] sm:$0xff]  ;;  %v667_v0 = vld [vmem:[%s4160_s25 + $0x1000] sm:$0xff] }
  0x95   : > { %664 = vst [vmem:[%s4165_s26 + $0x7f0] sm:$0xff] %v663_v62  ;;  %v669_v1 = vld [vmem:[%s4160_s25 + $0x1008] sm:$0xff]  ;;  %666 = vst [vmem:[%s4165_s26 + $0x7f8] sm:$0xff] %v665_v63  ;;  %v671_v2 = vld [vmem:[%s4160_s25 + $0x1010] sm:$0xff] }
  0x96   : > { %668 = vst [vmem:[%s4165_s26 + $0x800] sm:$0xff] %v667_v0  ;;  %670 = vst [vmem:[%s4165_s26 + $0x808] sm:$0xff] %v669_v1  ;;  %v673_v3 = vld [vmem:[%s4160_s25 + $0x1018] sm:$0xff]  ;;  %v675_v4 = vld [vmem:[%s4160_s25 + $0x1020] sm:$0xff] }
  0x97   : > { %672 = vst [vmem:[%s4165_s26 + $0x810] sm:$0xff] %v671_v2  ;;  %674 = vst [vmem:[%s4165_s26 + $0x818] sm:$0xff] %v673_v3  ;;  %v677_v5 = vld [vmem:[%s4160_s25 + $0x1028] sm:$0xff]  ;;  %v679_v6 = vld [vmem:[%s4160_s25 + $0x1030] sm:$0xff] }
  0x98   : > { %676 = vst [vmem:[%s4165_s26 + $0x820] sm:$0xff] %v675_v4  ;;  %v681_v7 = vld [vmem:[%s4160_s25 + $0x1038] sm:$0xff]  ;;  %678 = vst [vmem:[%s4165_s26 + $0x828] sm:$0xff] %v677_v5  ;;  %v683_v8 = vld [vmem:[%s4160_s25 + $0x1040] sm:$0xff] }
  0x99   : > { %680 = vst [vmem:[%s4165_s26 + $0x830] sm:$0xff] %v679_v6  ;;  %682 = vst [vmem:[%s4165_s26 + $0x838] sm:$0xff] %v681_v7  ;;  %v685_v9 = vld [vmem:[%s4160_s25 + $0x1048] sm:$0xff]  ;;  %v687_v10 = vld [vmem:[%s4160_s25 + $0x1050] sm:$0xff] }
  0x9a   : > { %684 = vst [vmem:[%s4165_s26 + $0x840] sm:$0xff] %v683_v8  ;;  %686 = vst [vmem:[%s4165_s26 + $0x848] sm:$0xff] %v685_v9  ;;  %v689_v11 = vld [vmem:[%s4160_s25 + $0x1058] sm:$0xff]  ;;  %v691_v12 = vld [vmem:[%s4160_s25 + $0x1060] sm:$0xff] }
  0x9b   : > { %688 = vst [vmem:[%s4165_s26 + $0x850] sm:$0xff] %v687_v10  ;;  %v693_v13 = vld [vmem:[%s4160_s25 + $0x1068] sm:$0xff]  ;;  %690 = vst [vmem:[%s4165_s26 + $0x858] sm:$0xff] %v689_v11  ;;  %v695_v14 = vld [vmem:[%s4160_s25 + $0x1070] sm:$0xff] }
  0x9c   : > { %692 = vst [vmem:[%s4165_s26 + $0x860] sm:$0xff] %v691_v12  ;;  %694 = vst [vmem:[%s4165_s26 + $0x868] sm:$0xff] %v693_v13  ;;  %v697_v15 = vld [vmem:[%s4160_s25 + $0x1078] sm:$0xff]  ;;  %v699_v16 = vld [vmem:[%s4160_s25 + $0x1080] sm:$0xff] }
  0x9d   : > { %696 = vst [vmem:[%s4165_s26 + $0x870] sm:$0xff] %v695_v14  ;;  %698 = vst [vmem:[%s4165_s26 + $0x878] sm:$0xff] %v697_v15  ;;  %v701_v17 = vld [vmem:[%s4160_s25 + $0x1088] sm:$0xff]  ;;  %v703_v18 = vld [vmem:[%s4160_s25 + $0x1090] sm:$0xff] }
  0x9e   : > { %700 = vst [vmem:[%s4165_s26 + $0x880] sm:$0xff] %v699_v16  ;;  %v705_v19 = vld [vmem:[%s4160_s25 + $0x1098] sm:$0xff]  ;;  %702 = vst [vmem:[%s4165_s26 + $0x888] sm:$0xff] %v701_v17  ;;  %v707_v20 = vld [vmem:[%s4160_s25 + $0x10a0] sm:$0xff] }
  0x9f   : > { %704 = vst [vmem:[%s4165_s26 + $0x890] sm:$0xff] %v703_v18  ;;  %706 = vst [vmem:[%s4165_s26 + $0x898] sm:$0xff] %v705_v19  ;;  %v709_v21 = vld [vmem:[%s4160_s25 + $0x10a8] sm:$0xff]  ;;  %v711_v22 = vld [vmem:[%s4160_s25 + $0x10b0] sm:$0xff] }
  0xa0   : > { %708 = vst [vmem:[%s4165_s26 + $0x8a0] sm:$0xff] %v707_v20  ;;  %710 = vst [vmem:[%s4165_s26 + $0x8a8] sm:$0xff] %v709_v21  ;;  %v713_v23 = vld [vmem:[%s4160_s25 + $0x10b8] sm:$0xff]  ;;  %v715_v24 = vld [vmem:[%s4160_s25 + $0x10c0] sm:$0xff] }
  0xa1   : > { %712 = vst [vmem:[%s4165_s26 + $0x8b0] sm:$0xff] %v711_v22  ;;  %v717_v25 = vld [vmem:[%s4160_s25 + $0x10c8] sm:$0xff]  ;;  %714 = vst [vmem:[%s4165_s26 + $0x8b8] sm:$0xff] %v713_v23  ;;  %v719_v26 = vld [vmem:[%s4160_s25 + $0x10d0] sm:$0xff] }
  0xa2   : > { %716 = vst [vmem:[%s4165_s26 + $0x8c0] sm:$0xff] %v715_v24  ;;  %718 = vst [vmem:[%s4165_s26 + $0x8c8] sm:$0xff] %v717_v25  ;;  %v721_v27 = vld [vmem:[%s4160_s25 + $0x10d8] sm:$0xff]  ;;  %v723_v28 = vld [vmem:[%s4160_s25 + $0x10e0] sm:$0xff] }
  0xa3   : > { %720 = vst [vmem:[%s4165_s26 + $0x8d0] sm:$0xff] %v719_v26  ;;  %722 = vst [vmem:[%s4165_s26 + $0x8d8] sm:$0xff] %v721_v27  ;;  %v725_v29 = vld [vmem:[%s4160_s25 + $0x10e8] sm:$0xff]  ;;  %v727_v30 = vld [vmem:[%s4160_s25 + $0x10f0] sm:$0xff] }
  0xa4   : > { %724 = vst [vmem:[%s4165_s26 + $0x8e0] sm:$0xff] %v723_v28  ;;  %v729_v31 = vld [vmem:[%s4160_s25 + $0x10f8] sm:$0xff]  ;;  %726 = vst [vmem:[%s4165_s26 + $0x8e8] sm:$0xff] %v725_v29  ;;  %v731_v32 = vld [vmem:[%s4160_s25 + $0x1200] sm:$0xff] }
  0xa5   : > { %728 = vst [vmem:[%s4165_s26 + $0x8f0] sm:$0xff] %v727_v30  ;;  %730 = vst [vmem:[%s4165_s26 + $0x8f8] sm:$0xff] %v729_v31  ;;  %v733_v33 = vld [vmem:[%s4160_s25 + $0x1208] sm:$0xff]  ;;  %v735_v34 = vld [vmem:[%s4160_s25 + $0x1210] sm:$0xff] }
  0xa6   : > { %732 = vst [vmem:[%s4165_s26 + $0x900] sm:$0xff] %v731_v32  ;;  %734 = vst [vmem:[%s4165_s26 + $0x908] sm:$0xff] %v733_v33  ;;  %v737_v35 = vld [vmem:[%s4160_s25 + $0x1218] sm:$0xff]  ;;  %v739_v36 = vld [vmem:[%s4160_s25 + $0x1220] sm:$0xff] }
  0xa7   : > { %736 = vst [vmem:[%s4165_s26 + $0x910] sm:$0xff] %v735_v34  ;;  %v741_v37 = vld [vmem:[%s4160_s25 + $0x1228] sm:$0xff]  ;;  %738 = vst [vmem:[%s4165_s26 + $0x918] sm:$0xff] %v737_v35  ;;  %v743_v38 = vld [vmem:[%s4160_s25 + $0x1230] sm:$0xff] }
  0xa8   : > { %740 = vst [vmem:[%s4165_s26 + $0x920] sm:$0xff] %v739_v36  ;;  %742 = vst [vmem:[%s4165_s26 + $0x928] sm:$0xff] %v741_v37  ;;  %v745_v39 = vld [vmem:[%s4160_s25 + $0x1238] sm:$0xff]  ;;  %v747_v40 = vld [vmem:[%s4160_s25 + $0x1240] sm:$0xff] }
  0xa9   : > { %744 = vst [vmem:[%s4165_s26 + $0x930] sm:$0xff] %v743_v38  ;;  %746 = vst [vmem:[%s4165_s26 + $0x938] sm:$0xff] %v745_v39  ;;  %v749_v41 = vld [vmem:[%s4160_s25 + $0x1248] sm:$0xff]  ;;  %v751_v42 = vld [vmem:[%s4160_s25 + $0x1250] sm:$0xff] }
  0xaa   : > { %748 = vst [vmem:[%s4165_s26 + $0x940] sm:$0xff] %v747_v40  ;;  %v753_v43 = vld [vmem:[%s4160_s25 + $0x1258] sm:$0xff]  ;;  %750 = vst [vmem:[%s4165_s26 + $0x948] sm:$0xff] %v749_v41  ;;  %v755_v44 = vld [vmem:[%s4160_s25 + $0x1260] sm:$0xff] }
  0xab   : > { %752 = vst [vmem:[%s4165_s26 + $0x950] sm:$0xff] %v751_v42  ;;  %754 = vst [vmem:[%s4165_s26 + $0x958] sm:$0xff] %v753_v43  ;;  %v757_v45 = vld [vmem:[%s4160_s25 + $0x1268] sm:$0xff]  ;;  %v759_v46 = vld [vmem:[%s4160_s25 + $0x1270] sm:$0xff] }
  0xac   : > { %756 = vst [vmem:[%s4165_s26 + $0x960] sm:$0xff] %v755_v44  ;;  %758 = vst [vmem:[%s4165_s26 + $0x968] sm:$0xff] %v757_v45  ;;  %v761_v47 = vld [vmem:[%s4160_s25 + $0x1278] sm:$0xff]  ;;  %v763_v48 = vld [vmem:[%s4160_s25 + $0x1280] sm:$0xff] }
  0xad   : > { %760 = vst [vmem:[%s4165_s26 + $0x970] sm:$0xff] %v759_v46  ;;  %v765_v49 = vld [vmem:[%s4160_s25 + $0x1288] sm:$0xff]  ;;  %762 = vst [vmem:[%s4165_s26 + $0x978] sm:$0xff] %v761_v47  ;;  %v767_v50 = vld [vmem:[%s4160_s25 + $0x1290] sm:$0xff] }
  0xae   : > { %764 = vst [vmem:[%s4165_s26 + $0x980] sm:$0xff] %v763_v48  ;;  %766 = vst [vmem:[%s4165_s26 + $0x988] sm:$0xff] %v765_v49  ;;  %v769_v51 = vld [vmem:[%s4160_s25 + $0x1298] sm:$0xff]  ;;  %v771_v52 = vld [vmem:[%s4160_s25 + $0x12a0] sm:$0xff] }
  0xaf   : > { %768 = vst [vmem:[%s4165_s26 + $0x990] sm:$0xff] %v767_v50  ;;  %770 = vst [vmem:[%s4165_s26 + $0x998] sm:$0xff] %v769_v51  ;;  %v773_v53 = vld [vmem:[%s4160_s25 + $0x12a8] sm:$0xff]  ;;  %v775_v54 = vld [vmem:[%s4160_s25 + $0x12b0] sm:$0xff] }
  0xb0   : > { %772 = vst [vmem:[%s4165_s26 + $0x9a0] sm:$0xff] %v771_v52  ;;  %v777_v55 = vld [vmem:[%s4160_s25 + $0x12b8] sm:$0xff]  ;;  %774 = vst [vmem:[%s4165_s26 + $0x9a8] sm:$0xff] %v773_v53  ;;  %v779_v56 = vld [vmem:[%s4160_s25 + $0x12c0] sm:$0xff] }
  0xb1   : > { %776 = vst [vmem:[%s4165_s26 + $0x9b0] sm:$0xff] %v775_v54  ;;  %778 = vst [vmem:[%s4165_s26 + $0x9b8] sm:$0xff] %v777_v55  ;;  %v781_v57 = vld [vmem:[%s4160_s25 + $0x12c8] sm:$0xff]  ;;  %v783_v58 = vld [vmem:[%s4160_s25 + $0x12d0] sm:$0xff] }
  0xb2   : > { %780 = vst [vmem:[%s4165_s26 + $0x9c0] sm:$0xff] %v779_v56  ;;  %782 = vst [vmem:[%s4165_s26 + $0x9c8] sm:$0xff] %v781_v57  ;;  %v785_v59 = vld [vmem:[%s4160_s25 + $0x12d8] sm:$0xff]  ;;  %v787_v60 = vld [vmem:[%s4160_s25 + $0x12e0] sm:$0xff] }
  0xb3   : > { %784 = vst [vmem:[%s4165_s26 + $0x9d0] sm:$0xff] %v783_v58  ;;  %v789_v61 = vld [vmem:[%s4160_s25 + $0x12e8] sm:$0xff]  ;;  %786 = vst [vmem:[%s4165_s26 + $0x9d8] sm:$0xff] %v785_v59  ;;  %v791_v62 = vld [vmem:[%s4160_s25 + $0x12f0] sm:$0xff] }
  0xb4   : > { %788 = vst [vmem:[%s4165_s26 + $0x9e0] sm:$0xff] %v787_v60  ;;  %790 = vst [vmem:[%s4165_s26 + $0x9e8] sm:$0xff] %v789_v61  ;;  %v793_v63 = vld [vmem:[%s4160_s25 + $0x12f8] sm:$0xff]  ;;  %v795_v0 = vld [vmem:[%s4160_s25 + $0x1400] sm:$0xff] }
  0xb5   : > { %792 = vst [vmem:[%s4165_s26 + $0x9f0] sm:$0xff] %v791_v62  ;;  %794 = vst [vmem:[%s4165_s26 + $0x9f8] sm:$0xff] %v793_v63  ;;  %v797_v1 = vld [vmem:[%s4160_s25 + $0x1408] sm:$0xff]  ;;  %v799_v2 = vld [vmem:[%s4160_s25 + $0x1410] sm:$0xff] }
  0xb6   : > { %796 = vst [vmem:[%s4165_s26 + $0xa00] sm:$0xff] %v795_v0  ;;  %v801_v3 = vld [vmem:[%s4160_s25 + $0x1418] sm:$0xff]  ;;  %798 = vst [vmem:[%s4165_s26 + $0xa08] sm:$0xff] %v797_v1  ;;  %v803_v4 = vld [vmem:[%s4160_s25 + $0x1420] sm:$0xff] }
  0xb7   : > { %800 = vst [vmem:[%s4165_s26 + $0xa10] sm:$0xff] %v799_v2  ;;  %802 = vst [vmem:[%s4165_s26 + $0xa18] sm:$0xff] %v801_v3  ;;  %v805_v5 = vld [vmem:[%s4160_s25 + $0x1428] sm:$0xff]  ;;  %v807_v6 = vld [vmem:[%s4160_s25 + $0x1430] sm:$0xff] }
  0xb8   : > { %804 = vst [vmem:[%s4165_s26 + $0xa20] sm:$0xff] %v803_v4  ;;  %806 = vst [vmem:[%s4165_s26 + $0xa28] sm:$0xff] %v805_v5  ;;  %v809_v7 = vld [vmem:[%s4160_s25 + $0x1438] sm:$0xff]  ;;  %v811_v8 = vld [vmem:[%s4160_s25 + $0x1440] sm:$0xff] }
  0xb9   : > { %808 = vst [vmem:[%s4165_s26 + $0xa30] sm:$0xff] %v807_v6  ;;  %v813_v9 = vld [vmem:[%s4160_s25 + $0x1448] sm:$0xff]  ;;  %810 = vst [vmem:[%s4165_s26 + $0xa38] sm:$0xff] %v809_v7  ;;  %v815_v10 = vld [vmem:[%s4160_s25 + $0x1450] sm:$0xff] }
  0xba   : > { %812 = vst [vmem:[%s4165_s26 + $0xa40] sm:$0xff] %v811_v8  ;;  %814 = vst [vmem:[%s4165_s26 + $0xa48] sm:$0xff] %v813_v9  ;;  %v817_v11 = vld [vmem:[%s4160_s25 + $0x1458] sm:$0xff]  ;;  %v819_v12 = vld [vmem:[%s4160_s25 + $0x1460] sm:$0xff] }
  0xbb   : > { %816 = vst [vmem:[%s4165_s26 + $0xa50] sm:$0xff] %v815_v10  ;;  %818 = vst [vmem:[%s4165_s26 + $0xa58] sm:$0xff] %v817_v11  ;;  %v821_v13 = vld [vmem:[%s4160_s25 + $0x1468] sm:$0xff]  ;;  %v823_v14 = vld [vmem:[%s4160_s25 + $0x1470] sm:$0xff] }
  0xbc   : > { %820 = vst [vmem:[%s4165_s26 + $0xa60] sm:$0xff] %v819_v12  ;;  %v825_v15 = vld [vmem:[%s4160_s25 + $0x1478] sm:$0xff]  ;;  %822 = vst [vmem:[%s4165_s26 + $0xa68] sm:$0xff] %v821_v13  ;;  %v827_v16 = vld [vmem:[%s4160_s25 + $0x1480] sm:$0xff] }
  0xbd   : > { %824 = vst [vmem:[%s4165_s26 + $0xa70] sm:$0xff] %v823_v14  ;;  %826 = vst [vmem:[%s4165_s26 + $0xa78] sm:$0xff] %v825_v15  ;;  %v829_v17 = vld [vmem:[%s4160_s25 + $0x1488] sm:$0xff]  ;;  %v831_v18 = vld [vmem:[%s4160_s25 + $0x1490] sm:$0xff] }
  0xbe   : > { %828 = vst [vmem:[%s4165_s26 + $0xa80] sm:$0xff] %v827_v16  ;;  %830 = vst [vmem:[%s4165_s26 + $0xa88] sm:$0xff] %v829_v17  ;;  %v833_v19 = vld [vmem:[%s4160_s25 + $0x1498] sm:$0xff]  ;;  %v835_v20 = vld [vmem:[%s4160_s25 + $0x14a0] sm:$0xff] }
  0xbf   : > { %832 = vst [vmem:[%s4165_s26 + $0xa90] sm:$0xff] %v831_v18  ;;  %v837_v21 = vld [vmem:[%s4160_s25 + $0x14a8] sm:$0xff]  ;;  %834 = vst [vmem:[%s4165_s26 + $0xa98] sm:$0xff] %v833_v19  ;;  %v839_v22 = vld [vmem:[%s4160_s25 + $0x14b0] sm:$0xff] }
  0xc0   : > { %836 = vst [vmem:[%s4165_s26 + $0xaa0] sm:$0xff] %v835_v20  ;;  %838 = vst [vmem:[%s4165_s26 + $0xaa8] sm:$0xff] %v837_v21  ;;  %v841_v23 = vld [vmem:[%s4160_s25 + $0x14b8] sm:$0xff]  ;;  %v843_v24 = vld [vmem:[%s4160_s25 + $0x14c0] sm:$0xff] }
  0xc1   : > { %840 = vst [vmem:[%s4165_s26 + $0xab0] sm:$0xff] %v839_v22  ;;  %842 = vst [vmem:[%s4165_s26 + $0xab8] sm:$0xff] %v841_v23  ;;  %v845_v25 = vld [vmem:[%s4160_s25 + $0x14c8] sm:$0xff]  ;;  %v847_v26 = vld [vmem:[%s4160_s25 + $0x14d0] sm:$0xff] }
  0xc2   : > { %844 = vst [vmem:[%s4165_s26 + $0xac0] sm:$0xff] %v843_v24  ;;  %v849_v27 = vld [vmem:[%s4160_s25 + $0x14d8] sm:$0xff]  ;;  %846 = vst [vmem:[%s4165_s26 + $0xac8] sm:$0xff] %v845_v25  ;;  %v851_v28 = vld [vmem:[%s4160_s25 + $0x14e0] sm:$0xff] }
  0xc3   : > { %848 = vst [vmem:[%s4165_s26 + $0xad0] sm:$0xff] %v847_v26  ;;  %850 = vst [vmem:[%s4165_s26 + $0xad8] sm:$0xff] %v849_v27  ;;  %v853_v29 = vld [vmem:[%s4160_s25 + $0x14e8] sm:$0xff]  ;;  %v855_v30 = vld [vmem:[%s4160_s25 + $0x14f0] sm:$0xff] }
  0xc4   : > { %852 = vst [vmem:[%s4165_s26 + $0xae0] sm:$0xff] %v851_v28  ;;  %854 = vst [vmem:[%s4165_s26 + $0xae8] sm:$0xff] %v853_v29  ;;  %v857_v31 = vld [vmem:[%s4160_s25 + $0x14f8] sm:$0xff]  ;;  %v859_v32 = vld [vmem:[%s4160_s25 + $0x1600] sm:$0xff] }
  0xc5   : > { %856 = vst [vmem:[%s4165_s26 + $0xaf0] sm:$0xff] %v855_v30  ;;  %v861_v33 = vld [vmem:[%s4160_s25 + $0x1608] sm:$0xff]  ;;  %858 = vst [vmem:[%s4165_s26 + $0xaf8] sm:$0xff] %v857_v31  ;;  %v863_v34 = vld [vmem:[%s4160_s25 + $0x1610] sm:$0xff] }
  0xc6   : > { %860 = vst [vmem:[%s4165_s26 + $0xb00] sm:$0xff] %v859_v32  ;;  %862 = vst [vmem:[%s4165_s26 + $0xb08] sm:$0xff] %v861_v33  ;;  %v865_v35 = vld [vmem:[%s4160_s25 + $0x1618] sm:$0xff]  ;;  %v867_v36 = vld [vmem:[%s4160_s25 + $0x1620] sm:$0xff] }
  0xc7   : > { %864 = vst [vmem:[%s4165_s26 + $0xb10] sm:$0xff] %v863_v34  ;;  %866 = vst [vmem:[%s4165_s26 + $0xb18] sm:$0xff] %v865_v35  ;;  %v869_v37 = vld [vmem:[%s4160_s25 + $0x1628] sm:$0xff]  ;;  %v871_v38 = vld [vmem:[%s4160_s25 + $0x1630] sm:$0xff] }
  0xc8   : > { %868 = vst [vmem:[%s4165_s26 + $0xb20] sm:$0xff] %v867_v36  ;;  %v873_v39 = vld [vmem:[%s4160_s25 + $0x1638] sm:$0xff]  ;;  %870 = vst [vmem:[%s4165_s26 + $0xb28] sm:$0xff] %v869_v37  ;;  %v875_v40 = vld [vmem:[%s4160_s25 + $0x1640] sm:$0xff] }
  0xc9   : > { %872 = vst [vmem:[%s4165_s26 + $0xb30] sm:$0xff] %v871_v38  ;;  %874 = vst [vmem:[%s4165_s26 + $0xb38] sm:$0xff] %v873_v39  ;;  %v877_v41 = vld [vmem:[%s4160_s25 + $0x1648] sm:$0xff]  ;;  %v879_v42 = vld [vmem:[%s4160_s25 + $0x1650] sm:$0xff] }
  0xca   : > { %876 = vst [vmem:[%s4165_s26 + $0xb40] sm:$0xff] %v875_v40  ;;  %878 = vst [vmem:[%s4165_s26 + $0xb48] sm:$0xff] %v877_v41  ;;  %v881_v43 = vld [vmem:[%s4160_s25 + $0x1658] sm:$0xff]  ;;  %v883_v44 = vld [vmem:[%s4160_s25 + $0x1660] sm:$0xff] }
  0xcb   : > { %880 = vst [vmem:[%s4165_s26 + $0xb50] sm:$0xff] %v879_v42  ;;  %v885_v45 = vld [vmem:[%s4160_s25 + $0x1668] sm:$0xff]  ;;  %882 = vst [vmem:[%s4165_s26 + $0xb58] sm:$0xff] %v881_v43  ;;  %v887_v46 = vld [vmem:[%s4160_s25 + $0x1670] sm:$0xff] }
  0xcc   : > { %884 = vst [vmem:[%s4165_s26 + $0xb60] sm:$0xff] %v883_v44  ;;  %886 = vst [vmem:[%s4165_s26 + $0xb68] sm:$0xff] %v885_v45  ;;  %v889_v47 = vld [vmem:[%s4160_s25 + $0x1678] sm:$0xff]  ;;  %v891_v48 = vld [vmem:[%s4160_s25 + $0x1680] sm:$0xff] }
  0xcd   : > { %888 = vst [vmem:[%s4165_s26 + $0xb70] sm:$0xff] %v887_v46  ;;  %890 = vst [vmem:[%s4165_s26 + $0xb78] sm:$0xff] %v889_v47  ;;  %v893_v49 = vld [vmem:[%s4160_s25 + $0x1688] sm:$0xff]  ;;  %v895_v50 = vld [vmem:[%s4160_s25 + $0x1690] sm:$0xff] }
  0xce   : > { %892 = vst [vmem:[%s4165_s26 + $0xb80] sm:$0xff] %v891_v48  ;;  %v897_v51 = vld [vmem:[%s4160_s25 + $0x1698] sm:$0xff]  ;;  %894 = vst [vmem:[%s4165_s26 + $0xb88] sm:$0xff] %v893_v49  ;;  %v899_v52 = vld [vmem:[%s4160_s25 + $0x16a0] sm:$0xff] }
  0xcf   : > { %896 = vst [vmem:[%s4165_s26 + $0xb90] sm:$0xff] %v895_v50  ;;  %898 = vst [vmem:[%s4165_s26 + $0xb98] sm:$0xff] %v897_v51  ;;  %v901_v53 = vld [vmem:[%s4160_s25 + $0x16a8] sm:$0xff]  ;;  %v903_v54 = vld [vmem:[%s4160_s25 + $0x16b0] sm:$0xff] }
  0xd0   : > { %900 = vst [vmem:[%s4165_s26 + $0xba0] sm:$0xff] %v899_v52  ;;  %902 = vst [vmem:[%s4165_s26 + $0xba8] sm:$0xff] %v901_v53  ;;  %v905_v55 = vld [vmem:[%s4160_s25 + $0x16b8] sm:$0xff]  ;;  %v907_v56 = vld [vmem:[%s4160_s25 + $0x16c0] sm:$0xff] }
  0xd1   : > { %904 = vst [vmem:[%s4165_s26 + $0xbb0] sm:$0xff] %v903_v54  ;;  %v909_v57 = vld [vmem:[%s4160_s25 + $0x16c8] sm:$0xff]  ;;  %906 = vst [vmem:[%s4165_s26 + $0xbb8] sm:$0xff] %v905_v55  ;;  %v911_v58 = vld [vmem:[%s4160_s25 + $0x16d0] sm:$0xff] }
  0xd2   : > { %908 = vst [vmem:[%s4165_s26 + $0xbc0] sm:$0xff] %v907_v56  ;;  %910 = vst [vmem:[%s4165_s26 + $0xbc8] sm:$0xff] %v909_v57  ;;  %v913_v59 = vld [vmem:[%s4160_s25 + $0x16d8] sm:$0xff]  ;;  %v915_v60 = vld [vmem:[%s4160_s25 + $0x16e0] sm:$0xff] }
  0xd3   : > { %912 = vst [vmem:[%s4165_s26 + $0xbd0] sm:$0xff] %v911_v58  ;;  %914 = vst [vmem:[%s4165_s26 + $0xbd8] sm:$0xff] %v913_v59  ;;  %v917_v61 = vld [vmem:[%s4160_s25 + $0x16e8] sm:$0xff]  ;;  %v919_v62 = vld [vmem:[%s4160_s25 + $0x16f0] sm:$0xff] }
  0xd4   : > { %916 = vst [vmem:[%s4165_s26 + $0xbe0] sm:$0xff] %v915_v60  ;;  %v921_v63 = vld [vmem:[%s4160_s25 + $0x16f8] sm:$0xff]  ;;  %918 = vst [vmem:[%s4165_s26 + $0xbe8] sm:$0xff] %v917_v61  ;;  %v923_v0 = vld [vmem:[%s4160_s25 + $0x1800] sm:$0xff] }
  0xd5   : > { %920 = vst [vmem:[%s4165_s26 + $0xbf0] sm:$0xff] %v919_v62  ;;  %922 = vst [vmem:[%s4165_s26 + $0xbf8] sm:$0xff] %v921_v63  ;;  %v925_v1 = vld [vmem:[%s4160_s25 + $0x1808] sm:$0xff]  ;;  %v927_v2 = vld [vmem:[%s4160_s25 + $0x1810] sm:$0xff] }
  0xd6   : > { %924 = vst [vmem:[%s4165_s26 + $0xc00] sm:$0xff] %v923_v0  ;;  %926 = vst [vmem:[%s4165_s26 + $0xc08] sm:$0xff] %v925_v1  ;;  %v929_v3 = vld [vmem:[%s4160_s25 + $0x1818] sm:$0xff]  ;;  %v931_v4 = vld [vmem:[%s4160_s25 + $0x1820] sm:$0xff] }
  0xd7   : > { %928 = vst [vmem:[%s4165_s26 + $0xc10] sm:$0xff] %v927_v2  ;;  %v933_v5 = vld [vmem:[%s4160_s25 + $0x1828] sm:$0xff]  ;;  %930 = vst [vmem:[%s4165_s26 + $0xc18] sm:$0xff] %v929_v3  ;;  %v935_v6 = vld [vmem:[%s4160_s25 + $0x1830] sm:$0xff] }
  0xd8   : > { %932 = vst [vmem:[%s4165_s26 + $0xc20] sm:$0xff] %v931_v4  ;;  %934 = vst [vmem:[%s4165_s26 + $0xc28] sm:$0xff] %v933_v5  ;;  %v937_v7 = vld [vmem:[%s4160_s25 + $0x1838] sm:$0xff]  ;;  %v939_v8 = vld [vmem:[%s4160_s25 + $0x1840] sm:$0xff] }
  0xd9   : > { %936 = vst [vmem:[%s4165_s26 + $0xc30] sm:$0xff] %v935_v6  ;;  %938 = vst [vmem:[%s4165_s26 + $0xc38] sm:$0xff] %v937_v7  ;;  %v941_v9 = vld [vmem:[%s4160_s25 + $0x1848] sm:$0xff]  ;;  %v943_v10 = vld [vmem:[%s4160_s25 + $0x1850] sm:$0xff] }
  0xda   : > { %940 = vst [vmem:[%s4165_s26 + $0xc40] sm:$0xff] %v939_v8  ;;  %v945_v11 = vld [vmem:[%s4160_s25 + $0x1858] sm:$0xff]  ;;  %942 = vst [vmem:[%s4165_s26 + $0xc48] sm:$0xff] %v941_v9  ;;  %v947_v12 = vld [vmem:[%s4160_s25 + $0x1860] sm:$0xff] }
  0xdb   : > { %944 = vst [vmem:[%s4165_s26 + $0xc50] sm:$0xff] %v943_v10  ;;  %946 = vst [vmem:[%s4165_s26 + $0xc58] sm:$0xff] %v945_v11  ;;  %v949_v13 = vld [vmem:[%s4160_s25 + $0x1868] sm:$0xff]  ;;  %v951_v14 = vld [vmem:[%s4160_s25 + $0x1870] sm:$0xff] }
  0xdc   : > { %948 = vst [vmem:[%s4165_s26 + $0xc60] sm:$0xff] %v947_v12  ;;  %950 = vst [vmem:[%s4165_s26 + $0xc68] sm:$0xff] %v949_v13  ;;  %v953_v15 = vld [vmem:[%s4160_s25 + $0x1878] sm:$0xff]  ;;  %v955_v16 = vld [vmem:[%s4160_s25 + $0x1880] sm:$0xff] }
  0xdd   : > { %952 = vst [vmem:[%s4165_s26 + $0xc70] sm:$0xff] %v951_v14  ;;  %v957_v17 = vld [vmem:[%s4160_s25 + $0x1888] sm:$0xff]  ;;  %954 = vst [vmem:[%s4165_s26 + $0xc78] sm:$0xff] %v953_v15  ;;  %v959_v18 = vld [vmem:[%s4160_s25 + $0x1890] sm:$0xff] }
  0xde   : > { %956 = vst [vmem:[%s4165_s26 + $0xc80] sm:$0xff] %v955_v16  ;;  %958 = vst [vmem:[%s4165_s26 + $0xc88] sm:$0xff] %v957_v17  ;;  %v961_v19 = vld [vmem:[%s4160_s25 + $0x1898] sm:$0xff]  ;;  %v963_v20 = vld [vmem:[%s4160_s25 + $0x18a0] sm:$0xff] }
  0xdf   : > { %960 = vst [vmem:[%s4165_s26 + $0xc90] sm:$0xff] %v959_v18  ;;  %962 = vst [vmem:[%s4165_s26 + $0xc98] sm:$0xff] %v961_v19  ;;  %v965_v21 = vld [vmem:[%s4160_s25 + $0x18a8] sm:$0xff]  ;;  %v967_v22 = vld [vmem:[%s4160_s25 + $0x18b0] sm:$0xff] }
  0xe0   : > { %964 = vst [vmem:[%s4165_s26 + $0xca0] sm:$0xff] %v963_v20  ;;  %v969_v23 = vld [vmem:[%s4160_s25 + $0x18b8] sm:$0xff]  ;;  %966 = vst [vmem:[%s4165_s26 + $0xca8] sm:$0xff] %v965_v21  ;;  %v971_v24 = vld [vmem:[%s4160_s25 + $0x18c0] sm:$0xff] }
  0xe1   : > { %968 = vst [vmem:[%s4165_s26 + $0xcb0] sm:$0xff] %v967_v22  ;;  %970 = vst [vmem:[%s4165_s26 + $0xcb8] sm:$0xff] %v969_v23  ;;  %v973_v25 = vld [vmem:[%s4160_s25 + $0x18c8] sm:$0xff]  ;;  %v975_v26 = vld [vmem:[%s4160_s25 + $0x18d0] sm:$0xff] }
  0xe2   : > { %972 = vst [vmem:[%s4165_s26 + $0xcc0] sm:$0xff] %v971_v24  ;;  %974 = vst [vmem:[%s4165_s26 + $0xcc8] sm:$0xff] %v973_v25  ;;  %v977_v27 = vld [vmem:[%s4160_s25 + $0x18d8] sm:$0xff]  ;;  %v979_v28 = vld [vmem:[%s4160_s25 + $0x18e0] sm:$0xff] }
  0xe3   : > { %976 = vst [vmem:[%s4165_s26 + $0xcd0] sm:$0xff] %v975_v26  ;;  %v981_v29 = vld [vmem:[%s4160_s25 + $0x18e8] sm:$0xff]  ;;  %978 = vst [vmem:[%s4165_s26 + $0xcd8] sm:$0xff] %v977_v27  ;;  %v983_v30 = vld [vmem:[%s4160_s25 + $0x18f0] sm:$0xff] }
  0xe4   : > { %980 = vst [vmem:[%s4165_s26 + $0xce0] sm:$0xff] %v979_v28  ;;  %982 = vst [vmem:[%s4165_s26 + $0xce8] sm:$0xff] %v981_v29  ;;  %v985_v31 = vld [vmem:[%s4160_s25 + $0x18f8] sm:$0xff]  ;;  %v987_v32 = vld [vmem:[%s4160_s25 + $0x1a00] sm:$0xff] }
  0xe5   : > { %984 = vst [vmem:[%s4165_s26 + $0xcf0] sm:$0xff] %v983_v30  ;;  %986 = vst [vmem:[%s4165_s26 + $0xcf8] sm:$0xff] %v985_v31  ;;  %v989_v33 = vld [vmem:[%s4160_s25 + $0x1a08] sm:$0xff]  ;;  %v991_v34 = vld [vmem:[%s4160_s25 + $0x1a10] sm:$0xff] }
  0xe6   : > { %988 = vst [vmem:[%s4165_s26 + $0xd00] sm:$0xff] %v987_v32  ;;  %v993_v35 = vld [vmem:[%s4160_s25 + $0x1a18] sm:$0xff]  ;;  %990 = vst [vmem:[%s4165_s26 + $0xd08] sm:$0xff] %v989_v33  ;;  %v995_v36 = vld [vmem:[%s4160_s25 + $0x1a20] sm:$0xff] }
  0xe7   : > { %992 = vst [vmem:[%s4165_s26 + $0xd10] sm:$0xff] %v991_v34  ;;  %994 = vst [vmem:[%s4165_s26 + $0xd18] sm:$0xff] %v993_v35  ;;  %v997_v37 = vld [vmem:[%s4160_s25 + $0x1a28] sm:$0xff]  ;;  %v999_v38 = vld [vmem:[%s4160_s25 + $0x1a30] sm:$0xff] }
  0xe8   : > { %996 = vst [vmem:[%s4165_s26 + $0xd20] sm:$0xff] %v995_v36  ;;  %998 = vst [vmem:[%s4165_s26 + $0xd28] sm:$0xff] %v997_v37  ;;  %v1001_v39 = vld [vmem:[%s4160_s25 + $0x1a38] sm:$0xff]  ;;  %v1003_v40 = vld [vmem:[%s4160_s25 + $0x1a40] sm:$0xff] }
  0xe9   : > { %1000 = vst [vmem:[%s4165_s26 + $0xd30] sm:$0xff] %v999_v38  ;;  %v1005_v41 = vld [vmem:[%s4160_s25 + $0x1a48] sm:$0xff]  ;;  %1002 = vst [vmem:[%s4165_s26 + $0xd38] sm:$0xff] %v1001_v39  ;;  %v1007_v42 = vld [vmem:[%s4160_s25 + $0x1a50] sm:$0xff] }
  0xea   : > { %1004 = vst [vmem:[%s4165_s26 + $0xd40] sm:$0xff] %v1003_v40  ;;  %1006 = vst [vmem:[%s4165_s26 + $0xd48] sm:$0xff] %v1005_v41  ;;  %v1009_v43 = vld [vmem:[%s4160_s25 + $0x1a58] sm:$0xff]  ;;  %v1011_v44 = vld [vmem:[%s4160_s25 + $0x1a60] sm:$0xff] }
  0xeb   : > { %1008 = vst [vmem:[%s4165_s26 + $0xd50] sm:$0xff] %v1007_v42  ;;  %1010 = vst [vmem:[%s4165_s26 + $0xd58] sm:$0xff] %v1009_v43  ;;  %v1013_v45 = vld [vmem:[%s4160_s25 + $0x1a68] sm:$0xff]  ;;  %v1015_v46 = vld [vmem:[%s4160_s25 + $0x1a70] sm:$0xff] }
  0xec   : > { %1012 = vst [vmem:[%s4165_s26 + $0xd60] sm:$0xff] %v1011_v44  ;;  %v1017_v47 = vld [vmem:[%s4160_s25 + $0x1a78] sm:$0xff]  ;;  %1014 = vst [vmem:[%s4165_s26 + $0xd68] sm:$0xff] %v1013_v45  ;;  %v1019_v48 = vld [vmem:[%s4160_s25 + $0x1a80] sm:$0xff] }
  0xed   : > { %1016 = vst [vmem:[%s4165_s26 + $0xd70] sm:$0xff] %v1015_v46  ;;  %1018 = vst [vmem:[%s4165_s26 + $0xd78] sm:$0xff] %v1017_v47  ;;  %v1021_v49 = vld [vmem:[%s4160_s25 + $0x1a88] sm:$0xff]  ;;  %v1023_v50 = vld [vmem:[%s4160_s25 + $0x1a90] sm:$0xff] }
  0xee   : > { %1020 = vst [vmem:[%s4165_s26 + $0xd80] sm:$0xff] %v1019_v48  ;;  %1022 = vst [vmem:[%s4165_s26 + $0xd88] sm:$0xff] %v1021_v49  ;;  %v1025_v51 = vld [vmem:[%s4160_s25 + $0x1a98] sm:$0xff]  ;;  %v1027_v52 = vld [vmem:[%s4160_s25 + $0x1aa0] sm:$0xff] }
  0xef   : > { %1024 = vst [vmem:[%s4165_s26 + $0xd90] sm:$0xff] %v1023_v50  ;;  %v1029_v53 = vld [vmem:[%s4160_s25 + $0x1aa8] sm:$0xff]  ;;  %1026 = vst [vmem:[%s4165_s26 + $0xd98] sm:$0xff] %v1025_v51  ;;  %v1031_v54 = vld [vmem:[%s4160_s25 + $0x1ab0] sm:$0xff] }
  0xf0   : > { %1028 = vst [vmem:[%s4165_s26 + $0xda0] sm:$0xff] %v1027_v52  ;;  %1030 = vst [vmem:[%s4165_s26 + $0xda8] sm:$0xff] %v1029_v53  ;;  %v1033_v55 = vld [vmem:[%s4160_s25 + $0x1ab8] sm:$0xff]  ;;  %v1035_v56 = vld [vmem:[%s4160_s25 + $0x1ac0] sm:$0xff] }
  0xf1   : > { %1032 = vst [vmem:[%s4165_s26 + $0xdb0] sm:$0xff] %v1031_v54  ;;  %1034 = vst [vmem:[%s4165_s26 + $0xdb8] sm:$0xff] %v1033_v55  ;;  %v1037_v57 = vld [vmem:[%s4160_s25 + $0x1ac8] sm:$0xff]  ;;  %v1039_v58 = vld [vmem:[%s4160_s25 + $0x1ad0] sm:$0xff] }
  0xf2   : > { %1036 = vst [vmem:[%s4165_s26 + $0xdc0] sm:$0xff] %v1035_v56  ;;  %v1041_v59 = vld [vmem:[%s4160_s25 + $0x1ad8] sm:$0xff]  ;;  %1038 = vst [vmem:[%s4165_s26 + $0xdc8] sm:$0xff] %v1037_v57  ;;  %v1043_v60 = vld [vmem:[%s4160_s25 + $0x1ae0] sm:$0xff] }
  0xf3   : > { %1040 = vst [vmem:[%s4165_s26 + $0xdd0] sm:$0xff] %v1039_v58  ;;  %1042 = vst [vmem:[%s4165_s26 + $0xdd8] sm:$0xff] %v1041_v59  ;;  %v1045_v61 = vld [vmem:[%s4160_s25 + $0x1ae8] sm:$0xff]  ;;  %v1047_v62 = vld [vmem:[%s4160_s25 + $0x1af0] sm:$0xff] }
  0xf4   : > { %1044 = vst [vmem:[%s4165_s26 + $0xde0] sm:$0xff] %v1043_v60  ;;  %1046 = vst [vmem:[%s4165_s26 + $0xde8] sm:$0xff] %v1045_v61  ;;  %v1049_v63 = vld [vmem:[%s4160_s25 + $0x1af8] sm:$0xff]  ;;  %v1051_v0 = vld [vmem:[%s4160_s25 + $0x1c00] sm:$0xff] }
  0xf5   : > { %1048 = vst [vmem:[%s4165_s26 + $0xdf0] sm:$0xff] %v1047_v62  ;;  %v1053_v1 = vld [vmem:[%s4160_s25 + $0x1c08] sm:$0xff]  ;;  %1050 = vst [vmem:[%s4165_s26 + $0xdf8] sm:$0xff] %v1049_v63  ;;  %v1055_v2 = vld [vmem:[%s4160_s25 + $0x1c10] sm:$0xff] }
  0xf6   : > { %1052 = vst [vmem:[%s4165_s26 + $0xe00] sm:$0xff] %v1051_v0  ;;  %1054 = vst [vmem:[%s4165_s26 + $0xe08] sm:$0xff] %v1053_v1  ;;  %v1057_v3 = vld [vmem:[%s4160_s25 + $0x1c18] sm:$0xff]  ;;  %v1059_v4 = vld [vmem:[%s4160_s25 + $0x1c20] sm:$0xff] }
  0xf7   : > { %1056 = vst [vmem:[%s4165_s26 + $0xe10] sm:$0xff] %v1055_v2  ;;  %1058 = vst [vmem:[%s4165_s26 + $0xe18] sm:$0xff] %v1057_v3  ;;  %v1061_v5 = vld [vmem:[%s4160_s25 + $0x1c28] sm:$0xff]  ;;  %v1063_v6 = vld [vmem:[%s4160_s25 + $0x1c30] sm:$0xff] }
  0xf8   : > { %1060 = vst [vmem:[%s4165_s26 + $0xe20] sm:$0xff] %v1059_v4  ;;  %v1065_v7 = vld [vmem:[%s4160_s25 + $0x1c38] sm:$0xff]  ;;  %1062 = vst [vmem:[%s4165_s26 + $0xe28] sm:$0xff] %v1061_v5  ;;  %v1067_v8 = vld [vmem:[%s4160_s25 + $0x1c40] sm:$0xff] }
  0xf9   : > { %1064 = vst [vmem:[%s4165_s26 + $0xe30] sm:$0xff] %v1063_v6  ;;  %1066 = vst [vmem:[%s4165_s26 + $0xe38] sm:$0xff] %v1065_v7  ;;  %v1069_v9 = vld [vmem:[%s4160_s25 + $0x1c48] sm:$0xff]  ;;  %v1071_v10 = vld [vmem:[%s4160_s25 + $0x1c50] sm:$0xff] }
  0xfa   : > { %1068 = vst [vmem:[%s4165_s26 + $0xe40] sm:$0xff] %v1067_v8  ;;  %1070 = vst [vmem:[%s4165_s26 + $0xe48] sm:$0xff] %v1069_v9  ;;  %v1073_v11 = vld [vmem:[%s4160_s25 + $0x1c58] sm:$0xff]  ;;  %v1075_v12 = vld [vmem:[%s4160_s25 + $0x1c60] sm:$0xff] }
  0xfb   : > { %1072 = vst [vmem:[%s4165_s26 + $0xe50] sm:$0xff] %v1071_v10  ;;  %v1077_v13 = vld [vmem:[%s4160_s25 + $0x1c68] sm:$0xff]  ;;  %1074 = vst [vmem:[%s4165_s26 + $0xe58] sm:$0xff] %v1073_v11  ;;  %v1079_v14 = vld [vmem:[%s4160_s25 + $0x1c70] sm:$0xff] }
  0xfc   : > { %1076 = vst [vmem:[%s4165_s26 + $0xe60] sm:$0xff] %v1075_v12  ;;  %1078 = vst [vmem:[%s4165_s26 + $0xe68] sm:$0xff] %v1077_v13  ;;  %v1081_v15 = vld [vmem:[%s4160_s25 + $0x1c78] sm:$0xff]  ;;  %v1083_v16 = vld [vmem:[%s4160_s25 + $0x1c80] sm:$0xff] }
  0xfd   : > { %1080 = vst [vmem:[%s4165_s26 + $0xe70] sm:$0xff] %v1079_v14  ;;  %1082 = vst [vmem:[%s4165_s26 + $0xe78] sm:$0xff] %v1081_v15  ;;  %v1085_v17 = vld [vmem:[%s4160_s25 + $0x1c88] sm:$0xff]  ;;  %v1087_v18 = vld [vmem:[%s4160_s25 + $0x1c90] sm:$0xff] }
  0xfe   : > { %1084 = vst [vmem:[%s4165_s26 + $0xe80] sm:$0xff] %v1083_v16  ;;  %v1089_v19 = vld [vmem:[%s4160_s25 + $0x1c98] sm:$0xff]  ;;  %1086 = vst [vmem:[%s4165_s26 + $0xe88] sm:$0xff] %v1085_v17  ;;  %v1091_v20 = vld [vmem:[%s4160_s25 + $0x1ca0] sm:$0xff] }
  0xff   : > { %1088 = vst [vmem:[%s4165_s26 + $0xe90] sm:$0xff] %v1087_v18  ;;  %1090 = vst [vmem:[%s4165_s26 + $0xe98] sm:$0xff] %v1089_v19  ;;  %v1093_v21 = vld [vmem:[%s4160_s25 + $0x1ca8] sm:$0xff]  ;;  %v1095_v22 = vld [vmem:[%s4160_s25 + $0x1cb0] sm:$0xff] }
 0x100   : > { %1092 = vst [vmem:[%s4165_s26 + $0xea0] sm:$0xff] %v1091_v20  ;;  %1094 = vst [vmem:[%s4165_s26 + $0xea8] sm:$0xff] %v1093_v21  ;;  %v1097_v23 = vld [vmem:[%s4160_s25 + $0x1cb8] sm:$0xff]  ;;  %v1099_v24 = vld [vmem:[%s4160_s25 + $0x1cc0] sm:$0xff] }
 0x101   : > { %1096 = vst [vmem:[%s4165_s26 + $0xeb0] sm:$0xff] %v1095_v22  ;;  %v1101_v25 = vld [vmem:[%s4160_s25 + $0x1cc8] sm:$0xff]  ;;  %1098 = vst [vmem:[%s4165_s26 + $0xeb8] sm:$0xff] %v1097_v23  ;;  %v1103_v26 = vld [vmem:[%s4160_s25 + $0x1cd0] sm:$0xff] }
 0x102   : > { %1100 = vst [vmem:[%s4165_s26 + $0xec0] sm:$0xff] %v1099_v24  ;;  %1102 = vst [vmem:[%s4165_s26 + $0xec8] sm:$0xff] %v1101_v25  ;;  %v1105_v27 = vld [vmem:[%s4160_s25 + $0x1cd8] sm:$0xff]  ;;  %v1107_v28 = vld [vmem:[%s4160_s25 + $0x1ce0] sm:$0xff] }
 0x103   : > { %1104 = vst [vmem:[%s4165_s26 + $0xed0] sm:$0xff] %v1103_v26  ;;  %1106 = vst [vmem:[%s4165_s26 + $0xed8] sm:$0xff] %v1105_v27  ;;  %v1109_v29 = vld [vmem:[%s4160_s25 + $0x1ce8] sm:$0xff]  ;;  %v1111_v30 = vld [vmem:[%s4160_s25 + $0x1cf0] sm:$0xff] }
 0x104   : > { %1108 = vst [vmem:[%s4165_s26 + $0xee0] sm:$0xff] %v1107_v28  ;;  %v1113_v31 = vld [vmem:[%s4160_s25 + $0x1cf8] sm:$0xff]  ;;  %1110 = vst [vmem:[%s4165_s26 + $0xee8] sm:$0xff] %v1109_v29  ;;  %v1115_v32 = vld [vmem:[%s4160_s25 + $0x1e00] sm:$0xff] }
 0x105   : > { %1112 = vst [vmem:[%s4165_s26 + $0xef0] sm:$0xff] %v1111_v30  ;;  %1114 = vst [vmem:[%s4165_s26 + $0xef8] sm:$0xff] %v1113_v31  ;;  %v1117_v33 = vld [vmem:[%s4160_s25 + $0x1e08] sm:$0xff]  ;;  %v1119_v34 = vld [vmem:[%s4160_s25 + $0x1e10] sm:$0xff] }
 0x106   : > { %1116 = vst [vmem:[%s4165_s26 + $0xf00] sm:$0xff] %v1115_v32  ;;  %1118 = vst [vmem:[%s4165_s26 + $0xf08] sm:$0xff] %v1117_v33  ;;  %v1121_v35 = vld [vmem:[%s4160_s25 + $0x1e18] sm:$0xff]  ;;  %v1123_v36 = vld [vmem:[%s4160_s25 + $0x1e20] sm:$0xff] }
 0x107   : > { %1120 = vst [vmem:[%s4165_s26 + $0xf10] sm:$0xff] %v1119_v34  ;;  %v1125_v37 = vld [vmem:[%s4160_s25 + $0x1e28] sm:$0xff]  ;;  %1122 = vst [vmem:[%s4165_s26 + $0xf18] sm:$0xff] %v1121_v35  ;;  %v1127_v38 = vld [vmem:[%s4160_s25 + $0x1e30] sm:$0xff] }
 0x108   : > { %1124 = vst [vmem:[%s4165_s26 + $0xf20] sm:$0xff] %v1123_v36  ;;  %1126 = vst [vmem:[%s4165_s26 + $0xf28] sm:$0xff] %v1125_v37  ;;  %v1129_v39 = vld [vmem:[%s4160_s25 + $0x1e38] sm:$0xff]  ;;  %v1131_v40 = vld [vmem:[%s4160_s25 + $0x1e40] sm:$0xff] }
 0x109   : > { %1128 = vst [vmem:[%s4165_s26 + $0xf30] sm:$0xff] %v1127_v38  ;;  %1130 = vst [vmem:[%s4165_s26 + $0xf38] sm:$0xff] %v1129_v39  ;;  %v1133_v41 = vld [vmem:[%s4160_s25 + $0x1e48] sm:$0xff]  ;;  %v1135_v42 = vld [vmem:[%s4160_s25 + $0x1e50] sm:$0xff] }
 0x10a   : > { %1132 = vst [vmem:[%s4165_s26 + $0xf40] sm:$0xff] %v1131_v40  ;;  %v1137_v43 = vld [vmem:[%s4160_s25 + $0x1e58] sm:$0xff]  ;;  %1134 = vst [vmem:[%s4165_s26 + $0xf48] sm:$0xff] %v1133_v41  ;;  %v1139_v44 = vld [vmem:[%s4160_s25 + $0x1e60] sm:$0xff] }
 0x10b   : > { %1136 = vst [vmem:[%s4165_s26 + $0xf50] sm:$0xff] %v1135_v42  ;;  %1138 = vst [vmem:[%s4165_s26 + $0xf58] sm:$0xff] %v1137_v43  ;;  %v1141_v45 = vld [vmem:[%s4160_s25 + $0x1e68] sm:$0xff]  ;;  %v1143_v46 = vld [vmem:[%s4160_s25 + $0x1e70] sm:$0xff] }
 0x10c   : > { %1140 = vst [vmem:[%s4165_s26 + $0xf60] sm:$0xff] %v1139_v44  ;;  %1142 = vst [vmem:[%s4165_s26 + $0xf68] sm:$0xff] %v1141_v45  ;;  %v1145_v47 = vld [vmem:[%s4160_s25 + $0x1e78] sm:$0xff]  ;;  %v1147_v48 = vld [vmem:[%s4160_s25 + $0x1e80] sm:$0xff] }
 0x10d   : > { %1144 = vst [vmem:[%s4165_s26 + $0xf70] sm:$0xff] %v1143_v46  ;;  %v1149_v49 = vld [vmem:[%s4160_s25 + $0x1e88] sm:$0xff]  ;;  %1146 = vst [vmem:[%s4165_s26 + $0xf78] sm:$0xff] %v1145_v47  ;;  %v1151_v50 = vld [vmem:[%s4160_s25 + $0x1e90] sm:$0xff] }
 0x10e   : > { %1148 = vst [vmem:[%s4165_s26 + $0xf80] sm:$0xff] %v1147_v48  ;;  %1150 = vst [vmem:[%s4165_s26 + $0xf88] sm:$0xff] %v1149_v49  ;;  %v1153_v51 = vld [vmem:[%s4160_s25 + $0x1e98] sm:$0xff]  ;;  %v1155_v52 = vld [vmem:[%s4160_s25 + $0x1ea0] sm:$0xff] }
 0x10f   : > { %1152 = vst [vmem:[%s4165_s26 + $0xf90] sm:$0xff] %v1151_v50  ;;  %1154 = vst [vmem:[%s4165_s26 + $0xf98] sm:$0xff] %v1153_v51  ;;  %v1157_v53 = vld [vmem:[%s4160_s25 + $0x1ea8] sm:$0xff]  ;;  %v1159_v54 = vld [vmem:[%s4160_s25 + $0x1eb0] sm:$0xff] }
 0x110   : > { %1156 = vst [vmem:[%s4165_s26 + $0xfa0] sm:$0xff] %v1155_v52  ;;  %v1161_v55 = vld [vmem:[%s4160_s25 + $0x1eb8] sm:$0xff]  ;;  %1158 = vst [vmem:[%s4165_s26 + $0xfa8] sm:$0xff] %v1157_v53  ;;  %v1163_v56 = vld [vmem:[%s4160_s25 + $0x1ec0] sm:$0xff] }
 0x111   : > { %1160 = vst [vmem:[%s4165_s26 + $0xfb0] sm:$0xff] %v1159_v54  ;;  %1162 = vst [vmem:[%s4165_s26 + $0xfb8] sm:$0xff] %v1161_v55  ;;  %v1165_v57 = vld [vmem:[%s4160_s25 + $0x1ec8] sm:$0xff]  ;;  %v1167_v58 = vld [vmem:[%s4160_s25 + $0x1ed0] sm:$0xff] }
 0x112   : > { %1164 = vst [vmem:[%s4165_s26 + $0xfc0] sm:$0xff] %v1163_v56  ;;  %1166 = vst [vmem:[%s4165_s26 + $0xfc8] sm:$0xff] %v1165_v57  ;;  %v1169_v59 = vld [vmem:[%s4160_s25 + $0x1ed8] sm:$0xff]  ;;  %v1171_v60 = vld [vmem:[%s4160_s25 + $0x1ee0] sm:$0xff] }
 0x113   : > { %1168 = vst [vmem:[%s4165_s26 + $0xfd0] sm:$0xff] %v1167_v58  ;;  %v1173_v61 = vld [vmem:[%s4160_s25 + $0x1ee8] sm:$0xff]  ;;  %1170 = vst [vmem:[%s4165_s26 + $0xfd8] sm:$0xff] %v1169_v59  ;;  %v1175_v62 = vld [vmem:[%s4160_s25 + $0x1ef0] sm:$0xff] }
 0x114   : > { %1172 = vst [vmem:[%s4165_s26 + $0xfe0] sm:$0xff] %v1171_v60  ;;  %1174 = vst [vmem:[%s4165_s26 + $0xfe8] sm:$0xff] %v1173_v61  ;;  %v1177_v63 = vld [vmem:[%s4160_s25 + $0x1ef8] sm:$0xff] }
 0x115   : > { %1176 = vst [vmem:[%s4165_s26 + $0xff0] sm:$0xff] %v1175_v62  ;;  %1178 = vst [vmem:[%s4165_s26 + $0xff8] sm:$0xff] %v1177_v63 }
 0x116 PF: > { %p4003_p8 = scmp.ge.s32.totalorder %s4094_s13, 1  ;;  %p1183_p9 = scmp.lt.s32.totalorder %s4094_s13, 3 }
 0x118   : > { %p1184_p10 = pnand %p4003_p8, %p1183_p9 }
 0x119   : > { %v1739_v0 = vld [vmem:[%s7863_s1 + $0x10] sm:$0xff] (!%p1184_p10)  ;;  %v1737_v1 = vld [vmem:[%s7863_s1] sm:$0xff] (!%p1184_p10)  ;;  %v4096_v2 = vmov (!%p1184_p10), 0   ;;  %v1740_v3 = vld [vmem:[%s7863_s1 + $0x18] sm:$0xff] (!%p1184_p10)  ;;  %s1190_s17 = sand.u32 (!%p1184_p10), 1, %s4078_s9  }
 0x11a   : > { %1187 = sbr.rel (%p1184_p10) target bundleno = 926 (0x39e), region = 47  ;;  %4055 = vset.pattern.permute.xlu1 (!%p1184_p10), %v4096_v2  ;;  %4054 = vset.pattern.permute.xlu0 (!%p1184_p10), %v4096_v2  ;;  %v1738_v4 = vld [vmem:[%s7863_s1 + $0x8] sm:$0xff] (!%p1184_p10)  ;;  %v1741_v6 = vld [vmem:[%s7863_s1 + $0x20] sm:$0xff] (!%p1184_p10)  ;;  %v1744_v7 = vld [vmem:[%s7863_s1 + $0x38] sm:$0xff] (!%p1184_p10)  ;;  %s5239_s20 = sshll.u32 (!%p1184_p10), %s1190_s17, 12 }
 0x11b   : > { %1765 = vperm.xlu1 (!%p1184_p10), %4055, %v1739_v0   ;;  %1755 = vperm.xlu0 (!%p1184_p10), %4054, %v1737_v1   ;;  %v1742_v5 = vld [vmem:[%s7863_s1 + $0x28] sm:$0xff] (!%p1184_p10)  ;;  %v1743_v8 = vld [vmem:[%s7863_s1 + $0x30] sm:$0xff] (!%p1184_p10)  ;;  %v1745_v10 = vld [vmem:[%s7863_s1 + $0x40] sm:$0xff] (!%p1184_p10)  ;;  %s5242_s21 = scalar_lea.vmem (!%p1184_p10), [#allocation2], %s5239_s20  ;;  %s5291_s9 = scalar_lea.vmem (!%p1184_p10), [#allocation3], %s5239_s20 }
 0x11c   : > { %v1746_v9 = vld [vmem:[%s7863_s1 + $0x48] sm:$0xff] (!%p1184_p10)  ;;  %v1748_v11 = vld [vmem:[%s7863_s1 + $0x58] sm:$0xff] (!%p1184_p10)  ;;  %v1747_v12 = vld [vmem:[%s7863_s1 + $0x50] sm:$0xff] (!%p1184_p10) }
 0x11d   : > { %v1750_v13 = vld [vmem:[%s7863_s1 + $0x68] sm:$0xff] (!%p1184_p10)  ;;  %v1749_v14 = vld [vmem:[%s7863_s1 + $0x60] sm:$0xff] (!%p1184_p10)  ;;  %v1752_v15 = vld [vmem:[%s7863_s1 + $0x78] sm:$0xff] (!%p1184_p10) }
 0x11e   : > { %v1751_v16 = vld [vmem:[%s7863_s1 + $0x70] sm:$0xff] (!%p1184_p10)  ;;  %v1289_v17 = vld [vmem:[%s5242_s21 + $0x200] sm:$0xff] (!%p1184_p10)  ;;  %v1290_v18 = vld [vmem:[%s5242_s21 + $0x208] sm:$0xff] (!%p1184_p10) }
 0x11f   : > { %1770 = vperm.xlu1 (!%p1184_p10), %4055, %v1740_v3   ;;  %1760 = vperm.xlu0 (!%p1184_p10), %4054, %v1738_v4   ;;  %v1291_v19 = vld [vmem:[%s5242_s21 + $0x210] sm:$0xff] (!%p1184_p10)  ;;  %v1292_v20 = vld [vmem:[%s5242_s21 + $0x218] sm:$0xff] (!%p1184_p10)  ;;  %v1293_v21 = vld [vmem:[%s5242_s21 + $0x220] sm:$0xff] (!%p1184_p10) }
 0x120   : > { %v1294_v22 = vld [vmem:[%s5242_s21 + $0x228] sm:$0xff] (!%p1184_p10)  ;;  %v1295_v23 = vld [vmem:[%s5242_s21 + $0x230] sm:$0xff] (!%p1184_p10)  ;;  %v1296_v24 = vld [vmem:[%s5242_s21 + $0x238] sm:$0xff] (!%p1184_p10) }
 0x121   : > { %v1297_v25 = vld [vmem:[%s5242_s21 + $0x240] sm:$0xff]  ;;  %v1298_v26 = vld [vmem:[%s5242_s21 + $0x248] sm:$0xff]  ;;  %v1299_v27 = vld [vmem:[%s5242_s21 + $0x250] sm:$0xff]  ;;  %s4012_s22 = sshll.u32 (%p4147_p6), %s4086_s11, 8 }
 0x122   : > { %v1300_v28 = vld [vmem:[%s5242_s21 + $0x258] sm:$0xff]  ;;  %v1301_v29 = vld [vmem:[%s5242_s21 + $0x260] sm:$0xff]  ;;  %v1302_v30 = vld [vmem:[%s5242_s21 + $0x268] sm:$0xff]  ;;  %s6824_s25 = scalar_lea.vmem (%p4147_p6), %s7864_s2, %s4012_s22 }
 0x123   : > { %1780 = vperm.xlu1 %4055, %v1742_v5   ;;  %1775 = vperm.xlu0 %4054, %v1741_v6   ;;  %v1303_v31 = vld [vmem:[%s5242_s21 + $0x270] sm:$0xff]  ;;  %v1304_v32 = vld [vmem:[%s5242_s21 + $0x278] sm:$0xff]  ;;  %v1305_v34 = vld [vmem:[%s5242_s21 + $0x280] sm:$0xff] }
 0x124   : > { %v1306_v35 = vld [vmem:[%s5242_s21 + $0x288] sm:$0xff]  ;;  %v1307_v36 = vld [vmem:[%s5242_s21 + $0x290] sm:$0xff]  ;;  %v1308_v37 = vld [vmem:[%s5242_s21 + $0x298] sm:$0xff] }
 0x125   : > { %v1309_v38 = vld [vmem:[%s5242_s21 + $0x2a0] sm:$0xff]  ;;  %v1310_v39 = vld [vmem:[%s5242_s21 + $0x2a8] sm:$0xff]  ;;  %v1311_v40 = vld [vmem:[%s5242_s21 + $0x2b0] sm:$0xff] }
 0x126   : > { %v1312_v41 = vld [vmem:[%s5242_s21 + $0x2b8] sm:$0xff]  ;;  %v1313_v46 = vld [vmem:[%s5242_s21 + $0x2c0] sm:$0xff]  ;;  %v1314_v47 = vld [vmem:[%s5242_s21 + $0x2c8] sm:$0xff] }
 0x127   : > { %1790 = vperm.xlu1 %4055, %v1744_v7   ;;  %1785 = vperm.xlu0 %4054, %v1743_v8   ;;  %v1315_v48 = vld [vmem:[%s5242_s21 + $0x2d0] sm:$0xff]  ;;  %v1316_v49 = vld [vmem:[%s5242_s21 + $0x2d8] sm:$0xff]  ;;  %v1317_v54 = vld [vmem:[%s5242_s21 + $0x2e0] sm:$0xff] }
 0x128   : > { %v1318_v55 = vld [vmem:[%s5242_s21 + $0x2e8] sm:$0xff]  ;;  %v1319_v56 = vld [vmem:[%s5242_s21 + $0x2f0] sm:$0xff]  ;;  %v1320_v57 = vld [vmem:[%s5242_s21 + $0x2f8] sm:$0xff] }
 0x129   : > { %v1225_v2 = vld [vmem:[%s5242_s21] sm:$0xff]  ;;  %v1226_v3 = vld [vmem:[%s5242_s21 + $0x8] sm:$0xff]  ;;  %v1227_v4 = vld [vmem:[%s5242_s21 + $0x10] sm:$0xff] }
 0x12a   : > { %v1228_v5 = vld [vmem:[%s5242_s21 + $0x18] sm:$0xff] }
 0x12b   : > { %1800 = vperm.xlu1 %4055, %v1746_v9   ;;  %1795 = vperm.xlu0 %4054, %v1745_v10   ;;  %v1229_v10 = vld [vmem:[%s5242_s21 + $0x20] sm:$0xff] }
 0x12f   : > { %1810 = vperm.xlu1 %4055, %v1748_v11   ;;  %1805 = vperm.xlu0 %4054, %v1747_v12   ;;  %v1230_v11 = vld [vmem:[%s5242_s21 + $0x28] sm:$0xff]  ;;  %v1231_v12 = vld [vmem:[%s5242_s21 + $0x30] sm:$0xff] }
 0x133   : > { %1820 = vperm.xlu1 %4055, %v1750_v13   ;;  %1815 = vperm.xlu0 %4054, %v1749_v14   ;;  %v1232_v13 = vld [vmem:[%s5242_s21 + $0x38] sm:$0xff] }
 0x137   : > { %1830 = vperm.xlu1 %4055, %v1752_v15   ;;  %1825 = vperm.xlu0 %4054, %v1751_v16  }
 0x19a   : > { %v5260_v33 = vpop.permute.xlu1 %1765 }
 0x19b   : > { %v1897_v42 = vmul.f32 %v5260_v33, %v1289_v17  ;;  %v1898_v43 = vmul.f32 %v5260_v33, %v1290_v18  ;;  %v1899_v44 = vmul.f32 %v5260_v33, %v1291_v19  ;;  %v1900_v45 = vmul.f32 %v5260_v33, %v1292_v20  ;;  %v5329_v18 = vpop.permute.xlu0 %1755  ;;  %v1233_v19 = vld [vmem:[%s5242_s21 + $0x40] sm:$0xff]  ;;  %v1234_v20 = vld [vmem:[%s5242_s21 + $0x48] sm:$0xff] }
 0x19c   : > { %v1901_v50 = vmul.f32 %v5260_v33, %v1293_v21  ;;  %v1902_v51 = vmul.f32 %v5260_v33, %v1294_v22  ;;  %v1903_v52 = vmul.f32 %v5260_v33, %v1295_v23  ;;  %v1904_v53 = vmul.f32 %v5260_v33, %v1296_v24  ;;  %v1235_v21 = vld [vmem:[%s5242_s21 + $0x50] sm:$0xff]  ;;  %v1236_v22 = vld [vmem:[%s5242_s21 + $0x58] sm:$0xff] }
 0x19d   : > { %v1905_v58 = vmul.f32 %v5260_v33, %v1297_v25  ;;  %v1906_v59 = vmul.f32 %v5260_v33, %v1298_v26  ;;  %v1907_v60 = vmul.f32 %v5260_v33, %v1299_v27  ;;  %v1908_v61 = vmul.f32 %v5260_v33, %v1300_v28  ;;  %2409 = vst [vmem:[%s5291_s9 + $0x200] sm:$0xff] %v1897_v42  ;;  %v1237_v27 = vld [vmem:[%s5242_s21 + $0x60] sm:$0xff]  ;;  %v1238_v28 = vld [vmem:[%s5242_s21 + $0x68] sm:$0xff]  ;;  %v1248_v42 = vld [vmem:[%s5242_s21 + $0xb8] sm:$0xff] }
 0x19e   : > { %2410 = vst [vmem:[%s5291_s9 + $0x208] sm:$0xff] %v1898_v43  ;;  %2411 = vst [vmem:[%s5291_s9 + $0x210] sm:$0xff] %v1899_v44  ;;  %v1909_v62 = vmul.f32 %v5260_v33, %v1301_v29  ;;  %v1910_v63 = vmul.f32 %v5260_v33, %v1302_v30  ;;  %v1911_v0 = vmul.f32 %v5260_v33, %v1303_v31  ;;  %v1239_v29 = vld [vmem:[%s5242_s21 + $0x70] sm:$0xff]  ;;  %v1240_v30 = vld [vmem:[%s5242_s21 + $0x78] sm:$0xff] }
 0x19f   : > { %2412 = vst [vmem:[%s5291_s9 + $0x218] sm:$0xff] %v1900_v45  ;;  %v1912_v1 = vmul.f32 %v5260_v33, %v1304_v32  ;;  %2413 = vst [vmem:[%s5291_s9 + $0x220] sm:$0xff] %v1901_v50  ;;  %v1913_v6 = vmul.f32 %v5260_v33, %v1305_v34  ;;  %v1914_v7 = vmul.f32 %v5260_v33, %v1306_v35  ;;  %v1252_v50 = vld [vmem:[%s5242_s21 + $0xd8] sm:$0xff] }
 0x1a0   : > { %2414 = vst [vmem:[%s5291_s9 + $0x228] sm:$0xff] %v1902_v51  ;;  %2415 = vst [vmem:[%s5291_s9 + $0x230] sm:$0xff] %v1903_v52  ;;  %v1915_v8 = vmul.f32 %v5260_v33, %v1307_v36  ;;  %v1916_v9 = vmul.f32 %v5260_v33, %v1308_v37  ;;  %v1917_v14 = vmul.f32 %v5260_v33, %v1309_v38  ;;  %v1241_v36 = vld [vmem:[%s5242_s21 + $0x80] sm:$0xff]  ;;  %v1242_v37 = vld [vmem:[%s5242_s21 + $0x88] sm:$0xff] }
 0x1a1   : > { %2416 = vst [vmem:[%s5291_s9 + $0x238] sm:$0xff] %v1904_v53  ;;  %2417 = vst [vmem:[%s5291_s9 + $0x240] sm:$0xff] %v1905_v58  ;;  %v1918_v15 = vmul.f32 %v5260_v33, %v1310_v39  ;;  %v1919_v16 = vmul.f32 %v5260_v33, %v1311_v40  ;;  %v1920_v17 = vmul.f32 %v5260_v33, %v1312_v41  ;;  %v1243_v38 = vld [vmem:[%s5242_s21 + $0x90] sm:$0xff]  ;;  %v1244_v39 = vld [vmem:[%s5242_s21 + $0x98] sm:$0xff] }
 0x1a2   : > { %2418 = vst [vmem:[%s5291_s9 + $0x248] sm:$0xff] %v1906_v59  ;;  %2419 = vst [vmem:[%s5291_s9 + $0x250] sm:$0xff] %v1907_v60  ;;  %v1921_v23 = vmul.f32 %v5260_v33, %v1313_v46  ;;  %v1922_v24 = vmul.f32 %v5260_v33, %v1314_v47  ;;  %v1923_v25 = vmul.f32 %v5260_v33, %v1315_v48  ;;  %v1246_v40 = vld [vmem:[%s5242_s21 + $0xa8] sm:$0xff]  ;;  %v1247_v41 = vld [vmem:[%s5242_s21 + $0xb0] sm:$0xff] }
 0x1a3   : > { %2420 = vst [vmem:[%s5291_s9 + $0x258] sm:$0xff] %v1908_v61  ;;  %2421 = vst [vmem:[%s5291_s9 + $0x260] sm:$0xff] %v1909_v62  ;;  %v1924_v26 = vmul.f32 %v5260_v33, %v1316_v49  ;;  %v1925_v31 = vmul.f32 %v5260_v33, %v1317_v54  ;;  %v1926_v32 = vmul.f32 %v5260_v33, %v1318_v55  ;;  %v1249_v47 = vld [vmem:[%s5242_s21 + $0xc0] sm:$0xff]  ;;  %v1250_v48 = vld [vmem:[%s5242_s21 + $0xc8] sm:$0xff] }
 0x1a4   : > { %2422 = vst [vmem:[%s5291_s9 + $0x268] sm:$0xff] %v1910_v63  ;;  %2423 = vst [vmem:[%s5291_s9 + $0x270] sm:$0xff] %v1911_v0  ;;  %v1927_v34 = vmul.f32 %v5260_v33, %v1319_v56  ;;  %v1928_v35 = vmul.f32 %v5260_v33, %v1320_v57  ;;  %v1245_v33 = vld [vmem:[%s5242_s21 + $0xa0] sm:$0xff]  ;;  %v1833_v43 = vmul.f32 %v5329_v18, %v1225_v2  ;;  %v1251_v49 = vld [vmem:[%s5242_s21 + $0xd0] sm:$0xff] }
 0x1a5   : > { %2424 = vst [vmem:[%s5291_s9 + $0x278] sm:$0xff] %v1912_v1  ;;  %2425 = vst [vmem:[%s5291_s9 + $0x280] sm:$0xff] %v1913_v6  ;;  %v1834_v44 = vmul.f32 %v5329_v18, %v1226_v3  ;;  %v1835_v45 = vmul.f32 %v5329_v18, %v1227_v4  ;;  %v1836_v46 = vmul.f32 %v5329_v18, %v1228_v5  ;;  %v1253_v55 = vld [vmem:[%s5242_s21 + $0xe0] sm:$0xff]  ;;  %v1254_v56 = vld [vmem:[%s5242_s21 + $0xe8] sm:$0xff] }
 0x1a6   : > { %2426 = vst [vmem:[%s5291_s9 + $0x288] sm:$0xff] %v1914_v7  ;;  %2427 = vst [vmem:[%s5291_s9 + $0x290] sm:$0xff] %v1915_v8  ;;  %v1837_v51 = vmul.f32 %v5329_v18, %v1229_v10  ;;  %v1838_v52 = vmul.f32 %v5329_v18, %v1230_v11  ;;  %v1839_v53 = vmul.f32 %v5329_v18, %v1231_v12  ;;  %v1255_v57 = vld [vmem:[%s5242_s21 + $0xf0] sm:$0xff]  ;;  %v1256_v58 = vld [vmem:[%s5242_s21 + $0xf8] sm:$0xff] }
 0x1a7   : > { %2428 = vst [vmem:[%s5291_s9 + $0x298] sm:$0xff] %v1916_v9  ;;  %2429 = vst [vmem:[%s5291_s9 + $0x2a0] sm:$0xff] %v1917_v14  ;;  %v1840_v54 = vmul.f32 %v5329_v18, %v1232_v13  ;;  %v1841_v59 = vmul.f32 %v5329_v18, %v1233_v19  ;;  %v1842_v60 = vmul.f32 %v5329_v18, %v1234_v20  ;;  %v1321_v3 = vld [vmem:[%s5242_s21 + $0x300] sm:$0xff]  ;;  %v1322_v4 = vld [vmem:[%s5242_s21 + $0x308] sm:$0xff]  ;;  %v5427_v20 = vpop.permute.xlu1 %1770 }
 0x1a8   : > { %2430 = vst [vmem:[%s5291_s9 + $0x2a8] sm:$0xff] %v1918_v15  ;;  %2431 = vst [vmem:[%s5291_s9 + $0x2b0] sm:$0xff] %v1919_v16  ;;  %v1843_v61 = vmul.f32 %v5329_v18, %v1235_v21  ;;  %v1844_v62 = vmul.f32 %v5329_v18, %v1236_v22  ;;  %v1845_v63 = vmul.f32 %v5329_v18, %v1237_v27  ;;  %v1323_v5 = vld [vmem:[%s5242_s21 + $0x310] sm:$0xff]  ;;  %v1324_v6 = vld [vmem:[%s5242_s21 + $0x318] sm:$0xff] }
 0x1a9   : > { %2432 = vst [vmem:[%s5291_s9 + $0x2b8] sm:$0xff] %v1920_v17  ;;  %2433 = vst [vmem:[%s5291_s9 + $0x2c0] sm:$0xff] %v1921_v23  ;;  %v1846_v0 = vmul.f32 %v5329_v18, %v1238_v28  ;;  %v1847_v1 = vmul.f32 %v5329_v18, %v1239_v29  ;;  %v1848_v2 = vmul.f32 %v5329_v18, %v1240_v30  ;;  %v1325_v11 = vld [vmem:[%s5242_s21 + $0x320] sm:$0xff]  ;;  %v1326_v12 = vld [vmem:[%s5242_s21 + $0x328] sm:$0xff] }
 0x1aa   : > { %2434 = vst [vmem:[%s5291_s9 + $0x2c8] sm:$0xff] %v1922_v24  ;;  %2435 = vst [vmem:[%s5291_s9 + $0x2d0] sm:$0xff] %v1923_v25  ;;  %v1849_v7 = vmul.f32 %v5329_v18, %v1241_v36  ;;  %v1850_v8 = vmul.f32 %v5329_v18, %v1242_v37  ;;  %v1851_v9 = vmul.f32 %v5329_v18, %v1243_v38  ;;  %v1327_v13 = vld [vmem:[%s5242_s21 + $0x330] sm:$0xff]  ;;  %v1328_v14 = vld [vmem:[%s5242_s21 + $0x338] sm:$0xff] }
 0x1ab   : > { %2436 = vst [vmem:[%s5291_s9 + $0x2d8] sm:$0xff] %v1924_v26  ;;  %2437 = vst [vmem:[%s5291_s9 + $0x2e0] sm:$0xff] %v1925_v31  ;;  %v1852_v10 = vmul.f32 %v5329_v18, %v1244_v39  ;;  %v1853_v15 = vmul.f32 %v5329_v18, %v1245_v33  ;;  %v1854_v16 = vmul.f32 %v5329_v18, %v1246_v40  ;;  %v1329_v21 = vld [vmem:[%s5242_s21 + $0x340] sm:$0xff]  ;;  %v1330_v22 = vld [vmem:[%s5242_s21 + $0x348] sm:$0xff] }
 0x1ac   : > { %2438 = vst [vmem:[%s5291_s9 + $0x2e8] sm:$0xff] %v1926_v32  ;;  %2439 = vst [vmem:[%s5291_s9 + $0x2f0] sm:$0xff] %v1927_v34  ;;  %v1855_v17 = vmul.f32 %v5329_v18, %v1247_v41  ;;  %v1856_v19 = vmul.f32 %v5329_v18, %v1248_v42  ;;  %v1331_v23 = vld [vmem:[%s5242_s21 + $0x350] sm:$0xff]  ;;  %v1332_v24 = vld [vmem:[%s5242_s21 + $0x358] sm:$0xff]  ;;  %v1857_v25 = vmul.f32 %v5329_v18, %v1249_v47 }
 0x1ad   : > { %2440 = vst [vmem:[%s5291_s9 + $0x2f8] sm:$0xff] %v1928_v35  ;;  %2345 = vst [vmem:[%s5291_s9] sm:$0xff] %v1833_v43  ;;  %v1858_v26 = vmul.f32 %v5329_v18, %v1250_v48  ;;  %v1859_v27 = vmul.f32 %v5329_v18, %v1251_v49  ;;  %v1860_v28 = vmul.f32 %v5329_v18, %v1252_v50  ;;  %v1333_v29 = vld [vmem:[%s5242_s21 + $0x360] sm:$0xff]  ;;  %v1334_v30 = vld [vmem:[%s5242_s21 + $0x368] sm:$0xff] }
 0x1ae   : > { %2346 = vst [vmem:[%s5291_s9 + $0x8] sm:$0xff] %v1834_v44  ;;  %2347 = vst [vmem:[%s5291_s9 + $0x10] sm:$0xff] %v1835_v45  ;;  %v1335_v31 = vld [vmem:[%s5242_s21 + $0x370] sm:$0xff]  ;;  %v1336_v32 = vld [vmem:[%s5242_s21 + $0x378] sm:$0xff]  ;;  %v1861_v34 = vmul.f32 %v5329_v18, %v1253_v55  ;;  %v1862_v35 = vmul.f32 %v5329_v18, %v1254_v56  ;;  %v1863_v36 = vmul.f32 %v5329_v18, %v1255_v57 }
 0x1af   : > { %2348 = vst [vmem:[%s5291_s9 + $0x18] sm:$0xff] %v1836_v46  ;;  %2349 = vst [vmem:[%s5291_s9 + $0x20] sm:$0xff] %v1837_v51  ;;  %v1864_v37 = vmul.f32 %v5329_v18, %v1256_v58  ;;  %v1337_v38 = vld [vmem:[%s5242_s21 + $0x380] sm:$0xff]  ;;  %v1338_v39 = vld [vmem:[%s5242_s21 + $0x388] sm:$0xff]  ;;  %v1929_v44 = vmul.f32 %v5427_v20, %v1321_v3  ;;  %v1930_v45 = vmul.f32 %v5427_v20, %v1322_v4 }
 0x1b0   : > { %2350 = vst [vmem:[%s5291_s9 + $0x28] sm:$0xff] %v1838_v52  ;;  %2351 = vst [vmem:[%s5291_s9 + $0x30] sm:$0xff] %v1839_v53  ;;  %v1339_v33 = vld [vmem:[%s5242_s21 + $0x390] sm:$0xff]  ;;  %v1340_v40 = vld [vmem:[%s5242_s21 + $0x398] sm:$0xff]  ;;  %v1931_v46 = vmul.f32 %v5427_v20, %v1323_v5  ;;  %v1932_v47 = vmul.f32 %v5427_v20, %v1324_v6  ;;  %v1933_v52 = vmul.f32 %v5427_v20, %v1325_v11 }
 0x1b1   : > { %2352 = vst [vmem:[%s5291_s9 + $0x38] sm:$0xff] %v1840_v54  ;;  %2353 = vst [vmem:[%s5291_s9 + $0x40] sm:$0xff] %v1841_v59  ;;  %v1341_v18 = vld [vmem:[%s5242_s21 + $0x3a0] sm:$0xff]  ;;  %v1342_v41 = vld [vmem:[%s5242_s21 + $0x3a8] sm:$0xff]  ;;  %v1934_v53 = vmul.f32 %v5427_v20, %v1326_v12  ;;  %v1935_v54 = vmul.f32 %v5427_v20, %v1327_v13  ;;  %v1936_v55 = vmul.f32 %v5427_v20, %v1328_v14 }
 0x1b2   : > { %2354 = vst [vmem:[%s5291_s9 + $0x48] sm:$0xff] %v1842_v60  ;;  %2355 = vst [vmem:[%s5291_s9 + $0x50] sm:$0xff] %v1843_v61  ;;  %v1343_v42 = vld [vmem:[%s5242_s21 + $0x3b0] sm:$0xff]  ;;  %v1344_v43 = vld [vmem:[%s5242_s21 + $0x3b8] sm:$0xff]  ;;  %v1937_v60 = vmul.f32 %v5427_v20, %v1329_v21  ;;  %v1938_v61 = vmul.f32 %v5427_v20, %v1330_v22  ;;  %v1944_v3 = vmul.f32 %v5427_v20, %v1336_v32  ;;  %v5525_v22 = vpop.permute.xlu0 %1760 }
 0x1b3   : > { %2356 = vst [vmem:[%s5291_s9 + $0x58] sm:$0xff] %v1844_v62  ;;  %2357 = vst [vmem:[%s5291_s9 + $0x60] sm:$0xff] %v1845_v63  ;;  %v1345_v48 = vld [vmem:[%s5242_s21 + $0x3c0] sm:$0xff]  ;;  %v1346_v49 = vld [vmem:[%s5242_s21 + $0x3c8] sm:$0xff]  ;;  %v1939_v62 = vmul.f32 %v5427_v20, %v1331_v23  ;;  %v1940_v63 = vmul.f32 %v5427_v20, %v1332_v24  ;;  %v1948_v11 = vmul.f32 %v5427_v20, %v1340_v40 }
 0x1b4   : > { %2358 = vst [vmem:[%s5291_s9 + $0x68] sm:$0xff] %v1846_v0  ;;  %2359 = vst [vmem:[%s5291_s9 + $0x70] sm:$0xff] %v1847_v1  ;;  %v1347_v50 = vld [vmem:[%s5242_s21 + $0x3d0] sm:$0xff]  ;;  %v1348_v51 = vld [vmem:[%s5242_s21 + $0x3d8] sm:$0xff]  ;;  %v1941_v0 = vmul.f32 %v5427_v20, %v1333_v29  ;;  %v1942_v1 = vmul.f32 %v5427_v20, %v1334_v30  ;;  %v1952_v21 = vmul.f32 %v5427_v20, %v1344_v43 }
 0x1b5   : > { %2360 = vst [vmem:[%s5291_s9 + $0x78] sm:$0xff] %v1848_v2  ;;  %2361 = vst [vmem:[%s5291_s9 + $0x80] sm:$0xff] %v1849_v7  ;;  %v1349_v56 = vld [vmem:[%s5242_s21 + $0x3e0] sm:$0xff]  ;;  %v1350_v57 = vld [vmem:[%s5242_s21 + $0x3e8] sm:$0xff]  ;;  %v1943_v2 = vmul.f32 %v5427_v20, %v1335_v31  ;;  %v1955_v29 = vmul.f32 %v5427_v20, %v1347_v50  ;;  %v1956_v30 = vmul.f32 %v5427_v20, %v1348_v51 }
 0x1b6   : > { %2362 = vst [vmem:[%s5291_s9 + $0x88] sm:$0xff] %v1850_v8  ;;  %2363 = vst [vmem:[%s5291_s9 + $0x90] sm:$0xff] %v1851_v9  ;;  %v1351_v58 = vld [vmem:[%s5242_s21 + $0x3f0] sm:$0xff]  ;;  %v1352_v59 = vld [vmem:[%s5242_s21 + $0x3f8] sm:$0xff]  ;;  %v1945_v8 = vmul.f32 %v5427_v20, %v1337_v38  ;;  %v1946_v9 = vmul.f32 %v5427_v20, %v1338_v39 }
 0x1b7   : > { %2364 = vst [vmem:[%s5291_s9 + $0x98] sm:$0xff] %v1852_v10  ;;  %2365 = vst [vmem:[%s5291_s9 + $0xa0] sm:$0xff] %v1853_v15  ;;  %v1257_v4 = vld [vmem:[%s5242_s21 + $0x100] sm:$0xff]  ;;  %v1258_v5 = vld [vmem:[%s5242_s21 + $0x108] sm:$0xff]  ;;  %v1947_v10 = vmul.f32 %v5427_v20, %v1339_v33  ;;  %v1959_v38 = vmul.f32 %v5427_v20, %v1351_v58  ;;  %v1960_v39 = vmul.f32 %v5427_v20, %v1352_v59 }
 0x1b8   : > { %2366 = vst [vmem:[%s5291_s9 + $0xa8] sm:$0xff] %v1854_v16  ;;  %2367 = vst [vmem:[%s5291_s9 + $0xb0] sm:$0xff] %v1855_v17  ;;  %v1259_v6 = vld [vmem:[%s5242_s21 + $0x110] sm:$0xff]  ;;  %v1260_v7 = vld [vmem:[%s5242_s21 + $0x118] sm:$0xff]  ;;  %v1949_v16 = vmul.f32 %v5427_v20, %v1341_v18  ;;  %v1950_v17 = vmul.f32 %v5427_v20, %v1342_v41 }
 0x1b9   : > { %2368 = vst [vmem:[%s5291_s9 + $0xb8] sm:$0xff] %v1856_v19  ;;  %2369 = vst [vmem:[%s5291_s9 + $0xc0] sm:$0xff] %v1857_v25  ;;  %v1261_v12 = vld [vmem:[%s5242_s21 + $0x120] sm:$0xff]  ;;  %v1262_v13 = vld [vmem:[%s5242_s21 + $0x128] sm:$0xff]  ;;  %v1951_v19 = vmul.f32 %v5427_v20, %v1343_v42 }
 0x1ba   : > { %2370 = vst [vmem:[%s5291_s9 + $0xc8] sm:$0xff] %v1858_v26  ;;  %2371 = vst [vmem:[%s5291_s9 + $0xd0] sm:$0xff] %v1859_v27  ;;  %v1263_v14 = vld [vmem:[%s5242_s21 + $0x130] sm:$0xff]  ;;  %v1264_v15 = vld [vmem:[%s5242_s21 + $0x138] sm:$0xff]  ;;  %v1953_v27 = vmul.f32 %v5427_v20, %v1345_v48  ;;  %v1868_v48 = vmul.f32 %v5525_v22, %v1260_v7 }
 0x1bb   : > { %2372 = vst [vmem:[%s5291_s9 + $0xd8] sm:$0xff] %v1860_v28  ;;  %2373 = vst [vmem:[%s5291_s9 + $0xe0] sm:$0xff] %v1861_v34  ;;  %v1265_v23 = vld [vmem:[%s5242_s21 + $0x140] sm:$0xff]  ;;  %v1266_v24 = vld [vmem:[%s5242_s21 + $0x148] sm:$0xff]  ;;  %v1954_v28 = vmul.f32 %v5427_v20, %v1346_v49 }
 0x1bc   : > { %2374 = vst [vmem:[%s5291_s9 + $0xe8] sm:$0xff] %v1862_v35  ;;  %2375 = vst [vmem:[%s5291_s9 + $0xf0] sm:$0xff] %v1863_v36  ;;  %v1267_v25 = vld [vmem:[%s5242_s21 + $0x150] sm:$0xff]  ;;  %v1268_v26 = vld [vmem:[%s5242_s21 + $0x158] sm:$0xff]  ;;  %v1957_v36 = vmul.f32 %v5427_v20, %v1349_v56  ;;  %v1872_v56 = vmul.f32 %v5525_v22, %v1264_v15 }
 0x1bd   : > { %2376 = vst [vmem:[%s5291_s9 + $0xf8] sm:$0xff] %v1864_v37  ;;  %2441 = vst [vmem:[%s5291_s9 + $0x300] sm:$0xff] %v1929_v44  ;;  %v1269_v31 = vld [vmem:[%s5242_s21 + $0x160] sm:$0xff]  ;;  %v1270_v32 = vld [vmem:[%s5242_s21 + $0x168] sm:$0xff]  ;;  %v1958_v37 = vmul.f32 %v5427_v20, %v1350_v57 }
 0x1be   : > { %2442 = vst [vmem:[%s5291_s9 + $0x308] sm:$0xff] %v1930_v45  ;;  %2443 = vst [vmem:[%s5291_s9 + $0x310] sm:$0xff] %v1931_v46  ;;  %v1271_v34 = vld [vmem:[%s5242_s21 + $0x170] sm:$0xff]  ;;  %v1272_v35 = vld [vmem:[%s5242_s21 + $0x178] sm:$0xff]  ;;  %v1865_v45 = vmul.f32 %v5525_v22, %v1257_v4  ;;  %v1866_v46 = vmul.f32 %v5525_v22, %v1258_v5 }
 0x1bf   : > { %2444 = vst [vmem:[%s5291_s9 + $0x318] sm:$0xff] %v1932_v47  ;;  %2445 = vst [vmem:[%s5291_s9 + $0x320] sm:$0xff] %v1933_v52  ;;  %v1273_v33 = vld [vmem:[%s5242_s21 + $0x180] sm:$0xff]  ;;  %v1274_v40 = vld [vmem:[%s5242_s21 + $0x188] sm:$0xff]  ;;  %v1867_v47 = vmul.f32 %v5525_v22, %v1259_v6  ;;  %v1880_v4 = vmul.f32 %v5525_v22, %v1272_v35 }
 0x1c0   : > { %2446 = vst [vmem:[%s5291_s9 + $0x328] sm:$0xff] %v1934_v53  ;;  %2447 = vst [vmem:[%s5291_s9 + $0x330] sm:$0xff] %v1935_v54  ;;  %v1275_v18 = vld [vmem:[%s5242_s21 + $0x190] sm:$0xff]  ;;  %v1276_v41 = vld [vmem:[%s5242_s21 + $0x198] sm:$0xff]  ;;  %v1869_v53 = vmul.f32 %v5525_v22, %v1261_v12  ;;  %v1870_v54 = vmul.f32 %v5525_v22, %v1262_v13 }
 0x1c1   : > { %2448 = vst [vmem:[%s5291_s9 + $0x338] sm:$0xff] %v1936_v55  ;;  %2449 = vst [vmem:[%s5291_s9 + $0x340] sm:$0xff] %v1937_v60  ;;  %v1277_v20 = vld [vmem:[%s5242_s21 + $0x1a0] sm:$0xff]  ;;  %v1278_v42 = vld [vmem:[%s5242_s21 + $0x1a8] sm:$0xff]  ;;  %v1871_v55 = vmul.f32 %v5525_v22, %v1263_v14  ;;  %v1884_v12 = vmul.f32 %v5525_v22, %v1276_v41 }
 0x1c2   : > { %2450 = vst [vmem:[%s5291_s9 + $0x348] sm:$0xff] %v1938_v61  ;;  %2451 = vst [vmem:[%s5291_s9 + $0x350] sm:$0xff] %v1939_v62  ;;  %v1279_v43 = vld [vmem:[%s5242_s21 + $0x1b0] sm:$0xff]  ;;  %v1280_v44 = vld [vmem:[%s5242_s21 + $0x1b8] sm:$0xff]  ;;  %v1873_v61 = vmul.f32 %v5525_v22, %v1265_v23  ;;  %v1874_v62 = vmul.f32 %v5525_v22, %v1266_v24  ;;  %v5623_v24 = vpop.permute.xlu1 %1780 }
 0x1c3   : > { %2452 = vst [vmem:[%s5291_s9 + $0x358] sm:$0xff] %v1940_v63  ;;  %2453 = vst [vmem:[%s5291_s9 + $0x360] sm:$0xff] %v1941_v0  ;;  %v1281_v49 = vld [vmem:[%s5242_s21 + $0x1c0] sm:$0xff]  ;;  %v1282_v50 = vld [vmem:[%s5242_s21 + $0x1c8] sm:$0xff]  ;;  %v1875_v63 = vmul.f32 %v5525_v22, %v1267_v25  ;;  %v1876_v0 = vmul.f32 %v5525_v22, %v1268_v26  ;;  %v1888_v23 = vmul.f32 %v5525_v22, %v1280_v44 }
 0x1c4   : > { %2454 = vst [vmem:[%s5291_s9 + $0x368] sm:$0xff] %v1942_v1  ;;  %2455 = vst [vmem:[%s5291_s9 + $0x370] sm:$0xff] %v1943_v2  ;;  %v1283_v51 = vld [vmem:[%s5242_s21 + $0x1d0] sm:$0xff]  ;;  %v1284_v52 = vld [vmem:[%s5242_s21 + $0x1d8] sm:$0xff]  ;;  %v1877_v1 = vmul.f32 %v5525_v22, %v1269_v31  ;;  %v1878_v2 = vmul.f32 %v5525_v22, %v1270_v32 }
 0x1c5   : > { %2456 = vst [vmem:[%s5291_s9 + $0x378] sm:$0xff] %v1944_v3  ;;  %2457 = vst [vmem:[%s5291_s9 + $0x380] sm:$0xff] %v1945_v8  ;;  %v1285_v57 = vld [vmem:[%s5242_s21 + $0x1e0] sm:$0xff]  ;;  %v1286_v58 = vld [vmem:[%s5242_s21 + $0x1e8] sm:$0xff]  ;;  %v1879_v3 = vmul.f32 %v5525_v22, %v1271_v34  ;;  %v1891_v31 = vmul.f32 %v5525_v22, %v1283_v51  ;;  %v1892_v32 = vmul.f32 %v5525_v22, %v1284_v52 }
 0x1c6   : > { %2458 = vst [vmem:[%s5291_s9 + $0x388] sm:$0xff] %v1946_v9  ;;  %2459 = vst [vmem:[%s5291_s9 + $0x390] sm:$0xff] %v1947_v10  ;;  %v1287_v59 = vld [vmem:[%s5242_s21 + $0x1f0] sm:$0xff]  ;;  %v1288_v60 = vld [vmem:[%s5242_s21 + $0x1f8] sm:$0xff]  ;;  %v1881_v9 = vmul.f32 %v5525_v22, %v1273_v33  ;;  %v1882_v10 = vmul.f32 %v5525_v22, %v1274_v40 }
 0x1c7   : > { %2460 = vst [vmem:[%s5291_s9 + $0x398] sm:$0xff] %v1948_v11  ;;  %2461 = vst [vmem:[%s5291_s9 + $0x3a0] sm:$0xff] %v1949_v16  ;;  %v1385_v5 = vld [vmem:[%s5242_s21 + $0x500] sm:$0xff]  ;;  %v1386_v6 = vld [vmem:[%s5242_s21 + $0x508] sm:$0xff]  ;;  %v1883_v11 = vmul.f32 %v5525_v22, %v1275_v18  ;;  %v1895_v33 = vmul.f32 %v5525_v22, %v1287_v59  ;;  %v1896_v40 = vmul.f32 %v5525_v22, %v1288_v60 }
 0x1c8   : > { %2462 = vst [vmem:[%s5291_s9 + $0x3a8] sm:$0xff] %v1950_v17  ;;  %2463 = vst [vmem:[%s5291_s9 + $0x3b0] sm:$0xff] %v1951_v19  ;;  %v1387_v7 = vld [vmem:[%s5242_s21 + $0x510] sm:$0xff]  ;;  %v1388_v8 = vld [vmem:[%s5242_s21 + $0x518] sm:$0xff]  ;;  %v1885_v17 = vmul.f32 %v5525_v22, %v1277_v20  ;;  %v1886_v19 = vmul.f32 %v5525_v22, %v1278_v42 }
 0x1c9   : > { %2464 = vst [vmem:[%s5291_s9 + $0x3b8] sm:$0xff] %v1952_v21  ;;  %2465 = vst [vmem:[%s5291_s9 + $0x3c0] sm:$0xff] %v1953_v27  ;;  %v1389_v13 = vld [vmem:[%s5242_s21 + $0x520] sm:$0xff]  ;;  %v1390_v14 = vld [vmem:[%s5242_s21 + $0x528] sm:$0xff]  ;;  %v1887_v21 = vmul.f32 %v5525_v22, %v1279_v43 }
 0x1ca   : > { %2466 = vst [vmem:[%s5291_s9 + $0x3c8] sm:$0xff] %v1954_v28  ;;  %2467 = vst [vmem:[%s5291_s9 + $0x3d0] sm:$0xff] %v1955_v29  ;;  %v1391_v15 = vld [vmem:[%s5242_s21 + $0x530] sm:$0xff]  ;;  %v1392_v16 = vld [vmem:[%s5242_s21 + $0x538] sm:$0xff]  ;;  %v1889_v29 = vmul.f32 %v5525_v22, %v1281_v49  ;;  %v1996_v49 = vmul.f32 %v5623_v24, %v1388_v8 }
 0x1cb   : > { %2468 = vst [vmem:[%s5291_s9 + $0x3d8] sm:$0xff] %v1956_v30  ;;  %2469 = vst [vmem:[%s5291_s9 + $0x3e0] sm:$0xff] %v1957_v36  ;;  %v1393_v25 = vld [vmem:[%s5242_s21 + $0x540] sm:$0xff]  ;;  %v1394_v26 = vld [vmem:[%s5242_s21 + $0x548] sm:$0xff]  ;;  %v1890_v30 = vmul.f32 %v5525_v22, %v1282_v50 }
 0x1cc   : > { %2470 = vst [vmem:[%s5291_s9 + $0x3e8] sm:$0xff] %v1958_v37  ;;  %2471 = vst [vmem:[%s5291_s9 + $0x3f0] sm:$0xff] %v1959_v38  ;;  %v1395_v27 = vld [vmem:[%s5242_s21 + $0x550] sm:$0xff]  ;;  %v1396_v28 = vld [vmem:[%s5242_s21 + $0x558] sm:$0xff]  ;;  %v1893_v38 = vmul.f32 %v5525_v22, %v1285_v57  ;;  %v2000_v57 = vmul.f32 %v5623_v24, %v1392_v16 }
 0x1cd   : > { %2472 = vst [vmem:[%s5291_s9 + $0x3f8] sm:$0xff] %v1960_v39  ;;  %2377 = vst [vmem:[%s5291_s9 + $0x100] sm:$0xff] %v1865_v45  ;;  %v1397_v34 = vld [vmem:[%s5242_s21 + $0x560] sm:$0xff]  ;;  %v1398_v35 = vld [vmem:[%s5242_s21 + $0x568] sm:$0xff]  ;;  %v1894_v39 = vmul.f32 %v5525_v22, %v1286_v58 }
 0x1ce   : > { %2378 = vst [vmem:[%s5291_s9 + $0x108] sm:$0xff] %v1866_v46  ;;  %2379 = vst [vmem:[%s5291_s9 + $0x110] sm:$0xff] %v1867_v47  ;;  %v1399_v36 = vld [vmem:[%s5242_s21 + $0x570] sm:$0xff]  ;;  %v1400_v37 = vld [vmem:[%s5242_s21 + $0x578] sm:$0xff]  ;;  %v1993_v46 = vmul.f32 %v5623_v24, %v1385_v5  ;;  %v1994_v47 = vmul.f32 %v5623_v24, %v1386_v6 }
 0x1cf   : > { %2380 = vst [vmem:[%s5291_s9 + $0x118] sm:$0xff] %v1868_v48  ;;  %2381 = vst [vmem:[%s5291_s9 + $0x120] sm:$0xff] %v1869_v53  ;;  %v1401_v18 = vld [vmem:[%s5242_s21 + $0x580] sm:$0xff]  ;;  %v1402_v41 = vld [vmem:[%s5242_s21 + $0x588] sm:$0xff]  ;;  %v1995_v48 = vmul.f32 %v5623_v24, %v1387_v7  ;;  %v2008_v5 = vmul.f32 %v5623_v24, %v1400_v37 }
 0x1d0   : > { %2382 = vst [vmem:[%s5291_s9 + $0x128] sm:$0xff] %v1870_v54  ;;  %2383 = vst [vmem:[%s5291_s9 + $0x130] sm:$0xff] %v1871_v55  ;;  %v1403_v20 = vld [vmem:[%s5242_s21 + $0x590] sm:$0xff]  ;;  %v1404_v42 = vld [vmem:[%s5242_s21 + $0x598] sm:$0xff]  ;;  %v1997_v54 = vmul.f32 %v5623_v24, %v1389_v13  ;;  %v1998_v55 = vmul.f32 %v5623_v24, %v1390_v14 }
 0x1d1   : > { %2384 = vst [vmem:[%s5291_s9 + $0x138] sm:$0xff] %v1872_v56  ;;  %2385 = vst [vmem:[%s5291_s9 + $0x140] sm:$0xff] %v1873_v61  ;;  %v1405_v22 = vld [vmem:[%s5242_s21 + $0x5a0] sm:$0xff]  ;;  %v1406_v43 = vld [vmem:[%s5242_s21 + $0x5a8] sm:$0xff]  ;;  %v1999_v56 = vmul.f32 %v5623_v24, %v1391_v15  ;;  %v2012_v13 = vmul.f32 %v5623_v24, %v1404_v42 }
 0x1d2   : > { %2386 = vst [vmem:[%s5291_s9 + $0x148] sm:$0xff] %v1874_v62  ;;  %2387 = vst [vmem:[%s5291_s9 + $0x150] sm:$0xff] %v1875_v63  ;;  %v1407_v44 = vld [vmem:[%s5242_s21 + $0x5b0] sm:$0xff]  ;;  %v1408_v45 = vld [vmem:[%s5242_s21 + $0x5b8] sm:$0xff]  ;;  %v2001_v62 = vmul.f32 %v5623_v24, %v1393_v25  ;;  %v2002_v63 = vmul.f32 %v5623_v24, %v1394_v26  ;;  %v5721_v26 = vpop.permute.xlu0 %1775 }
 0x1d3   : > { %2388 = vst [vmem:[%s5291_s9 + $0x158] sm:$0xff] %v1876_v0  ;;  %2389 = vst [vmem:[%s5291_s9 + $0x160] sm:$0xff] %v1877_v1  ;;  %v1409_v50 = vld [vmem:[%s5242_s21 + $0x5c0] sm:$0xff]  ;;  %v1410_v51 = vld [vmem:[%s5242_s21 + $0x5c8] sm:$0xff]  ;;  %v2003_v0 = vmul.f32 %v5623_v24, %v1395_v27  ;;  %v2004_v1 = vmul.f32 %v5623_v24, %v1396_v28  ;;  %v2016_v25 = vmul.f32 %v5623_v24, %v1408_v45 }
 0x1d4   : > { %2390 = vst [vmem:[%s5291_s9 + $0x168] sm:$0xff] %v1878_v2  ;;  %2391 = vst [vmem:[%s5291_s9 + $0x170] sm:$0xff] %v1879_v3  ;;  %v1411_v52 = vld [vmem:[%s5242_s21 + $0x5d0] sm:$0xff]  ;;  %v1412_v53 = vld [vmem:[%s5242_s21 + $0x5d8] sm:$0xff]  ;;  %v2005_v2 = vmul.f32 %v5623_v24, %v1397_v34  ;;  %v2006_v3 = vmul.f32 %v5623_v24, %v1398_v35 }
 0x1d5   : > { %2392 = vst [vmem:[%s5291_s9 + $0x178] sm:$0xff] %v1880_v4  ;;  %2393 = vst [vmem:[%s5291_s9 + $0x180] sm:$0xff] %v1881_v9  ;;  %v1413_v58 = vld [vmem:[%s5242_s21 + $0x5e0] sm:$0xff]  ;;  %v1414_v59 = vld [vmem:[%s5242_s21 + $0x5e8] sm:$0xff]  ;;  %v2007_v4 = vmul.f32 %v5623_v24, %v1399_v36  ;;  %v2019_v34 = vmul.f32 %v5623_v24, %v1411_v52  ;;  %v2020_v35 = vmul.f32 %v5623_v24, %v1412_v53 }
 0x1d6   : > { %2394 = vst [vmem:[%s5291_s9 + $0x188] sm:$0xff] %v1882_v10  ;;  %2395 = vst [vmem:[%s5291_s9 + $0x190] sm:$0xff] %v1883_v11  ;;  %v1415_v60 = vld [vmem:[%s5242_s21 + $0x5f0] sm:$0xff]  ;;  %v1416_v61 = vld [vmem:[%s5242_s21 + $0x5f8] sm:$0xff]  ;;  %v2009_v10 = vmul.f32 %v5623_v24, %v1401_v18  ;;  %v2010_v11 = vmul.f32 %v5623_v24, %v1402_v41 }
 0x1d7   : > { %2396 = vst [vmem:[%s5291_s9 + $0x198] sm:$0xff] %v1884_v12  ;;  %2397 = vst [vmem:[%s5291_s9 + $0x1a0] sm:$0xff] %v1885_v17  ;;  %v1353_v6 = vld [vmem:[%s5242_s21 + $0x400] sm:$0xff]  ;;  %v1354_v7 = vld [vmem:[%s5242_s21 + $0x408] sm:$0xff]  ;;  %v2011_v12 = vmul.f32 %v5623_v24, %v1403_v20  ;;  %v2023_v18 = vmul.f32 %v5623_v24, %v1415_v60  ;;  %v2024_v41 = vmul.f32 %v5623_v24, %v1416_v61 }
 0x1d8   : > { %2398 = vst [vmem:[%s5291_s9 + $0x1a8] sm:$0xff] %v1886_v19  ;;  %2399 = vst [vmem:[%s5291_s9 + $0x1b0] sm:$0xff] %v1887_v21  ;;  %v1355_v8 = vld [vmem:[%s5242_s21 + $0x410] sm:$0xff]  ;;  %v1356_v9 = vld [vmem:[%s5242_s21 + $0x418] sm:$0xff]  ;;  %v2013_v19 = vmul.f32 %v5623_v24, %v1405_v22  ;;  %v2014_v21 = vmul.f32 %v5623_v24, %v1406_v43 }
 0x1d9   : > { %2400 = vst [vmem:[%s5291_s9 + $0x1b8] sm:$0xff] %v1888_v23  ;;  %2401 = vst [vmem:[%s5291_s9 + $0x1c0] sm:$0xff] %v1889_v29  ;;  %v1357_v14 = vld [vmem:[%s5242_s21 + $0x420] sm:$0xff]  ;;  %v1358_v15 = vld [vmem:[%s5242_s21 + $0x428] sm:$0xff]  ;;  %v2015_v23 = vmul.f32 %v5623_v24, %v1407_v44 }
 0x1da   : > { %2402 = vst [vmem:[%s5291_s9 + $0x1c8] sm:$0xff] %v1890_v30  ;;  %2403 = vst [vmem:[%s5291_s9 + $0x1d0] sm:$0xff] %v1891_v31  ;;  %v1359_v16 = vld [vmem:[%s5242_s21 + $0x430] sm:$0xff]  ;;  %v1360_v17 = vld [vmem:[%s5242_s21 + $0x438] sm:$0xff]  ;;  %v2017_v31 = vmul.f32 %v5623_v24, %v1409_v50  ;;  %v1964_v50 = vmul.f32 %v5721_v26, %v1356_v9 }
 0x1db   : > { %2404 = vst [vmem:[%s5291_s9 + $0x1d8] sm:$0xff] %v1892_v32  ;;  %2405 = vst [vmem:[%s5291_s9 + $0x1e0] sm:$0xff] %v1893_v38  ;;  %v1361_v27 = vld [vmem:[%s5242_s21 + $0x440] sm:$0xff]  ;;  %v1362_v28 = vld [vmem:[%s5242_s21 + $0x448] sm:$0xff]  ;;  %v2018_v32 = vmul.f32 %v5623_v24, %v1410_v51 }
 0x1dc   : > { %2406 = vst [vmem:[%s5291_s9 + $0x1e8] sm:$0xff] %v1894_v39  ;;  %2407 = vst [vmem:[%s5291_s9 + $0x1f0] sm:$0xff] %v1895_v33  ;;  %v1363_v29 = vld [vmem:[%s5242_s21 + $0x450] sm:$0xff]  ;;  %v1364_v30 = vld [vmem:[%s5242_s21 + $0x458] sm:$0xff]  ;;  %v2021_v33 = vmul.f32 %v5623_v24, %v1413_v58  ;;  %v1968_v58 = vmul.f32 %v5721_v26, %v1360_v17 }
 0x1dd   : > { %2408 = vst [vmem:[%s5291_s9 + $0x1f8] sm:$0xff] %v1896_v40  ;;  %2505 = vst [vmem:[%s5291_s9 + $0x500] sm:$0xff] %v1993_v46  ;;  %v1365_v36 = vld [vmem:[%s5242_s21 + $0x460] sm:$0xff]  ;;  %v1366_v37 = vld [vmem:[%s5242_s21 + $0x468] sm:$0xff]  ;;  %v2022_v40 = vmul.f32 %v5623_v24, %v1414_v59 }
 0x1de   : > { %2506 = vst [vmem:[%s5291_s9 + $0x508] sm:$0xff] %v1994_v47  ;;  %2507 = vst [vmem:[%s5291_s9 + $0x510] sm:$0xff] %v1995_v48  ;;  %v1367_v38 = vld [vmem:[%s5242_s21 + $0x470] sm:$0xff]  ;;  %v1368_v39 = vld [vmem:[%s5242_s21 + $0x478] sm:$0xff]  ;;  %v1961_v47 = vmul.f32 %v5721_v26, %v1353_v6  ;;  %v1962_v48 = vmul.f32 %v5721_v26, %v1354_v7 }
 0x1df   : > { %2508 = vst [vmem:[%s5291_s9 + $0x518] sm:$0xff] %v1996_v49  ;;  %2509 = vst [vmem:[%s5291_s9 + $0x520] sm:$0xff] %v1997_v54  ;;  %v1369_v20 = vld [vmem:[%s5242_s21 + $0x480] sm:$0xff]  ;;  %v1370_v42 = vld [vmem:[%s5242_s21 + $0x488] sm:$0xff]  ;;  %v1963_v49 = vmul.f32 %v5721_v26, %v1355_v8  ;;  %v1976_v6 = vmul.f32 %v5721_v26, %v1368_v39 }
 0x1e0   : > { %2510 = vst [vmem:[%s5291_s9 + $0x528] sm:$0xff] %v1998_v55  ;;  %2511 = vst [vmem:[%s5291_s9 + $0x530] sm:$0xff] %v1999_v56  ;;  %v1371_v22 = vld [vmem:[%s5242_s21 + $0x490] sm:$0xff]  ;;  %v1372_v43 = vld [vmem:[%s5242_s21 + $0x498] sm:$0xff]  ;;  %v1965_v55 = vmul.f32 %v5721_v26, %v1357_v14  ;;  %v1966_v56 = vmul.f32 %v5721_v26, %v1358_v15 }
 0x1e1   : > { %2512 = vst [vmem:[%s5291_s9 + $0x538] sm:$0xff] %v2000_v57  ;;  %2513 = vst [vmem:[%s5291_s9 + $0x540] sm:$0xff] %v2001_v62  ;;  %v1373_v24 = vld [vmem:[%s5242_s21 + $0x4a0] sm:$0xff]  ;;  %v1374_v44 = vld [vmem:[%s5242_s21 + $0x4a8] sm:$0xff]  ;;  %v1967_v57 = vmul.f32 %v5721_v26, %v1359_v16  ;;  %v1980_v14 = vmul.f32 %v5721_v26, %v1372_v43 }
 0x1e2   : > { %2514 = vst [vmem:[%s5291_s9 + $0x548] sm:$0xff] %v2002_v63  ;;  %2515 = vst [vmem:[%s5291_s9 + $0x550] sm:$0xff] %v2003_v0  ;;  %v1375_v45 = vld [vmem:[%s5242_s21 + $0x4b0] sm:$0xff]  ;;  %v1376_v46 = vld [vmem:[%s5242_s21 + $0x4b8] sm:$0xff]  ;;  %v1969_v63 = vmul.f32 %v5721_v26, %v1361_v27  ;;  %v1970_v0 = vmul.f32 %v5721_v26, %v1362_v28  ;;  %v5819_v28 = vpop.permute.xlu1 %1790 }
 0x1e3   : > { %2516 = vst [vmem:[%s5291_s9 + $0x558] sm:$0xff] %v2004_v1  ;;  %2517 = vst [vmem:[%s5291_s9 + $0x560] sm:$0xff] %v2005_v2  ;;  %v1377_v51 = vld [vmem:[%s5242_s21 + $0x4c0] sm:$0xff]  ;;  %v1378_v52 = vld [vmem:[%s5242_s21 + $0x4c8] sm:$0xff]  ;;  %v1971_v1 = vmul.f32 %v5721_v26, %v1363_v29  ;;  %v1972_v2 = vmul.f32 %v5721_v26, %v1364_v30  ;;  %v1984_v27 = vmul.f32 %v5721_v26, %v1376_v46 }
 0x1e4   : > { %2518 = vst [vmem:[%s5291_s9 + $0x568] sm:$0xff] %v2006_v3  ;;  %2519 = vst [vmem:[%s5291_s9 + $0x570] sm:$0xff] %v2007_v4  ;;  %v1379_v53 = vld [vmem:[%s5242_s21 + $0x4d0] sm:$0xff]  ;;  %v1380_v54 = vld [vmem:[%s5242_s21 + $0x4d8] sm:$0xff]  ;;  %v1973_v3 = vmul.f32 %v5721_v26, %v1365_v36  ;;  %v1974_v4 = vmul.f32 %v5721_v26, %v1366_v37 }
 0x1e5   : > { %2520 = vst [vmem:[%s5291_s9 + $0x578] sm:$0xff] %v2008_v5  ;;  %2521 = vst [vmem:[%s5291_s9 + $0x580] sm:$0xff] %v2009_v10  ;;  %v1381_v59 = vld [vmem:[%s5242_s21 + $0x4e0] sm:$0xff]  ;;  %v1382_v60 = vld [vmem:[%s5242_s21 + $0x4e8] sm:$0xff]  ;;  %v1975_v5 = vmul.f32 %v5721_v26, %v1367_v38  ;;  %v1987_v36 = vmul.f32 %v5721_v26, %v1379_v53  ;;  %v1988_v37 = vmul.f32 %v5721_v26, %v1380_v54 }
 0x1e6   : > { %2522 = vst [vmem:[%s5291_s9 + $0x588] sm:$0xff] %v2010_v11  ;;  %2523 = vst [vmem:[%s5291_s9 + $0x590] sm:$0xff] %v2011_v12  ;;  %v1383_v61 = vld [vmem:[%s5242_s21 + $0x4f0] sm:$0xff]  ;;  %v1384_v62 = vld [vmem:[%s5242_s21 + $0x4f8] sm:$0xff]  ;;  %v1977_v11 = vmul.f32 %v5721_v26, %v1369_v20  ;;  %v1978_v12 = vmul.f32 %v5721_v26, %v1370_v42 }
 0x1e7   : > { %2524 = vst [vmem:[%s5291_s9 + $0x598] sm:$0xff] %v2012_v13  ;;  %2525 = vst [vmem:[%s5291_s9 + $0x5a0] sm:$0xff] %v2013_v19  ;;  %v1449_v7 = vld [vmem:[%s5242_s21 + $0x700] sm:$0xff]  ;;  %v1450_v8 = vld [vmem:[%s5242_s21 + $0x708] sm:$0xff]  ;;  %v1979_v13 = vmul.f32 %v5721_v26, %v1371_v22  ;;  %v1991_v20 = vmul.f32 %v5721_v26, %v1383_v61  ;;  %v1992_v42 = vmul.f32 %v5721_v26, %v1384_v62 }
 0x1e8   : > { %2526 = vst [vmem:[%s5291_s9 + $0x5a8] sm:$0xff] %v2014_v21  ;;  %2527 = vst [vmem:[%s5291_s9 + $0x5b0] sm:$0xff] %v2015_v23  ;;  %v1451_v9 = vld [vmem:[%s5242_s21 + $0x710] sm:$0xff]  ;;  %v1452_v10 = vld [vmem:[%s5242_s21 + $0x718] sm:$0xff]  ;;  %v1981_v21 = vmul.f32 %v5721_v26, %v1373_v24  ;;  %v1982_v23 = vmul.f32 %v5721_v26, %v1374_v44 }
 0x1e9   : > { %2528 = vst [vmem:[%s5291_s9 + $0x5b8] sm:$0xff] %v2016_v25  ;;  %2529 = vst [vmem:[%s5291_s9 + $0x5c0] sm:$0xff] %v2017_v31  ;;  %v1453_v15 = vld [vmem:[%s5242_s21 + $0x720] sm:$0xff]  ;;  %v1454_v16 = vld [vmem:[%s5242_s21 + $0x728] sm:$0xff]  ;;  %v1983_v25 = vmul.f32 %v5721_v26, %v1375_v45 }
 0x1ea   : > { %2530 = vst [vmem:[%s5291_s9 + $0x5c8] sm:$0xff] %v2018_v32  ;;  %2531 = vst [vmem:[%s5291_s9 + $0x5d0] sm:$0xff] %v2019_v34  ;;  %v1455_v17 = vld [vmem:[%s5242_s21 + $0x730] sm:$0xff]  ;;  %v1456_v19 = vld [vmem:[%s5242_s21 + $0x738] sm:$0xff]  ;;  %v1985_v34 = vmul.f32 %v5721_v26, %v1377_v51  ;;  %v2060_v51 = vmul.f32 %v5819_v28, %v1452_v10 }
 0x1eb   : > { %2532 = vst [vmem:[%s5291_s9 + $0x5d8] sm:$0xff] %v2020_v35  ;;  %2533 = vst [vmem:[%s5291_s9 + $0x5e0] sm:$0xff] %v2021_v33  ;;  %v1457_v29 = vld [vmem:[%s5242_s21 + $0x740] sm:$0xff]  ;;  %v1458_v30 = vld [vmem:[%s5242_s21 + $0x748] sm:$0xff]  ;;  %v1986_v35 = vmul.f32 %v5721_v26, %v1378_v52 }
 0x1ec   : > { %2534 = vst [vmem:[%s5291_s9 + $0x5e8] sm:$0xff] %v2022_v40  ;;  %2535 = vst [vmem:[%s5291_s9 + $0x5f0] sm:$0xff] %v2023_v18  ;;  %v1459_v31 = vld [vmem:[%s5242_s21 + $0x750] sm:$0xff]  ;;  %v1460_v32 = vld [vmem:[%s5242_s21 + $0x758] sm:$0xff]  ;;  %v1989_v18 = vmul.f32 %v5721_v26, %v1381_v59  ;;  %v2064_v59 = vmul.f32 %v5819_v28, %v1456_v19 }
 0x1ed   : > { %2536 = vst [vmem:[%s5291_s9 + $0x5f8] sm:$0xff] %v2024_v41  ;;  %2473 = vst [vmem:[%s5291_s9 + $0x400] sm:$0xff] %v1961_v47  ;;  %v1461_v38 = vld [vmem:[%s5242_s21 + $0x760] sm:$0xff]  ;;  %v1462_v39 = vld [vmem:[%s5242_s21 + $0x768] sm:$0xff]  ;;  %v1990_v41 = vmul.f32 %v5721_v26, %v1382_v60 }
 0x1ee   : > { %2474 = vst [vmem:[%s5291_s9 + $0x408] sm:$0xff] %v1962_v48  ;;  %2475 = vst [vmem:[%s5291_s9 + $0x410] sm:$0xff] %v1963_v49  ;;  %v1463_v33 = vld [vmem:[%s5242_s21 + $0x770] sm:$0xff]  ;;  %v1464_v40 = vld [vmem:[%s5242_s21 + $0x778] sm:$0xff]  ;;  %v2057_v48 = vmul.f32 %v5819_v28, %v1449_v7  ;;  %v2058_v49 = vmul.f32 %v5819_v28, %v1450_v8 }
 0x1ef   : > { %2476 = vst [vmem:[%s5291_s9 + $0x418] sm:$0xff] %v1964_v50  ;;  %2477 = vst [vmem:[%s5291_s9 + $0x420] sm:$0xff] %v1965_v55  ;;  %v1465_v22 = vld [vmem:[%s5242_s21 + $0x780] sm:$0xff]  ;;  %v1466_v43 = vld [vmem:[%s5242_s21 + $0x788] sm:$0xff]  ;;  %v2059_v50 = vmul.f32 %v5819_v28, %v1451_v9  ;;  %v2072_v7 = vmul.f32 %v5819_v28, %v1464_v40 }
 0x1f0   : > { %2478 = vst [vmem:[%s5291_s9 + $0x428] sm:$0xff] %v1966_v56  ;;  %2479 = vst [vmem:[%s5291_s9 + $0x430] sm:$0xff] %v1967_v57  ;;  %v1467_v24 = vld [vmem:[%s5242_s21 + $0x790] sm:$0xff]  ;;  %v1468_v44 = vld [vmem:[%s5242_s21 + $0x798] sm:$0xff]  ;;  %v2061_v56 = vmul.f32 %v5819_v28, %v1453_v15  ;;  %v2062_v57 = vmul.f32 %v5819_v28, %v1454_v16 }
 0x1f1   : > { %2480 = vst [vmem:[%s5291_s9 + $0x438] sm:$0xff] %v1968_v58  ;;  %2481 = vst [vmem:[%s5291_s9 + $0x440] sm:$0xff] %v1969_v63  ;;  %v1469_v26 = vld [vmem:[%s5242_s21 + $0x7a0] sm:$0xff]  ;;  %v1470_v45 = vld [vmem:[%s5242_s21 + $0x7a8] sm:$0xff]  ;;  %v2063_v58 = vmul.f32 %v5819_v28, %v1455_v17  ;;  %v2076_v15 = vmul.f32 %v5819_v28, %v1468_v44 }
 0x1f2   : > { %2482 = vst [vmem:[%s5291_s9 + $0x448] sm:$0xff] %v1970_v0  ;;  %2483 = vst [vmem:[%s5291_s9 + $0x450] sm:$0xff] %v1971_v1  ;;  %v1471_v46 = vld [vmem:[%s5242_s21 + $0x7b0] sm:$0xff]  ;;  %v1472_v47 = vld [vmem:[%s5242_s21 + $0x7b8] sm:$0xff]  ;;  %v2065_v0 = vmul.f32 %v5819_v28, %v1457_v29  ;;  %v2066_v1 = vmul.f32 %v5819_v28, %v1458_v30  ;;  %v5917_v30 = vpop.permute.xlu0 %1785 }
 0x1f3   : > { %2484 = vst [vmem:[%s5291_s9 + $0x458] sm:$0xff] %v1972_v2  ;;  %2485 = vst [vmem:[%s5291_s9 + $0x460] sm:$0xff] %v1973_v3  ;;  %v1473_v52 = vld [vmem:[%s5242_s21 + $0x7c0] sm:$0xff]  ;;  %v1474_v53 = vld [vmem:[%s5242_s21 + $0x7c8] sm:$0xff]  ;;  %v2067_v2 = vmul.f32 %v5819_v28, %v1459_v31  ;;  %v2068_v3 = vmul.f32 %v5819_v28, %v1460_v32  ;;  %v2080_v29 = vmul.f32 %v5819_v28, %v1472_v47 }
 0x1f4   : > { %2486 = vst [vmem:[%s5291_s9 + $0x468] sm:$0xff] %v1974_v4  ;;  %2487 = vst [vmem:[%s5291_s9 + $0x470] sm:$0xff] %v1975_v5  ;;  %v1475_v54 = vld [vmem:[%s5242_s21 + $0x7d0] sm:$0xff]  ;;  %v1476_v55 = vld [vmem:[%s5242_s21 + $0x7d8] sm:$0xff]  ;;  %v2069_v4 = vmul.f32 %v5819_v28, %v1461_v38  ;;  %v2070_v5 = vmul.f32 %v5819_v28, %v1462_v39 }
 0x1f5   : > { %2488 = vst [vmem:[%s5291_s9 + $0x478] sm:$0xff] %v1976_v6  ;;  %2489 = vst [vmem:[%s5291_s9 + $0x480] sm:$0xff] %v1977_v11  ;;  %v1477_v60 = vld [vmem:[%s5242_s21 + $0x7e0] sm:$0xff]  ;;  %v1478_v61 = vld [vmem:[%s5242_s21 + $0x7e8] sm:$0xff]  ;;  %v2071_v6 = vmul.f32 %v5819_v28, %v1463_v33  ;;  %v2083_v38 = vmul.f32 %v5819_v28, %v1475_v54  ;;  %v2084_v39 = vmul.f32 %v5819_v28, %v1476_v55 }
 0x1f6   : > { %2490 = vst [vmem:[%s5291_s9 + $0x488] sm:$0xff] %v1978_v12  ;;  %2491 = vst [vmem:[%s5291_s9 + $0x490] sm:$0xff] %v1979_v13  ;;  %v1479_v62 = vld [vmem:[%s5242_s21 + $0x7f0] sm:$0xff]  ;;  %v1480_v63 = vld [vmem:[%s5242_s21 + $0x7f8] sm:$0xff]  ;;  %v2073_v12 = vmul.f32 %v5819_v28, %v1465_v22  ;;  %v2074_v13 = vmul.f32 %v5819_v28, %v1466_v43 }
 0x1f7   : > { %2492 = vst [vmem:[%s5291_s9 + $0x498] sm:$0xff] %v1980_v14  ;;  %2493 = vst [vmem:[%s5291_s9 + $0x4a0] sm:$0xff] %v1981_v21  ;;  %v1417_v8 = vld [vmem:[%s5242_s21 + $0x600] sm:$0xff]  ;;  %v1418_v9 = vld [vmem:[%s5242_s21 + $0x608] sm:$0xff]  ;;  %v2075_v14 = vmul.f32 %v5819_v28, %v1467_v24  ;;  %v2087_v22 = vmul.f32 %v5819_v28, %v1479_v62  ;;  %v2088_v43 = vmul.f32 %v5819_v28, %v1480_v63 }
 0x1f8   : > { %2494 = vst [vmem:[%s5291_s9 + $0x4a8] sm:$0xff] %v1982_v23  ;;  %2495 = vst [vmem:[%s5291_s9 + $0x4b0] sm:$0xff] %v1983_v25  ;;  %v1419_v10 = vld [vmem:[%s5242_s21 + $0x610] sm:$0xff]  ;;  %v1420_v11 = vld [vmem:[%s5242_s21 + $0x618] sm:$0xff]  ;;  %v2077_v23 = vmul.f32 %v5819_v28, %v1469_v26  ;;  %v2078_v25 = vmul.f32 %v5819_v28, %v1470_v45 }
 0x1f9   : > { %2496 = vst [vmem:[%s5291_s9 + $0x4b8] sm:$0xff] %v1984_v27  ;;  %2497 = vst [vmem:[%s5291_s9 + $0x4c0] sm:$0xff] %v1985_v34  ;;  %v1421_v16 = vld [vmem:[%s5242_s21 + $0x620] sm:$0xff]  ;;  %v1422_v17 = vld [vmem:[%s5242_s21 + $0x628] sm:$0xff]  ;;  %v2079_v27 = vmul.f32 %v5819_v28, %v1471_v46 }
 0x1fa   : > { %2498 = vst [vmem:[%s5291_s9 + $0x4c8] sm:$0xff] %v1986_v35  ;;  %2499 = vst [vmem:[%s5291_s9 + $0x4d0] sm:$0xff] %v1987_v36  ;;  %v1423_v19 = vld [vmem:[%s5242_s21 + $0x630] sm:$0xff]  ;;  %v1424_v21 = vld [vmem:[%s5242_s21 + $0x638] sm:$0xff]  ;;  %v2081_v36 = vmul.f32 %v5819_v28, %v1473_v52  ;;  %v2028_v52 = vmul.f32 %v5917_v30, %v1420_v11 }
 0x1fb   : > { %2500 = vst [vmem:[%s5291_s9 + $0x4d8] sm:$0xff] %v1988_v37  ;;  %2501 = vst [vmem:[%s5291_s9 + $0x4e0] sm:$0xff] %v1989_v18  ;;  %v1425_v31 = vld [vmem:[%s5242_s21 + $0x640] sm:$0xff]  ;;  %v1426_v32 = vld [vmem:[%s5242_s21 + $0x648] sm:$0xff]  ;;  %v2082_v37 = vmul.f32 %v5819_v28, %v1474_v53 }
 0x1fc   : > { %2502 = vst [vmem:[%s5291_s9 + $0x4e8] sm:$0xff] %v1990_v41  ;;  %2503 = vst [vmem:[%s5291_s9 + $0x4f0] sm:$0xff] %v1991_v20  ;;  %v1427_v34 = vld [vmem:[%s5242_s21 + $0x650] sm:$0xff]  ;;  %v1428_v35 = vld [vmem:[%s5242_s21 + $0x658] sm:$0xff]  ;;  %v2085_v20 = vmul.f32 %v5819_v28, %v1477_v60  ;;  %v2032_v60 = vmul.f32 %v5917_v30, %v1424_v21 }
 0x1fd   : > { %2504 = vst [vmem:[%s5291_s9 + $0x4f8] sm:$0xff] %v1992_v42  ;;  %2569 = vst [vmem:[%s5291_s9 + $0x700] sm:$0xff] %v2057_v48  ;;  %v1429_v33 = vld [vmem:[%s5242_s21 + $0x660] sm:$0xff]  ;;  %v1430_v40 = vld [vmem:[%s5242_s21 + $0x668] sm:$0xff]  ;;  %v2086_v42 = vmul.f32 %v5819_v28, %v1478_v61 }
 0x1fe   : > { %2570 = vst [vmem:[%s5291_s9 + $0x708] sm:$0xff] %v2058_v49  ;;  %2571 = vst [vmem:[%s5291_s9 + $0x710] sm:$0xff] %v2059_v50  ;;  %v1431_v18 = vld [vmem:[%s5242_s21 + $0x670] sm:$0xff]  ;;  %v1432_v41 = vld [vmem:[%s5242_s21 + $0x678] sm:$0xff]  ;;  %v2025_v49 = vmul.f32 %v5917_v30, %v1417_v8  ;;  %v2026_v50 = vmul.f32 %v5917_v30, %v1418_v9 }
 0x1ff   : > { %2572 = vst [vmem:[%s5291_s9 + $0x718] sm:$0xff] %v2060_v51  ;;  %2573 = vst [vmem:[%s5291_s9 + $0x720] sm:$0xff] %v2061_v56  ;;  %v1433_v24 = vld [vmem:[%s5242_s21 + $0x680] sm:$0xff]  ;;  %v1434_v44 = vld [vmem:[%s5242_s21 + $0x688] sm:$0xff]  ;;  %v2027_v51 = vmul.f32 %v5917_v30, %v1419_v10  ;;  %v2040_v8 = vmul.f32 %v5917_v30, %v1432_v41 }
 0x200   : > { %2574 = vst [vmem:[%s5291_s9 + $0x728] sm:$0xff] %v2062_v57  ;;  %2575 = vst [vmem:[%s5291_s9 + $0x730] sm:$0xff] %v2063_v58  ;;  %v1435_v26 = vld [vmem:[%s5242_s21 + $0x690] sm:$0xff]  ;;  %v1436_v45 = vld [vmem:[%s5242_s21 + $0x698] sm:$0xff]  ;;  %v2029_v57 = vmul.f32 %v5917_v30, %v1421_v16  ;;  %v2030_v58 = vmul.f32 %v5917_v30, %v1422_v17 }
 0x201   : > { %2576 = vst [vmem:[%s5291_s9 + $0x738] sm:$0xff] %v2064_v59  ;;  %2577 = vst [vmem:[%s5291_s9 + $0x740] sm:$0xff] %v2065_v0  ;;  %v1437_v28 = vld [vmem:[%s5242_s21 + $0x6a0] sm:$0xff]  ;;  %v1438_v46 = vld [vmem:[%s5242_s21 + $0x6a8] sm:$0xff]  ;;  %v2031_v59 = vmul.f32 %v5917_v30, %v1423_v19  ;;  %v2044_v16 = vmul.f32 %v5917_v30, %v1436_v45 }
 0x202   : > { %2578 = vst [vmem:[%s5291_s9 + $0x748] sm:$0xff] %v2066_v1  ;;  %2579 = vst [vmem:[%s5291_s9 + $0x750] sm:$0xff] %v2067_v2  ;;  %v1439_v47 = vld [vmem:[%s5242_s21 + $0x6b0] sm:$0xff]  ;;  %v1440_v48 = vld [vmem:[%s5242_s21 + $0x6b8] sm:$0xff]  ;;  %v2033_v1 = vmul.f32 %v5917_v30, %v1425_v31  ;;  %v2034_v2 = vmul.f32 %v5917_v30, %v1426_v32  ;;  %v6015_v32 = vpop.permute.xlu1 %1800 }
 0x203   : > { %2580 = vst [vmem:[%s5291_s9 + $0x758] sm:$0xff] %v2068_v3  ;;  %2581 = vst [vmem:[%s5291_s9 + $0x760] sm:$0xff] %v2069_v4  ;;  %v1441_v53 = vld [vmem:[%s5242_s21 + $0x6c0] sm:$0xff]  ;;  %v1442_v54 = vld [vmem:[%s5242_s21 + $0x6c8] sm:$0xff]  ;;  %v2035_v3 = vmul.f32 %v5917_v30, %v1427_v34  ;;  %v2036_v4 = vmul.f32 %v5917_v30, %v1428_v35  ;;  %v2048_v31 = vmul.f32 %v5917_v30, %v1440_v48 }
 0x204   : > { %2582 = vst [vmem:[%s5291_s9 + $0x768] sm:$0xff] %v2070_v5  ;;  %2583 = vst [vmem:[%s5291_s9 + $0x770] sm:$0xff] %v2071_v6  ;;  %v1443_v55 = vld [vmem:[%s5242_s21 + $0x6d0] sm:$0xff]  ;;  %v1444_v56 = vld [vmem:[%s5242_s21 + $0x6d8] sm:$0xff]  ;;  %v2037_v5 = vmul.f32 %v5917_v30, %v1429_v33  ;;  %v2038_v6 = vmul.f32 %v5917_v30, %v1430_v40 }
 0x205   : > { %2584 = vst [vmem:[%s5291_s9 + $0x778] sm:$0xff] %v2072_v7  ;;  %2585 = vst [vmem:[%s5291_s9 + $0x780] sm:$0xff] %v2073_v12  ;;  %v1445_v61 = vld [vmem:[%s5242_s21 + $0x6e0] sm:$0xff]  ;;  %v1446_v62 = vld [vmem:[%s5242_s21 + $0x6e8] sm:$0xff]  ;;  %v2039_v7 = vmul.f32 %v5917_v30, %v1431_v18  ;;  %v2051_v33 = vmul.f32 %v5917_v30, %v1443_v55  ;;  %v2052_v40 = vmul.f32 %v5917_v30, %v1444_v56 }
 0x206   : > { %2586 = vst [vmem:[%s5291_s9 + $0x788] sm:$0xff] %v2074_v13  ;;  %2587 = vst [vmem:[%s5291_s9 + $0x790] sm:$0xff] %v2075_v14  ;;  %v1447_v63 = vld [vmem:[%s5242_s21 + $0x6f0] sm:$0xff]  ;;  %v1448_v0 = vld [vmem:[%s5242_s21 + $0x6f8] sm:$0xff]  ;;  %v2041_v13 = vmul.f32 %v5917_v30, %v1433_v24  ;;  %v2042_v14 = vmul.f32 %v5917_v30, %v1434_v44 }
 0x207   : > { %2588 = vst [vmem:[%s5291_s9 + $0x798] sm:$0xff] %v2076_v15  ;;  %2589 = vst [vmem:[%s5291_s9 + $0x7a0] sm:$0xff] %v2077_v23  ;;  %v1513_v9 = vld [vmem:[%s5242_s21 + $0x900] sm:$0xff]  ;;  %v1514_v10 = vld [vmem:[%s5242_s21 + $0x908] sm:$0xff]  ;;  %v2043_v15 = vmul.f32 %v5917_v30, %v1435_v26  ;;  %v2055_v24 = vmul.f32 %v5917_v30, %v1447_v63  ;;  %v2056_v44 = vmul.f32 %v5917_v30, %v1448_v0 }
 0x208   : > { %2590 = vst [vmem:[%s5291_s9 + $0x7a8] sm:$0xff] %v2078_v25  ;;  %2591 = vst [vmem:[%s5291_s9 + $0x7b0] sm:$0xff] %v2079_v27  ;;  %v1515_v11 = vld [vmem:[%s5242_s21 + $0x910] sm:$0xff]  ;;  %v1516_v12 = vld [vmem:[%s5242_s21 + $0x918] sm:$0xff]  ;;  %v2045_v25 = vmul.f32 %v5917_v30, %v1437_v28  ;;  %v2046_v27 = vmul.f32 %v5917_v30, %v1438_v46 }
 0x209   : > { %2592 = vst [vmem:[%s5291_s9 + $0x7b8] sm:$0xff] %v2080_v29  ;;  %2593 = vst [vmem:[%s5291_s9 + $0x7c0] sm:$0xff] %v2081_v36  ;;  %v1517_v17 = vld [vmem:[%s5242_s21 + $0x920] sm:$0xff]  ;;  %v1518_v19 = vld [vmem:[%s5242_s21 + $0x928] sm:$0xff]  ;;  %v2047_v29 = vmul.f32 %v5917_v30, %v1439_v47 }
 0x20a   : > { %2594 = vst [vmem:[%s5291_s9 + $0x7c8] sm:$0xff] %v2082_v37  ;;  %2595 = vst [vmem:[%s5291_s9 + $0x7d0] sm:$0xff] %v2083_v38  ;;  %v1519_v21 = vld [vmem:[%s5242_s21 + $0x930] sm:$0xff]  ;;  %v1520_v23 = vld [vmem:[%s5242_s21 + $0x938] sm:$0xff]  ;;  %v2049_v38 = vmul.f32 %v5917_v30, %v1441_v53  ;;  %v2124_v53 = vmul.f32 %v6015_v32, %v1516_v12 }
 0x20b   : > { %2596 = vst [vmem:[%s5291_s9 + $0x7d8] sm:$0xff] %v2084_v39  ;;  %2597 = vst [vmem:[%s5291_s9 + $0x7e0] sm:$0xff] %v2085_v20  ;;  %v1521_v34 = vld [vmem:[%s5242_s21 + $0x940] sm:$0xff]  ;;  %v1522_v35 = vld [vmem:[%s5242_s21 + $0x948] sm:$0xff]  ;;  %v2050_v39 = vmul.f32 %v5917_v30, %v1442_v54 }
 0x20c   : > { %2598 = vst [vmem:[%s5291_s9 + $0x7e8] sm:$0xff] %v2086_v42  ;;  %2599 = vst [vmem:[%s5291_s9 + $0x7f0] sm:$0xff] %v2087_v22  ;;  %v1523_v36 = vld [vmem:[%s5242_s21 + $0x950] sm:$0xff]  ;;  %v1524_v37 = vld [vmem:[%s5242_s21 + $0x958] sm:$0xff]  ;;  %v2053_v22 = vmul.f32 %v5917_v30, %v1445_v61  ;;  %v2128_v61 = vmul.f32 %v6015_v32, %v1520_v23 }
 0x20d   : > { %2600 = vst [vmem:[%s5291_s9 + $0x7f8] sm:$0xff] %v2088_v43  ;;  %2537 = vst [vmem:[%s5291_s9 + $0x600] sm:$0xff] %v2025_v49  ;;  %v1525_v18 = vld [vmem:[%s5242_s21 + $0x960] sm:$0xff]  ;;  %v1526_v41 = vld [vmem:[%s5242_s21 + $0x968] sm:$0xff]  ;;  %v2054_v43 = vmul.f32 %v5917_v30, %v1446_v62 }
 0x20e   : > { %2538 = vst [vmem:[%s5291_s9 + $0x608] sm:$0xff] %v2026_v50  ;;  %2539 = vst [vmem:[%s5291_s9 + $0x610] sm:$0xff] %v2027_v51  ;;  %v1527_v20 = vld [vmem:[%s5242_s21 + $0x970] sm:$0xff]  ;;  %v1528_v42 = vld [vmem:[%s5242_s21 + $0x978] sm:$0xff]  ;;  %v2121_v50 = vmul.f32 %v6015_v32, %v1513_v9  ;;  %v2122_v51 = vmul.f32 %v6015_v32, %v1514_v10 }
 0x20f   : > { %2540 = vst [vmem:[%s5291_s9 + $0x618] sm:$0xff] %v2028_v52  ;;  %2541 = vst [vmem:[%s5291_s9 + $0x620] sm:$0xff] %v2029_v57  ;;  %v1529_v26 = vld [vmem:[%s5242_s21 + $0x980] sm:$0xff]  ;;  %v1530_v45 = vld [vmem:[%s5242_s21 + $0x988] sm:$0xff]  ;;  %v2123_v52 = vmul.f32 %v6015_v32, %v1515_v11  ;;  %v2136_v9 = vmul.f32 %v6015_v32, %v1528_v42 }
 0x210   : > { %2542 = vst [vmem:[%s5291_s9 + $0x628] sm:$0xff] %v2030_v58  ;;  %2543 = vst [vmem:[%s5291_s9 + $0x630] sm:$0xff] %v2031_v59  ;;  %v1531_v28 = vld [vmem:[%s5242_s21 + $0x990] sm:$0xff]  ;;  %v1532_v46 = vld [vmem:[%s5242_s21 + $0x998] sm:$0xff]  ;;  %v2125_v58 = vmul.f32 %v6015_v32, %v1517_v17  ;;  %v2126_v59 = vmul.f32 %v6015_v32, %v1518_v19 }
 0x211   : > { %2544 = vst [vmem:[%s5291_s9 + $0x638] sm:$0xff] %v2032_v60  ;;  %2545 = vst [vmem:[%s5291_s9 + $0x640] sm:$0xff] %v2033_v1  ;;  %v1533_v30 = vld [vmem:[%s5242_s21 + $0x9a0] sm:$0xff]  ;;  %v1534_v47 = vld [vmem:[%s5242_s21 + $0x9a8] sm:$0xff]  ;;  %v2127_v60 = vmul.f32 %v6015_v32, %v1519_v21  ;;  %v2140_v17 = vmul.f32 %v6015_v32, %v1532_v46 }
 0x212   : > { %2546 = vst [vmem:[%s5291_s9 + $0x648] sm:$0xff] %v2034_v2  ;;  %2547 = vst [vmem:[%s5291_s9 + $0x650] sm:$0xff] %v2035_v3  ;;  %v1535_v48 = vld [vmem:[%s5242_s21 + $0x9b0] sm:$0xff]  ;;  %v1536_v49 = vld [vmem:[%s5242_s21 + $0x9b8] sm:$0xff]  ;;  %v2129_v2 = vmul.f32 %v6015_v32, %v1521_v34  ;;  %v2130_v3 = vmul.f32 %v6015_v32, %v1522_v35  ;;  %v6113_v35 = vpop.permute.xlu0 %1795 }
 0x213   : > { %2548 = vst [vmem:[%s5291_s9 + $0x658] sm:$0xff] %v2036_v4  ;;  %2549 = vst [vmem:[%s5291_s9 + $0x660] sm:$0xff] %v2037_v5  ;;  %v1537_v54 = vld [vmem:[%s5242_s21 + $0x9c0] sm:$0xff]  ;;  %v1538_v55 = vld [vmem:[%s5242_s21 + $0x9c8] sm:$0xff]  ;;  %v2131_v4 = vmul.f32 %v6015_v32, %v1523_v36  ;;  %v2132_v5 = vmul.f32 %v6015_v32, %v1524_v37  ;;  %v2144_v34 = vmul.f32 %v6015_v32, %v1536_v49 }
 0x214   : > { %2550 = vst [vmem:[%s5291_s9 + $0x668] sm:$0xff] %v2038_v6  ;;  %2551 = vst [vmem:[%s5291_s9 + $0x670] sm:$0xff] %v2039_v7  ;;  %v1539_v56 = vld [vmem:[%s5242_s21 + $0x9d0] sm:$0xff]  ;;  %v1540_v57 = vld [vmem:[%s5242_s21 + $0x9d8] sm:$0xff]  ;;  %v2133_v6 = vmul.f32 %v6015_v32, %v1525_v18  ;;  %v2134_v7 = vmul.f32 %v6015_v32, %v1526_v41 }
 0x215   : > { %2552 = vst [vmem:[%s5291_s9 + $0x678] sm:$0xff] %v2040_v8  ;;  %2553 = vst [vmem:[%s5291_s9 + $0x680] sm:$0xff] %v2041_v13  ;;  %v1541_v62 = vld [vmem:[%s5242_s21 + $0x9e0] sm:$0xff]  ;;  %v1542_v63 = vld [vmem:[%s5242_s21 + $0x9e8] sm:$0xff]  ;;  %v2135_v8 = vmul.f32 %v6015_v32, %v1527_v20  ;;  %v2147_v18 = vmul.f32 %v6015_v32, %v1539_v56  ;;  %v2148_v41 = vmul.f32 %v6015_v32, %v1540_v57 }
 0x216   : > { %2554 = vst [vmem:[%s5291_s9 + $0x688] sm:$0xff] %v2042_v14  ;;  %2555 = vst [vmem:[%s5291_s9 + $0x690] sm:$0xff] %v2043_v15  ;;  %v1543_v0 = vld [vmem:[%s5242_s21 + $0x9f0] sm:$0xff]  ;;  %v1544_v1 = vld [vmem:[%s5242_s21 + $0x9f8] sm:$0xff]  ;;  %v2137_v14 = vmul.f32 %v6015_v32, %v1529_v26  ;;  %v2138_v15 = vmul.f32 %v6015_v32, %v1530_v45 }
 0x217   : > { %2556 = vst [vmem:[%s5291_s9 + $0x698] sm:$0xff] %v2044_v16  ;;  %2557 = vst [vmem:[%s5291_s9 + $0x6a0] sm:$0xff] %v2045_v25  ;;  %v1481_v10 = vld [vmem:[%s5242_s21 + $0x800] sm:$0xff]  ;;  %v1482_v11 = vld [vmem:[%s5242_s21 + $0x808] sm:$0xff]  ;;  %v2139_v16 = vmul.f32 %v6015_v32, %v1531_v28  ;;  %v2151_v26 = vmul.f32 %v6015_v32, %v1543_v0  ;;  %v2152_v45 = vmul.f32 %v6015_v32, %v1544_v1 }
 0x218   : > { %2558 = vst [vmem:[%s5291_s9 + $0x6a8] sm:$0xff] %v2046_v27  ;;  %2559 = vst [vmem:[%s5291_s9 + $0x6b0] sm:$0xff] %v2047_v29  ;;  %v1483_v12 = vld [vmem:[%s5242_s21 + $0x810] sm:$0xff]  ;;  %v1484_v13 = vld [vmem:[%s5242_s21 + $0x818] sm:$0xff]  ;;  %v2141_v27 = vmul.f32 %v6015_v32, %v1533_v30  ;;  %v2142_v29 = vmul.f32 %v6015_v32, %v1534_v47 }
 0x219   : > { %2560 = vst [vmem:[%s5291_s9 + $0x6b8] sm:$0xff] %v2048_v31  ;;  %2561 = vst [vmem:[%s5291_s9 + $0x6c0] sm:$0xff] %v2049_v38  ;;  %v1485_v19 = vld [vmem:[%s5242_s21 + $0x820] sm:$0xff]  ;;  %v1486_v21 = vld [vmem:[%s5242_s21 + $0x828] sm:$0xff]  ;;  %v2143_v31 = vmul.f32 %v6015_v32, %v1535_v48 }
 0x21a   : > { %2562 = vst [vmem:[%s5291_s9 + $0x6c8] sm:$0xff] %v2050_v39  ;;  %2563 = vst [vmem:[%s5291_s9 + $0x6d0] sm:$0xff] %v2051_v33  ;;  %v1487_v23 = vld [vmem:[%s5242_s21 + $0x830] sm:$0xff]  ;;  %v1488_v25 = vld [vmem:[%s5242_s21 + $0x838] sm:$0xff]  ;;  %v2145_v33 = vmul.f32 %v6015_v32, %v1537_v54  ;;  %v2092_v54 = vmul.f32 %v6113_v35, %v1484_v13 }
 0x21b   : > { %2564 = vst [vmem:[%s5291_s9 + $0x6d8] sm:$0xff] %v2052_v40  ;;  %2565 = vst [vmem:[%s5291_s9 + $0x6e0] sm:$0xff] %v2053_v22  ;;  %v1489_v36 = vld [vmem:[%s5242_s21 + $0x840] sm:$0xff]  ;;  %v1490_v37 = vld [vmem:[%s5242_s21 + $0x848] sm:$0xff]  ;;  %v2146_v40 = vmul.f32 %v6015_v32, %v1538_v55 }
 0x21c   : > { %2566 = vst [vmem:[%s5291_s9 + $0x6e8] sm:$0xff] %v2054_v43  ;;  %2567 = vst [vmem:[%s5291_s9 + $0x6f0] sm:$0xff] %v2055_v24  ;;  %v1491_v38 = vld [vmem:[%s5242_s21 + $0x850] sm:$0xff]  ;;  %v1492_v39 = vld [vmem:[%s5242_s21 + $0x858] sm:$0xff]  ;;  %v2149_v24 = vmul.f32 %v6015_v32, %v1541_v62  ;;  %v2096_v62 = vmul.f32 %v6113_v35, %v1488_v25 }
 0x21d   : > { %2568 = vst [vmem:[%s5291_s9 + $0x6f8] sm:$0xff] %v2056_v44  ;;  %2633 = vst [vmem:[%s5291_s9 + $0x900] sm:$0xff] %v2121_v50  ;;  %v1493_v20 = vld [vmem:[%s5242_s21 + $0x860] sm:$0xff]  ;;  %v1494_v42 = vld [vmem:[%s5242_s21 + $0x868] sm:$0xff]  ;;  %v2150_v44 = vmul.f32 %v6015_v32, %v1542_v63 }
 0x21e   : > { %2634 = vst [vmem:[%s5291_s9 + $0x908] sm:$0xff] %v2122_v51  ;;  %2635 = vst [vmem:[%s5291_s9 + $0x910] sm:$0xff] %v2123_v52  ;;  %v1495_v22 = vld [vmem:[%s5242_s21 + $0x870] sm:$0xff]  ;;  %v1496_v43 = vld [vmem:[%s5242_s21 + $0x878] sm:$0xff]  ;;  %v2089_v51 = vmul.f32 %v6113_v35, %v1481_v10  ;;  %v2090_v52 = vmul.f32 %v6113_v35, %v1482_v11 }
 0x21f   : > { %2636 = vst [vmem:[%s5291_s9 + $0x918] sm:$0xff] %v2124_v53  ;;  %2637 = vst [vmem:[%s5291_s9 + $0x920] sm:$0xff] %v2125_v58  ;;  %v1497_v28 = vld [vmem:[%s5242_s21 + $0x880] sm:$0xff]  ;;  %v1498_v46 = vld [vmem:[%s5242_s21 + $0x888] sm:$0xff]  ;;  %v2091_v53 = vmul.f32 %v6113_v35, %v1483_v12  ;;  %v2104_v10 = vmul.f32 %v6113_v35, %v1496_v43 }
 0x220   : > { %2638 = vst [vmem:[%s5291_s9 + $0x928] sm:$0xff] %v2126_v59  ;;  %2639 = vst [vmem:[%s5291_s9 + $0x930] sm:$0xff] %v2127_v60  ;;  %v1499_v30 = vld [vmem:[%s5242_s21 + $0x890] sm:$0xff]  ;;  %v1500_v47 = vld [vmem:[%s5242_s21 + $0x898] sm:$0xff]  ;;  %v2093_v59 = vmul.f32 %v6113_v35, %v1485_v19  ;;  %v2094_v60 = vmul.f32 %v6113_v35, %v1486_v21 }
 0x221   : > { %2640 = vst [vmem:[%s5291_s9 + $0x938] sm:$0xff] %v2128_v61  ;;  %2641 = vst [vmem:[%s5291_s9 + $0x940] sm:$0xff] %v2129_v2  ;;  %v1501_v32 = vld [vmem:[%s5242_s21 + $0x8a0] sm:$0xff]  ;;  %v1502_v48 = vld [vmem:[%s5242_s21 + $0x8a8] sm:$0xff]  ;;  %v2095_v61 = vmul.f32 %v6113_v35, %v1487_v23  ;;  %v2108_v19 = vmul.f32 %v6113_v35, %v1500_v47 }
 0x222   : > { %2642 = vst [vmem:[%s5291_s9 + $0x948] sm:$0xff] %v2130_v3  ;;  %2643 = vst [vmem:[%s5291_s9 + $0x950] sm:$0xff] %v2131_v4  ;;  %v1503_v49 = vld [vmem:[%s5242_s21 + $0x8b0] sm:$0xff]  ;;  %v1504_v50 = vld [vmem:[%s5242_s21 + $0x8b8] sm:$0xff]  ;;  %v2097_v3 = vmul.f32 %v6113_v35, %v1489_v36  ;;  %v2098_v4 = vmul.f32 %v6113_v35, %v1490_v37  ;;  %v6211_v37 = vpop.permute.xlu1 %1810 }
 0x223   : > { %2644 = vst [vmem:[%s5291_s9 + $0x958] sm:$0xff] %v2132_v5  ;;  %2645 = vst [vmem:[%s5291_s9 + $0x960] sm:$0xff] %v2133_v6  ;;  %v1505_v55 = vld [vmem:[%s5242_s21 + $0x8c0] sm:$0xff]  ;;  %v1506_v56 = vld [vmem:[%s5242_s21 + $0x8c8] sm:$0xff]  ;;  %v2099_v5 = vmul.f32 %v6113_v35, %v1491_v38  ;;  %v2100_v6 = vmul.f32 %v6113_v35, %v1492_v39  ;;  %v2112_v36 = vmul.f32 %v6113_v35, %v1504_v50 }
 0x224   : > { %2646 = vst [vmem:[%s5291_s9 + $0x968] sm:$0xff] %v2134_v7  ;;  %2647 = vst [vmem:[%s5291_s9 + $0x970] sm:$0xff] %v2135_v8  ;;  %v1507_v57 = vld [vmem:[%s5242_s21 + $0x8d0] sm:$0xff]  ;;  %v1508_v58 = vld [vmem:[%s5242_s21 + $0x8d8] sm:$0xff]  ;;  %v2101_v7 = vmul.f32 %v6113_v35, %v1493_v20  ;;  %v2102_v8 = vmul.f32 %v6113_v35, %v1494_v42 }
 0x225   : > { %2648 = vst [vmem:[%s5291_s9 + $0x978] sm:$0xff] %v2136_v9  ;;  %2649 = vst [vmem:[%s5291_s9 + $0x980] sm:$0xff] %v2137_v14  ;;  %v1509_v63 = vld [vmem:[%s5242_s21 + $0x8e0] sm:$0xff]  ;;  %v1510_v0 = vld [vmem:[%s5242_s21 + $0x8e8] sm:$0xff]  ;;  %v2103_v9 = vmul.f32 %v6113_v35, %v1495_v22  ;;  %v2115_v20 = vmul.f32 %v6113_v35, %v1507_v57  ;;  %v2116_v42 = vmul.f32 %v6113_v35, %v1508_v58 }
 0x226   : > { %2650 = vst [vmem:[%s5291_s9 + $0x988] sm:$0xff] %v2138_v15  ;;  %2651 = vst [vmem:[%s5291_s9 + $0x990] sm:$0xff] %v2139_v16  ;;  %v1511_v1 = vld [vmem:[%s5242_s21 + $0x8f0] sm:$0xff]  ;;  %v1512_v2 = vld [vmem:[%s5242_s21 + $0x8f8] sm:$0xff]  ;;  %v2105_v15 = vmul.f32 %v6113_v35, %v1497_v28  ;;  %v2106_v16 = vmul.f32 %v6113_v35, %v1498_v46 }
 0x227   : > { %2652 = vst [vmem:[%s5291_s9 + $0x998] sm:$0xff] %v2140_v17  ;;  %2653 = vst [vmem:[%s5291_s9 + $0x9a0] sm:$0xff] %v2141_v27  ;;  %v1577_v11 = vld [vmem:[%s5242_s21 + $0xb00] sm:$0xff]  ;;  %v1578_v12 = vld [vmem:[%s5242_s21 + $0xb08] sm:$0xff]  ;;  %v2107_v17 = vmul.f32 %v6113_v35, %v1499_v30  ;;  %v2119_v28 = vmul.f32 %v6113_v35, %v1511_v1  ;;  %v2120_v46 = vmul.f32 %v6113_v35, %v1512_v2 }
 0x228   : > { %2654 = vst [vmem:[%s5291_s9 + $0x9a8] sm:$0xff] %v2142_v29  ;;  %2655 = vst [vmem:[%s5291_s9 + $0x9b0] sm:$0xff] %v2143_v31  ;;  %v1579_v13 = vld [vmem:[%s5242_s21 + $0xb10] sm:$0xff]  ;;  %v1580_v14 = vld [vmem:[%s5242_s21 + $0xb18] sm:$0xff]  ;;  %v2109_v29 = vmul.f32 %v6113_v35, %v1501_v32  ;;  %v2110_v31 = vmul.f32 %v6113_v35, %v1502_v48 }
 0x229   : > { %2656 = vst [vmem:[%s5291_s9 + $0x9b8] sm:$0xff] %v2144_v34  ;;  %2657 = vst [vmem:[%s5291_s9 + $0x9c0] sm:$0xff] %v2145_v33  ;;  %v1581_v21 = vld [vmem:[%s5242_s21 + $0xb20] sm:$0xff]  ;;  %v1582_v23 = vld [vmem:[%s5242_s21 + $0xb28] sm:$0xff]  ;;  %v2111_v34 = vmul.f32 %v6113_v35, %v1503_v49 }
 0x22a   : > { %2658 = vst [vmem:[%s5291_s9 + $0x9c8] sm:$0xff] %v2146_v40  ;;  %2659 = vst [vmem:[%s5291_s9 + $0x9d0] sm:$0xff] %v2147_v18  ;;  %v1583_v25 = vld [vmem:[%s5242_s21 + $0xb30] sm:$0xff]  ;;  %v1584_v27 = vld [vmem:[%s5242_s21 + $0xb38] sm:$0xff]  ;;  %v2113_v18 = vmul.f32 %v6113_v35, %v1505_v55  ;;  %v2188_v55 = vmul.f32 %v6211_v37, %v1580_v14 }
 0x22b   : > { %2660 = vst [vmem:[%s5291_s9 + $0x9d8] sm:$0xff] %v2148_v41  ;;  %2661 = vst [vmem:[%s5291_s9 + $0x9e0] sm:$0xff] %v2149_v24  ;;  %v1585_v38 = vld [vmem:[%s5242_s21 + $0xb40] sm:$0xff]  ;;  %v1586_v39 = vld [vmem:[%s5242_s21 + $0xb48] sm:$0xff]  ;;  %v2114_v41 = vmul.f32 %v6113_v35, %v1506_v56 }
 0x22c   : > { %2662 = vst [vmem:[%s5291_s9 + $0x9e8] sm:$0xff] %v2150_v44  ;;  %2663 = vst [vmem:[%s5291_s9 + $0x9f0] sm:$0xff] %v2151_v26  ;;  %v1587_v33 = vld [vmem:[%s5242_s21 + $0xb50] sm:$0xff]  ;;  %v1588_v40 = vld [vmem:[%s5242_s21 + $0xb58] sm:$0xff]  ;;  %v2117_v26 = vmul.f32 %v6113_v35, %v1509_v63  ;;  %v2192_v63 = vmul.f32 %v6211_v37, %v1584_v27 }
 0x22d   : > { %2664 = vst [vmem:[%s5291_s9 + $0x9f8] sm:$0xff] %v2152_v45  ;;  %2601 = vst [vmem:[%s5291_s9 + $0x800] sm:$0xff] %v2089_v51  ;;  %v1589_v22 = vld [vmem:[%s5242_s21 + $0xb60] sm:$0xff]  ;;  %v1590_v43 = vld [vmem:[%s5242_s21 + $0xb68] sm:$0xff]  ;;  %v2118_v45 = vmul.f32 %v6113_v35, %v1510_v0 }
 0x22e   : > { %2602 = vst [vmem:[%s5291_s9 + $0x808] sm:$0xff] %v2090_v52  ;;  %2603 = vst [vmem:[%s5291_s9 + $0x810] sm:$0xff] %v2091_v53  ;;  %v1591_v24 = vld [vmem:[%s5242_s21 + $0xb70] sm:$0xff]  ;;  %v1592_v44 = vld [vmem:[%s5242_s21 + $0xb78] sm:$0xff]  ;;  %v2185_v52 = vmul.f32 %v6211_v37, %v1577_v11  ;;  %v2186_v53 = vmul.f32 %v6211_v37, %v1578_v12 }
 0x22f   : > { %2604 = vst [vmem:[%s5291_s9 + $0x818] sm:$0xff] %v2092_v54  ;;  %2605 = vst [vmem:[%s5291_s9 + $0x820] sm:$0xff] %v2093_v59  ;;  %v1593_v30 = vld [vmem:[%s5242_s21 + $0xb80] sm:$0xff]  ;;  %v1594_v47 = vld [vmem:[%s5242_s21 + $0xb88] sm:$0xff]  ;;  %v2187_v54 = vmul.f32 %v6211_v37, %v1579_v13  ;;  %v2200_v11 = vmul.f32 %v6211_v37, %v1592_v44 }
 0x230   : > { %2606 = vst [vmem:[%s5291_s9 + $0x828] sm:$0xff] %v2094_v60  ;;  %2607 = vst [vmem:[%s5291_s9 + $0x830] sm:$0xff] %v2095_v61  ;;  %v1595_v32 = vld [vmem:[%s5242_s21 + $0xb90] sm:$0xff]  ;;  %v1596_v48 = vld [vmem:[%s5242_s21 + $0xb98] sm:$0xff]  ;;  %v2189_v60 = vmul.f32 %v6211_v37, %v1581_v21  ;;  %v2190_v61 = vmul.f32 %v6211_v37, %v1582_v23 }
 0x231   : > { %2608 = vst [vmem:[%s5291_s9 + $0x838] sm:$0xff] %v2096_v62  ;;  %2609 = vst [vmem:[%s5291_s9 + $0x840] sm:$0xff] %v2097_v3  ;;  %v1597_v35 = vld [vmem:[%s5242_s21 + $0xba0] sm:$0xff]  ;;  %v1598_v49 = vld [vmem:[%s5242_s21 + $0xba8] sm:$0xff]  ;;  %v2191_v62 = vmul.f32 %v6211_v37, %v1583_v25  ;;  %v2204_v21 = vmul.f32 %v6211_v37, %v1596_v48 }
 0x232   : > { %2610 = vst [vmem:[%s5291_s9 + $0x848] sm:$0xff] %v2098_v4  ;;  %2611 = vst [vmem:[%s5291_s9 + $0x850] sm:$0xff] %v2099_v5  ;;  %v1599_v50 = vld [vmem:[%s5242_s21 + $0xbb0] sm:$0xff]  ;;  %v1600_v51 = vld [vmem:[%s5242_s21 + $0xbb8] sm:$0xff]  ;;  %v2193_v4 = vmul.f32 %v6211_v37, %v1585_v38  ;;  %v2194_v5 = vmul.f32 %v6211_v37, %v1586_v39  ;;  %v6309_v39 = vpop.permute.xlu0 %1805 }
 0x233   : > { %2612 = vst [vmem:[%s5291_s9 + $0x858] sm:$0xff] %v2100_v6  ;;  %2613 = vst [vmem:[%s5291_s9 + $0x860] sm:$0xff] %v2101_v7  ;;  %v1601_v56 = vld [vmem:[%s5242_s21 + $0xbc0] sm:$0xff]  ;;  %v1602_v57 = vld [vmem:[%s5242_s21 + $0xbc8] sm:$0xff]  ;;  %v2195_v6 = vmul.f32 %v6211_v37, %v1587_v33  ;;  %v2196_v7 = vmul.f32 %v6211_v37, %v1588_v40  ;;  %v2208_v38 = vmul.f32 %v6211_v37, %v1600_v51 }
 0x234   : > { %2614 = vst [vmem:[%s5291_s9 + $0x868] sm:$0xff] %v2102_v8  ;;  %2615 = vst [vmem:[%s5291_s9 + $0x870] sm:$0xff] %v2103_v9  ;;  %v1603_v58 = vld [vmem:[%s5242_s21 + $0xbd0] sm:$0xff]  ;;  %v1604_v59 = vld [vmem:[%s5242_s21 + $0xbd8] sm:$0xff]  ;;  %v2197_v8 = vmul.f32 %v6211_v37, %v1589_v22  ;;  %v2198_v9 = vmul.f32 %v6211_v37, %v1590_v43 }
 0x235   : > { %2616 = vst [vmem:[%s5291_s9 + $0x878] sm:$0xff] %v2104_v10  ;;  %2617 = vst [vmem:[%s5291_s9 + $0x880] sm:$0xff] %v2105_v15  ;;  %v1605_v0 = vld [vmem:[%s5242_s21 + $0xbe0] sm:$0xff]  ;;  %v1606_v1 = vld [vmem:[%s5242_s21 + $0xbe8] sm:$0xff]  ;;  %v2199_v10 = vmul.f32 %v6211_v37, %v1591_v24  ;;  %v2211_v22 = vmul.f32 %v6211_v37, %v1603_v58  ;;  %v2212_v43 = vmul.f32 %v6211_v37, %v1604_v59 }
 0x236   : > { %2618 = vst [vmem:[%s5291_s9 + $0x888] sm:$0xff] %v2106_v16  ;;  %2619 = vst [vmem:[%s5291_s9 + $0x890] sm:$0xff] %v2107_v17  ;;  %v1607_v2 = vld [vmem:[%s5242_s21 + $0xbf0] sm:$0xff]  ;;  %v1608_v3 = vld [vmem:[%s5242_s21 + $0xbf8] sm:$0xff]  ;;  %v2201_v16 = vmul.f32 %v6211_v37, %v1593_v30  ;;  %v2202_v17 = vmul.f32 %v6211_v37, %v1594_v47 }
 0x237   : > { %2620 = vst [vmem:[%s5291_s9 + $0x898] sm:$0xff] %v2108_v19  ;;  %2621 = vst [vmem:[%s5291_s9 + $0x8a0] sm:$0xff] %v2109_v29  ;;  %v1545_v12 = vld [vmem:[%s5242_s21 + $0xa00] sm:$0xff]  ;;  %v1546_v13 = vld [vmem:[%s5242_s21 + $0xa08] sm:$0xff]  ;;  %v2203_v19 = vmul.f32 %v6211_v37, %v1595_v32  ;;  %v2215_v30 = vmul.f32 %v6211_v37, %v1607_v2  ;;  %v2216_v47 = vmul.f32 %v6211_v37, %v1608_v3 }
 0x238   : > { %2622 = vst [vmem:[%s5291_s9 + $0x8a8] sm:$0xff] %v2110_v31  ;;  %2623 = vst [vmem:[%s5291_s9 + $0x8b0] sm:$0xff] %v2111_v34  ;;  %v1547_v14 = vld [vmem:[%s5242_s21 + $0xa10] sm:$0xff]  ;;  %v1548_v15 = vld [vmem:[%s5242_s21 + $0xa18] sm:$0xff]  ;;  %v2205_v31 = vmul.f32 %v6211_v37, %v1597_v35  ;;  %v2206_v34 = vmul.f32 %v6211_v37, %v1598_v49 }
 0x239   : > { %2624 = vst [vmem:[%s5291_s9 + $0x8b8] sm:$0xff] %v2112_v36  ;;  %2625 = vst [vmem:[%s5291_s9 + $0x8c0] sm:$0xff] %v2113_v18  ;;  %v1549_v23 = vld [vmem:[%s5242_s21 + $0xa20] sm:$0xff]  ;;  %v1550_v25 = vld [vmem:[%s5242_s21 + $0xa28] sm:$0xff]  ;;  %v2207_v36 = vmul.f32 %v6211_v37, %v1599_v50 }
 0x23a   : > { %2626 = vst [vmem:[%s5291_s9 + $0x8c8] sm:$0xff] %v2114_v41  ;;  %2627 = vst [vmem:[%s5291_s9 + $0x8d0] sm:$0xff] %v2115_v20  ;;  %v1551_v27 = vld [vmem:[%s5242_s21 + $0xa30] sm:$0xff]  ;;  %v1552_v29 = vld [vmem:[%s5242_s21 + $0xa38] sm:$0xff]  ;;  %v2209_v20 = vmul.f32 %v6211_v37, %v1601_v56  ;;  %v2156_v56 = vmul.f32 %v6309_v39, %v1548_v15 }
 0x23b   : > { %2628 = vst [vmem:[%s5291_s9 + $0x8d8] sm:$0xff] %v2116_v42  ;;  %2629 = vst [vmem:[%s5291_s9 + $0x8e0] sm:$0xff] %v2117_v26  ;;  %v1553_v33 = vld [vmem:[%s5242_s21 + $0xa40] sm:$0xff]  ;;  %v1554_v40 = vld [vmem:[%s5242_s21 + $0xa48] sm:$0xff]  ;;  %v2210_v42 = vmul.f32 %v6211_v37, %v1602_v57 }
 0x23c   : > { %2630 = vst [vmem:[%s5291_s9 + $0x8e8] sm:$0xff] %v2118_v45  ;;  %2631 = vst [vmem:[%s5291_s9 + $0x8f0] sm:$0xff] %v2119_v28  ;;  %v1555_v18 = vld [vmem:[%s5242_s21 + $0xa50] sm:$0xff]  ;;  %v1556_v41 = vld [vmem:[%s5242_s21 + $0xa58] sm:$0xff]  ;;  %v2213_v28 = vmul.f32 %v6211_v37, %v1605_v0  ;;  %v2160_v0 = vmul.f32 %v6309_v39, %v1552_v29 }
 0x23d   : > { %2632 = vst [vmem:[%s5291_s9 + $0x8f8] sm:$0xff] %v2120_v46  ;;  %2697 = vst [vmem:[%s5291_s9 + $0xb00] sm:$0xff] %v2185_v52  ;;  %v1557_v24 = vld [vmem:[%s5242_s21 + $0xa60] sm:$0xff]  ;;  %v1558_v44 = vld [vmem:[%s5242_s21 + $0xa68] sm:$0xff]  ;;  %v2214_v46 = vmul.f32 %v6211_v37, %v1606_v1 }
 0x23e   : > { %2698 = vst [vmem:[%s5291_s9 + $0xb08] sm:$0xff] %v2186_v53  ;;  %2699 = vst [vmem:[%s5291_s9 + $0xb10] sm:$0xff] %v2187_v54  ;;  %v1559_v26 = vld [vmem:[%s5242_s21 + $0xa70] sm:$0xff]  ;;  %v1560_v45 = vld [vmem:[%s5242_s21 + $0xa78] sm:$0xff]  ;;  %v2153_v53 = vmul.f32 %v6309_v39, %v1545_v12  ;;  %v2154_v54 = vmul.f32 %v6309_v39, %v1546_v13 }
 0x23f   : > { %2700 = vst [vmem:[%s5291_s9 + $0xb18] sm:$0xff] %v2188_v55  ;;  %2701 = vst [vmem:[%s5291_s9 + $0xb20] sm:$0xff] %v2189_v60  ;;  %v1561_v32 = vld [vmem:[%s5242_s21 + $0xa80] sm:$0xff]  ;;  %v1562_v48 = vld [vmem:[%s5242_s21 + $0xa88] sm:$0xff]  ;;  %v2155_v55 = vmul.f32 %v6309_v39, %v1547_v14  ;;  %v2168_v12 = vmul.f32 %v6309_v39, %v1560_v45 }
 0x240   : > { %2702 = vst [vmem:[%s5291_s9 + $0xb28] sm:$0xff] %v2190_v61  ;;  %2703 = vst [vmem:[%s5291_s9 + $0xb30] sm:$0xff] %v2191_v62  ;;  %v1563_v35 = vld [vmem:[%s5242_s21 + $0xa90] sm:$0xff]  ;;  %v1564_v49 = vld [vmem:[%s5242_s21 + $0xa98] sm:$0xff]  ;;  %v2157_v61 = vmul.f32 %v6309_v39, %v1549_v23  ;;  %v2158_v62 = vmul.f32 %v6309_v39, %v1550_v25 }
 0x241   : > { %2704 = vst [vmem:[%s5291_s9 + $0xb38] sm:$0xff] %v2192_v63  ;;  %2705 = vst [vmem:[%s5291_s9 + $0xb40] sm:$0xff] %v2193_v4  ;;  %v1565_v37 = vld [vmem:[%s5242_s21 + $0xaa0] sm:$0xff]  ;;  %v1566_v50 = vld [vmem:[%s5242_s21 + $0xaa8] sm:$0xff]  ;;  %v2159_v63 = vmul.f32 %v6309_v39, %v1551_v27  ;;  %v2172_v23 = vmul.f32 %v6309_v39, %v1564_v49 }
 0x242   : > { %2706 = vst [vmem:[%s5291_s9 + $0xb48] sm:$0xff] %v2194_v5  ;;  %2707 = vst [vmem:[%s5291_s9 + $0xb50] sm:$0xff] %v2195_v6  ;;  %v1567_v51 = vld [vmem:[%s5242_s21 + $0xab0] sm:$0xff]  ;;  %v1568_v52 = vld [vmem:[%s5242_s21 + $0xab8] sm:$0xff]  ;;  %v2161_v5 = vmul.f32 %v6309_v39, %v1553_v33  ;;  %v2162_v6 = vmul.f32 %v6309_v39, %v1554_v40  ;;  %v6407_v40 = vpop.permute.xlu1 %1820 }
 0x243   : > { %2708 = vst [vmem:[%s5291_s9 + $0xb58] sm:$0xff] %v2196_v7  ;;  %2709 = vst [vmem:[%s5291_s9 + $0xb60] sm:$0xff] %v2197_v8  ;;  %v1569_v57 = vld [vmem:[%s5242_s21 + $0xac0] sm:$0xff]  ;;  %v1570_v58 = vld [vmem:[%s5242_s21 + $0xac8] sm:$0xff]  ;;  %v2163_v7 = vmul.f32 %v6309_v39, %v1555_v18  ;;  %v2164_v8 = vmul.f32 %v6309_v39, %v1556_v41  ;;  %v2176_v33 = vmul.f32 %v6309_v39, %v1568_v52 }
 0x244   : > { %2710 = vst [vmem:[%s5291_s9 + $0xb68] sm:$0xff] %v2198_v9  ;;  %2711 = vst [vmem:[%s5291_s9 + $0xb70] sm:$0xff] %v2199_v10  ;;  %v1571_v59 = vld [vmem:[%s5242_s21 + $0xad0] sm:$0xff]  ;;  %v1572_v60 = vld [vmem:[%s5242_s21 + $0xad8] sm:$0xff]  ;;  %v2165_v9 = vmul.f32 %v6309_v39, %v1557_v24  ;;  %v2166_v10 = vmul.f32 %v6309_v39, %v1558_v44 }
 0x245   : > { %2712 = vst [vmem:[%s5291_s9 + $0xb78] sm:$0xff] %v2200_v11  ;;  %2713 = vst [vmem:[%s5291_s9 + $0xb80] sm:$0xff] %v2201_v16  ;;  %v1573_v1 = vld [vmem:[%s5242_s21 + $0xae0] sm:$0xff]  ;;  %v1574_v2 = vld [vmem:[%s5242_s21 + $0xae8] sm:$0xff]  ;;  %v2167_v11 = vmul.f32 %v6309_v39, %v1559_v26  ;;  %v2179_v24 = vmul.f32 %v6309_v39, %v1571_v59  ;;  %v2180_v44 = vmul.f32 %v6309_v39, %v1572_v60 }
 0x246   : > { %2714 = vst [vmem:[%s5291_s9 + $0xb88] sm:$0xff] %v2202_v17  ;;  %2715 = vst [vmem:[%s5291_s9 + $0xb90] sm:$0xff] %v2203_v19  ;;  %v1575_v3 = vld [vmem:[%s5242_s21 + $0xaf0] sm:$0xff]  ;;  %v1576_v4 = vld [vmem:[%s5242_s21 + $0xaf8] sm:$0xff]  ;;  %v2169_v17 = vmul.f32 %v6309_v39, %v1561_v32  ;;  %v2170_v19 = vmul.f32 %v6309_v39, %v1562_v48 }
 0x247   : > { %2716 = vst [vmem:[%s5291_s9 + $0xb98] sm:$0xff] %v2204_v21  ;;  %2717 = vst [vmem:[%s5291_s9 + $0xba0] sm:$0xff] %v2205_v31  ;;  %v1641_v13 = vld [vmem:[%s5242_s21 + $0xd00] sm:$0xff]  ;;  %v1642_v14 = vld [vmem:[%s5242_s21 + $0xd08] sm:$0xff]  ;;  %v2171_v21 = vmul.f32 %v6309_v39, %v1563_v35  ;;  %v2183_v32 = vmul.f32 %v6309_v39, %v1575_v3  ;;  %v2184_v48 = vmul.f32 %v6309_v39, %v1576_v4 }
 0x248   : > { %2718 = vst [vmem:[%s5291_s9 + $0xba8] sm:$0xff] %v2206_v34  ;;  %2719 = vst [vmem:[%s5291_s9 + $0xbb0] sm:$0xff] %v2207_v36  ;;  %v1643_v15 = vld [vmem:[%s5242_s21 + $0xd10] sm:$0xff]  ;;  %v1644_v16 = vld [vmem:[%s5242_s21 + $0xd18] sm:$0xff]  ;;  %v2173_v34 = vmul.f32 %v6309_v39, %v1565_v37  ;;  %v2174_v36 = vmul.f32 %v6309_v39, %v1566_v50 }
 0x249   : > { %2720 = vst [vmem:[%s5291_s9 + $0xbb8] sm:$0xff] %v2208_v38  ;;  %2721 = vst [vmem:[%s5291_s9 + $0xbc0] sm:$0xff] %v2209_v20  ;;  %v1645_v25 = vld [vmem:[%s5242_s21 + $0xd20] sm:$0xff]  ;;  %v1646_v27 = vld [vmem:[%s5242_s21 + $0xd28] sm:$0xff]  ;;  %v2175_v38 = vmul.f32 %v6309_v39, %v1567_v51 }
 0x24a   : > { %2722 = vst [vmem:[%s5291_s9 + $0xbc8] sm:$0xff] %v2210_v42  ;;  %2723 = vst [vmem:[%s5291_s9 + $0xbd0] sm:$0xff] %v2211_v22  ;;  %v1647_v29 = vld [vmem:[%s5242_s21 + $0xd30] sm:$0xff]  ;;  %v1648_v31 = vld [vmem:[%s5242_s21 + $0xd38] sm:$0xff]  ;;  %v2177_v22 = vmul.f32 %v6309_v39, %v1569_v57  ;;  %v2252_v57 = vmul.f32 %v6407_v40, %v1644_v16 }
 0x24b   : > { %2724 = vst [vmem:[%s5291_s9 + $0xbd8] sm:$0xff] %v2212_v43  ;;  %2725 = vst [vmem:[%s5291_s9 + $0xbe0] sm:$0xff] %v2213_v28  ;;  %v1649_v18 = vld [vmem:[%s5242_s21 + $0xd40] sm:$0xff]  ;;  %v1650_v41 = vld [vmem:[%s5242_s21 + $0xd48] sm:$0xff]  ;;  %v2178_v43 = vmul.f32 %v6309_v39, %v1570_v58 }
 0x24c   : > { %2726 = vst [vmem:[%s5291_s9 + $0xbe8] sm:$0xff] %v2214_v46  ;;  %2727 = vst [vmem:[%s5291_s9 + $0xbf0] sm:$0xff] %v2215_v30  ;;  %v1651_v20 = vld [vmem:[%s5242_s21 + $0xd50] sm:$0xff]  ;;  %v1652_v42 = vld [vmem:[%s5242_s21 + $0xd58] sm:$0xff]  ;;  %v2181_v30 = vmul.f32 %v6309_v39, %v1573_v1  ;;  %v2256_v1 = vmul.f32 %v6407_v40, %v1648_v31 }
 0x24d   : > { %2728 = vst [vmem:[%s5291_s9 + $0xbf8] sm:$0xff] %v2216_v47  ;;  %2665 = vst [vmem:[%s5291_s9 + $0xa00] sm:$0xff] %v2153_v53  ;;  %v1653_v26 = vld [vmem:[%s5242_s21 + $0xd60] sm:$0xff]  ;;  %v1654_v45 = vld [vmem:[%s5242_s21 + $0xd68] sm:$0xff]  ;;  %v2182_v47 = vmul.f32 %v6309_v39, %v1574_v2 }
 0x24e   : > { %2666 = vst [vmem:[%s5291_s9 + $0xa08] sm:$0xff] %v2154_v54  ;;  %2667 = vst [vmem:[%s5291_s9 + $0xa10] sm:$0xff] %v2155_v55  ;;  %v1655_v28 = vld [vmem:[%s5242_s21 + $0xd70] sm:$0xff]  ;;  %v1656_v46 = vld [vmem:[%s5242_s21 + $0xd78] sm:$0xff]  ;;  %v2249_v54 = vmul.f32 %v6407_v40, %v1641_v13  ;;  %v2250_v55 = vmul.f32 %v6407_v40, %v1642_v14 }
 0x24f   : > { %2668 = vst [vmem:[%s5291_s9 + $0xa18] sm:$0xff] %v2156_v56  ;;  %2669 = vst [vmem:[%s5291_s9 + $0xa20] sm:$0xff] %v2157_v61  ;;  %v1657_v35 = vld [vmem:[%s5242_s21 + $0xd80] sm:$0xff]  ;;  %v1658_v49 = vld [vmem:[%s5242_s21 + $0xd88] sm:$0xff]  ;;  %v2251_v56 = vmul.f32 %v6407_v40, %v1643_v15  ;;  %v2264_v13 = vmul.f32 %v6407_v40, %v1656_v46 }
 0x250   : > { %2670 = vst [vmem:[%s5291_s9 + $0xa28] sm:$0xff] %v2158_v62  ;;  %2671 = vst [vmem:[%s5291_s9 + $0xa30] sm:$0xff] %v2159_v63  ;;  %v1659_v37 = vld [vmem:[%s5242_s21 + $0xd90] sm:$0xff]  ;;  %v1660_v50 = vld [vmem:[%s5242_s21 + $0xd98] sm:$0xff]  ;;  %v2253_v62 = vmul.f32 %v6407_v40, %v1645_v25  ;;  %v2254_v63 = vmul.f32 %v6407_v40, %v1646_v27 }
 0x251   : > { %2672 = vst [vmem:[%s5291_s9 + $0xa38] sm:$0xff] %v2160_v0  ;;  %2673 = vst [vmem:[%s5291_s9 + $0xa40] sm:$0xff] %v2161_v5  ;;  %v1661_v39 = vld [vmem:[%s5242_s21 + $0xda0] sm:$0xff]  ;;  %v1662_v51 = vld [vmem:[%s5242_s21 + $0xda8] sm:$0xff]  ;;  %v2255_v0 = vmul.f32 %v6407_v40, %v1647_v29  ;;  %v2268_v25 = vmul.f32 %v6407_v40, %v1660_v50 }
 0x252   : > { %2674 = vst [vmem:[%s5291_s9 + $0xa48] sm:$0xff] %v2162_v6  ;;  %2675 = vst [vmem:[%s5291_s9 + $0xa50] sm:$0xff] %v2163_v7  ;;  %v1663_v52 = vld [vmem:[%s5242_s21 + $0xdb0] sm:$0xff]  ;;  %v1664_v53 = vld [vmem:[%s5242_s21 + $0xdb8] sm:$0xff]  ;;  %v2257_v6 = vmul.f32 %v6407_v40, %v1649_v18  ;;  %v2258_v7 = vmul.f32 %v6407_v40, %v1650_v41  ;;  %v6505_v41 = vpop.permute.xlu0 %1815 }
 0x253   : > { %2676 = vst [vmem:[%s5291_s9 + $0xa58] sm:$0xff] %v2164_v8  ;;  %2677 = vst [vmem:[%s5291_s9 + $0xa60] sm:$0xff] %v2165_v9  ;;  %v1665_v58 = vld [vmem:[%s5242_s21 + $0xdc0] sm:$0xff]  ;;  %v1666_v59 = vld [vmem:[%s5242_s21 + $0xdc8] sm:$0xff]  ;;  %v2259_v8 = vmul.f32 %v6407_v40, %v1651_v20  ;;  %v2260_v9 = vmul.f32 %v6407_v40, %v1652_v42  ;;  %v2272_v18 = vmul.f32 %v6407_v40, %v1664_v53 }
 0x254   : > { %2678 = vst [vmem:[%s5291_s9 + $0xa68] sm:$0xff] %v2166_v10  ;;  %2679 = vst [vmem:[%s5291_s9 + $0xa70] sm:$0xff] %v2167_v11  ;;  %v1667_v60 = vld [vmem:[%s5242_s21 + $0xdd0] sm:$0xff]  ;;  %v1668_v61 = vld [vmem:[%s5242_s21 + $0xdd8] sm:$0xff]  ;;  %v2261_v10 = vmul.f32 %v6407_v40, %v1653_v26  ;;  %v2262_v11 = vmul.f32 %v6407_v40, %v1654_v45 }
 0x255   : > { %2680 = vst [vmem:[%s5291_s9 + $0xa78] sm:$0xff] %v2168_v12  ;;  %2681 = vst [vmem:[%s5291_s9 + $0xa80] sm:$0xff] %v2169_v17  ;;  %v1669_v2 = vld [vmem:[%s5242_s21 + $0xde0] sm:$0xff]  ;;  %v1670_v3 = vld [vmem:[%s5242_s21 + $0xde8] sm:$0xff]  ;;  %v2263_v12 = vmul.f32 %v6407_v40, %v1655_v28  ;;  %v2275_v26 = vmul.f32 %v6407_v40, %v1667_v60  ;;  %v2276_v45 = vmul.f32 %v6407_v40, %v1668_v61 }
 0x256   : > { %2682 = vst [vmem:[%s5291_s9 + $0xa88] sm:$0xff] %v2170_v19  ;;  %2683 = vst [vmem:[%s5291_s9 + $0xa90] sm:$0xff] %v2171_v21  ;;  %v1671_v4 = vld [vmem:[%s5242_s21 + $0xdf0] sm:$0xff]  ;;  %v1672_v5 = vld [vmem:[%s5242_s21 + $0xdf8] sm:$0xff]  ;;  %v2265_v19 = vmul.f32 %v6407_v40, %v1657_v35  ;;  %v2266_v21 = vmul.f32 %v6407_v40, %v1658_v49 }
 0x257   : > { %2684 = vst [vmem:[%s5291_s9 + $0xa98] sm:$0xff] %v2172_v23  ;;  %2685 = vst [vmem:[%s5291_s9 + $0xaa0] sm:$0xff] %v2173_v34  ;;  %v1609_v14 = vld [vmem:[%s5242_s21 + $0xc00] sm:$0xff]  ;;  %v1610_v15 = vld [vmem:[%s5242_s21 + $0xc08] sm:$0xff]  ;;  %v2267_v23 = vmul.f32 %v6407_v40, %v1659_v37  ;;  %v2279_v35 = vmul.f32 %v6407_v40, %v1671_v4  ;;  %v2280_v49 = vmul.f32 %v6407_v40, %v1672_v5 }
 0x258   : > { %2686 = vst [vmem:[%s5291_s9 + $0xaa8] sm:$0xff] %v2174_v36  ;;  %2687 = vst [vmem:[%s5291_s9 + $0xab0] sm:$0xff] %v2175_v38  ;;  %v1611_v16 = vld [vmem:[%s5242_s21 + $0xc10] sm:$0xff]  ;;  %v1612_v17 = vld [vmem:[%s5242_s21 + $0xc18] sm:$0xff]  ;;  %v2269_v36 = vmul.f32 %v6407_v40, %v1661_v39  ;;  %v2270_v38 = vmul.f32 %v6407_v40, %v1662_v51 }
 0x259   : > { %2688 = vst [vmem:[%s5291_s9 + $0xab8] sm:$0xff] %v2176_v33  ;;  %2689 = vst [vmem:[%s5291_s9 + $0xac0] sm:$0xff] %v2177_v22  ;;  %v1613_v27 = vld [vmem:[%s5242_s21 + $0xc20] sm:$0xff]  ;;  %v1614_v29 = vld [vmem:[%s5242_s21 + $0xc28] sm:$0xff]  ;;  %v2271_v33 = vmul.f32 %v6407_v40, %v1663_v52 }
 0x25a   : > { %2690 = vst [vmem:[%s5291_s9 + $0xac8] sm:$0xff] %v2178_v43  ;;  %2691 = vst [vmem:[%s5291_s9 + $0xad0] sm:$0xff] %v2179_v24  ;;  %v1615_v31 = vld [vmem:[%s5242_s21 + $0xc30] sm:$0xff]  ;;  %v1616_v34 = vld [vmem:[%s5242_s21 + $0xc38] sm:$0xff]  ;;  %v2273_v24 = vmul.f32 %v6407_v40, %v1665_v58  ;;  %v2220_v58 = vmul.f32 %v6505_v41, %v1612_v17 }
 0x25b   : > { %2692 = vst [vmem:[%s5291_s9 + $0xad8] sm:$0xff] %v2180_v44  ;;  %2693 = vst [vmem:[%s5291_s9 + $0xae0] sm:$0xff] %v2181_v30  ;;  %v1617_v20 = vld [vmem:[%s5242_s21 + $0xc40] sm:$0xff]  ;;  %v1618_v42 = vld [vmem:[%s5242_s21 + $0xc48] sm:$0xff]  ;;  %v2274_v44 = vmul.f32 %v6407_v40, %v1666_v59 }
 0x25c   : > { %2694 = vst [vmem:[%s5291_s9 + $0xae8] sm:$0xff] %v2182_v47  ;;  %2695 = vst [vmem:[%s5291_s9 + $0xaf0] sm:$0xff] %v2183_v32  ;;  %v1619_v22 = vld [vmem:[%s5242_s21 + $0xc50] sm:$0xff]  ;;  %v1620_v43 = vld [vmem:[%s5242_s21 + $0xc58] sm:$0xff]  ;;  %v2277_v32 = vmul.f32 %v6407_v40, %v1669_v2  ;;  %v2224_v2 = vmul.f32 %v6505_v41, %v1616_v34 }
 0x25d   : > { %2696 = vst [vmem:[%s5291_s9 + $0xaf8] sm:$0xff] %v2184_v48  ;;  %2761 = vst [vmem:[%s5291_s9 + $0xd00] sm:$0xff] %v2249_v54  ;;  %v1621_v28 = vld [vmem:[%s5242_s21 + $0xc60] sm:$0xff]  ;;  %v1622_v46 = vld [vmem:[%s5242_s21 + $0xc68] sm:$0xff]  ;;  %v2278_v48 = vmul.f32 %v6407_v40, %v1670_v3 }
 0x25e   : > { %2762 = vst [vmem:[%s5291_s9 + $0xd08] sm:$0xff] %v2250_v55  ;;  %2763 = vst [vmem:[%s5291_s9 + $0xd10] sm:$0xff] %v2251_v56  ;;  %v1623_v30 = vld [vmem:[%s5242_s21 + $0xc70] sm:$0xff]  ;;  %v1624_v47 = vld [vmem:[%s5242_s21 + $0xc78] sm:$0xff]  ;;  %v2217_v55 = vmul.f32 %v6505_v41, %v1609_v14  ;;  %v2218_v56 = vmul.f32 %v6505_v41, %v1610_v15 }
 0x25f   : > { %2764 = vst [vmem:[%s5291_s9 + $0xd18] sm:$0xff] %v2252_v57  ;;  %2765 = vst [vmem:[%s5291_s9 + $0xd20] sm:$0xff] %v2253_v62  ;;  %v1625_v37 = vld [vmem:[%s5242_s21 + $0xc80] sm:$0xff]  ;;  %v1626_v50 = vld [vmem:[%s5242_s21 + $0xc88] sm:$0xff]  ;;  %v2219_v57 = vmul.f32 %v6505_v41, %v1611_v16  ;;  %v2232_v14 = vmul.f32 %v6505_v41, %v1624_v47 }
 0x260   : > { %2766 = vst [vmem:[%s5291_s9 + $0xd28] sm:$0xff] %v2254_v63  ;;  %2767 = vst [vmem:[%s5291_s9 + $0xd30] sm:$0xff] %v2255_v0  ;;  %v1627_v39 = vld [vmem:[%s5242_s21 + $0xc90] sm:$0xff]  ;;  %v1628_v51 = vld [vmem:[%s5242_s21 + $0xc98] sm:$0xff]  ;;  %v2221_v63 = vmul.f32 %v6505_v41, %v1613_v27  ;;  %v2222_v0 = vmul.f32 %v6505_v41, %v1614_v29 }
 0x261   : > { %2768 = vst [vmem:[%s5291_s9 + $0xd38] sm:$0xff] %v2256_v1  ;;  %2769 = vst [vmem:[%s5291_s9 + $0xd40] sm:$0xff] %v2257_v6  ;;  %v1629_v40 = vld [vmem:[%s5242_s21 + $0xca0] sm:$0xff]  ;;  %v1630_v52 = vld [vmem:[%s5242_s21 + $0xca8] sm:$0xff]  ;;  %v2223_v1 = vmul.f32 %v6505_v41, %v1615_v31  ;;  %v2236_v27 = vmul.f32 %v6505_v41, %v1628_v51 }
 0x262   : > { %2770 = vst [vmem:[%s5291_s9 + $0xd48] sm:$0xff] %v2258_v7  ;;  %2771 = vst [vmem:[%s5291_s9 + $0xd50] sm:$0xff] %v2259_v8  ;;  %v1631_v53 = vld [vmem:[%s5242_s21 + $0xcb0] sm:$0xff]  ;;  %v1632_v54 = vld [vmem:[%s5242_s21 + $0xcb8] sm:$0xff]  ;;  %v2225_v7 = vmul.f32 %v6505_v41, %v1617_v20  ;;  %v2226_v8 = vmul.f32 %v6505_v41, %v1618_v42  ;;  %v6603_v42 = vpop.permute.xlu1 %1830 }
 0x263   : > { %2772 = vst [vmem:[%s5291_s9 + $0xd58] sm:$0xff] %v2260_v9  ;;  %2773 = vst [vmem:[%s5291_s9 + $0xd60] sm:$0xff] %v2261_v10  ;;  %v1633_v59 = vld [vmem:[%s5242_s21 + $0xcc0] sm:$0xff]  ;;  %v1634_v60 = vld [vmem:[%s5242_s21 + $0xcc8] sm:$0xff]  ;;  %v2227_v9 = vmul.f32 %v6505_v41, %v1619_v22  ;;  %v2228_v10 = vmul.f32 %v6505_v41, %v1620_v43  ;;  %v2240_v20 = vmul.f32 %v6505_v41, %v1632_v54 }
 0x264   : > { %2774 = vst [vmem:[%s5291_s9 + $0xd68] sm:$0xff] %v2262_v11  ;;  %2775 = vst [vmem:[%s5291_s9 + $0xd70] sm:$0xff] %v2263_v12  ;;  %v1635_v61 = vld [vmem:[%s5242_s21 + $0xcd0] sm:$0xff]  ;;  %v1636_v62 = vld [vmem:[%s5242_s21 + $0xcd8] sm:$0xff]  ;;  %v2229_v11 = vmul.f32 %v6505_v41, %v1621_v28  ;;  %v2230_v12 = vmul.f32 %v6505_v41, %v1622_v46 }
 0x265   : > { %2776 = vst [vmem:[%s5291_s9 + $0xd78] sm:$0xff] %v2264_v13  ;;  %2777 = vst [vmem:[%s5291_s9 + $0xd80] sm:$0xff] %v2265_v19  ;;  %v1637_v3 = vld [vmem:[%s5242_s21 + $0xce0] sm:$0xff]  ;;  %v1638_v4 = vld [vmem:[%s5242_s21 + $0xce8] sm:$0xff]  ;;  %v2231_v13 = vmul.f32 %v6505_v41, %v1623_v30  ;;  %v2243_v28 = vmul.f32 %v6505_v41, %v1635_v61  ;;  %v2244_v46 = vmul.f32 %v6505_v41, %v1636_v62 }
 0x266   : > { %2778 = vst [vmem:[%s5291_s9 + $0xd88] sm:$0xff] %v2266_v21  ;;  %2779 = vst [vmem:[%s5291_s9 + $0xd90] sm:$0xff] %v2267_v23  ;;  %v1639_v5 = vld [vmem:[%s5242_s21 + $0xcf0] sm:$0xff]  ;;  %v1640_v6 = vld [vmem:[%s5242_s21 + $0xcf8] sm:$0xff]  ;;  %v2233_v21 = vmul.f32 %v6505_v41, %v1625_v37  ;;  %v2234_v23 = vmul.f32 %v6505_v41, %v1626_v50 }
 0x267   : > { %2780 = vst [vmem:[%s5291_s9 + $0xd98] sm:$0xff] %v2268_v25  ;;  %2781 = vst [vmem:[%s5291_s9 + $0xda0] sm:$0xff] %v2269_v36  ;;  %v1705_v15 = vld [vmem:[%s5242_s21 + $0xf00] sm:$0xff]  ;;  %v1706_v16 = vld [vmem:[%s5242_s21 + $0xf08] sm:$0xff]  ;;  %v2235_v25 = vmul.f32 %v6505_v41, %v1627_v39  ;;  %v2247_v37 = vmul.f32 %v6505_v41, %v1639_v5  ;;  %v2248_v50 = vmul.f32 %v6505_v41, %v1640_v6 }
 0x268   : > { %2782 = vst [vmem:[%s5291_s9 + $0xda8] sm:$0xff] %v2270_v38  ;;  %2783 = vst [vmem:[%s5291_s9 + $0xdb0] sm:$0xff] %v2271_v33  ;;  %v1707_v17 = vld [vmem:[%s5242_s21 + $0xf10] sm:$0xff]  ;;  %v1708_v19 = vld [vmem:[%s5242_s21 + $0xf18] sm:$0xff]  ;;  %v2237_v38 = vmul.f32 %v6505_v41, %v1629_v40  ;;  %v2238_v33 = vmul.f32 %v6505_v41, %v1630_v52 }
 0x269   : > { %2784 = vst [vmem:[%s5291_s9 + $0xdb8] sm:$0xff] %v2272_v18  ;;  %2785 = vst [vmem:[%s5291_s9 + $0xdc0] sm:$0xff] %v2273_v24  ;;  %v1709_v29 = vld [vmem:[%s5242_s21 + $0xf20] sm:$0xff]  ;;  %v1710_v31 = vld [vmem:[%s5242_s21 + $0xf28] sm:$0xff]  ;;  %v2239_v18 = vmul.f32 %v6505_v41, %v1631_v53 }
 0x26a   : > { %2786 = vst [vmem:[%s5291_s9 + $0xdc8] sm:$0xff] %v2274_v44  ;;  %2787 = vst [vmem:[%s5291_s9 + $0xdd0] sm:$0xff] %v2275_v26  ;;  %v1711_v34 = vld [vmem:[%s5242_s21 + $0xf30] sm:$0xff]  ;;  %v1712_v36 = vld [vmem:[%s5242_s21 + $0xf38] sm:$0xff]  ;;  %v2241_v26 = vmul.f32 %v6505_v41, %v1633_v59  ;;  %v2316_v59 = vmul.f32 %v6603_v42, %v1708_v19 }
 0x26b   : > { %2788 = vst [vmem:[%s5291_s9 + $0xdd8] sm:$0xff] %v2276_v45  ;;  %2789 = vst [vmem:[%s5291_s9 + $0xde0] sm:$0xff] %v2277_v32  ;;  %v1713_v22 = vld [vmem:[%s5242_s21 + $0xf40] sm:$0xff]  ;;  %v1714_v43 = vld [vmem:[%s5242_s21 + $0xf48] sm:$0xff]  ;;  %v2242_v45 = vmul.f32 %v6505_v41, %v1634_v60 }
 0x26c   : > { %2790 = vst [vmem:[%s5291_s9 + $0xde8] sm:$0xff] %v2278_v48  ;;  %2791 = vst [vmem:[%s5291_s9 + $0xdf0] sm:$0xff] %v2279_v35  ;;  %v1715_v24 = vld [vmem:[%s5242_s21 + $0xf50] sm:$0xff]  ;;  %v1716_v44 = vld [vmem:[%s5242_s21 + $0xf58] sm:$0xff]  ;;  %v2245_v35 = vmul.f32 %v6505_v41, %v1637_v3  ;;  %v2320_v3 = vmul.f32 %v6603_v42, %v1712_v36 }
 0x26d   : > { %2792 = vst [vmem:[%s5291_s9 + $0xdf8] sm:$0xff] %v2280_v49  ;;  %2729 = vst [vmem:[%s5291_s9 + $0xc00] sm:$0xff] %v2217_v55  ;;  %v1717_v30 = vld [vmem:[%s5242_s21 + $0xf60] sm:$0xff]  ;;  %v1718_v47 = vld [vmem:[%s5242_s21 + $0xf68] sm:$0xff]  ;;  %v2246_v49 = vmul.f32 %v6505_v41, %v1638_v4 }
 0x26e   : > { %2730 = vst [vmem:[%s5291_s9 + $0xc08] sm:$0xff] %v2218_v56  ;;  %2731 = vst [vmem:[%s5291_s9 + $0xc10] sm:$0xff] %v2219_v57  ;;  %v1719_v32 = vld [vmem:[%s5242_s21 + $0xf70] sm:$0xff]  ;;  %v1720_v48 = vld [vmem:[%s5242_s21 + $0xf78] sm:$0xff]  ;;  %v2313_v56 = vmul.f32 %v6603_v42, %v1705_v15  ;;  %v2314_v57 = vmul.f32 %v6603_v42, %v1706_v16 }
 0x26f   : > { %2732 = vst [vmem:[%s5291_s9 + $0xc18] sm:$0xff] %v2220_v58  ;;  %2733 = vst [vmem:[%s5291_s9 + $0xc20] sm:$0xff] %v2221_v63  ;;  %v1721_v39 = vld [vmem:[%s5242_s21 + $0xf80] sm:$0xff]  ;;  %v1722_v51 = vld [vmem:[%s5242_s21 + $0xf88] sm:$0xff]  ;;  %v2315_v58 = vmul.f32 %v6603_v42, %v1707_v17  ;;  %v2328_v15 = vmul.f32 %v6603_v42, %v1720_v48 }
 0x270   : > { %2734 = vst [vmem:[%s5291_s9 + $0xc28] sm:$0xff] %v2222_v0  ;;  %2735 = vst [vmem:[%s5291_s9 + $0xc30] sm:$0xff] %v2223_v1  ;;  %v1723_v40 = vld [vmem:[%s5242_s21 + $0xf90] sm:$0xff]  ;;  %v1724_v52 = vld [vmem:[%s5242_s21 + $0xf98] sm:$0xff]  ;;  %v2317_v0 = vmul.f32 %v6603_v42, %v1709_v29  ;;  %v2318_v1 = vmul.f32 %v6603_v42, %v1710_v31 }
 0x271   : > { %2736 = vst [vmem:[%s5291_s9 + $0xc38] sm:$0xff] %v2224_v2  ;;  %2737 = vst [vmem:[%s5291_s9 + $0xc40] sm:$0xff] %v2225_v7  ;;  %v1725_v41 = vld [vmem:[%s5242_s21 + $0xfa0] sm:$0xff]  ;;  %v1726_v53 = vld [vmem:[%s5242_s21 + $0xfa8] sm:$0xff]  ;;  %v2319_v2 = vmul.f32 %v6603_v42, %v1711_v34  ;;  %v2332_v29 = vmul.f32 %v6603_v42, %v1724_v52 }
 0x272   : > { %2738 = vst [vmem:[%s5291_s9 + $0xc48] sm:$0xff] %v2226_v8  ;;  %2739 = vst [vmem:[%s5291_s9 + $0xc50] sm:$0xff] %v2227_v9  ;;  %v1727_v54 = vld [vmem:[%s5242_s21 + $0xfb0] sm:$0xff]  ;;  %v1728_v55 = vld [vmem:[%s5242_s21 + $0xfb8] sm:$0xff]  ;;  %v2321_v8 = vmul.f32 %v6603_v42, %v1713_v22  ;;  %v2322_v9 = vmul.f32 %v6603_v42, %v1714_v43  ;;  %v6701_v43 = vpop.permute.xlu0 %1825 }
 0x273   : > { %2740 = vst [vmem:[%s5291_s9 + $0xc58] sm:$0xff] %v2228_v10  ;;  %2741 = vst [vmem:[%s5291_s9 + $0xc60] sm:$0xff] %v2229_v11  ;;  %v1729_v60 = vld [vmem:[%s5242_s21 + $0xfc0] sm:$0xff]  ;;  %v1730_v61 = vld [vmem:[%s5242_s21 + $0xfc8] sm:$0xff]  ;;  %v2323_v10 = vmul.f32 %v6603_v42, %v1715_v24  ;;  %v2324_v11 = vmul.f32 %v6603_v42, %v1716_v44  ;;  %v2336_v22 = vmul.f32 %v6603_v42, %v1728_v55 }
 0x274   : > { %2742 = vst [vmem:[%s5291_s9 + $0xc68] sm:$0xff] %v2230_v12  ;;  %2743 = vst [vmem:[%s5291_s9 + $0xc70] sm:$0xff] %v2231_v13  ;;  %v1731_v62 = vld [vmem:[%s5242_s21 + $0xfd0] sm:$0xff]  ;;  %v1732_v63 = vld [vmem:[%s5242_s21 + $0xfd8] sm:$0xff]  ;;  %v2325_v12 = vmul.f32 %v6603_v42, %v1717_v30  ;;  %v2326_v13 = vmul.f32 %v6603_v42, %v1718_v47 }
 0x275   : > { %2744 = vst [vmem:[%s5291_s9 + $0xc78] sm:$0xff] %v2232_v14  ;;  %2745 = vst [vmem:[%s5291_s9 + $0xc80] sm:$0xff] %v2233_v21  ;;  %v1733_v4 = vld [vmem:[%s5242_s21 + $0xfe0] sm:$0xff]  ;;  %v1734_v5 = vld [vmem:[%s5242_s21 + $0xfe8] sm:$0xff]  ;;  %v2327_v14 = vmul.f32 %v6603_v42, %v1719_v32  ;;  %v2340_v30 = vmul.f32 %v6603_v42, %v1732_v63 }
 0x276   : > { %2746 = vst [vmem:[%s5291_s9 + $0xc88] sm:$0xff] %v2234_v23  ;;  %2747 = vst [vmem:[%s5291_s9 + $0xc90] sm:$0xff] %v2235_v25  ;;  %v1735_v6 = vld [vmem:[%s5242_s21 + $0xff0] sm:$0xff]  ;;  %v1736_v7 = vld [vmem:[%s5242_s21 + $0xff8] sm:$0xff]  ;;  %v2329_v23 = vmul.f32 %v6603_v42, %v1721_v39  ;;  %v2330_v25 = vmul.f32 %v6603_v42, %v1722_v51 }
 0x277   : > { %2748 = vst [vmem:[%s5291_s9 + $0xc98] sm:$0xff] %v2236_v27  ;;  %2749 = vst [vmem:[%s5291_s9 + $0xca0] sm:$0xff] %v2237_v38  ;;  %v1673_v16 = vld [vmem:[%s5242_s21 + $0xe00] sm:$0xff]  ;;  %v1674_v17 = vld [vmem:[%s5242_s21 + $0xe08] sm:$0xff]  ;;  %v2331_v27 = vmul.f32 %v6603_v42, %v1723_v40 }
 0x278   : > { %2750 = vst [vmem:[%s5291_s9 + $0xca8] sm:$0xff] %v2238_v33  ;;  %2751 = vst [vmem:[%s5291_s9 + $0xcb0] sm:$0xff] %v2239_v18  ;;  %v1675_v19 = vld [vmem:[%s5242_s21 + $0xe10] sm:$0xff]  ;;  %v1676_v21 = vld [vmem:[%s5242_s21 + $0xe18] sm:$0xff]  ;;  %v2333_v33 = vmul.f32 %v6603_v42, %v1725_v41  ;;  %v2334_v18 = vmul.f32 %v6603_v42, %v1726_v53  ;;  %v2281_v53 = vmul.f32 %v6701_v43, %v1673_v16 }
 0x279   : > { %2752 = vst [vmem:[%s5291_s9 + $0xcb8] sm:$0xff] %v2240_v20  ;;  %2753 = vst [vmem:[%s5291_s9 + $0xcc0] sm:$0xff] %v2241_v26  ;;  %v1677_v31 = vld [vmem:[%s5242_s21 + $0xe20] sm:$0xff]  ;;  %v1678_v34 = vld [vmem:[%s5242_s21 + $0xe28] sm:$0xff]  ;;  %v2335_v20 = vmul.f32 %v6603_v42, %v1727_v54  ;;  %v2282_v54 = vmul.f32 %v6701_v43, %v1674_v17  ;;  %v2283_v55 = vmul.f32 %v6701_v43, %v1675_v19 }
 0x27a   : > { %2754 = vst [vmem:[%s5291_s9 + $0xcc8] sm:$0xff] %v2242_v45  ;;  %2755 = vst [vmem:[%s5291_s9 + $0xcd0] sm:$0xff] %v2243_v28  ;;  %v1679_v36 = vld [vmem:[%s5242_s21 + $0xe30] sm:$0xff]  ;;  %v1680_v38 = vld [vmem:[%s5242_s21 + $0xe38] sm:$0xff]  ;;  %v2337_v45 = vmul.f32 %v6603_v42, %v1729_v60  ;;  %v2338_v28 = vmul.f32 %v6603_v42, %v1730_v61  ;;  %v2285_v60 = vmul.f32 %v6701_v43, %v1677_v31 }
 0x27b   : > { %2756 = vst [vmem:[%s5291_s9 + $0xcd8] sm:$0xff] %v2244_v46  ;;  %2757 = vst [vmem:[%s5291_s9 + $0xce0] sm:$0xff] %v2245_v35  ;;  %v1681_v24 = vld [vmem:[%s5242_s21 + $0xe40] sm:$0xff]  ;;  %v1682_v44 = vld [vmem:[%s5242_s21 + $0xe48] sm:$0xff]  ;;  %v2339_v46 = vmul.f32 %v6603_v42, %v1731_v62  ;;  %v2341_v35 = vmul.f32 %v6603_v42, %v1733_v4  ;;  %v2286_v61 = vmul.f32 %v6701_v43, %v1678_v34 }
 0x27c   : > { %2758 = vst [vmem:[%s5291_s9 + $0xce8] sm:$0xff] %v2246_v49  ;;  %2759 = vst [vmem:[%s5291_s9 + $0xcf0] sm:$0xff] %v2247_v37  ;;  %v1683_v26 = vld [vmem:[%s5242_s21 + $0xe50] sm:$0xff]  ;;  %v1684_v47 = vld [vmem:[%s5242_s21 + $0xe58] sm:$0xff]  ;;  %v2342_v49 = vmul.f32 %v6603_v42, %v1734_v5  ;;  %v2343_v37 = vmul.f32 %v6603_v42, %v1735_v6  ;;  %v2287_v62 = vmul.f32 %v6701_v43, %v1679_v36 }
 0x27d   : > { %2760 = vst [vmem:[%s5291_s9 + $0xcf8] sm:$0xff] %v2248_v50  ;;  %2825 = vst [vmem:[%s5291_s9 + $0xf00] sm:$0xff] %v2313_v56  ;;  %v1685_v32 = vld [vmem:[%s5242_s21 + $0xe60] sm:$0xff]  ;;  %v1686_v48 = vld [vmem:[%s5242_s21 + $0xe68] sm:$0xff]  ;;  %v2344_v50 = vmul.f32 %v6603_v42, %v1736_v7  ;;  %v2284_v56 = vmul.f32 %v6701_v43, %v1676_v21  ;;  %v2288_v63 = vmul.f32 %v6701_v43, %v1680_v38 }
 0x27e   : > { %2826 = vst [vmem:[%s5291_s9 + $0xf08] sm:$0xff] %v2314_v57  ;;  %2827 = vst [vmem:[%s5291_s9 + $0xf10] sm:$0xff] %v2315_v58  ;;  %v1687_v39 = vld [vmem:[%s5242_s21 + $0xe70] sm:$0xff]  ;;  %v1688_v51 = vld [vmem:[%s5242_s21 + $0xe78] sm:$0xff]  ;;  %v2290_v4 = vmul.f32 %v6701_v43, %v1682_v44  ;;  %v2291_v5 = vmul.f32 %v6701_v43, %v1683_v26  ;;  %v2292_v6 = vmul.f32 %v6701_v43, %v1684_v47 }
 0x27f   : > { %2828 = vst [vmem:[%s5291_s9 + $0xf18] sm:$0xff] %v2316_v59  ;;  %2829 = vst [vmem:[%s5291_s9 + $0xf20] sm:$0xff] %v2317_v0  ;;  %v1689_v40 = vld [vmem:[%s5242_s21 + $0xe80] sm:$0xff]  ;;  %v1690_v52 = vld [vmem:[%s5242_s21 + $0xe88] sm:$0xff] }
 0x280   : > { %2830 = vst [vmem:[%s5291_s9 + $0xf28] sm:$0xff] %v2318_v1  ;;  %2831 = vst [vmem:[%s5291_s9 + $0xf30] sm:$0xff] %v2319_v2  ;;  %v1691_v42 = vld [vmem:[%s5242_s21 + $0xe90] sm:$0xff]  ;;  %v1692_v41 = vld [vmem:[%s5242_s21 + $0xe98] sm:$0xff]  ;;  %v2297_v17 = vmul.f32 %v6701_v43, %v1689_v40  ;;  %v2298_v19 = vmul.f32 %v6701_v43, %v1690_v52 }
 0x281   : > { %2832 = vst [vmem:[%s5291_s9 + $0xf38] sm:$0xff] %v2320_v3  ;;  %2833 = vst [vmem:[%s5291_s9 + $0xf40] sm:$0xff] %v2321_v8  ;;  %v1693_v57 = vld [vmem:[%s5242_s21 + $0xea0] sm:$0xff]  ;;  %v1694_v58 = vld [vmem:[%s5242_s21 + $0xea8] sm:$0xff]  ;;  %v2289_v3 = vmul.f32 %v6701_v43, %v1681_v24  ;;  %v2299_v21 = vmul.f32 %v6701_v43, %v1691_v42 }
 0x282   : > { %2834 = vst [vmem:[%s5291_s9 + $0xf48] sm:$0xff] %v2322_v9  ;;  %2835 = vst [vmem:[%s5291_s9 + $0xf50] sm:$0xff] %v2323_v10  ;;  %v1695_v59 = vld [vmem:[%s5242_s21 + $0xeb0] sm:$0xff]  ;;  %v1696_v0 = vld [vmem:[%s5242_s21 + $0xeb8] sm:$0xff]  ;;  %v2293_v10 = vmul.f32 %v6701_v43, %v1685_v32 }
 0x283   : > { %2836 = vst [vmem:[%s5291_s9 + $0xf58] sm:$0xff] %v2324_v11  ;;  %2837 = vst [vmem:[%s5291_s9 + $0xf60] sm:$0xff] %v2325_v12  ;;  %v1697_v1 = vld [vmem:[%s5242_s21 + $0xec0] sm:$0xff]  ;;  %v1698_v2 = vld [vmem:[%s5242_s21 + $0xec8] sm:$0xff]  ;;  %v2294_v11 = vmul.f32 %v6701_v43, %v1686_v48  ;;  %v2295_v12 = vmul.f32 %v6701_v43, %v1687_v39  ;;  %v2304_v31 = vmul.f32 %v6701_v43, %v1696_v0 }
 0x284   : > { %2838 = vst [vmem:[%s5291_s9 + $0xf68] sm:$0xff] %v2326_v13  ;;  %2839 = vst [vmem:[%s5291_s9 + $0xf70] sm:$0xff] %v2327_v14  ;;  %v1699_v7 = vld [vmem:[%s5242_s21 + $0xed0] sm:$0xff]  ;;  %v1700_v8 = vld [vmem:[%s5242_s21 + $0xed8] sm:$0xff]  ;;  %v2296_v13 = vmul.f32 %v6701_v43, %v1688_v51  ;;  %v2305_v34 = vmul.f32 %v6701_v43, %v1697_v1  ;;  %v2306_v36 = vmul.f32 %v6701_v43, %v1698_v2 }
 0x285   : > { %2840 = vst [vmem:[%s5291_s9 + $0xf78] sm:$0xff] %v2328_v15  ;;  %2841 = vst [vmem:[%s5291_s9 + $0xf80] sm:$0xff] %v2329_v23  ;;  %v1701_v9 = vld [vmem:[%s5242_s21 + $0xee0] sm:$0xff]  ;;  %v1702_v14 = vld [vmem:[%s5242_s21 + $0xee8] sm:$0xff]  ;;  %v2300_v23 = vmul.f32 %v6701_v43, %v1692_v41  ;;  %v2307_v38 = vmul.f32 %v6701_v43, %v1699_v7 }
 0x286   : > { %2842 = vst [vmem:[%s5291_s9 + $0xf88] sm:$0xff] %v2330_v25  ;;  %2843 = vst [vmem:[%s5291_s9 + $0xf90] sm:$0xff] %v2331_v27  ;;  %v1703_v15 = vld [vmem:[%s5242_s21 + $0xef0] sm:$0xff]  ;;  %v1704_v16 = vld [vmem:[%s5242_s21 + $0xef8] sm:$0xff]  ;;  %v2301_v25 = vmul.f32 %v6701_v43, %v1693_v57  ;;  %v2302_v27 = vmul.f32 %v6701_v43, %v1694_v58 }
 0x287   : > { %2844 = vst [vmem:[%s5291_s9 + $0xf98] sm:$0xff] %v2332_v29  ;;  %2845 = vst [vmem:[%s5291_s9 + $0xfa0] sm:$0xff] %v2333_v33  ;;  %v2303_v29 = vmul.f32 %v6701_v43, %v1695_v59  ;;  %v2308_v33 = vmul.f32 %v6701_v43, %v1700_v8  ;;  %v2312_v24 = vmul.f32 %v6701_v43, %v1704_v16  ;;  %v2884_v44 = vld [vmem:[%s5291_s9 + $0x8] sm:$0xff] (%p4147_p6)  ;;  %v2886_v26 = vld [vmem:[%s5291_s9 + $0x10] sm:$0xff] (%p4147_p6) }
 0x288   : > { %2846 = vst [vmem:[%s5291_s9 + $0xfa8] sm:$0xff] %v2334_v18  ;;  %2847 = vst [vmem:[%s5291_s9 + $0xfb0] sm:$0xff] %v2335_v20  ;;  %v2309_v18 = vmul.f32 %v6701_v43, %v1701_v9  ;;  %v2310_v20 = vmul.f32 %v6701_v43, %v1702_v14  ;;  %v2896_v47 = vld [vmem:[%s5291_s9 + $0x38] sm:$0xff] (%p4147_p6)  ;;  %v2898_v32 = vld [vmem:[%s5291_s9 + $0x40] sm:$0xff] (%p4147_p6) }
 0x289   : > { %2848 = vst [vmem:[%s5291_s9 + $0xfb8] sm:$0xff] %v2336_v22  ;;  %2849 = vst [vmem:[%s5291_s9 + $0xfc0] sm:$0xff] %v2337_v45  ;;  %v2311_v22 = vmul.f32 %v6701_v43, %v1703_v15  ;;  %v2882_v43 = vld [vmem:[%s5291_s9] sm:$0xff] (%p4147_p6)  ;;  %v2888_v45 = vld [vmem:[%s5291_s9 + $0x18] sm:$0xff] (%p4147_p6) }
 0x28a   : > { %2850 = vst [vmem:[%s5291_s9 + $0xfc8] sm:$0xff] %v2338_v28  ;;  %2851 = vst [vmem:[%s5291_s9 + $0xfd0] sm:$0xff] %v2339_v46  ;;  %v2890_v28 = vld [vmem:[%s5291_s9 + $0x20] sm:$0xff] (%p4147_p6)  ;;  %v2892_v46 = vld [vmem:[%s5291_s9 + $0x28] sm:$0xff] (%p4147_p6) }
 0x28b   : > { %2852 = vst [vmem:[%s5291_s9 + $0xfd8] sm:$0xff] %v2340_v30  ;;  %2853 = vst [vmem:[%s5291_s9 + $0xfe0] sm:$0xff] %v2341_v35  ;;  %v2894_v30 = vld [vmem:[%s5291_s9 + $0x30] sm:$0xff] (%p4147_p6)  ;;  %v2900_v48 = vld [vmem:[%s5291_s9 + $0x48] sm:$0xff] (%p4147_p6) }
 0x28c   : > { %2854 = vst [vmem:[%s5291_s9 + $0xfe8] sm:$0xff] %v2342_v49  ;;  %2855 = vst [vmem:[%s5291_s9 + $0xff0] sm:$0xff] %v2343_v37  ;;  %v2902_v35 = vld [vmem:[%s5291_s9 + $0x50] sm:$0xff] (%p4147_p6)  ;;  %v2904_v49 = vld [vmem:[%s5291_s9 + $0x58] sm:$0xff] (%p4147_p6) }
 0x28d   : > { %2856 = vst [vmem:[%s5291_s9 + $0xff8] sm:$0xff] %v2344_v50  ;;  %2793 = vst [vmem:[%s5291_s9 + $0xe00] sm:$0xff] %v2281_v53  ;;  %v2906_v37 = vld [vmem:[%s5291_s9 + $0x60] sm:$0xff] (%p4147_p6)  ;;  %v2908_v50 = vld [vmem:[%s5291_s9 + $0x68] sm:$0xff] (%p4147_p6) }
 0x28e   : > { %2794 = vst [vmem:[%s5291_s9 + $0xe08] sm:$0xff] %v2282_v54  ;;  %2795 = vst [vmem:[%s5291_s9 + $0xe10] sm:$0xff] %v2283_v55  ;;  %v2910_v39 = vld [vmem:[%s5291_s9 + $0x70] sm:$0xff] (%p4147_p6)  ;;  %v2912_v51 = vld [vmem:[%s5291_s9 + $0x78] sm:$0xff] (%p4147_p6) }
 0x28f   : > { %2796 = vst [vmem:[%s5291_s9 + $0xe18] sm:$0xff] %v2284_v56  ;;  %2797 = vst [vmem:[%s5291_s9 + $0xe20] sm:$0xff] %v2285_v60  ;;  %v2914_v40 = vld [vmem:[%s5291_s9 + $0x80] sm:$0xff] (%p4147_p6)  ;;  %v2916_v52 = vld [vmem:[%s5291_s9 + $0x88] sm:$0xff] (%p4147_p6) }
 0x290   : > { %2798 = vst [vmem:[%s5291_s9 + $0xe28] sm:$0xff] %v2286_v61  ;;  %2799 = vst [vmem:[%s5291_s9 + $0xe30] sm:$0xff] %v2287_v62  ;;  %v2918_v42 = vld [vmem:[%s5291_s9 + $0x90] sm:$0xff] (%p4147_p6)  ;;  %v2920_v41 = vld [vmem:[%s5291_s9 + $0x98] sm:$0xff] (%p4147_p6) }
 0x291   : > { %2800 = vst [vmem:[%s5291_s9 + $0xe38] sm:$0xff] %v2288_v63  ;;  %2801 = vst [vmem:[%s5291_s9 + $0xe40] sm:$0xff] %v2289_v3  ;;  %v2922_v53 = vld [vmem:[%s5291_s9 + $0xa0] sm:$0xff] (%p4147_p6)  ;;  %v2924_v54 = vld [vmem:[%s5291_s9 + $0xa8] sm:$0xff] (%p4147_p6) }
 0x292   : > { %2802 = vst [vmem:[%s5291_s9 + $0xe48] sm:$0xff] %v2290_v4  ;;  %2803 = vst [vmem:[%s5291_s9 + $0xe50] sm:$0xff] %v2291_v5  ;;  %v2926_v55 = vld [vmem:[%s5291_s9 + $0xb0] sm:$0xff] (%p4147_p6)  ;;  %v2928_v56 = vld [vmem:[%s5291_s9 + $0xb8] sm:$0xff] (%p4147_p6) }
 0x293   : > { %2804 = vst [vmem:[%s5291_s9 + $0xe58] sm:$0xff] %v2292_v6  ;;  %2805 = vst [vmem:[%s5291_s9 + $0xe60] sm:$0xff] %v2293_v10  ;;  %v2930_v57 = vld [vmem:[%s5291_s9 + $0xc0] sm:$0xff] (%p4147_p6)  ;;  %v2932_v58 = vld [vmem:[%s5291_s9 + $0xc8] sm:$0xff] (%p4147_p6) }
 0x294   : > { %2806 = vst [vmem:[%s5291_s9 + $0xe68] sm:$0xff] %v2294_v11  ;;  %2807 = vst [vmem:[%s5291_s9 + $0xe70] sm:$0xff] %v2295_v12  ;;  %v2934_v59 = vld [vmem:[%s5291_s9 + $0xd0] sm:$0xff] (%p4147_p6)  ;;  %v2936_v60 = vld [vmem:[%s5291_s9 + $0xd8] sm:$0xff] (%p4147_p6) }
 0x295   : > { %2808 = vst [vmem:[%s5291_s9 + $0xe78] sm:$0xff] %v2296_v13  ;;  %2809 = vst [vmem:[%s5291_s9 + $0xe80] sm:$0xff] %v2297_v17  ;;  %v2938_v61 = vld [vmem:[%s5291_s9 + $0xe0] sm:$0xff] (%p4147_p6)  ;;  %v2940_v62 = vld [vmem:[%s5291_s9 + $0xe8] sm:$0xff] (%p4147_p6) }
 0x296   : > { %2810 = vst [vmem:[%s5291_s9 + $0xe88] sm:$0xff] %v2298_v19  ;;  %2811 = vst [vmem:[%s5291_s9 + $0xe90] sm:$0xff] %v2299_v21  ;;  %v2942_v63 = vld [vmem:[%s5291_s9 + $0xf0] sm:$0xff] (%p4147_p6)  ;;  %v2944_v0 = vld [vmem:[%s5291_s9 + $0xf8] sm:$0xff] (%p4147_p6) }
 0x297   : > { %2812 = vst [vmem:[%s5291_s9 + $0xe98] sm:$0xff] %v2300_v23  ;;  %2813 = vst [vmem:[%s5291_s9 + $0xea0] sm:$0xff] %v2301_v25  ;;  %2863 = sbr.rel (!%p4147_p6) target bundleno = 926 (0x39e), region = 55  ;;  %v2946_v1 = vld [vmem:[%s5291_s9 + $0x100] sm:$0xff] (%p4147_p6)  ;;  %v2948_v2 = vld [vmem:[%s5291_s9 + $0x108] sm:$0xff] (%p4147_p6) }
 0x298   : > { %2814 = vst [vmem:[%s5291_s9 + $0xea8] sm:$0xff] %v2302_v27  ;;  %2815 = vst [vmem:[%s5291_s9 + $0xeb0] sm:$0xff] %v2303_v29  ;;  %v2950_v3 = vld [vmem:[%s5291_s9 + $0x110] sm:$0xff] (%p4147_p6)  ;;  %v2952_v4 = vld [vmem:[%s5291_s9 + $0x118] sm:$0xff] (%p4147_p6) }
 0x299   : > { %2816 = vst [vmem:[%s5291_s9 + $0xeb8] sm:$0xff] %v2304_v31  ;;  %2817 = vst [vmem:[%s5291_s9 + $0xec0] sm:$0xff] %v2305_v34  ;;  %v2954_v5 = vld [vmem:[%s5291_s9 + $0x120] sm:$0xff] (%p4147_p6)  ;;  %v2956_v6 = vld [vmem:[%s5291_s9 + $0x128] sm:$0xff] (%p4147_p6) }
 0x29a   : > { %2818 = vst [vmem:[%s5291_s9 + $0xec8] sm:$0xff] %v2306_v36  ;;  %2819 = vst [vmem:[%s5291_s9 + $0xed0] sm:$0xff] %v2307_v38  ;;  %v2958_v7 = vld [vmem:[%s5291_s9 + $0x130] sm:$0xff] (%p4147_p6)  ;;  %v2960_v8 = vld [vmem:[%s5291_s9 + $0x138] sm:$0xff] (%p4147_p6) }
 0x29b   : > { %2820 = vst [vmem:[%s5291_s9 + $0xed8] sm:$0xff] %v2308_v33  ;;  %2821 = vst [vmem:[%s5291_s9 + $0xee0] sm:$0xff] %v2309_v18  ;;  %v2962_v9 = vld [vmem:[%s5291_s9 + $0x140] sm:$0xff] (%p4147_p6)  ;;  %v2964_v10 = vld [vmem:[%s5291_s9 + $0x148] sm:$0xff] (%p4147_p6) }
 0x29c   : > { %2822 = vst [vmem:[%s5291_s9 + $0xee8] sm:$0xff] %v2310_v20  ;;  %2823 = vst [vmem:[%s5291_s9 + $0xef0] sm:$0xff] %v2311_v22  ;;  %v2966_v11 = vld [vmem:[%s5291_s9 + $0x150] sm:$0xff] (%p4147_p6)  ;;  %v2968_v12 = vld [vmem:[%s5291_s9 + $0x158] sm:$0xff] (%p4147_p6) }
 0x29d   : > { %2824 = vst [vmem:[%s5291_s9 + $0xef8] sm:$0xff] %v2312_v24  ;;  %2883 = vst [vmem:[%s6824_s25] sm:$0xff] (%p4147_p6), %v2882_v43  ;;  %v2970_v13 = vld [vmem:[%s5291_s9 + $0x160] sm:$0xff] (%p4147_p6)  ;;  %v2972_v14 = vld [vmem:[%s5291_s9 + $0x168] sm:$0xff] (%p4147_p6) }
 0x29e   : > { %2885 = vst [vmem:[%s6824_s25 + $0x8] sm:$0xff] %v2884_v44  ;;  %2887 = vst [vmem:[%s6824_s25 + $0x10] sm:$0xff] %v2886_v26  ;;  %v2974_v15 = vld [vmem:[%s5291_s9 + $0x170] sm:$0xff]  ;;  %v2976_v16 = vld [vmem:[%s5291_s9 + $0x178] sm:$0xff] }
 0x29f   : > { %2889 = vst [vmem:[%s6824_s25 + $0x18] sm:$0xff] %v2888_v45  ;;  %2891 = vst [vmem:[%s6824_s25 + $0x20] sm:$0xff] %v2890_v28  ;;  %v2978_v17 = vld [vmem:[%s5291_s9 + $0x180] sm:$0xff]  ;;  %v2980_v19 = vld [vmem:[%s5291_s9 + $0x188] sm:$0xff] }
 0x2a0   : > { %2893 = vst [vmem:[%s6824_s25 + $0x28] sm:$0xff] %v2892_v46  ;;  %2895 = vst [vmem:[%s6824_s25 + $0x30] sm:$0xff] %v2894_v30  ;;  %v2982_v21 = vld [vmem:[%s5291_s9 + $0x190] sm:$0xff]  ;;  %v2984_v23 = vld [vmem:[%s5291_s9 + $0x198] sm:$0xff] }
 0x2a1   : > { %2897 = vst [vmem:[%s6824_s25 + $0x38] sm:$0xff] %v2896_v47  ;;  %2899 = vst [vmem:[%s6824_s25 + $0x40] sm:$0xff] %v2898_v32  ;;  %v2986_v25 = vld [vmem:[%s5291_s9 + $0x1a0] sm:$0xff]  ;;  %v2988_v27 = vld [vmem:[%s5291_s9 + $0x1a8] sm:$0xff] }
 0x2a2   : > { %2901 = vst [vmem:[%s6824_s25 + $0x48] sm:$0xff] %v2900_v48  ;;  %2903 = vst [vmem:[%s6824_s25 + $0x50] sm:$0xff] %v2902_v35  ;;  %v2990_v29 = vld [vmem:[%s5291_s9 + $0x1b0] sm:$0xff]  ;;  %v2992_v31 = vld [vmem:[%s5291_s9 + $0x1b8] sm:$0xff] }
 0x2a3   : > { %2905 = vst [vmem:[%s6824_s25 + $0x58] sm:$0xff] %v2904_v49  ;;  %2907 = vst [vmem:[%s6824_s25 + $0x60] sm:$0xff] %v2906_v37  ;;  %v2994_v34 = vld [vmem:[%s5291_s9 + $0x1c0] sm:$0xff]  ;;  %v2996_v36 = vld [vmem:[%s5291_s9 + $0x1c8] sm:$0xff] }
 0x2a4   : > { %2909 = vst [vmem:[%s6824_s25 + $0x68] sm:$0xff] %v2908_v50  ;;  %2911 = vst [vmem:[%s6824_s25 + $0x70] sm:$0xff] %v2910_v39  ;;  %v2998_v38 = vld [vmem:[%s5291_s9 + $0x1d0] sm:$0xff]  ;;  %v3000_v33 = vld [vmem:[%s5291_s9 + $0x1d8] sm:$0xff] }
 0x2a5   : > { %2913 = vst [vmem:[%s6824_s25 + $0x78] sm:$0xff] %v2912_v51  ;;  %2915 = vst [vmem:[%s6824_s25 + $0x80] sm:$0xff] %v2914_v40  ;;  %v3002_v18 = vld [vmem:[%s5291_s9 + $0x1e0] sm:$0xff]  ;;  %v3004_v20 = vld [vmem:[%s5291_s9 + $0x1e8] sm:$0xff] }
 0x2a6   : > { %2917 = vst [vmem:[%s6824_s25 + $0x88] sm:$0xff] %v2916_v52  ;;  %2919 = vst [vmem:[%s6824_s25 + $0x90] sm:$0xff] %v2918_v42  ;;  %v3006_v22 = vld [vmem:[%s5291_s9 + $0x1f0] sm:$0xff]  ;;  %v3008_v24 = vld [vmem:[%s5291_s9 + $0x1f8] sm:$0xff] }
 0x2a7   : > { %2921 = vst [vmem:[%s6824_s25 + $0x98] sm:$0xff] %v2920_v41  ;;  %2923 = vst [vmem:[%s6824_s25 + $0xa0] sm:$0xff] %v2922_v53  ;;  %v3010_v43 = vld [vmem:[%s5291_s9 + $0x200] sm:$0xff]  ;;  %v3012_v44 = vld [vmem:[%s5291_s9 + $0x208] sm:$0xff] }
 0x2a8   : > { %2925 = vst [vmem:[%s6824_s25 + $0xa8] sm:$0xff] %v2924_v54  ;;  %2927 = vst [vmem:[%s6824_s25 + $0xb0] sm:$0xff] %v2926_v55  ;;  %v3014_v26 = vld [vmem:[%s5291_s9 + $0x210] sm:$0xff]  ;;  %v3016_v45 = vld [vmem:[%s5291_s9 + $0x218] sm:$0xff] }
 0x2a9   : > { %2929 = vst [vmem:[%s6824_s25 + $0xb8] sm:$0xff] %v2928_v56  ;;  %2931 = vst [vmem:[%s6824_s25 + $0xc0] sm:$0xff] %v2930_v57  ;;  %v3018_v28 = vld [vmem:[%s5291_s9 + $0x220] sm:$0xff]  ;;  %v3020_v46 = vld [vmem:[%s5291_s9 + $0x228] sm:$0xff] }
 0x2aa   : > { %2933 = vst [vmem:[%s6824_s25 + $0xc8] sm:$0xff] %v2932_v58  ;;  %2935 = vst [vmem:[%s6824_s25 + $0xd0] sm:$0xff] %v2934_v59  ;;  %v3022_v30 = vld [vmem:[%s5291_s9 + $0x230] sm:$0xff]  ;;  %v3024_v47 = vld [vmem:[%s5291_s9 + $0x238] sm:$0xff] }
 0x2ab   : > { %2937 = vst [vmem:[%s6824_s25 + $0xd8] sm:$0xff] %v2936_v60  ;;  %2939 = vst [vmem:[%s6824_s25 + $0xe0] sm:$0xff] %v2938_v61  ;;  %v3026_v32 = vld [vmem:[%s5291_s9 + $0x240] sm:$0xff]  ;;  %v3028_v48 = vld [vmem:[%s5291_s9 + $0x248] sm:$0xff] }
 0x2ac   : > { %2941 = vst [vmem:[%s6824_s25 + $0xe8] sm:$0xff] %v2940_v62  ;;  %2943 = vst [vmem:[%s6824_s25 + $0xf0] sm:$0xff] %v2942_v63  ;;  %v3030_v35 = vld [vmem:[%s5291_s9 + $0x250] sm:$0xff]  ;;  %v3032_v49 = vld [vmem:[%s5291_s9 + $0x258] sm:$0xff] }
 0x2ad   : > { %2945 = vst [vmem:[%s6824_s25 + $0xf8] sm:$0xff] %v2944_v0  ;;  %2947 = vst [vmem:[%s6824_s25 + $0x200] sm:$0xff] %v2946_v1  ;;  %v3034_v37 = vld [vmem:[%s5291_s9 + $0x260] sm:$0xff]  ;;  %v3036_v50 = vld [vmem:[%s5291_s9 + $0x268] sm:$0xff] }
 0x2ae   : > { %2949 = vst [vmem:[%s6824_s25 + $0x208] sm:$0xff] %v2948_v2  ;;  %2951 = vst [vmem:[%s6824_s25 + $0x210] sm:$0xff] %v2950_v3  ;;  %v3038_v39 = vld [vmem:[%s5291_s9 + $0x270] sm:$0xff]  ;;  %v3040_v51 = vld [vmem:[%s5291_s9 + $0x278] sm:$0xff] }
 0x2af   : > { %2953 = vst [vmem:[%s6824_s25 + $0x218] sm:$0xff] %v2952_v4  ;;  %2955 = vst [vmem:[%s6824_s25 + $0x220] sm:$0xff] %v2954_v5  ;;  %v3042_v40 = vld [vmem:[%s5291_s9 + $0x280] sm:$0xff]  ;;  %v3044_v52 = vld [vmem:[%s5291_s9 + $0x288] sm:$0xff] }
 0x2b0   : > { %2957 = vst [vmem:[%s6824_s25 + $0x228] sm:$0xff] %v2956_v6  ;;  %2959 = vst [vmem:[%s6824_s25 + $0x230] sm:$0xff] %v2958_v7  ;;  %v3046_v42 = vld [vmem:[%s5291_s9 + $0x290] sm:$0xff]  ;;  %v3048_v41 = vld [vmem:[%s5291_s9 + $0x298] sm:$0xff] }
 0x2b1   : > { %2961 = vst [vmem:[%s6824_s25 + $0x238] sm:$0xff] %v2960_v8  ;;  %2963 = vst [vmem:[%s6824_s25 + $0x240] sm:$0xff] %v2962_v9  ;;  %v3050_v53 = vld [vmem:[%s5291_s9 + $0x2a0] sm:$0xff]  ;;  %v3052_v54 = vld [vmem:[%s5291_s9 + $0x2a8] sm:$0xff] }
 0x2b2   : > { %2965 = vst [vmem:[%s6824_s25 + $0x248] sm:$0xff] %v2964_v10  ;;  %2967 = vst [vmem:[%s6824_s25 + $0x250] sm:$0xff] %v2966_v11  ;;  %v3054_v55 = vld [vmem:[%s5291_s9 + $0x2b0] sm:$0xff]  ;;  %v3056_v56 = vld [vmem:[%s5291_s9 + $0x2b8] sm:$0xff] }
 0x2b3   : > { %2969 = vst [vmem:[%s6824_s25 + $0x258] sm:$0xff] %v2968_v12  ;;  %2971 = vst [vmem:[%s6824_s25 + $0x260] sm:$0xff] %v2970_v13  ;;  %v3058_v57 = vld [vmem:[%s5291_s9 + $0x2c0] sm:$0xff]  ;;  %v3060_v58 = vld [vmem:[%s5291_s9 + $0x2c8] sm:$0xff] }
 0x2b4   : > { %2973 = vst [vmem:[%s6824_s25 + $0x268] sm:$0xff] %v2972_v14  ;;  %2975 = vst [vmem:[%s6824_s25 + $0x270] sm:$0xff] %v2974_v15  ;;  %v3062_v59 = vld [vmem:[%s5291_s9 + $0x2d0] sm:$0xff]  ;;  %v3064_v60 = vld [vmem:[%s5291_s9 + $0x2d8] sm:$0xff] }
 0x2b5   : > { %2977 = vst [vmem:[%s6824_s25 + $0x278] sm:$0xff] %v2976_v16  ;;  %2979 = vst [vmem:[%s6824_s25 + $0x280] sm:$0xff] %v2978_v17  ;;  %v3066_v61 = vld [vmem:[%s5291_s9 + $0x2e0] sm:$0xff]  ;;  %v3068_v62 = vld [vmem:[%s5291_s9 + $0x2e8] sm:$0xff] }
 0x2b6   : > { %2981 = vst [vmem:[%s6824_s25 + $0x288] sm:$0xff] %v2980_v19  ;;  %2983 = vst [vmem:[%s6824_s25 + $0x290] sm:$0xff] %v2982_v21  ;;  %v3070_v63 = vld [vmem:[%s5291_s9 + $0x2f0] sm:$0xff]  ;;  %v3072_v0 = vld [vmem:[%s5291_s9 + $0x2f8] sm:$0xff] }
 0x2b7   : > { %2985 = vst [vmem:[%s6824_s25 + $0x298] sm:$0xff] %v2984_v23  ;;  %2987 = vst [vmem:[%s6824_s25 + $0x2a0] sm:$0xff] %v2986_v25  ;;  %v3074_v1 = vld [vmem:[%s5291_s9 + $0x300] sm:$0xff]  ;;  %v3076_v2 = vld [vmem:[%s5291_s9 + $0x308] sm:$0xff] }
 0x2b8   : > { %2989 = vst [vmem:[%s6824_s25 + $0x2a8] sm:$0xff] %v2988_v27  ;;  %2991 = vst [vmem:[%s6824_s25 + $0x2b0] sm:$0xff] %v2990_v29  ;;  %v3078_v3 = vld [vmem:[%s5291_s9 + $0x310] sm:$0xff]  ;;  %v3080_v4 = vld [vmem:[%s5291_s9 + $0x318] sm:$0xff] }
 0x2b9   : > { %2993 = vst [vmem:[%s6824_s25 + $0x2b8] sm:$0xff] %v2992_v31  ;;  %2995 = vst [vmem:[%s6824_s25 + $0x2c0] sm:$0xff] %v2994_v34  ;;  %v3082_v5 = vld [vmem:[%s5291_s9 + $0x320] sm:$0xff]  ;;  %v3084_v6 = vld [vmem:[%s5291_s9 + $0x328] sm:$0xff] }
 0x2ba   : > { %2997 = vst [vmem:[%s6824_s25 + $0x2c8] sm:$0xff] %v2996_v36  ;;  %2999 = vst [vmem:[%s6824_s25 + $0x2d0] sm:$0xff] %v2998_v38  ;;  %v3086_v7 = vld [vmem:[%s5291_s9 + $0x330] sm:$0xff]  ;;  %v3088_v8 = vld [vmem:[%s5291_s9 + $0x338] sm:$0xff] }
 0x2bb   : > { %3001 = vst [vmem:[%s6824_s25 + $0x2d8] sm:$0xff] %v3000_v33  ;;  %3003 = vst [vmem:[%s6824_s25 + $0x2e0] sm:$0xff] %v3002_v18  ;;  %v3090_v9 = vld [vmem:[%s5291_s9 + $0x340] sm:$0xff]  ;;  %v3092_v10 = vld [vmem:[%s5291_s9 + $0x348] sm:$0xff] }
 0x2bc   : > { %3005 = vst [vmem:[%s6824_s25 + $0x2e8] sm:$0xff] %v3004_v20  ;;  %3007 = vst [vmem:[%s6824_s25 + $0x2f0] sm:$0xff] %v3006_v22  ;;  %v3094_v11 = vld [vmem:[%s5291_s9 + $0x350] sm:$0xff]  ;;  %v3096_v12 = vld [vmem:[%s5291_s9 + $0x358] sm:$0xff] }
 0x2bd   : > { %3009 = vst [vmem:[%s6824_s25 + $0x2f8] sm:$0xff] %v3008_v24  ;;  %3011 = vst [vmem:[%s6824_s25 + $0x400] sm:$0xff] %v3010_v43  ;;  %v3098_v13 = vld [vmem:[%s5291_s9 + $0x360] sm:$0xff]  ;;  %v3100_v14 = vld [vmem:[%s5291_s9 + $0x368] sm:$0xff] }
 0x2be   : > { %3013 = vst [vmem:[%s6824_s25 + $0x408] sm:$0xff] %v3012_v44  ;;  %3015 = vst [vmem:[%s6824_s25 + $0x410] sm:$0xff] %v3014_v26  ;;  %v3102_v15 = vld [vmem:[%s5291_s9 + $0x370] sm:$0xff]  ;;  %v3104_v16 = vld [vmem:[%s5291_s9 + $0x378] sm:$0xff] }
 0x2bf   : > { %3017 = vst [vmem:[%s6824_s25 + $0x418] sm:$0xff] %v3016_v45  ;;  %3019 = vst [vmem:[%s6824_s25 + $0x420] sm:$0xff] %v3018_v28  ;;  %v3106_v17 = vld [vmem:[%s5291_s9 + $0x380] sm:$0xff]  ;;  %v3108_v19 = vld [vmem:[%s5291_s9 + $0x388] sm:$0xff] }
 0x2c0   : > { %3021 = vst [vmem:[%s6824_s25 + $0x428] sm:$0xff] %v3020_v46  ;;  %3023 = vst [vmem:[%s6824_s25 + $0x430] sm:$0xff] %v3022_v30  ;;  %v3110_v21 = vld [vmem:[%s5291_s9 + $0x390] sm:$0xff]  ;;  %v3112_v23 = vld [vmem:[%s5291_s9 + $0x398] sm:$0xff] }
 0x2c1   : > { %3025 = vst [vmem:[%s6824_s25 + $0x438] sm:$0xff] %v3024_v47  ;;  %3027 = vst [vmem:[%s6824_s25 + $0x440] sm:$0xff] %v3026_v32  ;;  %v3114_v25 = vld [vmem:[%s5291_s9 + $0x3a0] sm:$0xff]  ;;  %v3116_v27 = vld [vmem:[%s5291_s9 + $0x3a8] sm:$0xff] }
 0x2c2   : > { %3029 = vst [vmem:[%s6824_s25 + $0x448] sm:$0xff] %v3028_v48  ;;  %3031 = vst [vmem:[%s6824_s25 + $0x450] sm:$0xff] %v3030_v35  ;;  %v3118_v29 = vld [vmem:[%s5291_s9 + $0x3b0] sm:$0xff]  ;;  %v3120_v31 = vld [vmem:[%s5291_s9 + $0x3b8] sm:$0xff] }
 0x2c3   : > { %3033 = vst [vmem:[%s6824_s25 + $0x458] sm:$0xff] %v3032_v49  ;;  %3035 = vst [vmem:[%s6824_s25 + $0x460] sm:$0xff] %v3034_v37  ;;  %v3122_v34 = vld [vmem:[%s5291_s9 + $0x3c0] sm:$0xff]  ;;  %v3124_v36 = vld [vmem:[%s5291_s9 + $0x3c8] sm:$0xff] }
 0x2c4   : > { %3037 = vst [vmem:[%s6824_s25 + $0x468] sm:$0xff] %v3036_v50  ;;  %3039 = vst [vmem:[%s6824_s25 + $0x470] sm:$0xff] %v3038_v39  ;;  %v3126_v38 = vld [vmem:[%s5291_s9 + $0x3d0] sm:$0xff]  ;;  %v3128_v33 = vld [vmem:[%s5291_s9 + $0x3d8] sm:$0xff] }
 0x2c5   : > { %3041 = vst [vmem:[%s6824_s25 + $0x478] sm:$0xff] %v3040_v51  ;;  %3043 = vst [vmem:[%s6824_s25 + $0x480] sm:$0xff] %v3042_v40  ;;  %v3130_v18 = vld [vmem:[%s5291_s9 + $0x3e0] sm:$0xff]  ;;  %v3132_v20 = vld [vmem:[%s5291_s9 + $0x3e8] sm:$0xff] }
 0x2c6   : > { %3045 = vst [vmem:[%s6824_s25 + $0x488] sm:$0xff] %v3044_v52  ;;  %3047 = vst [vmem:[%s6824_s25 + $0x490] sm:$0xff] %v3046_v42  ;;  %v3134_v22 = vld [vmem:[%s5291_s9 + $0x3f0] sm:$0xff]  ;;  %v3136_v24 = vld [vmem:[%s5291_s9 + $0x3f8] sm:$0xff] }
 0x2c7   : > { %3049 = vst [vmem:[%s6824_s25 + $0x498] sm:$0xff] %v3048_v41  ;;  %3051 = vst [vmem:[%s6824_s25 + $0x4a0] sm:$0xff] %v3050_v53  ;;  %v3138_v43 = vld [vmem:[%s5291_s9 + $0x400] sm:$0xff]  ;;  %v3140_v44 = vld [vmem:[%s5291_s9 + $0x408] sm:$0xff] }
 0x2c8   : > { %3053 = vst [vmem:[%s6824_s25 + $0x4a8] sm:$0xff] %v3052_v54  ;;  %3055 = vst [vmem:[%s6824_s25 + $0x4b0] sm:$0xff] %v3054_v55  ;;  %v3142_v26 = vld [vmem:[%s5291_s9 + $0x410] sm:$0xff]  ;;  %v3144_v45 = vld [vmem:[%s5291_s9 + $0x418] sm:$0xff] }
 0x2c9   : > { %3057 = vst [vmem:[%s6824_s25 + $0x4b8] sm:$0xff] %v3056_v56  ;;  %3059 = vst [vmem:[%s6824_s25 + $0x4c0] sm:$0xff] %v3058_v57  ;;  %v3146_v28 = vld [vmem:[%s5291_s9 + $0x420] sm:$0xff]  ;;  %v3148_v46 = vld [vmem:[%s5291_s9 + $0x428] sm:$0xff] }
 0x2ca   : > { %3061 = vst [vmem:[%s6824_s25 + $0x4c8] sm:$0xff] %v3060_v58  ;;  %3063 = vst [vmem:[%s6824_s25 + $0x4d0] sm:$0xff] %v3062_v59  ;;  %v3150_v30 = vld [vmem:[%s5291_s9 + $0x430] sm:$0xff]  ;;  %v3152_v47 = vld [vmem:[%s5291_s9 + $0x438] sm:$0xff] }
 0x2cb   : > { %3065 = vst [vmem:[%s6824_s25 + $0x4d8] sm:$0xff] %v3064_v60  ;;  %3067 = vst [vmem:[%s6824_s25 + $0x4e0] sm:$0xff] %v3066_v61  ;;  %v3154_v32 = vld [vmem:[%s5291_s9 + $0x440] sm:$0xff]  ;;  %v3156_v48 = vld [vmem:[%s5291_s9 + $0x448] sm:$0xff] }
 0x2cc   : > { %3069 = vst [vmem:[%s6824_s25 + $0x4e8] sm:$0xff] %v3068_v62  ;;  %3071 = vst [vmem:[%s6824_s25 + $0x4f0] sm:$0xff] %v3070_v63  ;;  %v3158_v35 = vld [vmem:[%s5291_s9 + $0x450] sm:$0xff]  ;;  %v3160_v49 = vld [vmem:[%s5291_s9 + $0x458] sm:$0xff] }
 0x2cd   : > { %3073 = vst [vmem:[%s6824_s25 + $0x4f8] sm:$0xff] %v3072_v0  ;;  %3075 = vst [vmem:[%s6824_s25 + $0x600] sm:$0xff] %v3074_v1  ;;  %v3162_v37 = vld [vmem:[%s5291_s9 + $0x460] sm:$0xff]  ;;  %v3164_v50 = vld [vmem:[%s5291_s9 + $0x468] sm:$0xff] }
 0x2ce   : > { %3077 = vst [vmem:[%s6824_s25 + $0x608] sm:$0xff] %v3076_v2  ;;  %3079 = vst [vmem:[%s6824_s25 + $0x610] sm:$0xff] %v3078_v3  ;;  %v3166_v39 = vld [vmem:[%s5291_s9 + $0x470] sm:$0xff]  ;;  %v3168_v51 = vld [vmem:[%s5291_s9 + $0x478] sm:$0xff] }
 0x2cf   : > { %3081 = vst [vmem:[%s6824_s25 + $0x618] sm:$0xff] %v3080_v4  ;;  %3083 = vst [vmem:[%s6824_s25 + $0x620] sm:$0xff] %v3082_v5  ;;  %v3170_v40 = vld [vmem:[%s5291_s9 + $0x480] sm:$0xff]  ;;  %v3172_v52 = vld [vmem:[%s5291_s9 + $0x488] sm:$0xff] }
 0x2d0   : > { %3085 = vst [vmem:[%s6824_s25 + $0x628] sm:$0xff] %v3084_v6  ;;  %3087 = vst [vmem:[%s6824_s25 + $0x630] sm:$0xff] %v3086_v7  ;;  %v3174_v42 = vld [vmem:[%s5291_s9 + $0x490] sm:$0xff]  ;;  %v3176_v41 = vld [vmem:[%s5291_s9 + $0x498] sm:$0xff] }
 0x2d1   : > { %3089 = vst [vmem:[%s6824_s25 + $0x638] sm:$0xff] %v3088_v8  ;;  %3091 = vst [vmem:[%s6824_s25 + $0x640] sm:$0xff] %v3090_v9  ;;  %v3178_v53 = vld [vmem:[%s5291_s9 + $0x4a0] sm:$0xff]  ;;  %v3180_v54 = vld [vmem:[%s5291_s9 + $0x4a8] sm:$0xff] }
 0x2d2   : > { %3093 = vst [vmem:[%s6824_s25 + $0x648] sm:$0xff] %v3092_v10  ;;  %3095 = vst [vmem:[%s6824_s25 + $0x650] sm:$0xff] %v3094_v11  ;;  %v3182_v55 = vld [vmem:[%s5291_s9 + $0x4b0] sm:$0xff]  ;;  %v3184_v56 = vld [vmem:[%s5291_s9 + $0x4b8] sm:$0xff] }
 0x2d3   : > { %3097 = vst [vmem:[%s6824_s25 + $0x658] sm:$0xff] %v3096_v12  ;;  %3099 = vst [vmem:[%s6824_s25 + $0x660] sm:$0xff] %v3098_v13  ;;  %v3186_v57 = vld [vmem:[%s5291_s9 + $0x4c0] sm:$0xff]  ;;  %v3188_v58 = vld [vmem:[%s5291_s9 + $0x4c8] sm:$0xff] }
 0x2d4   : > { %3101 = vst [vmem:[%s6824_s25 + $0x668] sm:$0xff] %v3100_v14  ;;  %3103 = vst [vmem:[%s6824_s25 + $0x670] sm:$0xff] %v3102_v15  ;;  %v3190_v59 = vld [vmem:[%s5291_s9 + $0x4d0] sm:$0xff]  ;;  %v3192_v60 = vld [vmem:[%s5291_s9 + $0x4d8] sm:$0xff] }
 0x2d5   : > { %3105 = vst [vmem:[%s6824_s25 + $0x678] sm:$0xff] %v3104_v16  ;;  %3107 = vst [vmem:[%s6824_s25 + $0x680] sm:$0xff] %v3106_v17  ;;  %v3194_v61 = vld [vmem:[%s5291_s9 + $0x4e0] sm:$0xff]  ;;  %v3196_v62 = vld [vmem:[%s5291_s9 + $0x4e8] sm:$0xff] }
 0x2d6   : > { %3109 = vst [vmem:[%s6824_s25 + $0x688] sm:$0xff] %v3108_v19  ;;  %3111 = vst [vmem:[%s6824_s25 + $0x690] sm:$0xff] %v3110_v21  ;;  %v3198_v63 = vld [vmem:[%s5291_s9 + $0x4f0] sm:$0xff]  ;;  %v3200_v0 = vld [vmem:[%s5291_s9 + $0x4f8] sm:$0xff] }
 0x2d7   : > { %3113 = vst [vmem:[%s6824_s25 + $0x698] sm:$0xff] %v3112_v23  ;;  %3115 = vst [vmem:[%s6824_s25 + $0x6a0] sm:$0xff] %v3114_v25  ;;  %v3202_v1 = vld [vmem:[%s5291_s9 + $0x500] sm:$0xff]  ;;  %v3204_v2 = vld [vmem:[%s5291_s9 + $0x508] sm:$0xff] }
 0x2d8   : > { %3117 = vst [vmem:[%s6824_s25 + $0x6a8] sm:$0xff] %v3116_v27  ;;  %3119 = vst [vmem:[%s6824_s25 + $0x6b0] sm:$0xff] %v3118_v29  ;;  %v3206_v3 = vld [vmem:[%s5291_s9 + $0x510] sm:$0xff]  ;;  %v3208_v4 = vld [vmem:[%s5291_s9 + $0x518] sm:$0xff] }
 0x2d9   : > { %3121 = vst [vmem:[%s6824_s25 + $0x6b8] sm:$0xff] %v3120_v31  ;;  %3123 = vst [vmem:[%s6824_s25 + $0x6c0] sm:$0xff] %v3122_v34  ;;  %v3210_v5 = vld [vmem:[%s5291_s9 + $0x520] sm:$0xff]  ;;  %v3212_v6 = vld [vmem:[%s5291_s9 + $0x528] sm:$0xff] }
 0x2da   : > { %3125 = vst [vmem:[%s6824_s25 + $0x6c8] sm:$0xff] %v3124_v36  ;;  %3127 = vst [vmem:[%s6824_s25 + $0x6d0] sm:$0xff] %v3126_v38  ;;  %v3214_v7 = vld [vmem:[%s5291_s9 + $0x530] sm:$0xff]  ;;  %v3216_v8 = vld [vmem:[%s5291_s9 + $0x538] sm:$0xff] }
 0x2db   : > { %3129 = vst [vmem:[%s6824_s25 + $0x6d8] sm:$0xff] %v3128_v33  ;;  %3131 = vst [vmem:[%s6824_s25 + $0x6e0] sm:$0xff] %v3130_v18  ;;  %v3218_v9 = vld [vmem:[%s5291_s9 + $0x540] sm:$0xff]  ;;  %v3220_v10 = vld [vmem:[%s5291_s9 + $0x548] sm:$0xff] }
 0x2dc   : > { %3133 = vst [vmem:[%s6824_s25 + $0x6e8] sm:$0xff] %v3132_v20  ;;  %3135 = vst [vmem:[%s6824_s25 + $0x6f0] sm:$0xff] %v3134_v22  ;;  %v3222_v11 = vld [vmem:[%s5291_s9 + $0x550] sm:$0xff]  ;;  %v3224_v12 = vld [vmem:[%s5291_s9 + $0x558] sm:$0xff] }
 0x2dd   : > { %3137 = vst [vmem:[%s6824_s25 + $0x6f8] sm:$0xff] %v3136_v24  ;;  %3139 = vst [vmem:[%s6824_s25 + $0x800] sm:$0xff] %v3138_v43  ;;  %v3226_v13 = vld [vmem:[%s5291_s9 + $0x560] sm:$0xff]  ;;  %v3228_v14 = vld [vmem:[%s5291_s9 + $0x568] sm:$0xff] }
 0x2de   : > { %3141 = vst [vmem:[%s6824_s25 + $0x808] sm:$0xff] %v3140_v44  ;;  %3143 = vst [vmem:[%s6824_s25 + $0x810] sm:$0xff] %v3142_v26  ;;  %v3230_v15 = vld [vmem:[%s5291_s9 + $0x570] sm:$0xff]  ;;  %v3232_v16 = vld [vmem:[%s5291_s9 + $0x578] sm:$0xff] }
 0x2df   : > { %3145 = vst [vmem:[%s6824_s25 + $0x818] sm:$0xff] %v3144_v45  ;;  %3147 = vst [vmem:[%s6824_s25 + $0x820] sm:$0xff] %v3146_v28  ;;  %v3234_v17 = vld [vmem:[%s5291_s9 + $0x580] sm:$0xff]  ;;  %v3236_v19 = vld [vmem:[%s5291_s9 + $0x588] sm:$0xff] }
 0x2e0   : > { %3149 = vst [vmem:[%s6824_s25 + $0x828] sm:$0xff] %v3148_v46  ;;  %3151 = vst [vmem:[%s6824_s25 + $0x830] sm:$0xff] %v3150_v30  ;;  %v3238_v21 = vld [vmem:[%s5291_s9 + $0x590] sm:$0xff]  ;;  %v3240_v23 = vld [vmem:[%s5291_s9 + $0x598] sm:$0xff] }
 0x2e1   : > { %3153 = vst [vmem:[%s6824_s25 + $0x838] sm:$0xff] %v3152_v47  ;;  %3155 = vst [vmem:[%s6824_s25 + $0x840] sm:$0xff] %v3154_v32  ;;  %v3242_v25 = vld [vmem:[%s5291_s9 + $0x5a0] sm:$0xff]  ;;  %v3244_v27 = vld [vmem:[%s5291_s9 + $0x5a8] sm:$0xff] }
 0x2e2   : > { %3157 = vst [vmem:[%s6824_s25 + $0x848] sm:$0xff] %v3156_v48  ;;  %3159 = vst [vmem:[%s6824_s25 + $0x850] sm:$0xff] %v3158_v35  ;;  %v3246_v29 = vld [vmem:[%s5291_s9 + $0x5b0] sm:$0xff]  ;;  %v3248_v31 = vld [vmem:[%s5291_s9 + $0x5b8] sm:$0xff] }
 0x2e3   : > { %3161 = vst [vmem:[%s6824_s25 + $0x858] sm:$0xff] %v3160_v49  ;;  %3163 = vst [vmem:[%s6824_s25 + $0x860] sm:$0xff] %v3162_v37  ;;  %v3250_v34 = vld [vmem:[%s5291_s9 + $0x5c0] sm:$0xff]  ;;  %v3252_v36 = vld [vmem:[%s5291_s9 + $0x5c8] sm:$0xff] }
 0x2e4   : > { %3165 = vst [vmem:[%s6824_s25 + $0x868] sm:$0xff] %v3164_v50  ;;  %3167 = vst [vmem:[%s6824_s25 + $0x870] sm:$0xff] %v3166_v39  ;;  %v3254_v38 = vld [vmem:[%s5291_s9 + $0x5d0] sm:$0xff]  ;;  %v3256_v33 = vld [vmem:[%s5291_s9 + $0x5d8] sm:$0xff] }
 0x2e5   : > { %3169 = vst [vmem:[%s6824_s25 + $0x878] sm:$0xff] %v3168_v51  ;;  %3171 = vst [vmem:[%s6824_s25 + $0x880] sm:$0xff] %v3170_v40  ;;  %v3258_v18 = vld [vmem:[%s5291_s9 + $0x5e0] sm:$0xff]  ;;  %v3260_v20 = vld [vmem:[%s5291_s9 + $0x5e8] sm:$0xff] }
 0x2e6   : > { %3173 = vst [vmem:[%s6824_s25 + $0x888] sm:$0xff] %v3172_v52  ;;  %3175 = vst [vmem:[%s6824_s25 + $0x890] sm:$0xff] %v3174_v42  ;;  %v3262_v22 = vld [vmem:[%s5291_s9 + $0x5f0] sm:$0xff]  ;;  %v3264_v24 = vld [vmem:[%s5291_s9 + $0x5f8] sm:$0xff] }
 0x2e7   : > { %3177 = vst [vmem:[%s6824_s25 + $0x898] sm:$0xff] %v3176_v41  ;;  %3179 = vst [vmem:[%s6824_s25 + $0x8a0] sm:$0xff] %v3178_v53  ;;  %v3266_v43 = vld [vmem:[%s5291_s9 + $0x600] sm:$0xff]  ;;  %v3268_v44 = vld [vmem:[%s5291_s9 + $0x608] sm:$0xff] }
 0x2e8   : > { %3181 = vst [vmem:[%s6824_s25 + $0x8a8] sm:$0xff] %v3180_v54  ;;  %3183 = vst [vmem:[%s6824_s25 + $0x8b0] sm:$0xff] %v3182_v55  ;;  %v3270_v26 = vld [vmem:[%s5291_s9 + $0x610] sm:$0xff]  ;;  %v3272_v45 = vld [vmem:[%s5291_s9 + $0x618] sm:$0xff] }
 0x2e9   : > { %3185 = vst [vmem:[%s6824_s25 + $0x8b8] sm:$0xff] %v3184_v56  ;;  %3187 = vst [vmem:[%s6824_s25 + $0x8c0] sm:$0xff] %v3186_v57  ;;  %v3274_v28 = vld [vmem:[%s5291_s9 + $0x620] sm:$0xff]  ;;  %v3276_v46 = vld [vmem:[%s5291_s9 + $0x628] sm:$0xff] }
 0x2ea   : > { %3189 = vst [vmem:[%s6824_s25 + $0x8c8] sm:$0xff] %v3188_v58  ;;  %3191 = vst [vmem:[%s6824_s25 + $0x8d0] sm:$0xff] %v3190_v59  ;;  %v3278_v30 = vld [vmem:[%s5291_s9 + $0x630] sm:$0xff]  ;;  %v3280_v47 = vld [vmem:[%s5291_s9 + $0x638] sm:$0xff] }
 0x2eb   : > { %3193 = vst [vmem:[%s6824_s25 + $0x8d8] sm:$0xff] %v3192_v60  ;;  %3195 = vst [vmem:[%s6824_s25 + $0x8e0] sm:$0xff] %v3194_v61  ;;  %v3282_v32 = vld [vmem:[%s5291_s9 + $0x640] sm:$0xff]  ;;  %v3284_v48 = vld [vmem:[%s5291_s9 + $0x648] sm:$0xff] }
 0x2ec   : > { %3197 = vst [vmem:[%s6824_s25 + $0x8e8] sm:$0xff] %v3196_v62  ;;  %3199 = vst [vmem:[%s6824_s25 + $0x8f0] sm:$0xff] %v3198_v63  ;;  %v3286_v35 = vld [vmem:[%s5291_s9 + $0x650] sm:$0xff]  ;;  %v3288_v49 = vld [vmem:[%s5291_s9 + $0x658] sm:$0xff] }
 0x2ed   : > { %3201 = vst [vmem:[%s6824_s25 + $0x8f8] sm:$0xff] %v3200_v0  ;;  %3203 = vst [vmem:[%s6824_s25 + $0xa00] sm:$0xff] %v3202_v1  ;;  %v3290_v37 = vld [vmem:[%s5291_s9 + $0x660] sm:$0xff]  ;;  %v3292_v50 = vld [vmem:[%s5291_s9 + $0x668] sm:$0xff] }
 0x2ee   : > { %3205 = vst [vmem:[%s6824_s25 + $0xa08] sm:$0xff] %v3204_v2  ;;  %3207 = vst [vmem:[%s6824_s25 + $0xa10] sm:$0xff] %v3206_v3  ;;  %v3294_v39 = vld [vmem:[%s5291_s9 + $0x670] sm:$0xff]  ;;  %v3296_v51 = vld [vmem:[%s5291_s9 + $0x678] sm:$0xff] }
 0x2ef   : > { %3209 = vst [vmem:[%s6824_s25 + $0xa18] sm:$0xff] %v3208_v4  ;;  %3211 = vst [vmem:[%s6824_s25 + $0xa20] sm:$0xff] %v3210_v5  ;;  %v3298_v40 = vld [vmem:[%s5291_s9 + $0x680] sm:$0xff]  ;;  %v3300_v52 = vld [vmem:[%s5291_s9 + $0x688] sm:$0xff] }
 0x2f0   : > { %3213 = vst [vmem:[%s6824_s25 + $0xa28] sm:$0xff] %v3212_v6  ;;  %3215 = vst [vmem:[%s6824_s25 + $0xa30] sm:$0xff] %v3214_v7  ;;  %v3302_v42 = vld [vmem:[%s5291_s9 + $0x690] sm:$0xff]  ;;  %v3304_v41 = vld [vmem:[%s5291_s9 + $0x698] sm:$0xff] }
 0x2f1   : > { %3217 = vst [vmem:[%s6824_s25 + $0xa38] sm:$0xff] %v3216_v8  ;;  %3219 = vst [vmem:[%s6824_s25 + $0xa40] sm:$0xff] %v3218_v9  ;;  %v3306_v53 = vld [vmem:[%s5291_s9 + $0x6a0] sm:$0xff]  ;;  %v3308_v54 = vld [vmem:[%s5291_s9 + $0x6a8] sm:$0xff] }
 0x2f2   : > { %3221 = vst [vmem:[%s6824_s25 + $0xa48] sm:$0xff] %v3220_v10  ;;  %3223 = vst [vmem:[%s6824_s25 + $0xa50] sm:$0xff] %v3222_v11  ;;  %v3310_v55 = vld [vmem:[%s5291_s9 + $0x6b0] sm:$0xff]  ;;  %v3312_v56 = vld [vmem:[%s5291_s9 + $0x6b8] sm:$0xff] }
 0x2f3   : > { %3225 = vst [vmem:[%s6824_s25 + $0xa58] sm:$0xff] %v3224_v12  ;;  %3227 = vst [vmem:[%s6824_s25 + $0xa60] sm:$0xff] %v3226_v13  ;;  %v3314_v57 = vld [vmem:[%s5291_s9 + $0x6c0] sm:$0xff]  ;;  %v3316_v58 = vld [vmem:[%s5291_s9 + $0x6c8] sm:$0xff] }
 0x2f4   : > { %3229 = vst [vmem:[%s6824_s25 + $0xa68] sm:$0xff] %v3228_v14  ;;  %3231 = vst [vmem:[%s6824_s25 + $0xa70] sm:$0xff] %v3230_v15  ;;  %v3318_v59 = vld [vmem:[%s5291_s9 + $0x6d0] sm:$0xff]  ;;  %v3320_v60 = vld [vmem:[%s5291_s9 + $0x6d8] sm:$0xff] }
 0x2f5   : > { %3233 = vst [vmem:[%s6824_s25 + $0xa78] sm:$0xff] %v3232_v16  ;;  %3235 = vst [vmem:[%s6824_s25 + $0xa80] sm:$0xff] %v3234_v17  ;;  %v3322_v61 = vld [vmem:[%s5291_s9 + $0x6e0] sm:$0xff]  ;;  %v3324_v62 = vld [vmem:[%s5291_s9 + $0x6e8] sm:$0xff] }
 0x2f6   : > { %3237 = vst [vmem:[%s6824_s25 + $0xa88] sm:$0xff] %v3236_v19  ;;  %3239 = vst [vmem:[%s6824_s25 + $0xa90] sm:$0xff] %v3238_v21  ;;  %v3326_v63 = vld [vmem:[%s5291_s9 + $0x6f0] sm:$0xff]  ;;  %v3328_v0 = vld [vmem:[%s5291_s9 + $0x6f8] sm:$0xff] }
 0x2f7   : > { %3241 = vst [vmem:[%s6824_s25 + $0xa98] sm:$0xff] %v3240_v23  ;;  %3243 = vst [vmem:[%s6824_s25 + $0xaa0] sm:$0xff] %v3242_v25  ;;  %v3330_v1 = vld [vmem:[%s5291_s9 + $0x700] sm:$0xff]  ;;  %v3332_v2 = vld [vmem:[%s5291_s9 + $0x708] sm:$0xff] }
 0x2f8   : > { %3245 = vst [vmem:[%s6824_s25 + $0xaa8] sm:$0xff] %v3244_v27  ;;  %3247 = vst [vmem:[%s6824_s25 + $0xab0] sm:$0xff] %v3246_v29  ;;  %v3334_v3 = vld [vmem:[%s5291_s9 + $0x710] sm:$0xff]  ;;  %v3336_v4 = vld [vmem:[%s5291_s9 + $0x718] sm:$0xff] }
 0x2f9   : > { %3249 = vst [vmem:[%s6824_s25 + $0xab8] sm:$0xff] %v3248_v31  ;;  %3251 = vst [vmem:[%s6824_s25 + $0xac0] sm:$0xff] %v3250_v34  ;;  %v3338_v5 = vld [vmem:[%s5291_s9 + $0x720] sm:$0xff]  ;;  %v3340_v6 = vld [vmem:[%s5291_s9 + $0x728] sm:$0xff] }
 0x2fa   : > { %3253 = vst [vmem:[%s6824_s25 + $0xac8] sm:$0xff] %v3252_v36  ;;  %3255 = vst [vmem:[%s6824_s25 + $0xad0] sm:$0xff] %v3254_v38  ;;  %v3342_v7 = vld [vmem:[%s5291_s9 + $0x730] sm:$0xff]  ;;  %v3344_v8 = vld [vmem:[%s5291_s9 + $0x738] sm:$0xff] }
 0x2fb   : > { %3257 = vst [vmem:[%s6824_s25 + $0xad8] sm:$0xff] %v3256_v33  ;;  %3259 = vst [vmem:[%s6824_s25 + $0xae0] sm:$0xff] %v3258_v18  ;;  %v3346_v9 = vld [vmem:[%s5291_s9 + $0x740] sm:$0xff]  ;;  %v3348_v10 = vld [vmem:[%s5291_s9 + $0x748] sm:$0xff] }
 0x2fc   : > { %3261 = vst [vmem:[%s6824_s25 + $0xae8] sm:$0xff] %v3260_v20  ;;  %3263 = vst [vmem:[%s6824_s25 + $0xaf0] sm:$0xff] %v3262_v22  ;;  %v3350_v11 = vld [vmem:[%s5291_s9 + $0x750] sm:$0xff]  ;;  %v3352_v12 = vld [vmem:[%s5291_s9 + $0x758] sm:$0xff] }
 0x2fd   : > { %3265 = vst [vmem:[%s6824_s25 + $0xaf8] sm:$0xff] %v3264_v24  ;;  %3267 = vst [vmem:[%s6824_s25 + $0xc00] sm:$0xff] %v3266_v43  ;;  %v3354_v13 = vld [vmem:[%s5291_s9 + $0x760] sm:$0xff]  ;;  %v3356_v14 = vld [vmem:[%s5291_s9 + $0x768] sm:$0xff] }
 0x2fe   : > { %3269 = vst [vmem:[%s6824_s25 + $0xc08] sm:$0xff] %v3268_v44  ;;  %3271 = vst [vmem:[%s6824_s25 + $0xc10] sm:$0xff] %v3270_v26  ;;  %v3358_v15 = vld [vmem:[%s5291_s9 + $0x770] sm:$0xff]  ;;  %v3360_v16 = vld [vmem:[%s5291_s9 + $0x778] sm:$0xff] }
 0x2ff   : > { %3273 = vst [vmem:[%s6824_s25 + $0xc18] sm:$0xff] %v3272_v45  ;;  %3275 = vst [vmem:[%s6824_s25 + $0xc20] sm:$0xff] %v3274_v28  ;;  %v3362_v17 = vld [vmem:[%s5291_s9 + $0x780] sm:$0xff]  ;;  %v3364_v19 = vld [vmem:[%s5291_s9 + $0x788] sm:$0xff] }
 0x300   : > { %3277 = vst [vmem:[%s6824_s25 + $0xc28] sm:$0xff] %v3276_v46  ;;  %3279 = vst [vmem:[%s6824_s25 + $0xc30] sm:$0xff] %v3278_v30  ;;  %v3366_v21 = vld [vmem:[%s5291_s9 + $0x790] sm:$0xff]  ;;  %v3368_v23 = vld [vmem:[%s5291_s9 + $0x798] sm:$0xff] }
 0x301   : > { %3281 = vst [vmem:[%s6824_s25 + $0xc38] sm:$0xff] %v3280_v47  ;;  %3283 = vst [vmem:[%s6824_s25 + $0xc40] sm:$0xff] %v3282_v32  ;;  %v3370_v25 = vld [vmem:[%s5291_s9 + $0x7a0] sm:$0xff]  ;;  %v3372_v27 = vld [vmem:[%s5291_s9 + $0x7a8] sm:$0xff] }
 0x302   : > { %3285 = vst [vmem:[%s6824_s25 + $0xc48] sm:$0xff] %v3284_v48  ;;  %3287 = vst [vmem:[%s6824_s25 + $0xc50] sm:$0xff] %v3286_v35  ;;  %v3374_v29 = vld [vmem:[%s5291_s9 + $0x7b0] sm:$0xff]  ;;  %v3376_v31 = vld [vmem:[%s5291_s9 + $0x7b8] sm:$0xff] }
 0x303   : > { %3289 = vst [vmem:[%s6824_s25 + $0xc58] sm:$0xff] %v3288_v49  ;;  %3291 = vst [vmem:[%s6824_s25 + $0xc60] sm:$0xff] %v3290_v37  ;;  %v3378_v34 = vld [vmem:[%s5291_s9 + $0x7c0] sm:$0xff]  ;;  %v3380_v36 = vld [vmem:[%s5291_s9 + $0x7c8] sm:$0xff] }
 0x304   : > { %3293 = vst [vmem:[%s6824_s25 + $0xc68] sm:$0xff] %v3292_v50  ;;  %3295 = vst [vmem:[%s6824_s25 + $0xc70] sm:$0xff] %v3294_v39  ;;  %v3382_v38 = vld [vmem:[%s5291_s9 + $0x7d0] sm:$0xff]  ;;  %v3384_v33 = vld [vmem:[%s5291_s9 + $0x7d8] sm:$0xff] }
 0x305   : > { %3297 = vst [vmem:[%s6824_s25 + $0xc78] sm:$0xff] %v3296_v51  ;;  %3299 = vst [vmem:[%s6824_s25 + $0xc80] sm:$0xff] %v3298_v40  ;;  %v3386_v18 = vld [vmem:[%s5291_s9 + $0x7e0] sm:$0xff]  ;;  %v3388_v20 = vld [vmem:[%s5291_s9 + $0x7e8] sm:$0xff] }
 0x306   : > { %3301 = vst [vmem:[%s6824_s25 + $0xc88] sm:$0xff] %v3300_v52  ;;  %3303 = vst [vmem:[%s6824_s25 + $0xc90] sm:$0xff] %v3302_v42  ;;  %v3390_v22 = vld [vmem:[%s5291_s9 + $0x7f0] sm:$0xff]  ;;  %v3392_v24 = vld [vmem:[%s5291_s9 + $0x7f8] sm:$0xff] }
 0x307   : > { %3305 = vst [vmem:[%s6824_s25 + $0xc98] sm:$0xff] %v3304_v41  ;;  %3307 = vst [vmem:[%s6824_s25 + $0xca0] sm:$0xff] %v3306_v53  ;;  %v3394_v43 = vld [vmem:[%s5291_s9 + $0x800] sm:$0xff]  ;;  %v3396_v44 = vld [vmem:[%s5291_s9 + $0x808] sm:$0xff] }
 0x308   : > { %3309 = vst [vmem:[%s6824_s25 + $0xca8] sm:$0xff] %v3308_v54  ;;  %3311 = vst [vmem:[%s6824_s25 + $0xcb0] sm:$0xff] %v3310_v55  ;;  %v3398_v26 = vld [vmem:[%s5291_s9 + $0x810] sm:$0xff]  ;;  %v3400_v45 = vld [vmem:[%s5291_s9 + $0x818] sm:$0xff] }
 0x309   : > { %3313 = vst [vmem:[%s6824_s25 + $0xcb8] sm:$0xff] %v3312_v56  ;;  %3315 = vst [vmem:[%s6824_s25 + $0xcc0] sm:$0xff] %v3314_v57  ;;  %v3402_v28 = vld [vmem:[%s5291_s9 + $0x820] sm:$0xff]  ;;  %v3404_v46 = vld [vmem:[%s5291_s9 + $0x828] sm:$0xff] }
 0x30a   : > { %3317 = vst [vmem:[%s6824_s25 + $0xcc8] sm:$0xff] %v3316_v58  ;;  %3319 = vst [vmem:[%s6824_s25 + $0xcd0] sm:$0xff] %v3318_v59  ;;  %v3406_v30 = vld [vmem:[%s5291_s9 + $0x830] sm:$0xff]  ;;  %v3408_v47 = vld [vmem:[%s5291_s9 + $0x838] sm:$0xff] }
 0x30b   : > { %3321 = vst [vmem:[%s6824_s25 + $0xcd8] sm:$0xff] %v3320_v60  ;;  %3323 = vst [vmem:[%s6824_s25 + $0xce0] sm:$0xff] %v3322_v61  ;;  %v3410_v32 = vld [vmem:[%s5291_s9 + $0x840] sm:$0xff]  ;;  %v3412_v48 = vld [vmem:[%s5291_s9 + $0x848] sm:$0xff] }
 0x30c   : > { %3325 = vst [vmem:[%s6824_s25 + $0xce8] sm:$0xff] %v3324_v62  ;;  %3327 = vst [vmem:[%s6824_s25 + $0xcf0] sm:$0xff] %v3326_v63  ;;  %v3414_v35 = vld [vmem:[%s5291_s9 + $0x850] sm:$0xff]  ;;  %v3416_v49 = vld [vmem:[%s5291_s9 + $0x858] sm:$0xff] }
 0x30d   : > { %3329 = vst [vmem:[%s6824_s25 + $0xcf8] sm:$0xff] %v3328_v0  ;;  %3331 = vst [vmem:[%s6824_s25 + $0xe00] sm:$0xff] %v3330_v1  ;;  %v3418_v37 = vld [vmem:[%s5291_s9 + $0x860] sm:$0xff]  ;;  %v3420_v50 = vld [vmem:[%s5291_s9 + $0x868] sm:$0xff] }
 0x30e   : > { %3333 = vst [vmem:[%s6824_s25 + $0xe08] sm:$0xff] %v3332_v2  ;;  %3335 = vst [vmem:[%s6824_s25 + $0xe10] sm:$0xff] %v3334_v3  ;;  %v3422_v39 = vld [vmem:[%s5291_s9 + $0x870] sm:$0xff]  ;;  %v3424_v51 = vld [vmem:[%s5291_s9 + $0x878] sm:$0xff] }
 0x30f   : > { %3337 = vst [vmem:[%s6824_s25 + $0xe18] sm:$0xff] %v3336_v4  ;;  %3339 = vst [vmem:[%s6824_s25 + $0xe20] sm:$0xff] %v3338_v5  ;;  %v3426_v40 = vld [vmem:[%s5291_s9 + $0x880] sm:$0xff]  ;;  %v3428_v52 = vld [vmem:[%s5291_s9 + $0x888] sm:$0xff] }
 0x310   : > { %3341 = vst [vmem:[%s6824_s25 + $0xe28] sm:$0xff] %v3340_v6  ;;  %3343 = vst [vmem:[%s6824_s25 + $0xe30] sm:$0xff] %v3342_v7  ;;  %v3430_v42 = vld [vmem:[%s5291_s9 + $0x890] sm:$0xff]  ;;  %v3432_v41 = vld [vmem:[%s5291_s9 + $0x898] sm:$0xff] }
 0x311   : > { %3345 = vst [vmem:[%s6824_s25 + $0xe38] sm:$0xff] %v3344_v8  ;;  %3347 = vst [vmem:[%s6824_s25 + $0xe40] sm:$0xff] %v3346_v9  ;;  %v3434_v53 = vld [vmem:[%s5291_s9 + $0x8a0] sm:$0xff]  ;;  %v3436_v54 = vld [vmem:[%s5291_s9 + $0x8a8] sm:$0xff] }
 0x312   : > { %3349 = vst [vmem:[%s6824_s25 + $0xe48] sm:$0xff] %v3348_v10  ;;  %3351 = vst [vmem:[%s6824_s25 + $0xe50] sm:$0xff] %v3350_v11  ;;  %v3438_v55 = vld [vmem:[%s5291_s9 + $0x8b0] sm:$0xff]  ;;  %v3440_v56 = vld [vmem:[%s5291_s9 + $0x8b8] sm:$0xff] }
 0x313   : > { %3353 = vst [vmem:[%s6824_s25 + $0xe58] sm:$0xff] %v3352_v12  ;;  %3355 = vst [vmem:[%s6824_s25 + $0xe60] sm:$0xff] %v3354_v13  ;;  %v3442_v57 = vld [vmem:[%s5291_s9 + $0x8c0] sm:$0xff]  ;;  %v3444_v58 = vld [vmem:[%s5291_s9 + $0x8c8] sm:$0xff] }
 0x314   : > { %3357 = vst [vmem:[%s6824_s25 + $0xe68] sm:$0xff] %v3356_v14  ;;  %3359 = vst [vmem:[%s6824_s25 + $0xe70] sm:$0xff] %v3358_v15  ;;  %v3446_v59 = vld [vmem:[%s5291_s9 + $0x8d0] sm:$0xff]  ;;  %v3448_v60 = vld [vmem:[%s5291_s9 + $0x8d8] sm:$0xff] }
 0x315   : > { %3361 = vst [vmem:[%s6824_s25 + $0xe78] sm:$0xff] %v3360_v16  ;;  %3363 = vst [vmem:[%s6824_s25 + $0xe80] sm:$0xff] %v3362_v17  ;;  %v3450_v61 = vld [vmem:[%s5291_s9 + $0x8e0] sm:$0xff]  ;;  %v3452_v62 = vld [vmem:[%s5291_s9 + $0x8e8] sm:$0xff] }
 0x316   : > { %3365 = vst [vmem:[%s6824_s25 + $0xe88] sm:$0xff] %v3364_v19  ;;  %3367 = vst [vmem:[%s6824_s25 + $0xe90] sm:$0xff] %v3366_v21  ;;  %v3454_v63 = vld [vmem:[%s5291_s9 + $0x8f0] sm:$0xff]  ;;  %v3456_v0 = vld [vmem:[%s5291_s9 + $0x8f8] sm:$0xff] }
 0x317   : > { %3369 = vst [vmem:[%s6824_s25 + $0xe98] sm:$0xff] %v3368_v23  ;;  %3371 = vst [vmem:[%s6824_s25 + $0xea0] sm:$0xff] %v3370_v25  ;;  %v3458_v1 = vld [vmem:[%s5291_s9 + $0x900] sm:$0xff]  ;;  %v3460_v2 = vld [vmem:[%s5291_s9 + $0x908] sm:$0xff] }
 0x318   : > { %3373 = vst [vmem:[%s6824_s25 + $0xea8] sm:$0xff] %v3372_v27  ;;  %3375 = vst [vmem:[%s6824_s25 + $0xeb0] sm:$0xff] %v3374_v29  ;;  %v3462_v3 = vld [vmem:[%s5291_s9 + $0x910] sm:$0xff]  ;;  %v3464_v4 = vld [vmem:[%s5291_s9 + $0x918] sm:$0xff] }
 0x319   : > { %3377 = vst [vmem:[%s6824_s25 + $0xeb8] sm:$0xff] %v3376_v31  ;;  %3379 = vst [vmem:[%s6824_s25 + $0xec0] sm:$0xff] %v3378_v34  ;;  %v3466_v5 = vld [vmem:[%s5291_s9 + $0x920] sm:$0xff]  ;;  %v3468_v6 = vld [vmem:[%s5291_s9 + $0x928] sm:$0xff] }
 0x31a   : > { %3381 = vst [vmem:[%s6824_s25 + $0xec8] sm:$0xff] %v3380_v36  ;;  %3383 = vst [vmem:[%s6824_s25 + $0xed0] sm:$0xff] %v3382_v38  ;;  %v3470_v7 = vld [vmem:[%s5291_s9 + $0x930] sm:$0xff]  ;;  %v3472_v8 = vld [vmem:[%s5291_s9 + $0x938] sm:$0xff] }
 0x31b   : > { %3385 = vst [vmem:[%s6824_s25 + $0xed8] sm:$0xff] %v3384_v33  ;;  %3387 = vst [vmem:[%s6824_s25 + $0xee0] sm:$0xff] %v3386_v18  ;;  %v3474_v9 = vld [vmem:[%s5291_s9 + $0x940] sm:$0xff]  ;;  %v3476_v10 = vld [vmem:[%s5291_s9 + $0x948] sm:$0xff] }
 0x31c   : > { %3389 = vst [vmem:[%s6824_s25 + $0xee8] sm:$0xff] %v3388_v20  ;;  %3391 = vst [vmem:[%s6824_s25 + $0xef0] sm:$0xff] %v3390_v22  ;;  %v3478_v11 = vld [vmem:[%s5291_s9 + $0x950] sm:$0xff]  ;;  %v3480_v12 = vld [vmem:[%s5291_s9 + $0x958] sm:$0xff] }
 0x31d   : > { %3393 = vst [vmem:[%s6824_s25 + $0xef8] sm:$0xff] %v3392_v24  ;;  %3395 = vst [vmem:[%s6824_s25 + $0x1000] sm:$0xff] %v3394_v43  ;;  %v3482_v13 = vld [vmem:[%s5291_s9 + $0x960] sm:$0xff]  ;;  %v3484_v14 = vld [vmem:[%s5291_s9 + $0x968] sm:$0xff] }
 0x31e   : > { %3397 = vst [vmem:[%s6824_s25 + $0x1008] sm:$0xff] %v3396_v44  ;;  %3399 = vst [vmem:[%s6824_s25 + $0x1010] sm:$0xff] %v3398_v26  ;;  %v3486_v15 = vld [vmem:[%s5291_s9 + $0x970] sm:$0xff]  ;;  %v3488_v16 = vld [vmem:[%s5291_s9 + $0x978] sm:$0xff] }
 0x31f   : > { %3401 = vst [vmem:[%s6824_s25 + $0x1018] sm:$0xff] %v3400_v45  ;;  %3403 = vst [vmem:[%s6824_s25 + $0x1020] sm:$0xff] %v3402_v28  ;;  %v3490_v17 = vld [vmem:[%s5291_s9 + $0x980] sm:$0xff]  ;;  %v3492_v19 = vld [vmem:[%s5291_s9 + $0x988] sm:$0xff] }
 0x320   : > { %3405 = vst [vmem:[%s6824_s25 + $0x1028] sm:$0xff] %v3404_v46  ;;  %3407 = vst [vmem:[%s6824_s25 + $0x1030] sm:$0xff] %v3406_v30  ;;  %v3494_v21 = vld [vmem:[%s5291_s9 + $0x990] sm:$0xff]  ;;  %v3496_v23 = vld [vmem:[%s5291_s9 + $0x998] sm:$0xff] }
 0x321   : > { %3409 = vst [vmem:[%s6824_s25 + $0x1038] sm:$0xff] %v3408_v47  ;;  %3411 = vst [vmem:[%s6824_s25 + $0x1040] sm:$0xff] %v3410_v32  ;;  %v3498_v25 = vld [vmem:[%s5291_s9 + $0x9a0] sm:$0xff]  ;;  %v3500_v27 = vld [vmem:[%s5291_s9 + $0x9a8] sm:$0xff] }
 0x322   : > { %3413 = vst [vmem:[%s6824_s25 + $0x1048] sm:$0xff] %v3412_v48  ;;  %3415 = vst [vmem:[%s6824_s25 + $0x1050] sm:$0xff] %v3414_v35  ;;  %v3502_v29 = vld [vmem:[%s5291_s9 + $0x9b0] sm:$0xff]  ;;  %v3504_v31 = vld [vmem:[%s5291_s9 + $0x9b8] sm:$0xff] }
 0x323   : > { %3417 = vst [vmem:[%s6824_s25 + $0x1058] sm:$0xff] %v3416_v49  ;;  %3419 = vst [vmem:[%s6824_s25 + $0x1060] sm:$0xff] %v3418_v37  ;;  %v3506_v34 = vld [vmem:[%s5291_s9 + $0x9c0] sm:$0xff]  ;;  %v3508_v36 = vld [vmem:[%s5291_s9 + $0x9c8] sm:$0xff] }
 0x324   : > { %3421 = vst [vmem:[%s6824_s25 + $0x1068] sm:$0xff] %v3420_v50  ;;  %3423 = vst [vmem:[%s6824_s25 + $0x1070] sm:$0xff] %v3422_v39  ;;  %v3510_v38 = vld [vmem:[%s5291_s9 + $0x9d0] sm:$0xff]  ;;  %v3512_v33 = vld [vmem:[%s5291_s9 + $0x9d8] sm:$0xff] }
 0x325   : > { %3425 = vst [vmem:[%s6824_s25 + $0x1078] sm:$0xff] %v3424_v51  ;;  %3427 = vst [vmem:[%s6824_s25 + $0x1080] sm:$0xff] %v3426_v40  ;;  %v3514_v18 = vld [vmem:[%s5291_s9 + $0x9e0] sm:$0xff]  ;;  %v3516_v20 = vld [vmem:[%s5291_s9 + $0x9e8] sm:$0xff] }
 0x326   : > { %3429 = vst [vmem:[%s6824_s25 + $0x1088] sm:$0xff] %v3428_v52  ;;  %3431 = vst [vmem:[%s6824_s25 + $0x1090] sm:$0xff] %v3430_v42  ;;  %v3518_v22 = vld [vmem:[%s5291_s9 + $0x9f0] sm:$0xff]  ;;  %v3520_v24 = vld [vmem:[%s5291_s9 + $0x9f8] sm:$0xff] }
 0x327   : > { %3433 = vst [vmem:[%s6824_s25 + $0x1098] sm:$0xff] %v3432_v41  ;;  %3435 = vst [vmem:[%s6824_s25 + $0x10a0] sm:$0xff] %v3434_v53  ;;  %v3522_v43 = vld [vmem:[%s5291_s9 + $0xa00] sm:$0xff]  ;;  %v3524_v44 = vld [vmem:[%s5291_s9 + $0xa08] sm:$0xff] }
 0x328   : > { %3437 = vst [vmem:[%s6824_s25 + $0x10a8] sm:$0xff] %v3436_v54  ;;  %3439 = vst [vmem:[%s6824_s25 + $0x10b0] sm:$0xff] %v3438_v55  ;;  %v3526_v26 = vld [vmem:[%s5291_s9 + $0xa10] sm:$0xff]  ;;  %v3528_v45 = vld [vmem:[%s5291_s9 + $0xa18] sm:$0xff] }
 0x329   : > { %3441 = vst [vmem:[%s6824_s25 + $0x10b8] sm:$0xff] %v3440_v56  ;;  %3443 = vst [vmem:[%s6824_s25 + $0x10c0] sm:$0xff] %v3442_v57  ;;  %v3530_v28 = vld [vmem:[%s5291_s9 + $0xa20] sm:$0xff]  ;;  %v3532_v46 = vld [vmem:[%s5291_s9 + $0xa28] sm:$0xff] }
 0x32a   : > { %3445 = vst [vmem:[%s6824_s25 + $0x10c8] sm:$0xff] %v3444_v58  ;;  %3447 = vst [vmem:[%s6824_s25 + $0x10d0] sm:$0xff] %v3446_v59  ;;  %v3534_v30 = vld [vmem:[%s5291_s9 + $0xa30] sm:$0xff]  ;;  %v3536_v47 = vld [vmem:[%s5291_s9 + $0xa38] sm:$0xff] }
 0x32b   : > { %3449 = vst [vmem:[%s6824_s25 + $0x10d8] sm:$0xff] %v3448_v60  ;;  %3451 = vst [vmem:[%s6824_s25 + $0x10e0] sm:$0xff] %v3450_v61  ;;  %v3538_v32 = vld [vmem:[%s5291_s9 + $0xa40] sm:$0xff]  ;;  %v3540_v48 = vld [vmem:[%s5291_s9 + $0xa48] sm:$0xff] }
 0x32c   : > { %3453 = vst [vmem:[%s6824_s25 + $0x10e8] sm:$0xff] %v3452_v62  ;;  %3455 = vst [vmem:[%s6824_s25 + $0x10f0] sm:$0xff] %v3454_v63  ;;  %v3542_v35 = vld [vmem:[%s5291_s9 + $0xa50] sm:$0xff]  ;;  %v3544_v49 = vld [vmem:[%s5291_s9 + $0xa58] sm:$0xff] }
 0x32d   : > { %3457 = vst [vmem:[%s6824_s25 + $0x10f8] sm:$0xff] %v3456_v0  ;;  %3459 = vst [vmem:[%s6824_s25 + $0x1200] sm:$0xff] %v3458_v1  ;;  %v3546_v37 = vld [vmem:[%s5291_s9 + $0xa60] sm:$0xff]  ;;  %v3548_v50 = vld [vmem:[%s5291_s9 + $0xa68] sm:$0xff] }
 0x32e   : > { %3461 = vst [vmem:[%s6824_s25 + $0x1208] sm:$0xff] %v3460_v2  ;;  %3463 = vst [vmem:[%s6824_s25 + $0x1210] sm:$0xff] %v3462_v3  ;;  %v3550_v39 = vld [vmem:[%s5291_s9 + $0xa70] sm:$0xff]  ;;  %v3552_v51 = vld [vmem:[%s5291_s9 + $0xa78] sm:$0xff] }
 0x32f   : > { %3465 = vst [vmem:[%s6824_s25 + $0x1218] sm:$0xff] %v3464_v4  ;;  %3467 = vst [vmem:[%s6824_s25 + $0x1220] sm:$0xff] %v3466_v5  ;;  %v3554_v40 = vld [vmem:[%s5291_s9 + $0xa80] sm:$0xff]  ;;  %v3556_v52 = vld [vmem:[%s5291_s9 + $0xa88] sm:$0xff] }
 0x330   : > { %3469 = vst [vmem:[%s6824_s25 + $0x1228] sm:$0xff] %v3468_v6  ;;  %3471 = vst [vmem:[%s6824_s25 + $0x1230] sm:$0xff] %v3470_v7  ;;  %v3558_v42 = vld [vmem:[%s5291_s9 + $0xa90] sm:$0xff]  ;;  %v3560_v41 = vld [vmem:[%s5291_s9 + $0xa98] sm:$0xff] }
 0x331   : > { %3473 = vst [vmem:[%s6824_s25 + $0x1238] sm:$0xff] %v3472_v8  ;;  %3475 = vst [vmem:[%s6824_s25 + $0x1240] sm:$0xff] %v3474_v9  ;;  %v3562_v53 = vld [vmem:[%s5291_s9 + $0xaa0] sm:$0xff]  ;;  %v3564_v54 = vld [vmem:[%s5291_s9 + $0xaa8] sm:$0xff] }
 0x332   : > { %3477 = vst [vmem:[%s6824_s25 + $0x1248] sm:$0xff] %v3476_v10  ;;  %3479 = vst [vmem:[%s6824_s25 + $0x1250] sm:$0xff] %v3478_v11  ;;  %v3566_v55 = vld [vmem:[%s5291_s9 + $0xab0] sm:$0xff]  ;;  %v3568_v56 = vld [vmem:[%s5291_s9 + $0xab8] sm:$0xff] }
 0x333   : > { %3481 = vst [vmem:[%s6824_s25 + $0x1258] sm:$0xff] %v3480_v12  ;;  %3483 = vst [vmem:[%s6824_s25 + $0x1260] sm:$0xff] %v3482_v13  ;;  %v3570_v57 = vld [vmem:[%s5291_s9 + $0xac0] sm:$0xff]  ;;  %v3572_v58 = vld [vmem:[%s5291_s9 + $0xac8] sm:$0xff] }
 0x334   : > { %3485 = vst [vmem:[%s6824_s25 + $0x1268] sm:$0xff] %v3484_v14  ;;  %3487 = vst [vmem:[%s6824_s25 + $0x1270] sm:$0xff] %v3486_v15  ;;  %v3574_v59 = vld [vmem:[%s5291_s9 + $0xad0] sm:$0xff]  ;;  %v3576_v60 = vld [vmem:[%s5291_s9 + $0xad8] sm:$0xff] }
 0x335   : > { %3489 = vst [vmem:[%s6824_s25 + $0x1278] sm:$0xff] %v3488_v16  ;;  %3491 = vst [vmem:[%s6824_s25 + $0x1280] sm:$0xff] %v3490_v17  ;;  %v3578_v61 = vld [vmem:[%s5291_s9 + $0xae0] sm:$0xff]  ;;  %v3580_v62 = vld [vmem:[%s5291_s9 + $0xae8] sm:$0xff] }
 0x336   : > { %3493 = vst [vmem:[%s6824_s25 + $0x1288] sm:$0xff] %v3492_v19  ;;  %3495 = vst [vmem:[%s6824_s25 + $0x1290] sm:$0xff] %v3494_v21  ;;  %v3582_v63 = vld [vmem:[%s5291_s9 + $0xaf0] sm:$0xff]  ;;  %v3584_v0 = vld [vmem:[%s5291_s9 + $0xaf8] sm:$0xff] }
 0x337   : > { %3497 = vst [vmem:[%s6824_s25 + $0x1298] sm:$0xff] %v3496_v23  ;;  %3499 = vst [vmem:[%s6824_s25 + $0x12a0] sm:$0xff] %v3498_v25  ;;  %v3586_v1 = vld [vmem:[%s5291_s9 + $0xb00] sm:$0xff]  ;;  %v3588_v2 = vld [vmem:[%s5291_s9 + $0xb08] sm:$0xff] }
 0x338   : > { %3501 = vst [vmem:[%s6824_s25 + $0x12a8] sm:$0xff] %v3500_v27  ;;  %3503 = vst [vmem:[%s6824_s25 + $0x12b0] sm:$0xff] %v3502_v29  ;;  %v3590_v3 = vld [vmem:[%s5291_s9 + $0xb10] sm:$0xff]  ;;  %v3592_v4 = vld [vmem:[%s5291_s9 + $0xb18] sm:$0xff] }
 0x339   : > { %3505 = vst [vmem:[%s6824_s25 + $0x12b8] sm:$0xff] %v3504_v31  ;;  %3507 = vst [vmem:[%s6824_s25 + $0x12c0] sm:$0xff] %v3506_v34  ;;  %v3594_v5 = vld [vmem:[%s5291_s9 + $0xb20] sm:$0xff]  ;;  %v3596_v6 = vld [vmem:[%s5291_s9 + $0xb28] sm:$0xff] }
 0x33a   : > { %3509 = vst [vmem:[%s6824_s25 + $0x12c8] sm:$0xff] %v3508_v36  ;;  %3511 = vst [vmem:[%s6824_s25 + $0x12d0] sm:$0xff] %v3510_v38  ;;  %v3598_v7 = vld [vmem:[%s5291_s9 + $0xb30] sm:$0xff]  ;;  %v3600_v8 = vld [vmem:[%s5291_s9 + $0xb38] sm:$0xff] }
 0x33b   : > { %3513 = vst [vmem:[%s6824_s25 + $0x12d8] sm:$0xff] %v3512_v33  ;;  %3515 = vst [vmem:[%s6824_s25 + $0x12e0] sm:$0xff] %v3514_v18  ;;  %v3602_v9 = vld [vmem:[%s5291_s9 + $0xb40] sm:$0xff]  ;;  %v3604_v10 = vld [vmem:[%s5291_s9 + $0xb48] sm:$0xff] }
 0x33c   : > { %3517 = vst [vmem:[%s6824_s25 + $0x12e8] sm:$0xff] %v3516_v20  ;;  %3519 = vst [vmem:[%s6824_s25 + $0x12f0] sm:$0xff] %v3518_v22  ;;  %v3606_v11 = vld [vmem:[%s5291_s9 + $0xb50] sm:$0xff]  ;;  %v3608_v12 = vld [vmem:[%s5291_s9 + $0xb58] sm:$0xff] }
 0x33d   : > { %3521 = vst [vmem:[%s6824_s25 + $0x12f8] sm:$0xff] %v3520_v24  ;;  %3523 = vst [vmem:[%s6824_s25 + $0x1400] sm:$0xff] %v3522_v43  ;;  %v3610_v13 = vld [vmem:[%s5291_s9 + $0xb60] sm:$0xff]  ;;  %v3612_v14 = vld [vmem:[%s5291_s9 + $0xb68] sm:$0xff] }
 0x33e   : > { %3525 = vst [vmem:[%s6824_s25 + $0x1408] sm:$0xff] %v3524_v44  ;;  %3527 = vst [vmem:[%s6824_s25 + $0x1410] sm:$0xff] %v3526_v26  ;;  %v3614_v15 = vld [vmem:[%s5291_s9 + $0xb70] sm:$0xff]  ;;  %v3616_v16 = vld [vmem:[%s5291_s9 + $0xb78] sm:$0xff] }
 0x33f   : > { %3529 = vst [vmem:[%s6824_s25 + $0x1418] sm:$0xff] %v3528_v45  ;;  %3531 = vst [vmem:[%s6824_s25 + $0x1420] sm:$0xff] %v3530_v28  ;;  %v3618_v17 = vld [vmem:[%s5291_s9 + $0xb80] sm:$0xff]  ;;  %v3620_v19 = vld [vmem:[%s5291_s9 + $0xb88] sm:$0xff] }
 0x340   : > { %3533 = vst [vmem:[%s6824_s25 + $0x1428] sm:$0xff] %v3532_v46  ;;  %3535 = vst [vmem:[%s6824_s25 + $0x1430] sm:$0xff] %v3534_v30  ;;  %v3622_v21 = vld [vmem:[%s5291_s9 + $0xb90] sm:$0xff]  ;;  %v3624_v23 = vld [vmem:[%s5291_s9 + $0xb98] sm:$0xff] }
 0x341   : > { %3537 = vst [vmem:[%s6824_s25 + $0x1438] sm:$0xff] %v3536_v47  ;;  %3539 = vst [vmem:[%s6824_s25 + $0x1440] sm:$0xff] %v3538_v32  ;;  %v3626_v25 = vld [vmem:[%s5291_s9 + $0xba0] sm:$0xff]  ;;  %v3628_v27 = vld [vmem:[%s5291_s9 + $0xba8] sm:$0xff] }
 0x342   : > { %3541 = vst [vmem:[%s6824_s25 + $0x1448] sm:$0xff] %v3540_v48  ;;  %3543 = vst [vmem:[%s6824_s25 + $0x1450] sm:$0xff] %v3542_v35  ;;  %v3630_v29 = vld [vmem:[%s5291_s9 + $0xbb0] sm:$0xff]  ;;  %v3632_v31 = vld [vmem:[%s5291_s9 + $0xbb8] sm:$0xff] }
 0x343   : > { %3545 = vst [vmem:[%s6824_s25 + $0x1458] sm:$0xff] %v3544_v49  ;;  %3547 = vst [vmem:[%s6824_s25 + $0x1460] sm:$0xff] %v3546_v37  ;;  %v3634_v34 = vld [vmem:[%s5291_s9 + $0xbc0] sm:$0xff]  ;;  %v3636_v36 = vld [vmem:[%s5291_s9 + $0xbc8] sm:$0xff] }
 0x344   : > { %3549 = vst [vmem:[%s6824_s25 + $0x1468] sm:$0xff] %v3548_v50  ;;  %3551 = vst [vmem:[%s6824_s25 + $0x1470] sm:$0xff] %v3550_v39  ;;  %v3638_v38 = vld [vmem:[%s5291_s9 + $0xbd0] sm:$0xff]  ;;  %v3640_v33 = vld [vmem:[%s5291_s9 + $0xbd8] sm:$0xff] }
 0x345   : > { %3553 = vst [vmem:[%s6824_s25 + $0x1478] sm:$0xff] %v3552_v51  ;;  %3555 = vst [vmem:[%s6824_s25 + $0x1480] sm:$0xff] %v3554_v40  ;;  %v3642_v18 = vld [vmem:[%s5291_s9 + $0xbe0] sm:$0xff]  ;;  %v3644_v20 = vld [vmem:[%s5291_s9 + $0xbe8] sm:$0xff] }
 0x346   : > { %3557 = vst [vmem:[%s6824_s25 + $0x1488] sm:$0xff] %v3556_v52  ;;  %3559 = vst [vmem:[%s6824_s25 + $0x1490] sm:$0xff] %v3558_v42  ;;  %v3646_v22 = vld [vmem:[%s5291_s9 + $0xbf0] sm:$0xff]  ;;  %v3648_v24 = vld [vmem:[%s5291_s9 + $0xbf8] sm:$0xff] }
 0x347   : > { %3561 = vst [vmem:[%s6824_s25 + $0x1498] sm:$0xff] %v3560_v41  ;;  %3563 = vst [vmem:[%s6824_s25 + $0x14a0] sm:$0xff] %v3562_v53  ;;  %v3650_v43 = vld [vmem:[%s5291_s9 + $0xc00] sm:$0xff]  ;;  %v3652_v44 = vld [vmem:[%s5291_s9 + $0xc08] sm:$0xff] }
 0x348   : > { %3565 = vst [vmem:[%s6824_s25 + $0x14a8] sm:$0xff] %v3564_v54  ;;  %3567 = vst [vmem:[%s6824_s25 + $0x14b0] sm:$0xff] %v3566_v55  ;;  %v3654_v26 = vld [vmem:[%s5291_s9 + $0xc10] sm:$0xff]  ;;  %v3656_v45 = vld [vmem:[%s5291_s9 + $0xc18] sm:$0xff] }
 0x349   : > { %3569 = vst [vmem:[%s6824_s25 + $0x14b8] sm:$0xff] %v3568_v56  ;;  %3571 = vst [vmem:[%s6824_s25 + $0x14c0] sm:$0xff] %v3570_v57  ;;  %v3658_v28 = vld [vmem:[%s5291_s9 + $0xc20] sm:$0xff]  ;;  %v3660_v46 = vld [vmem:[%s5291_s9 + $0xc28] sm:$0xff] }
 0x34a   : > { %3573 = vst [vmem:[%s6824_s25 + $0x14c8] sm:$0xff] %v3572_v58  ;;  %3575 = vst [vmem:[%s6824_s25 + $0x14d0] sm:$0xff] %v3574_v59  ;;  %v3662_v30 = vld [vmem:[%s5291_s9 + $0xc30] sm:$0xff]  ;;  %v3664_v47 = vld [vmem:[%s5291_s9 + $0xc38] sm:$0xff] }
 0x34b   : > { %3577 = vst [vmem:[%s6824_s25 + $0x14d8] sm:$0xff] %v3576_v60  ;;  %3579 = vst [vmem:[%s6824_s25 + $0x14e0] sm:$0xff] %v3578_v61  ;;  %v3666_v32 = vld [vmem:[%s5291_s9 + $0xc40] sm:$0xff]  ;;  %v3668_v48 = vld [vmem:[%s5291_s9 + $0xc48] sm:$0xff] }
 0x34c   : > { %3581 = vst [vmem:[%s6824_s25 + $0x14e8] sm:$0xff] %v3580_v62  ;;  %3583 = vst [vmem:[%s6824_s25 + $0x14f0] sm:$0xff] %v3582_v63  ;;  %v3670_v35 = vld [vmem:[%s5291_s9 + $0xc50] sm:$0xff]  ;;  %v3672_v49 = vld [vmem:[%s5291_s9 + $0xc58] sm:$0xff] }
 0x34d   : > { %3585 = vst [vmem:[%s6824_s25 + $0x14f8] sm:$0xff] %v3584_v0  ;;  %3587 = vst [vmem:[%s6824_s25 + $0x1600] sm:$0xff] %v3586_v1  ;;  %v3674_v37 = vld [vmem:[%s5291_s9 + $0xc60] sm:$0xff]  ;;  %v3676_v50 = vld [vmem:[%s5291_s9 + $0xc68] sm:$0xff] }
 0x34e   : > { %3589 = vst [vmem:[%s6824_s25 + $0x1608] sm:$0xff] %v3588_v2  ;;  %3591 = vst [vmem:[%s6824_s25 + $0x1610] sm:$0xff] %v3590_v3  ;;  %v3678_v39 = vld [vmem:[%s5291_s9 + $0xc70] sm:$0xff]  ;;  %v3680_v51 = vld [vmem:[%s5291_s9 + $0xc78] sm:$0xff] }
 0x34f   : > { %3593 = vst [vmem:[%s6824_s25 + $0x1618] sm:$0xff] %v3592_v4  ;;  %3595 = vst [vmem:[%s6824_s25 + $0x1620] sm:$0xff] %v3594_v5  ;;  %v3682_v40 = vld [vmem:[%s5291_s9 + $0xc80] sm:$0xff]  ;;  %v3684_v52 = vld [vmem:[%s5291_s9 + $0xc88] sm:$0xff] }
 0x350   : > { %3597 = vst [vmem:[%s6824_s25 + $0x1628] sm:$0xff] %v3596_v6  ;;  %3599 = vst [vmem:[%s6824_s25 + $0x1630] sm:$0xff] %v3598_v7  ;;  %v3686_v42 = vld [vmem:[%s5291_s9 + $0xc90] sm:$0xff]  ;;  %v3688_v41 = vld [vmem:[%s5291_s9 + $0xc98] sm:$0xff] }
 0x351   : > { %3601 = vst [vmem:[%s6824_s25 + $0x1638] sm:$0xff] %v3600_v8  ;;  %3603 = vst [vmem:[%s6824_s25 + $0x1640] sm:$0xff] %v3602_v9  ;;  %v3690_v53 = vld [vmem:[%s5291_s9 + $0xca0] sm:$0xff]  ;;  %v3692_v54 = vld [vmem:[%s5291_s9 + $0xca8] sm:$0xff] }
 0x352   : > { %3605 = vst [vmem:[%s6824_s25 + $0x1648] sm:$0xff] %v3604_v10  ;;  %3607 = vst [vmem:[%s6824_s25 + $0x1650] sm:$0xff] %v3606_v11  ;;  %v3694_v55 = vld [vmem:[%s5291_s9 + $0xcb0] sm:$0xff]  ;;  %v3696_v56 = vld [vmem:[%s5291_s9 + $0xcb8] sm:$0xff] }
 0x353   : > { %3609 = vst [vmem:[%s6824_s25 + $0x1658] sm:$0xff] %v3608_v12  ;;  %3611 = vst [vmem:[%s6824_s25 + $0x1660] sm:$0xff] %v3610_v13  ;;  %v3698_v57 = vld [vmem:[%s5291_s9 + $0xcc0] sm:$0xff]  ;;  %v3700_v58 = vld [vmem:[%s5291_s9 + $0xcc8] sm:$0xff] }
 0x354   : > { %3613 = vst [vmem:[%s6824_s25 + $0x1668] sm:$0xff] %v3612_v14  ;;  %3615 = vst [vmem:[%s6824_s25 + $0x1670] sm:$0xff] %v3614_v15  ;;  %v3702_v59 = vld [vmem:[%s5291_s9 + $0xcd0] sm:$0xff]  ;;  %v3704_v60 = vld [vmem:[%s5291_s9 + $0xcd8] sm:$0xff] }
 0x355   : > { %3617 = vst [vmem:[%s6824_s25 + $0x1678] sm:$0xff] %v3616_v16  ;;  %3619 = vst [vmem:[%s6824_s25 + $0x1680] sm:$0xff] %v3618_v17  ;;  %v3706_v61 = vld [vmem:[%s5291_s9 + $0xce0] sm:$0xff]  ;;  %v3708_v62 = vld [vmem:[%s5291_s9 + $0xce8] sm:$0xff] }
 0x356   : > { %3621 = vst [vmem:[%s6824_s25 + $0x1688] sm:$0xff] %v3620_v19  ;;  %3623 = vst [vmem:[%s6824_s25 + $0x1690] sm:$0xff] %v3622_v21  ;;  %v3710_v63 = vld [vmem:[%s5291_s9 + $0xcf0] sm:$0xff]  ;;  %v3712_v0 = vld [vmem:[%s5291_s9 + $0xcf8] sm:$0xff] }
 0x357   : > { %3625 = vst [vmem:[%s6824_s25 + $0x1698] sm:$0xff] %v3624_v23  ;;  %3627 = vst [vmem:[%s6824_s25 + $0x16a0] sm:$0xff] %v3626_v25  ;;  %v3714_v1 = vld [vmem:[%s5291_s9 + $0xd00] sm:$0xff]  ;;  %v3716_v2 = vld [vmem:[%s5291_s9 + $0xd08] sm:$0xff] }
 0x358   : > { %3629 = vst [vmem:[%s6824_s25 + $0x16a8] sm:$0xff] %v3628_v27  ;;  %3631 = vst [vmem:[%s6824_s25 + $0x16b0] sm:$0xff] %v3630_v29  ;;  %v3718_v3 = vld [vmem:[%s5291_s9 + $0xd10] sm:$0xff]  ;;  %v3720_v4 = vld [vmem:[%s5291_s9 + $0xd18] sm:$0xff] }
 0x359   : > { %3633 = vst [vmem:[%s6824_s25 + $0x16b8] sm:$0xff] %v3632_v31  ;;  %3635 = vst [vmem:[%s6824_s25 + $0x16c0] sm:$0xff] %v3634_v34  ;;  %v3722_v5 = vld [vmem:[%s5291_s9 + $0xd20] sm:$0xff]  ;;  %v3724_v6 = vld [vmem:[%s5291_s9 + $0xd28] sm:$0xff] }
 0x35a   : > { %3637 = vst [vmem:[%s6824_s25 + $0x16c8] sm:$0xff] %v3636_v36  ;;  %3639 = vst [vmem:[%s6824_s25 + $0x16d0] sm:$0xff] %v3638_v38  ;;  %v3726_v7 = vld [vmem:[%s5291_s9 + $0xd30] sm:$0xff]  ;;  %v3728_v8 = vld [vmem:[%s5291_s9 + $0xd38] sm:$0xff] }
 0x35b   : > { %3641 = vst [vmem:[%s6824_s25 + $0x16d8] sm:$0xff] %v3640_v33  ;;  %3643 = vst [vmem:[%s6824_s25 + $0x16e0] sm:$0xff] %v3642_v18  ;;  %v3730_v9 = vld [vmem:[%s5291_s9 + $0xd40] sm:$0xff]  ;;  %v3732_v10 = vld [vmem:[%s5291_s9 + $0xd48] sm:$0xff] }
 0x35c   : > { %3645 = vst [vmem:[%s6824_s25 + $0x16e8] sm:$0xff] %v3644_v20  ;;  %3647 = vst [vmem:[%s6824_s25 + $0x16f0] sm:$0xff] %v3646_v22  ;;  %v3734_v11 = vld [vmem:[%s5291_s9 + $0xd50] sm:$0xff]  ;;  %v3736_v12 = vld [vmem:[%s5291_s9 + $0xd58] sm:$0xff] }
 0x35d   : > { %3649 = vst [vmem:[%s6824_s25 + $0x16f8] sm:$0xff] %v3648_v24  ;;  %3651 = vst [vmem:[%s6824_s25 + $0x1800] sm:$0xff] %v3650_v43  ;;  %v3738_v13 = vld [vmem:[%s5291_s9 + $0xd60] sm:$0xff]  ;;  %v3740_v14 = vld [vmem:[%s5291_s9 + $0xd68] sm:$0xff] }
 0x35e   : > { %3653 = vst [vmem:[%s6824_s25 + $0x1808] sm:$0xff] %v3652_v44  ;;  %3655 = vst [vmem:[%s6824_s25 + $0x1810] sm:$0xff] %v3654_v26  ;;  %v3742_v15 = vld [vmem:[%s5291_s9 + $0xd70] sm:$0xff]  ;;  %v3744_v16 = vld [vmem:[%s5291_s9 + $0xd78] sm:$0xff] }
 0x35f   : > { %3657 = vst [vmem:[%s6824_s25 + $0x1818] sm:$0xff] %v3656_v45  ;;  %3659 = vst [vmem:[%s6824_s25 + $0x1820] sm:$0xff] %v3658_v28  ;;  %v3746_v17 = vld [vmem:[%s5291_s9 + $0xd80] sm:$0xff]  ;;  %v3748_v19 = vld [vmem:[%s5291_s9 + $0xd88] sm:$0xff] }
 0x360   : > { %3661 = vst [vmem:[%s6824_s25 + $0x1828] sm:$0xff] %v3660_v46  ;;  %3663 = vst [vmem:[%s6824_s25 + $0x1830] sm:$0xff] %v3662_v30  ;;  %v3750_v21 = vld [vmem:[%s5291_s9 + $0xd90] sm:$0xff]  ;;  %v3752_v23 = vld [vmem:[%s5291_s9 + $0xd98] sm:$0xff] }
 0x361   : > { %3665 = vst [vmem:[%s6824_s25 + $0x1838] sm:$0xff] %v3664_v47  ;;  %3667 = vst [vmem:[%s6824_s25 + $0x1840] sm:$0xff] %v3666_v32  ;;  %v3754_v25 = vld [vmem:[%s5291_s9 + $0xda0] sm:$0xff]  ;;  %v3756_v27 = vld [vmem:[%s5291_s9 + $0xda8] sm:$0xff] }
 0x362   : > { %3669 = vst [vmem:[%s6824_s25 + $0x1848] sm:$0xff] %v3668_v48  ;;  %3671 = vst [vmem:[%s6824_s25 + $0x1850] sm:$0xff] %v3670_v35  ;;  %v3758_v29 = vld [vmem:[%s5291_s9 + $0xdb0] sm:$0xff]  ;;  %v3760_v31 = vld [vmem:[%s5291_s9 + $0xdb8] sm:$0xff] }
 0x363   : > { %3673 = vst [vmem:[%s6824_s25 + $0x1858] sm:$0xff] %v3672_v49  ;;  %3675 = vst [vmem:[%s6824_s25 + $0x1860] sm:$0xff] %v3674_v37  ;;  %v3762_v34 = vld [vmem:[%s5291_s9 + $0xdc0] sm:$0xff]  ;;  %v3764_v36 = vld [vmem:[%s5291_s9 + $0xdc8] sm:$0xff] }
 0x364   : > { %3677 = vst [vmem:[%s6824_s25 + $0x1868] sm:$0xff] %v3676_v50  ;;  %3679 = vst [vmem:[%s6824_s25 + $0x1870] sm:$0xff] %v3678_v39  ;;  %v3766_v38 = vld [vmem:[%s5291_s9 + $0xdd0] sm:$0xff]  ;;  %v3768_v33 = vld [vmem:[%s5291_s9 + $0xdd8] sm:$0xff] }
 0x365   : > { %3681 = vst [vmem:[%s6824_s25 + $0x1878] sm:$0xff] %v3680_v51  ;;  %3683 = vst [vmem:[%s6824_s25 + $0x1880] sm:$0xff] %v3682_v40  ;;  %v3770_v18 = vld [vmem:[%s5291_s9 + $0xde0] sm:$0xff]  ;;  %v3772_v20 = vld [vmem:[%s5291_s9 + $0xde8] sm:$0xff] }
 0x366   : > { %3685 = vst [vmem:[%s6824_s25 + $0x1888] sm:$0xff] %v3684_v52  ;;  %3687 = vst [vmem:[%s6824_s25 + $0x1890] sm:$0xff] %v3686_v42  ;;  %v3774_v22 = vld [vmem:[%s5291_s9 + $0xdf0] sm:$0xff]  ;;  %v3776_v24 = vld [vmem:[%s5291_s9 + $0xdf8] sm:$0xff] }
 0x367   : > { %3689 = vst [vmem:[%s6824_s25 + $0x1898] sm:$0xff] %v3688_v41  ;;  %3691 = vst [vmem:[%s6824_s25 + $0x18a0] sm:$0xff] %v3690_v53  ;;  %v3778_v43 = vld [vmem:[%s5291_s9 + $0xe00] sm:$0xff]  ;;  %v3780_v44 = vld [vmem:[%s5291_s9 + $0xe08] sm:$0xff] }
 0x368   : > { %3693 = vst [vmem:[%s6824_s25 + $0x18a8] sm:$0xff] %v3692_v54  ;;  %3695 = vst [vmem:[%s6824_s25 + $0x18b0] sm:$0xff] %v3694_v55  ;;  %v3782_v26 = vld [vmem:[%s5291_s9 + $0xe10] sm:$0xff]  ;;  %v3784_v45 = vld [vmem:[%s5291_s9 + $0xe18] sm:$0xff] }
 0x369   : > { %3697 = vst [vmem:[%s6824_s25 + $0x18b8] sm:$0xff] %v3696_v56  ;;  %3699 = vst [vmem:[%s6824_s25 + $0x18c0] sm:$0xff] %v3698_v57  ;;  %v3786_v28 = vld [vmem:[%s5291_s9 + $0xe20] sm:$0xff]  ;;  %v3788_v46 = vld [vmem:[%s5291_s9 + $0xe28] sm:$0xff] }
 0x36a   : > { %3701 = vst [vmem:[%s6824_s25 + $0x18c8] sm:$0xff] %v3700_v58  ;;  %3703 = vst [vmem:[%s6824_s25 + $0x18d0] sm:$0xff] %v3702_v59  ;;  %v3790_v30 = vld [vmem:[%s5291_s9 + $0xe30] sm:$0xff]  ;;  %v3792_v47 = vld [vmem:[%s5291_s9 + $0xe38] sm:$0xff] }
 0x36b   : > { %3705 = vst [vmem:[%s6824_s25 + $0x18d8] sm:$0xff] %v3704_v60  ;;  %3707 = vst [vmem:[%s6824_s25 + $0x18e0] sm:$0xff] %v3706_v61  ;;  %v3794_v32 = vld [vmem:[%s5291_s9 + $0xe40] sm:$0xff]  ;;  %v3796_v48 = vld [vmem:[%s5291_s9 + $0xe48] sm:$0xff] }
 0x36c   : > { %3709 = vst [vmem:[%s6824_s25 + $0x18e8] sm:$0xff] %v3708_v62  ;;  %3711 = vst [vmem:[%s6824_s25 + $0x18f0] sm:$0xff] %v3710_v63  ;;  %v3798_v35 = vld [vmem:[%s5291_s9 + $0xe50] sm:$0xff]  ;;  %v3800_v49 = vld [vmem:[%s5291_s9 + $0xe58] sm:$0xff] }
 0x36d   : > { %3713 = vst [vmem:[%s6824_s25 + $0x18f8] sm:$0xff] %v3712_v0  ;;  %3715 = vst [vmem:[%s6824_s25 + $0x1a00] sm:$0xff] %v3714_v1  ;;  %v3802_v37 = vld [vmem:[%s5291_s9 + $0xe60] sm:$0xff]  ;;  %v3804_v50 = vld [vmem:[%s5291_s9 + $0xe68] sm:$0xff] }
 0x36e   : > { %3717 = vst [vmem:[%s6824_s25 + $0x1a08] sm:$0xff] %v3716_v2  ;;  %3719 = vst [vmem:[%s6824_s25 + $0x1a10] sm:$0xff] %v3718_v3  ;;  %v3806_v39 = vld [vmem:[%s5291_s9 + $0xe70] sm:$0xff]  ;;  %v3808_v51 = vld [vmem:[%s5291_s9 + $0xe78] sm:$0xff] }
 0x36f   : > { %3721 = vst [vmem:[%s6824_s25 + $0x1a18] sm:$0xff] %v3720_v4  ;;  %3723 = vst [vmem:[%s6824_s25 + $0x1a20] sm:$0xff] %v3722_v5  ;;  %v3810_v40 = vld [vmem:[%s5291_s9 + $0xe80] sm:$0xff]  ;;  %v3812_v52 = vld [vmem:[%s5291_s9 + $0xe88] sm:$0xff] }
 0x370   : > { %3725 = vst [vmem:[%s6824_s25 + $0x1a28] sm:$0xff] %v3724_v6  ;;  %3727 = vst [vmem:[%s6824_s25 + $0x1a30] sm:$0xff] %v3726_v7  ;;  %v3814_v42 = vld [vmem:[%s5291_s9 + $0xe90] sm:$0xff]  ;;  %v3816_v41 = vld [vmem:[%s5291_s9 + $0xe98] sm:$0xff] }
 0x371   : > { %3729 = vst [vmem:[%s6824_s25 + $0x1a38] sm:$0xff] %v3728_v8  ;;  %3731 = vst [vmem:[%s6824_s25 + $0x1a40] sm:$0xff] %v3730_v9  ;;  %v3818_v53 = vld [vmem:[%s5291_s9 + $0xea0] sm:$0xff]  ;;  %v3820_v54 = vld [vmem:[%s5291_s9 + $0xea8] sm:$0xff] }
 0x372   : > { %3733 = vst [vmem:[%s6824_s25 + $0x1a48] sm:$0xff] %v3732_v10  ;;  %3735 = vst [vmem:[%s6824_s25 + $0x1a50] sm:$0xff] %v3734_v11  ;;  %v3822_v55 = vld [vmem:[%s5291_s9 + $0xeb0] sm:$0xff]  ;;  %v3824_v56 = vld [vmem:[%s5291_s9 + $0xeb8] sm:$0xff] }
 0x373   : > { %3737 = vst [vmem:[%s6824_s25 + $0x1a58] sm:$0xff] %v3736_v12  ;;  %3739 = vst [vmem:[%s6824_s25 + $0x1a60] sm:$0xff] %v3738_v13  ;;  %v3826_v57 = vld [vmem:[%s5291_s9 + $0xec0] sm:$0xff]  ;;  %v3828_v58 = vld [vmem:[%s5291_s9 + $0xec8] sm:$0xff] }
 0x374   : > { %3741 = vst [vmem:[%s6824_s25 + $0x1a68] sm:$0xff] %v3740_v14  ;;  %3743 = vst [vmem:[%s6824_s25 + $0x1a70] sm:$0xff] %v3742_v15  ;;  %v3830_v59 = vld [vmem:[%s5291_s9 + $0xed0] sm:$0xff]  ;;  %v3832_v60 = vld [vmem:[%s5291_s9 + $0xed8] sm:$0xff] }
 0x375   : > { %3745 = vst [vmem:[%s6824_s25 + $0x1a78] sm:$0xff] %v3744_v16  ;;  %3747 = vst [vmem:[%s6824_s25 + $0x1a80] sm:$0xff] %v3746_v17  ;;  %v3834_v61 = vld [vmem:[%s5291_s9 + $0xee0] sm:$0xff]  ;;  %v3836_v62 = vld [vmem:[%s5291_s9 + $0xee8] sm:$0xff] }
 0x376   : > { %3749 = vst [vmem:[%s6824_s25 + $0x1a88] sm:$0xff] %v3748_v19  ;;  %3751 = vst [vmem:[%s6824_s25 + $0x1a90] sm:$0xff] %v3750_v21  ;;  %v3838_v63 = vld [vmem:[%s5291_s9 + $0xef0] sm:$0xff]  ;;  %v3840_v0 = vld [vmem:[%s5291_s9 + $0xef8] sm:$0xff] }
 0x377   : > { %3753 = vst [vmem:[%s6824_s25 + $0x1a98] sm:$0xff] %v3752_v23  ;;  %3755 = vst [vmem:[%s6824_s25 + $0x1aa0] sm:$0xff] %v3754_v25  ;;  %v3842_v1 = vld [vmem:[%s5291_s9 + $0xf00] sm:$0xff]  ;;  %v3844_v2 = vld [vmem:[%s5291_s9 + $0xf08] sm:$0xff] }
 0x378   : > { %3757 = vst [vmem:[%s6824_s25 + $0x1aa8] sm:$0xff] %v3756_v27  ;;  %3759 = vst [vmem:[%s6824_s25 + $0x1ab0] sm:$0xff] %v3758_v29  ;;  %v3846_v3 = vld [vmem:[%s5291_s9 + $0xf10] sm:$0xff]  ;;  %v3848_v4 = vld [vmem:[%s5291_s9 + $0xf18] sm:$0xff] }
 0x379   : > { %3761 = vst [vmem:[%s6824_s25 + $0x1ab8] sm:$0xff] %v3760_v31  ;;  %3763 = vst [vmem:[%s6824_s25 + $0x1ac0] sm:$0xff] %v3762_v34  ;;  %v3850_v5 = vld [vmem:[%s5291_s9 + $0xf20] sm:$0xff]  ;;  %v3852_v6 = vld [vmem:[%s5291_s9 + $0xf28] sm:$0xff] }
 0x37a   : > { %3765 = vst [vmem:[%s6824_s25 + $0x1ac8] sm:$0xff] %v3764_v36  ;;  %3767 = vst [vmem:[%s6824_s25 + $0x1ad0] sm:$0xff] %v3766_v38  ;;  %v3854_v7 = vld [vmem:[%s5291_s9 + $0xf30] sm:$0xff]  ;;  %v3856_v8 = vld [vmem:[%s5291_s9 + $0xf38] sm:$0xff] }
 0x37b   : > { %3769 = vst [vmem:[%s6824_s25 + $0x1ad8] sm:$0xff] %v3768_v33  ;;  %3771 = vst [vmem:[%s6824_s25 + $0x1ae0] sm:$0xff] %v3770_v18  ;;  %v3858_v9 = vld [vmem:[%s5291_s9 + $0xf40] sm:$0xff]  ;;  %v3860_v10 = vld [vmem:[%s5291_s9 + $0xf48] sm:$0xff] }
 0x37c   : > { %3773 = vst [vmem:[%s6824_s25 + $0x1ae8] sm:$0xff] %v3772_v20  ;;  %3775 = vst [vmem:[%s6824_s25 + $0x1af0] sm:$0xff] %v3774_v22  ;;  %v3862_v11 = vld [vmem:[%s5291_s9 + $0xf50] sm:$0xff]  ;;  %v3864_v12 = vld [vmem:[%s5291_s9 + $0xf58] sm:$0xff] }
 0x37d   : > { %3777 = vst [vmem:[%s6824_s25 + $0x1af8] sm:$0xff] %v3776_v24  ;;  %3779 = vst [vmem:[%s6824_s25 + $0x1c00] sm:$0xff] %v3778_v43  ;;  %v3866_v13 = vld [vmem:[%s5291_s9 + $0xf60] sm:$0xff]  ;;  %v3868_v14 = vld [vmem:[%s5291_s9 + $0xf68] sm:$0xff] }
 0x37e   : > { %3781 = vst [vmem:[%s6824_s25 + $0x1c08] sm:$0xff] %v3780_v44  ;;  %3783 = vst [vmem:[%s6824_s25 + $0x1c10] sm:$0xff] %v3782_v26  ;;  %v3870_v15 = vld [vmem:[%s5291_s9 + $0xf70] sm:$0xff]  ;;  %v3872_v16 = vld [vmem:[%s5291_s9 + $0xf78] sm:$0xff] }
 0x37f   : > { %3785 = vst [vmem:[%s6824_s25 + $0x1c18] sm:$0xff] %v3784_v45  ;;  %3787 = vst [vmem:[%s6824_s25 + $0x1c20] sm:$0xff] %v3786_v28  ;;  %v3874_v17 = vld [vmem:[%s5291_s9 + $0xf80] sm:$0xff]  ;;  %v3876_v19 = vld [vmem:[%s5291_s9 + $0xf88] sm:$0xff] }
 0x380   : > { %3789 = vst [vmem:[%s6824_s25 + $0x1c28] sm:$0xff] %v3788_v46  ;;  %3791 = vst [vmem:[%s6824_s25 + $0x1c30] sm:$0xff] %v3790_v30  ;;  %v3878_v21 = vld [vmem:[%s5291_s9 + $0xf90] sm:$0xff]  ;;  %v3880_v23 = vld [vmem:[%s5291_s9 + $0xf98] sm:$0xff] }
 0x381   : > { %3793 = vst [vmem:[%s6824_s25 + $0x1c38] sm:$0xff] %v3792_v47  ;;  %3795 = vst [vmem:[%s6824_s25 + $0x1c40] sm:$0xff] %v3794_v32  ;;  %v3882_v25 = vld [vmem:[%s5291_s9 + $0xfa0] sm:$0xff]  ;;  %v3884_v27 = vld [vmem:[%s5291_s9 + $0xfa8] sm:$0xff] }
 0x382   : > { %3797 = vst [vmem:[%s6824_s25 + $0x1c48] sm:$0xff] %v3796_v48  ;;  %3799 = vst [vmem:[%s6824_s25 + $0x1c50] sm:$0xff] %v3798_v35  ;;  %v3886_v29 = vld [vmem:[%s5291_s9 + $0xfb0] sm:$0xff]  ;;  %v3888_v31 = vld [vmem:[%s5291_s9 + $0xfb8] sm:$0xff] }
 0x383   : > { %3801 = vst [vmem:[%s6824_s25 + $0x1c58] sm:$0xff] %v3800_v49  ;;  %3803 = vst [vmem:[%s6824_s25 + $0x1c60] sm:$0xff] %v3802_v37  ;;  %v3890_v34 = vld [vmem:[%s5291_s9 + $0xfc0] sm:$0xff]  ;;  %v3892_v36 = vld [vmem:[%s5291_s9 + $0xfc8] sm:$0xff] }
 0x384   : > { %3805 = vst [vmem:[%s6824_s25 + $0x1c68] sm:$0xff] %v3804_v50  ;;  %3807 = vst [vmem:[%s6824_s25 + $0x1c70] sm:$0xff] %v3806_v39  ;;  %v3894_v38 = vld [vmem:[%s5291_s9 + $0xfd0] sm:$0xff]  ;;  %v3896_v33 = vld [vmem:[%s5291_s9 + $0xfd8] sm:$0xff] }
 0x385   : > { %3809 = vst [vmem:[%s6824_s25 + $0x1c78] sm:$0xff] %v3808_v51  ;;  %3811 = vst [vmem:[%s6824_s25 + $0x1c80] sm:$0xff] %v3810_v40  ;;  %v3898_v18 = vld [vmem:[%s5291_s9 + $0xfe0] sm:$0xff]  ;;  %v3900_v20 = vld [vmem:[%s5291_s9 + $0xfe8] sm:$0xff] }
 0x386   : > { %3813 = vst [vmem:[%s6824_s25 + $0x1c88] sm:$0xff] %v3812_v52  ;;  %3815 = vst [vmem:[%s6824_s25 + $0x1c90] sm:$0xff] %v3814_v42  ;;  %v3902_v22 = vld [vmem:[%s5291_s9 + $0xff0] sm:$0xff]  ;;  %v3904_v24 = vld [vmem:[%s5291_s9 + $0xff8] sm:$0xff] }
 0x387   : > { %3817 = vst [vmem:[%s6824_s25 + $0x1c98] sm:$0xff] %v3816_v41  ;;  %3819 = vst [vmem:[%s6824_s25 + $0x1ca0] sm:$0xff] %v3818_v53 }
 0x388   : > { %3821 = vst [vmem:[%s6824_s25 + $0x1ca8] sm:$0xff] %v3820_v54  ;;  %3823 = vst [vmem:[%s6824_s25 + $0x1cb0] sm:$0xff] %v3822_v55 }
 0x389   : > { %3825 = vst [vmem:[%s6824_s25 + $0x1cb8] sm:$0xff] %v3824_v56  ;;  %3827 = vst [vmem:[%s6824_s25 + $0x1cc0] sm:$0xff] %v3826_v57 }
 0x38a   : > { %3829 = vst [vmem:[%s6824_s25 + $0x1cc8] sm:$0xff] %v3828_v58  ;;  %3831 = vst [vmem:[%s6824_s25 + $0x1cd0] sm:$0xff] %v3830_v59 }
 0x38b   : > { %3833 = vst [vmem:[%s6824_s25 + $0x1cd8] sm:$0xff] %v3832_v60  ;;  %3835 = vst [vmem:[%s6824_s25 + $0x1ce0] sm:$0xff] %v3834_v61 }
 0x38c   : > { %3837 = vst [vmem:[%s6824_s25 + $0x1ce8] sm:$0xff] %v3836_v62  ;;  %3839 = vst [vmem:[%s6824_s25 + $0x1cf0] sm:$0xff] %v3838_v63 }
 0x38d   : > { %3841 = vst [vmem:[%s6824_s25 + $0x1cf8] sm:$0xff] %v3840_v0  ;;  %3843 = vst [vmem:[%s6824_s25 + $0x1e00] sm:$0xff] %v3842_v1 }
 0x38e   : > { %3845 = vst [vmem:[%s6824_s25 + $0x1e08] sm:$0xff] %v3844_v2  ;;  %3847 = vst [vmem:[%s6824_s25 + $0x1e10] sm:$0xff] %v3846_v3 }
 0x38f   : > { %3849 = vst [vmem:[%s6824_s25 + $0x1e18] sm:$0xff] %v3848_v4  ;;  %3851 = vst [vmem:[%s6824_s25 + $0x1e20] sm:$0xff] %v3850_v5 }
 0x390   : > { %3853 = vst [vmem:[%s6824_s25 + $0x1e28] sm:$0xff] %v3852_v6  ;;  %3855 = vst [vmem:[%s6824_s25 + $0x1e30] sm:$0xff] %v3854_v7 }
 0x391   : > { %3857 = vst [vmem:[%s6824_s25 + $0x1e38] sm:$0xff] %v3856_v8  ;;  %3859 = vst [vmem:[%s6824_s25 + $0x1e40] sm:$0xff] %v3858_v9 }
 0x392   : > { %3861 = vst [vmem:[%s6824_s25 + $0x1e48] sm:$0xff] %v3860_v10  ;;  %3863 = vst [vmem:[%s6824_s25 + $0x1e50] sm:$0xff] %v3862_v11 }
 0x393   : > { %3865 = vst [vmem:[%s6824_s25 + $0x1e58] sm:$0xff] %v3864_v12  ;;  %3867 = vst [vmem:[%s6824_s25 + $0x1e60] sm:$0xff] %v3866_v13 }
 0x394   : > { %3869 = vst [vmem:[%s6824_s25 + $0x1e68] sm:$0xff] %v3868_v14  ;;  %3871 = vst [vmem:[%s6824_s25 + $0x1e70] sm:$0xff] %v3870_v15 }
 0x395   : > { %3873 = vst [vmem:[%s6824_s25 + $0x1e78] sm:$0xff] %v3872_v16  ;;  %3875 = vst [vmem:[%s6824_s25 + $0x1e80] sm:$0xff] %v3874_v17 }
 0x396   : > { %3877 = vst [vmem:[%s6824_s25 + $0x1e88] sm:$0xff] %v3876_v19  ;;  %3879 = vst [vmem:[%s6824_s25 + $0x1e90] sm:$0xff] %v3878_v21 }
 0x397   : > { %3881 = vst [vmem:[%s6824_s25 + $0x1e98] sm:$0xff] %v3880_v23  ;;  %3883 = vst [vmem:[%s6824_s25 + $0x1ea0] sm:$0xff] %v3882_v25 }
 0x398   : > { %3885 = vst [vmem:[%s6824_s25 + $0x1ea8] sm:$0xff] %v3884_v27  ;;  %3887 = vst [vmem:[%s6824_s25 + $0x1eb0] sm:$0xff] %v3886_v29 }
 0x399   : > { %3889 = vst [vmem:[%s6824_s25 + $0x1eb8] sm:$0xff] %v3888_v31  ;;  %3891 = vst [vmem:[%s6824_s25 + $0x1ec0] sm:$0xff] %v3890_v34 }
 0x39a   : > { %3893 = vst [vmem:[%s6824_s25 + $0x1ec8] sm:$0xff] %v3892_v36  ;;  %3895 = vst [vmem:[%s6824_s25 + $0x1ed0] sm:$0xff] %v3894_v38 }
 0x39b   : > { %3897 = vst [vmem:[%s6824_s25 + $0x1ed8] sm:$0xff] %v3896_v33  ;;  %3899 = vst [vmem:[%s6824_s25 + $0x1ee0] sm:$0xff] %v3898_v18 }
 0x39c   : > { %3901 = vst [vmem:[%s6824_s25 + $0x1ee8] sm:$0xff] %v3900_v20  ;;  %3903 = vst [vmem:[%s6824_s25 + $0x1ef0] sm:$0xff] %v3902_v22 }
 0x39d   : > { %3905 = vst [vmem:[%s6824_s25 + $0x1ef8] sm:$0xff] %v3904_v24 }
 0x39e PF: > { %s12_s13 = sadd.s32 1, %s4094_s13   ;;  %s7866_s9 = smov %s4082_s10 }
 0x39f   : > { %p9_p11 = scmp.ge.s32.totalorder %s12_s13, 4   ;;  %s7867_s10 = smov %s4152_s19 }
 0x3a0   : > { %s7868_s11 = smov %s4090_s12  ;;  %s7869_s12 = smov %s7871_s14 }
 0x3a1   :  { %11 = sbr.rel (!%p9_p11) target bundleno = 3 (0x3), region = 112 }

</bundles_post_ra>
